<compile_context>
chip_gen: v7x
topology: tpu7x:2x2x1
jax: 0.10.0
libtpu: 0.0.40
codegen_flags: <defaults>
</compile_context>

<pallas_src>
import functools

import jax
import jax.numpy as jnp
from jax.experimental import pallas as pl
from jax.experimental.pallas import tpu as pltpu

LANE = 128      # conv output channels / fc dim padded to multiples of this
CIN0_PAD = 8    # first-layer input channels padded 3 -> 8 (NOT 128)
OFF = 8         # sublane-aligned column offset of the image interior inside the halo buffer


def _pick_strip(out_rows, target=32):
    """Largest divisor of out_rows that is <= target (strip height in output rows)."""
    hs = 1
    for d in range(1, out_rows + 1):
        if out_rows % d == 0 and d <= target:
            hs = d
    return hs


# ----------------------------------------------------------------------------
# Conv block kernel: conv3x3(pad=1) + folded-BN + ReLU + maxpool(2), one row strip.
# ----------------------------------------------------------------------------
def _make_conv_bn_relu_pool_kernel(H, W, Cin, Cout, hs):
    RS = 2 * hs            # input rows per strip
    WP = W + 2 * OFF       # padded halo-buffer width (interior at column OFF)

    def kernel(x_ref, xt_ref, xb_ref, w_ref, sb_ref, o_ref, xpad_ref, col_ref):
        # x_ref   : (1, RS, W, Cin)   strip of input rows                (bf16)
        # xt_ref  : (1, 1, W, Cin)    row just above the strip (clamped) (bf16)
        # xb_ref  : (1, 1, W, Cin)    row just below the strip (clamped) (bf16)
        # w_ref   : (9*Cin, Cout)     rows ordered (dy*3+dx)*Cin + cin   (bf16)
        # sb_ref  : (2, Cout)         row0 = eff_scale, row1 = eff_bias  (f32)
        # o_ref   : (1, hs, W//2, Cout)                                  (bf16)
        # xpad_ref: VMEM (RS+2, WP, Cin)   strip + 1-row/1-col zero halo
        # col_ref : VMEM (RS*W, 3*Cin)     per-dy im2col matrix
        s = pl.program_id(1)
        ns = pl.num_programs(1)
        zcol = jnp.zeros((RS + 2, 1, Cin), xpad_ref.dtype)
        zrow = jnp.zeros((1, W, Cin), xpad_ref.dtype)

        # Left / right halo columns (never overwritten by data; cheap per-step zero,
        # kept per-step instead of program_id==0-guarded for megacore-scratch safety).
        xpad_ref[:, pl.ds(OFF - 1, 1), :] = zcol
        xpad_ref[:, pl.ds(OFF + W, 1), :] = zcol

        # Strip interior (sublane-aligned store at column OFF).
        xpad_ref[pl.ds(1, RS), pl.ds(OFF, W), :] = x_ref[0]

        # Top halo row: zero at the image top edge, neighbour row otherwise.
        @pl.when(s == 0)
        def _():
            xpad_ref[pl.ds(0, 1), pl.ds(OFF, W), :] = zrow

        @pl.when(s > 0)
        def _():
            xpad_ref[pl.ds(0, 1), pl.ds(OFF, W), :] = xt_ref[0]

        # Bottom halo row: zero at the image bottom edge, neighbour row otherwise.
        @pl.when(s == ns - 1)
        def _():
            xpad_ref[pl.ds(RS + 1, 1), pl.ds(OFF, W), :] = zrow

        @pl.when(s < ns - 1)
        def _():
            xpad_ref[pl.ds(RS + 1, 1), pl.ds(OFF, W), :] = xb_ref[0]

        # Per-dy im2col + accumulated MXU dot (K = 3*Cin per dot, 3x smaller col scratch).
        acc = None
        for dy in range(3):
            for dx in range(3):
                tap = xpad_ref[pl.ds(dy, RS), pl.ds(OFF - 1 + dx, W), :]
                col_ref[:, pl.ds(dx * Cin, Cin)] = tap.reshape(RS * W, Cin)
            part = jnp.dot(col_ref[...],
                           w_ref[dy * 3 * Cin:(dy + 1) * 3 * Cin, :],
                           preferred_element_type=jnp.float32)
            acc = part if acc is None else acc + part

        # Folded conv-bias + BN, ReLU (f32), then downcast BEFORE the pool (bit-identical).
        y = jnp.maximum(acc * sb_ref[0] + sb_ref[1], 0.0).astype(jnp.bfloat16)

        # 2x2 max pool, stride 2 (H-pool is a free outer-dim split; W-pool one relayout).
        y = y.reshape(hs, 2, W, Cout).max(axis=1)          # (hs, W, Cout)
        y = y.reshape(hs, W // 2, 2, Cout).max(axis=2)     # (hs, W//2, Cout)
        o_ref[0] = y

    return kernel


def conv_block(x_nhwc, w2d, sb):
    """One conv3x3(pad=1)+BN+ReLU+MaxPool2 block.  x_nhwc: (N, H, W, Cin) bf16."""
    N, H, W, Cin = x_nhwc.shape
    Cout = w2d.shape[1]
    assert w2d.shape == (9 * Cin, Cout)
    out_rows = H // 2
    hs = _pick_strip(out_rows)          # strip height (output rows); ~32 at real sizes
    RS = 2 * hs
    S = out_rows // hs
    WP = W + 2 * OFF

    # Explicit VMEM budget: scratch + 2x double-buffered in/out blocks, capped for v7x.
    bf = 2
    scratch_b = (RS + 2) * WP * Cin * bf + RS * W * 3 * Cin * bf
    block_b = (RS * W * Cin + 2 * W * Cin + 9 * Cin * Cout) * bf + 2 * Cout * 4 \
        + hs * (W // 2) * Cout * bf
    vmem_limit = int(min(max(scratch_b + 2 * block_b + (4 << 20), 8 << 20), 64 << 20))

    return pl.pallas_call(
        _make_conv_bn_relu_pool_kernel(H, W, Cin, Cout, hs),
        out_shape=jax.ShapeDtypeStruct((N, out_rows, W // 2, Cout), jnp.bfloat16),
        grid=(N, S),
        in_specs=[
            pl.BlockSpec((1, RS, W, Cin), lambda b, s: (b, s, 0, 0)),
            # 1-row halo views of the same array; clamped at the edges (edge rows are
            # overwritten with zeros in-kernel under pl.when).
            pl.BlockSpec((1, 1, W, Cin),
                         lambda b, s: (b, jnp.maximum(s * RS - 1, 0), 0, 0)),
            pl.BlockSpec((1, 1, W, Cin),
                         lambda b, s: (b, jnp.minimum((s + 1) * RS, H - 1), 0, 0)),
            pl.BlockSpec((9 * Cin, Cout), lambda b, s: (0, 0)),   # weights resident
            pl.BlockSpec((2, Cout), lambda b, s: (0, 0)),
        ],
        out_specs=pl.BlockSpec((1, hs, W // 2, Cout), lambda b, s: (b, s, 0, 0)),
        scratch_shapes=[
            pltpu.VMEM((RS + 2, WP, Cin), jnp.bfloat16),   # zero-halo strip buffer
            pltpu.VMEM((RS * W, 3 * Cin), jnp.bfloat16),   # per-dy im2col matrix
        ],
        compiler_params=pltpu.CompilerParams(
            dimension_semantics=("parallel", "parallel"),
            vmem_limit_bytes=vmem_limit),
    )(x_nhwc, x_nhwc, x_nhwc, w2d, sb)


# ----------------------------------------------------------------------------
# FC (K-tiled) + fused heads kernel (single lane-dense output).
# ----------------------------------------------------------------------------
def _fc_heads_kernel(x_ref, w1_ref, b1_ref, wh_ref, bh_ref, o_ref, hacc_ref):
    k = pl.program_id(0)

    @pl.when(k == 0)
    def _():
        hacc_ref[...] = jnp.zeros_like(hacc_ref)

    hacc_ref[...] += jnp.dot(x_ref[...], w1_ref[...],
                             preferred_element_type=jnp.float32)

    @pl.when(k == pl.num_programs(0) - 1)
    def _():
        h = jnp.maximum(hacc_ref[...] + b1_ref[...], 0.0)   # FC bias + ReLU
        # Dropout(p) is identity in inference mode.
        o_ref[...] = jnp.dot(h, wh_ref[...],
                             preferred_element_type=jnp.float32) + bh_ref[...]


def _pick_tk(K, FCP, budget_bytes=24 << 20):
    """Largest multiple-of-128 divisor of K whose double-buffered w1 block fits budget."""
    best = 128
    for t in range(128, K + 1, 128):
        if K % t == 0 and 2 * t * FCP * 2 <= budget_bytes:
            best = t
    return best


def fc_and_heads(x_flat, w1, b1, wh, bh):
    """FC + ReLU (+Dropout=id) then both heads fused into one (N, NH_pad) output."""
    N, K = x_flat.shape
    FCP = w1.shape[1]
    NHP = wh.shape[1]
    TK = _pick_tk(K, FCP)

    block_b = (N * TK + TK * FCP) * 2 + FCP * 4 + FCP * NHP * 4 + NHP * 4 + N * NHP * 4
    vmem_limit = int(min(max(2 * block_b + N * FCP * 4 + (4 << 20), 8 << 20), 64 << 20))

    return pl.pallas_call(
        _fc_heads_kernel,
        out_shape=jax.ShapeDtypeStruct((N, NHP), jnp.float32),
        grid=(K // TK,),
        in_specs=[
            pl.BlockSpec((N, TK), lambda k: (0, k)),
            pl.BlockSpec((TK, FCP), lambda k: (k, 0)),
            pl.BlockSpec((1, FCP), lambda k: (0, 0)),
            pl.BlockSpec((FCP, NHP), lambda k: (0, 0)),
            pl.BlockSpec((1, NHP), lambda k: (0, 0)),
        ],
        out_specs=pl.BlockSpec((N, NHP), lambda k: (0, 0)),
        scratch_shapes=[pltpu.VMEM((N, FCP), jnp.float32)],
        compiler_params=pltpu.CompilerParams(
            dimension_semantics=("arbitrary",),
            vmem_limit_bytes=vmem_limit),
    )(x_flat, w1, b1, wh, bh)


# ----------------------------------------------------------------------------
# Parameter init (folds BN, layout padding and the NCHW flatten permutation).
# ----------------------------------------------------------------------------
def init_params(key, num_conv, num_filters, fc_dim, num_p, num_r, img_hw, use_bn=True):
    eps = 1e-5
    params = {"conv": []}
    in_ch, in_pad, hw = 3, CIN0_PAD, img_hw
    for _ in range(num_conv):
        key, k1, k2, k3, k4, k5, k6 = jax.random.split(key, 7)
        w = 0.1 * jax.random.normal(k1, (3, 3, in_ch, num_filters), jnp.float32)
        conv_b = 0.1 * jax.random.normal(k2, (num_filters,), jnp.float32)
        if use_bn:
            gamma = 1.0 + 0.1 * jax.random.normal(k3, (num_filters,), jnp.float32)
            beta = 0.1 * jax.random.normal(k4, (num_filters,), jnp.float32)
            mean = 0.1 * jax.random.normal(k5, (num_filters,), jnp.float32)
            var = jnp.abs(jax.random.normal(k6, (num_filters,), jnp.float32)) + 0.5
        else:
            gamma = jnp.ones((num_filters,), jnp.float32)
            beta = jnp.zeros((num_filters,), jnp.float32)
            mean = jnp.zeros((num_filters,), jnp.float32)
            var = jnp.ones((num_filters,), jnp.float32) - eps
        eff_scale = gamma / jnp.sqrt(var + eps)
        eff_bias = beta + eff_scale * (conv_b - mean)
        # Lane-dense im2col layout: pad Cin to in_pad (8 for layer 1, 128 after), Cout to 128.
        w_pad = jnp.pad(w, ((0, 0), (0, 0), (0, in_pad - in_ch), (0, LANE - num_filters)))
        w2d = w_pad.reshape(9 * in_pad, LANE).astype(jnp.bfloat16)
        sb = jnp.stack([jnp.pad(eff_scale, (0, LANE - num_filters)),
                        jnp.pad(eff_bias, (0, LANE - num_filters))], axis=0)  # (2,128) f32
        params["conv"].append((w2d, sb))
        in_ch, in_pad, hw = num_filters, LANE, hw // 2

    flat_real = num_filters * hw * hw                    # PyTorch flat_size for this input
    fc_pad = ((fc_dim + LANE - 1) // LANE) * LANE
    nh = num_p + num_r
    nh_pad = ((nh + LANE - 1) // LANE) * LANE
    key, k1, k2, k3, k4, k5, k6 = jax.random.split(key, 7)

    # FC weight in PyTorch NCHW-flatten row order; fold the NCHW->NHWC flatten permutation
    # + channel / fc zero-padding so the forward can flatten the NHWC conv output directly.
    w1 = 0.05 * jax.random.normal(k1, (flat_real, fc_dim), jnp.float32)
    b1 = 0.05 * jax.random.normal(k2, (fc_dim,), jnp.float32)
    w1 = w1.reshape(num_filters, hw, hw, fc_dim)         # rows ordered (C, H, W)
    w1 = jnp.transpose(w1, (1, 2, 0, 3))                 # -> NHWC row order (H, W, C)
    w1 = jnp.pad(w1, ((0, 0), (0, 0), (0, LANE - num_filters), (0, fc_pad - fc_dim)))
    params["fc_w"] = w1.reshape(hw * hw * LANE, fc_pad).astype(jnp.bfloat16)
    params["fc_b"] = jnp.pad(b1, (0, fc_pad - fc_dim)).reshape(1, fc_pad)

    # Fused head weights, padded to a lane-dense 128-wide output (split in the wrapper).
    wp = 0.05 * jax.random.normal(k3, (fc_dim, num_p), jnp.float32)
    bp = 0.05 * jax.random.normal(k4, (num_p,), jnp.float32)
    wr = 0.05 * jax.random.normal(k5, (fc_dim, num_r), jnp.float32)
    br = 0.05 * jax.random.normal(k6, (num_r,), jnp.float32)
    wh = jnp.concatenate([wp, wr], axis=1)               # (fc_dim, nh)
    params["head_w"] = jnp.pad(wh, ((0, fc_pad - fc_dim), (0, nh_pad - nh)))
    params["head_b"] = jnp.pad(jnp.concatenate([bp, br]), (0, nh_pad - nh)).reshape(1, nh_pad)
    return params


# ----------------------------------------------------------------------------
# Forward pass.
# ----------------------------------------------------------------------------
@functools.partial(jax.jit, static_argnames=("num_p", "num_r"))
def searchable_cnn_forward(params, x_nchw, *, num_p, num_r):
    # PyTorch forward takes NCHW; convert once to NHWC, pad channels only to 8, bf16.
    cin_pad = params["conv"][0][0].shape[0] // 9          # 8 for the first layer
    x = jnp.transpose(x_nchw, (0, 2, 3, 1)).astype(jnp.bfloat16)
    x = jnp.pad(x, ((0, 0), (0, 0), (0, 0), (0, cin_pad - x.shape[-1])))
    for (w2d, sb) in params["conv"]:
        x = conv_block(x, w2d, sb)
    # Flatten directly in NHWC; the NCHW flatten permutation lives inside fc_w.
    N = x.shape[0]
    x_flat = x.reshape(N, -1)
    out = fc_and_heads(x_flat, params["fc_w"], params["fc_b"],
                       params["head_w"], params["head_b"])
    return out[:, :num_p], out[:, num_p:num_p + num_r]


# ----------------------------------------------------------------------------
if __name__ == "__main__":
    # Small config: num_conv=2, num_filters=8, fc_dim=32, num_p=4, num_r=4,
    # dropout_rate=0.5 (identity at inference), use_bn=True.  Input 3x16x16 instead of
    # 3x224x224; flat_size derives from the actual spatial size, as in the PyTorch code.
    NUM_CONV, NUM_FILTERS, FC_DIM, NUM_P, NUM_R = 2, 8, 32, 4, 4
    BATCH, IMG = 2, 16

    key = jax.random.PRNGKey(0)
    key, kx = jax.random.split(key)
    x = jax.random.normal(kx, (BATCH, 3, IMG, IMG), jnp.float32)  # NCHW like PyTorch

    params = init_params(key, NUM_CONV, NUM_FILTERS, FC_DIM, NUM_P, NUM_R,
                         img_hw=IMG, use_bn=True)

    out_p, out_r = searchable_cnn_forward(params, x, num_p=NUM_P, num_r=NUM_R)
    jax.block_until_ready((out_p, out_r))
    assert out_p.shape == (BATCH, NUM_P) and out_r.shape == (BATCH, NUM_R)
    print("KERNEL_OK")
</pallas_src>

<mosaic_0001>
module attributes {stable_mosaic.version = 11 : i64} {
  func.func @kernel(%arg0: i32, %arg1: i32, %arg2: memref<1x16x16x8xbf16, #tpu.memory_space<vmem>>, %arg3: memref<1x1x16x8xbf16, #tpu.memory_space<vmem>>, %arg4: memref<1x1x16x8xbf16, #tpu.memory_space<vmem>>, %arg5: memref<72x128xbf16, #tpu.memory_space<vmem>>, %arg6: memref<2x128xf32, #tpu.memory_space<vmem>>, %arg7: memref<1x8x8x128xbf16, #tpu.memory_space<vmem>>, %arg8: memref<18x32x8xbf16, #tpu.memory_space<vmem>>, %arg9: memref<256x24xbf16, #tpu.memory_space<vmem>>) attributes {dimension_semantics = [#tpu.dimension_semantics<parallel>, #tpu.dimension_semantics<parallel>], iteration_bounds = array<i64: 2, 1>, scalar_prefetch = 0 : i64, scratch_operands = 2 : i64, tpu.core_type = #tpu.core_type<tc>, window_params = [{transform_indices = @transform_0, window_bounds = array<i64: 1, 16, 16, 8>}, {transform_indices = @transform_1, window_bounds = array<i64: 1, 1, 16, 8>}, {transform_indices = @transform_2, window_bounds = array<i64: 1, 1, 16, 8>}, {pipeline_mode = #tpu.pipeline_mode<synchronous>, transform_indices = @transform_3, window_bounds = array<i64: 72, 128>}, {pipeline_mode = #tpu.pipeline_mode<synchronous>, transform_indices = @transform_4, window_bounds = array<i64: 2, 128>}, {transform_indices = @transform_5, window_bounds = array<i64: 1, 8, 8, 128>}]} {
    %cst = arith.constant 0.000000e+00 : bf16
    %0 = vector.broadcast %cst : bf16 to vector<18x1x8xbf16>
    %cst_0 = arith.constant 0.000000e+00 : bf16
    %1 = vector.broadcast %cst_0 : bf16 to vector<1x16x8xbf16>
    %c0 = arith.constant 0 : index
    %c7 = arith.constant 7 : index
    %c0_1 = arith.constant 0 : index
    %2 = vector.load %arg8[%c0, %c7, %c0_1] : memref<18x32x8xbf16, #tpu.memory_space<vmem>>, vector<18x1x8xbf16>
    tpu.vector_store %arg8[%c0, %c7, %c0_1], %0 {strides = array<i32>} : memref<18x32x8xbf16, #tpu.memory_space<vmem>>, vector<18x1x8xbf16>,
    %c0_2 = arith.constant 0 : index
    %c24 = arith.constant 24 : index
    %c0_3 = arith.constant 0 : index
    %3 = vector.load %arg8[%c0_2, %c24, %c0_3] : memref<18x32x8xbf16, #tpu.memory_space<vmem>>, vector<18x1x8xbf16>
    tpu.vector_store %arg8[%c0_2, %c24, %c0_3], %0 {strides = array<i32>} : memref<18x32x8xbf16, #tpu.memory_space<vmem>>, vector<18x1x8xbf16>,
    %c0_4 = arith.constant 0 : index
    %c0_5 = arith.constant 0 : index
    %c0_6 = arith.constant 0 : index
    %c0_7 = arith.constant 0 : index
    %4 = vector.load %arg2[%c0_4, %c0_5, %c0_6, %c0_7] : memref<1x16x16x8xbf16, #tpu.memory_space<vmem>>, vector<1x16x16x8xbf16>
    %5 = vector.shape_cast %4 : vector<1x16x16x8xbf16> to vector<16x16x8xbf16>
    %c1 = arith.constant 1 : index
    %c8 = arith.constant 8 : index
    %c0_8 = arith.constant 0 : index
    %6 = vector.load %arg8[%c1, %c8, %c0_8] : memref<18x32x8xbf16, #tpu.memory_space<vmem>>, vector<16x16x8xbf16>
    tpu.vector_store %arg8[%c1, %c8, %c0_8], %5 {strides = array<i32>} : memref<18x32x8xbf16, #tpu.memory_space<vmem>>, vector<16x16x8xbf16>,
    %c0_i32 = arith.constant 0 : i32
    %7 = arith.cmpi eq, %arg1, %c0_i32 : i32
    %8 = arith.extui %7 : i1 to i32
    %c0_i32_9 = arith.constant 0 : i32
    %9 = arith.cmpi ne, %8, %c0_i32_9 : i32
    scf.if %9 {
      %c0_83 = arith.constant 0 : index
      %c8_84 = arith.constant 8 : index
      %c0_85 = arith.constant 0 : index
      %77 = vector.load %arg8[%c0_83, %c8_84, %c0_85] : memref<18x32x8xbf16, #tpu.memory_space<vmem>>, vector<1x16x8xbf16>
      tpu.vector_store %arg8[%c0_83, %c8_84, %c0_85], %1 {strides = array<i32>} : memref<18x32x8xbf16, #tpu.memory_space<vmem>>, vector<1x16x8xbf16>,
    } else {
    }
    %c0_i32_10 = arith.constant 0 : i32
    %10 = arith.cmpi sgt, %arg1, %c0_i32_10 : i32
    %11 = arith.extui %10 : i1 to i32
    %c0_i32_11 = arith.constant 0 : i32
    %12 = arith.cmpi ne, %11, %c0_i32_11 : i32
    scf.if %12 {
      %c0_83 = arith.constant 0 : index
      %c0_84 = arith.constant 0 : index
      %c0_85 = arith.constant 0 : index
      %c0_86 = arith.constant 0 : index
      %77 = vector.load %arg3[%c0_83, %c0_84, %c0_85, %c0_86] : memref<1x1x16x8xbf16, #tpu.memory_space<vmem>>, vector<1x1x16x8xbf16>
      %78 = vector.shape_cast %77 : vector<1x1x16x8xbf16> to vector<1x16x8xbf16>
      %c0_87 = arith.constant 0 : index
      %c8_88 = arith.constant 8 : index
      %c0_89 = arith.constant 0 : index
      %79 = vector.load %arg8[%c0_87, %c8_88, %c0_89] : memref<18x32x8xbf16, #tpu.memory_space<vmem>>, vector<1x16x8xbf16>
      tpu.vector_store %arg8[%c0_87, %c8_88, %c0_89], %78 {strides = array<i32>} : memref<18x32x8xbf16, #tpu.memory_space<vmem>>, vector<1x16x8xbf16>,
    } else {
    }
    %c0_i32_12 = arith.constant 0 : i32
    %13 = arith.cmpi eq, %arg1, %c0_i32_12 : i32
    %14 = arith.extui %13 : i1 to i32
    %c0_i32_13 = arith.constant 0 : i32
    %15 = arith.cmpi ne, %14, %c0_i32_13 : i32
    scf.if %15 {
      %c17 = arith.constant 17 : index
      %c8_83 = arith.constant 8 : index
      %c0_84 = arith.constant 0 : index
      %77 = vector.load %arg8[%c17, %c8_83, %c0_84] : memref<18x32x8xbf16, #tpu.memory_space<vmem>>, vector<1x16x8xbf16>
      tpu.vector_store %arg8[%c17, %c8_83, %c0_84], %1 {strides = array<i32>} : memref<18x32x8xbf16, #tpu.memory_space<vmem>>, vector<1x16x8xbf16>,
    } else {
    }
    %c0_i32_14 = arith.constant 0 : i32
    %16 = arith.cmpi slt, %arg1, %c0_i32_14 : i32
    %17 = arith.extui %16 : i1 to i32
    %c0_i32_15 = arith.constant 0 : i32
    %18 = arith.cmpi ne, %17, %c0_i32_15 : i32
    scf.if %18 {
      %c0_83 = arith.constant 0 : index
      %c0_84 = arith.constant 0 : index
      %c0_85 = arith.constant 0 : index
      %c0_86 = arith.constant 0 : index
      %77 = vector.load %arg4[%c0_83, %c0_84, %c0_85, %c0_86] : memref<1x1x16x8xbf16, #tpu.memory_space<vmem>>, vector<1x1x16x8xbf16>
      %78 = vector.shape_cast %77 : vector<1x1x16x8xbf16> to vector<1x16x8xbf16>
      %c17 = arith.constant 17 : index
      %c8_87 = arith.constant 8 : index
      %c0_88 = arith.constant 0 : index
      %79 = vector.load %arg8[%c17, %c8_87, %c0_88] : memref<18x32x8xbf16, #tpu.memory_space<vmem>>, vector<1x16x8xbf16>
      tpu.vector_store %arg8[%c17, %c8_87, %c0_88], %78 {strides = array<i32>} : memref<18x32x8xbf16, #tpu.memory_space<vmem>>, vector<1x16x8xbf16>,
    } else {
    }
    %c0_16 = arith.constant 0 : index
    %c7_17 = arith.constant 7 : index
    %c0_18 = arith.constant 0 : index
    %19 = vector.load %arg8[%c0_16, %c7_17, %c0_18] : memref<18x32x8xbf16, #tpu.memory_space<vmem>>, vector<16x16x8xbf16>
    %20 = vector.shape_cast %19 : vector<16x16x8xbf16> to vector<256x8xbf16>
    %c0_19 = arith.constant 0 : index
    %c0_20 = arith.constant 0 : index
    %21 = vector.load %arg9[%c0_19, %c0_20] : memref<256x24xbf16, #tpu.memory_space<vmem>>, vector<256x8xbf16>
    tpu.vector_store %arg9[%c0_19, %c0_20], %20 {strides = array<i32>} : memref<256x24xbf16, #tpu.memory_space<vmem>>, vector<256x8xbf16>,
    %c0_21 = arith.constant 0 : index
    %c8_22 = arith.constant 8 : index
    %c0_23 = arith.constant 0 : index
    %22 = vector.load %arg8[%c0_21, %c8_22, %c0_23] : memref<18x32x8xbf16, #tpu.memory_space<vmem>>, vector<16x16x8xbf16>
    %23 = vector.shape_cast %22 : vector<16x16x8xbf16> to vector<256x8xbf16>
    %c0_24 = arith.constant 0 : index
    %c8_25 = arith.constant 8 : index
    %24 = vector.load %arg9[%c0_24, %c8_25] : memref<256x24xbf16, #tpu.memory_space<vmem>>, vector<256x8xbf16>
    tpu.vector_store %arg9[%c0_24, %c8_25], %23 {strides = array<i32>} : memref<256x24xbf16, #tpu.memory_space<vmem>>, vector<256x8xbf16>,
    %c0_26 = arith.constant 0 : index
    %c9 = arith.constant 9 : index
    %c0_27 = arith.constant 0 : index
    %25 = vector.load %arg8[%c0_26, %c9, %c0_27] : memref<18x32x8xbf16, #tpu.memory_space<vmem>>, vector<16x16x8xbf16>
    %26 = vector.shape_cast %25 : vector<16x16x8xbf16> to vector<256x8xbf16>
    %c0_28 = arith.constant 0 : index
    %c16 = arith.constant 16 : index
    %27 = vector.load %arg9[%c0_28, %c16] : memref<256x24xbf16, #tpu.memory_space<vmem>>, vector<256x8xbf16>
    tpu.vector_store %arg9[%c0_28, %c16], %26 {strides = array<i32>} : memref<256x24xbf16, #tpu.memory_space<vmem>>, vector<256x8xbf16>,
    %c0_29 = arith.constant 0 : index
    %c0_30 = arith.constant 0 : index
    %28 = vector.load %arg9[%c0_29, %c0_30] : memref<256x24xbf16, #tpu.memory_space<vmem>>, vector<256x24xbf16>
    %c0_31 = arith.constant 0 : index
    %c0_32 = arith.constant 0 : index
    %29 = vector.load %arg5[%c0_31, %c0_32] : memref<72x128xbf16, #tpu.memory_space<vmem>>, vector<24x128xbf16>
    %cst_33 = arith.constant dense<0.000000e+00> : vector<256x128xf32>
    %30 = tpu.matmul %28, %29, %cst_33 {dimension_numbers = #tpu.dot_dimension_numbers<[1], [0], [0], [1], [0, 0, 1, 1], [], []>} : vector<256x24xbf16>, vector<24x128xbf16>, vector<256x128xf32> -> vector<256x128xf32>
    %c1_34 = arith.constant 1 : index
    %c7_35 = arith.constant 7 : index
    %c0_36 = arith.constant 0 : index
    %31 = vector.load %arg8[%c1_34, %c7_35, %c0_36] : memref<18x32x8xbf16, #tpu.memory_space<vmem>>, vector<16x16x8xbf16>
    %32 = vector.shape_cast %31 : vector<16x16x8xbf16> to vector<256x8xbf16>
    %c0_37 = arith.constant 0 : index
    %c0_38 = arith.constant 0 : index
    %33 = vector.load %arg9[%c0_37, %c0_38] : memref<256x24xbf16, #tpu.memory_space<vmem>>, vector<256x8xbf16>
    tpu.vector_store %arg9[%c0_37, %c0_38], %32 {strides = array<i32>} : memref<256x24xbf16, #tpu.memory_space<vmem>>, vector<256x8xbf16>,
    %c1_39 = arith.constant 1 : index
    %c8_40 = arith.constant 8 : index
    %c0_41 = arith.constant 0 : index
    %34 = vector.load %arg8[%c1_39, %c8_40, %c0_41] : memref<18x32x8xbf16, #tpu.memory_space<vmem>>, vector<16x16x8xbf16>
    %35 = vector.shape_cast %34 : vector<16x16x8xbf16> to vector<256x8xbf16>
    %c0_42 = arith.constant 0 : index
    %c8_43 = arith.constant 8 : index
    %36 = vector.load %arg9[%c0_42, %c8_43] : memref<256x24xbf16, #tpu.memory_space<vmem>>, vector<256x8xbf16>
    tpu.vector_store %arg9[%c0_42, %c8_43], %35 {strides = array<i32>} : memref<256x24xbf16, #tpu.memory_space<vmem>>, vector<256x8xbf16>,
    %c1_44 = arith.constant 1 : index
    %c9_45 = arith.constant 9 : index
    %c0_46 = arith.constant 0 : index
    %37 = vector.load %arg8[%c1_44, %c9_45, %c0_46] : memref<18x32x8xbf16, #tpu.memory_space<vmem>>, vector<16x16x8xbf16>
    %38 = vector.shape_cast %37 : vector<16x16x8xbf16> to vector<256x8xbf16>
    %c0_47 = arith.constant 0 : index
    %c16_48 = arith.constant 16 : index
    %39 = vector.load %arg9[%c0_47, %c16_48] : memref<256x24xbf16, #tpu.memory_space<vmem>>, vector<256x8xbf16>
    tpu.vector_store %arg9[%c0_47, %c16_48], %38 {strides = array<i32>} : memref<256x24xbf16, #tpu.memory_space<vmem>>, vector<256x8xbf16>,
    %c0_49 = arith.constant 0 : index
    %c0_50 = arith.constant 0 : index
    %40 = vector.load %arg9[%c0_49, %c0_50] : memref<256x24xbf16, #tpu.memory_space<vmem>>, vector<256x24xbf16>
    %c24_51 = arith.constant 24 : index
    %c0_52 = arith.constant 0 : index
    %41 = vector.load %arg5[%c24_51, %c0_52] : memref<72x128xbf16, #tpu.memory_space<vmem>>, vector<24x128xbf16>
    %cst_53 = arith.constant dense<0.000000e+00> : vector<256x128xf32>
    %42 = tpu.matmul %40, %41, %cst_53 {dimension_numbers = #tpu.dot_dimension_numbers<[1], [0], [0], [1], [0, 0, 1, 1], [], []>} : vector<256x24xbf16>, vector<24x128xbf16>, vector<256x128xf32> -> vector<256x128xf32>
    %43 = arith.addf %30, %42 : vector<256x128xf32>
    %c2 = arith.constant 2 : index
    %c7_54 = arith.constant 7 : index
    %c0_55 = arith.constant 0 : index
    %44 = vector.load %arg8[%c2, %c7_54, %c0_55] : memref<18x32x8xbf16, #tpu.memory_space<vmem>>, vector<16x16x8xbf16>
    %45 = vector.shape_cast %44 : vector<16x16x8xbf16> to vector<256x8xbf16>
    %c0_56 = arith.constant 0 : index
    %c0_57 = arith.constant 0 : index
    %46 = vector.load %arg9[%c0_56, %c0_57] : memref<256x24xbf16, #tpu.memory_space<vmem>>, vector<256x8xbf16>
    tpu.vector_store %arg9[%c0_56, %c0_57], %45 {strides = array<i32>} : memref<256x24xbf16, #tpu.memory_space<vmem>>, vector<256x8xbf16>,
    %c2_58 = arith.constant 2 : index
    %c8_59 = arith.constant 8 : index
    %c0_60 = arith.constant 0 : index
    %47 = vector.load %arg8[%c2_58, %c8_59, %c0_60] : memref<18x32x8xbf16, #tpu.memory_space<vmem>>, vector<16x16x8xbf16>
    %48 = vector.shape_cast %47 : vector<16x16x8xbf16> to vector<256x8xbf16>
    %c0_61 = arith.constant 0 : index
    %c8_62 = arith.constant 8 : index
    %49 = vector.load %arg9[%c0_61, %c8_62] : memref<256x24xbf16, #tpu.memory_space<vmem>>, vector<256x8xbf16>
    tpu.vector_store %arg9[%c0_61, %c8_62], %48 {strides = array<i32>} : memref<256x24xbf16, #tpu.memory_space<vmem>>, vector<256x8xbf16>,
    %c2_63 = arith.constant 2 : index
    %c9_64 = arith.constant 9 : index
    %c0_65 = arith.constant 0 : index
    %50 = vector.load %arg8[%c2_63, %c9_64, %c0_65] : memref<18x32x8xbf16, #tpu.memory_space<vmem>>, vector<16x16x8xbf16>
    %51 = vector.shape_cast %50 : vector<16x16x8xbf16> to vector<256x8xbf16>
    %c0_66 = arith.constant 0 : index
    %c16_67 = arith.constant 16 : index
    %52 = vector.load %arg9[%c0_66, %c16_67] : memref<256x24xbf16, #tpu.memory_space<vmem>>, vector<256x8xbf16>
    tpu.vector_store %arg9[%c0_66, %c16_67], %51 {strides = array<i32>} : memref<256x24xbf16, #tpu.memory_space<vmem>>, vector<256x8xbf16>,
    %c0_68 = arith.constant 0 : index
    %c0_69 = arith.constant 0 : index
    %53 = vector.load %arg9[%c0_68, %c0_69] : memref<256x24xbf16, #tpu.memory_space<vmem>>, vector<256x24xbf16>
    %c48 = arith.constant 48 : index
    %c0_70 = arith.constant 0 : index
    %54 = vector.load %arg5[%c48, %c0_70] : memref<72x128xbf16, #tpu.memory_space<vmem>>, vector<24x128xbf16>
    %cst_71 = arith.constant dense<0.000000e+00> : vector<256x128xf32>
    %55 = tpu.matmul %53, %54, %cst_71 {dimension_numbers = #tpu.dot_dimension_numbers<[1], [0], [0], [1], [0, 0, 1, 1], [], []>} : vector<256x24xbf16>, vector<24x128xbf16>, vector<256x128xf32> -> vector<256x128xf32>
    %56 = arith.addf %43, %55 : vector<256x128xf32>
    %c0_72 = arith.constant 0 : index
    %c0_73 = arith.constant 0 : index
    %57 = vector.load %arg6[%c0_72, %c0_73] : memref<2x128xf32, #tpu.memory_space<vmem>>, vector<1x128xf32>
    %58 = vector.shape_cast %57 : vector<1x128xf32> to vector<128xf32>
    %59 = vector.shape_cast %58 : vector<128xf32> to vector<1x128xf32>
    %60 = vector.broadcast %59 : vector<1x128xf32> to vector<256x128xf32>
    %61 = arith.mulf %56, %60 : vector<256x128xf32>
    %c1_74 = arith.constant 1 : index
    %c0_75 = arith.constant 0 : index
    %62 = vector.load %arg6[%c1_74, %c0_75] : memref<2x128xf32, #tpu.memory_space<vmem>>, vector<1x128xf32>
    %63 = vector.shape_cast %62 : vector<1x128xf32> to vector<128xf32>
    %64 = vector.shape_cast %63 : vector<128xf32> to vector<1x128xf32>
    %65 = vector.broadcast %64 : vector<1x128xf32> to vector<256x128xf32>
    %66 = arith.addf %61, %65 : vector<256x128xf32>
    %cst_76 = arith.constant 0.000000e+00 : f32
    %67 = vector.broadcast %cst_76 : f32 to vector<256x128xf32>
    %68 = arith.maximumf %66, %67 : vector<256x128xf32>
    %69 = arith.truncf %68 : vector<256x128xf32> to vector<256x128xbf16>
    %70 = vector.shape_cast %69 : vector<256x128xbf16> to vector<8x2x16x128xbf16>
    %cst_77 = arith.constant dense<0xFF80> : vector<8x16x128xbf16>
    %71 = vector.multi_reduction <maximumf>, %70, %cst_77 [1] : vector<8x2x16x128xbf16> to vector<8x16x128xbf16>
    %72 = vector.shape_cast %71 : vector<8x16x128xbf16> to vector<8x8x2x128xbf16>
    %cst_78 = arith.constant dense<0xFF80> : vector<8x8x128xbf16>
    %73 = vector.multi_reduction <maximumf>, %72, %cst_78 [2] : vector<8x8x2x128xbf16> to vector<8x8x128xbf16>
    %c0_79 = arith.constant 0 : index
    %c0_80 = arith.constant 0 : index
    %c0_81 = arith.constant 0 : index
    %c0_82 = arith.constant 0 : index
    %74 = vector.load %arg7[%c0_79, %c0_80, %c0_81, %c0_82] : memref<1x8x8x128xbf16, #tpu.memory_space<vmem>>, vector<1x8x8x128xbf16>
    %75 = vector.shape_cast %74 : vector<1x8x8x128xbf16> to vector<8x8x128xbf16>
    %76 = vector.shape_cast %73 : vector<8x8x128xbf16> to vector<1x8x8x128xbf16>
    tpu.vector_store %arg7[%c0_79, %c0_80, %c0_81, %c0_82], %76 {strides = array<i32>} : memref<1x8x8x128xbf16, #tpu.memory_space<vmem>>, vector<1x8x8x128xbf16>,
    return
  }
  func.func @transform_0(%arg0: i32, %arg1: i32) -> (i32, i32, i32, i32) {
    %c0_i32 = arith.constant 0 : i32
    %c0_i32_0 = arith.constant 0 : i32
    %c0_i32_1 = arith.constant 0 : i32
    return %arg0, %arg1, %c0_i32, %c0_i32_0 : i32, i32, i32, i32
  }
  func.func @transform_1(%arg0: i32, %arg1: i32) -> (i32, i32, i32, i32) {
    %c16_i32 = arith.constant 16 : i32
    %0 = arith.muli %arg1, %c16_i32 : i32
    %c1_i32 = arith.constant 1 : i32
    %1 = arith.subi %0, %c1_i32 : i32
    %c0_i32 = arith.constant 0 : i32
    %2 = arith.maxsi %1, %c0_i32 : i32
    %c0_i32_0 = arith.constant 0 : i32
    %c0_i32_1 = arith.constant 0 : i32
    %c0_i32_2 = arith.constant 0 : i32
    return %arg0, %2, %c0_i32_0, %c0_i32_1 : i32, i32, i32, i32
  }
  func.func @transform_2(%arg0: i32, %arg1: i32) -> (i32, i32, i32, i32) {
    %c1_i32 = arith.constant 1 : i32
    %0 = arith.addi %arg1, %c1_i32 : i32
    %c16_i32 = arith.constant 16 : i32
    %1 = arith.muli %0, %c16_i32 : i32
    %c15_i32 = arith.constant 15 : i32
    %2 = arith.minsi %1, %c15_i32 : i32
    %c0_i32 = arith.constant 0 : i32
    %c0_i32_0 = arith.constant 0 : i32
    %c0_i32_1 = arith.constant 0 : i32
    return %arg0, %2, %c0_i32, %c0_i32_0 : i32, i32, i32, i32
  }
  func.func @transform_3(%arg0: i32, %arg1: i32) -> (i32, i32) {
    %c0_i32 = arith.constant 0 : i32
    %c0_i32_0 = arith.constant 0 : i32
    %c0_i32_1 = arith.constant 0 : i32
    return %c0_i32, %c0_i32_0 : i32, i32
  }
  func.func @transform_4(%arg0: i32, %arg1: i32) -> (i32, i32) {
    %c0_i32 = arith.constant 0 : i32
    %c0_i32_0 = arith.constant 0 : i32
    %c0_i32_1 = arith.constant 0 : i32
    return %c0_i32, %c0_i32_0 : i32, i32
  }
  func.func @transform_5(%arg0: i32, %arg1: i32) -> (i32, i32, i32, i32) {
    %c0_i32 = arith.constant 0 : i32
    %c0_i32_0 = arith.constant 0 : i32
    %c0_i32_1 = arith.constant 0 : i32
    return %arg0, %arg1, %c0_i32, %c0_i32_0 : i32, i32, i32, i32
  }
}

module attributes {stable_mosaic.version = 11 : i64} {
  func.func @_fc_heads_kernel(%arg0: i32, %arg1: memref<2x2048xbf16, #tpu.memory_space<vmem>>, %arg2: memref<2048x128xbf16, #tpu.memory_space<vmem>>, %arg3: memref<1x128xf32, #tpu.memory_space<vmem>>, %arg4: memref<128x128xf32, #tpu.memory_space<vmem>>, %arg5: memref<1x128xf32, #tpu.memory_space<vmem>>, %arg6: memref<2x128xf32, #tpu.memory_space<vmem>>, %arg7: memref<2x128xf32, #tpu.memory_space<vmem>>) attributes {dimension_semantics = [#tpu.dimension_semantics<arbitrary>], iteration_bounds = array<i64: 1>, scalar_prefetch = 0 : i64, scratch_operands = 1 : i64, tpu.core_type = #tpu.core_type<tc>, window_params = [{transform_indices = @transform_0, window_bounds = array<i64: 2, 2048>}, {transform_indices = @transform_1, window_bounds = array<i64: 2048, 128>}, {pipeline_mode = #tpu.pipeline_mode<synchronous>, transform_indices = @transform_2, window_bounds = array<i64: 1, 128>}, {pipeline_mode = #tpu.pipeline_mode<synchronous>, transform_indices = @transform_3, window_bounds = array<i64: 128, 128>}, {pipeline_mode = #tpu.pipeline_mode<synchronous>, transform_indices = @transform_4, window_bounds = array<i64: 1, 128>}, {pipeline_mode = #tpu.pipeline_mode<synchronous>, transform_indices = @transform_5, window_bounds = array<i64: 2, 128>}]} {
    %c0_i32 = arith.constant 0 : i32
    %0 = arith.cmpi eq, %arg0, %c0_i32 : i32
    %1 = arith.extui %0 : i1 to i32
    %c0_i32_0 = arith.constant 0 : i32
    %2 = arith.cmpi ne, %1, %c0_i32_0 : i32
    scf.if %2 {
      %cst_10 = arith.constant 0.000000e+00 : f32
      %12 = vector.broadcast %cst_10 : f32 to vector<2x128xf32>
      %c0_11 = arith.constant 0 : index
      %c0_12 = arith.constant 0 : index
      %13 = vector.load %arg7[%c0_11, %c0_12] : memref<2x128xf32, #tpu.memory_space<vmem>>, vector<2x128xf32>
      tpu.vector_store %arg7[%c0_11, %c0_12], %12 {strides = array<i32>} : memref<2x128xf32, #tpu.memory_space<vmem>>, vector<2x128xf32>,
    } else {
    }
    %c0 = arith.constant 0 : index
    %c0_1 = arith.constant 0 : index
    %3 = vector.load %arg7[%c0, %c0_1] : memref<2x128xf32, #tpu.memory_space<vmem>>, vector<2x128xf32>
    %c0_2 = arith.constant 0 : index
    %c0_3 = arith.constant 0 : index
    %4 = vector.load %arg1[%c0_2, %c0_3] : memref<2x2048xbf16, #tpu.memory_space<vmem>>, vector<2x2048xbf16>
    %c0_4 = arith.constant 0 : index
    %c0_5 = arith.constant 0 : index
    %5 = vector.load %arg2[%c0_4, %c0_5] : memref<2048x128xbf16, #tpu.memory_space<vmem>>, vector<2048x128xbf16>
    %cst = arith.constant dense<0.000000e+00> : vector<2x128xf32>
    %6 = tpu.matmul %4, %5, %cst {dimension_numbers = #tpu.dot_dimension_numbers<[1], [0], [0], [1], [0, 0, 1, 1], [], []>} : vector<2x2048xbf16>, vector<2048x128xbf16>, vector<2x128xf32> -> vector<2x128xf32>
    %7 = arith.addf %3, %6 : vector<2x128xf32>
    %c0_6 = arith.constant 0 : index
    %c0_7 = arith.constant 0 : index
    %8 = vector.load %arg7[%c0_6, %c0_7] : memref<2x128xf32, #tpu.memory_space<vmem>>, vector<2x128xf32>
    tpu.vector_store %arg7[%c0_6, %c0_7], %7 {strides = array<i32>} : memref<2x128xf32, #tpu.memory_space<vmem>>, vector<2x128xf32>,
    %c0_i32_8 = arith.constant 0 : i32
    %9 = arith.cmpi eq, %arg0, %c0_i32_8 : i32
    %10 = arith.extui %9 : i1 to i32
    %c0_i32_9 = arith.constant 0 : i32
    %11 = arith.cmpi ne, %10, %c0_i32_9 : i32
    scf.if %11 {
      %c0_10 = arith.constant 0 : index
      %c0_11 = arith.constant 0 : index
      %12 = vector.load %arg7[%c0_10, %c0_11] : memref<2x128xf32, #tpu.memory_space<vmem>>, vector<2x128xf32>
      %c0_12 = arith.constant 0 : index
      %c0_13 = arith.constant 0 : index
      %13 = vector.load %arg3[%c0_12, %c0_13] : memref<1x128xf32, #tpu.memory_space<vmem>>, vector<1x128xf32>
      %14 = vector.broadcast %13 : vector<1x128xf32> to vector<2x128xf32>
      %15 = arith.addf %12, %14 : vector<2x128xf32>
      %cst_14 = arith.constant 0.000000e+00 : f32
      %16 = vector.broadcast %cst_14 : f32 to vector<2x128xf32>
      %17 = arith.maximumf %15, %16 : vector<2x128xf32>
      %c0_15 = arith.constant 0 : index
      %c0_16 = arith.constant 0 : index
      %18 = vector.load %arg4[%c0_15, %c0_16] : memref<128x128xf32, #tpu.memory_space<vmem>>, vector<128x128xf32>
      %cst_17 = arith.constant dense<0.000000e+00> : vector<2x128xf32>
      %19 = tpu.matmul %17, %18, %cst_17 {dimension_numbers = #tpu.dot_dimension_numbers<[1], [0], [0], [1], [0, 0, 1, 1], [], []>} : vector<2x128xf32>, vector<128x128xf32>, vector<2x128xf32> -> vector<2x128xf32>
      %c0_18 = arith.constant 0 : index
      %c0_19 = arith.constant 0 : index
      %20 = vector.load %arg5[%c0_18, %c0_19] : memref<1x128xf32, #tpu.memory_space<vmem>>, vector<1x128xf32>
      %21 = vector.broadcast %20 : vector<1x128xf32> to vector<2x128xf32>
      %22 = arith.addf %19, %21 : vector<2x128xf32>
      %c0_20 = arith.constant 0 : index
      %c0_21 = arith.constant 0 : index
      %23 = vector.load %arg6[%c0_20, %c0_21] : memref<2x128xf32, #tpu.memory_space<vmem>>, vector<2x128xf32>
      tpu.vector_store %arg6[%c0_20, %c0_21], %22 {strides = array<i32>} : memref<2x128xf32, #tpu.memory_space<vmem>>, vector<2x128xf32>,
    } else {
    }
    return
  }
  func.func @transform_0(%arg0: i32) -> (i32, i32) {
    %c0_i32 = arith.constant 0 : i32
    %c0_i32_0 = arith.constant 0 : i32
    return %c0_i32, %arg0 : i32, i32
  }
  func.func @transform_1(%arg0: i32) -> (i32, i32) {
    %c0_i32 = arith.constant 0 : i32
    %c0_i32_0 = arith.constant 0 : i32
    return %arg0, %c0_i32 : i32, i32
  }
  func.func @transform_2(%arg0: i32) -> (i32, i32) {
    %c0_i32 = arith.constant 0 : i32
    %c0_i32_0 = arith.constant 0 : i32
    %c0_i32_1 = arith.constant 0 : i32
    return %c0_i32, %c0_i32_0 : i32, i32
  }
  func.func @transform_3(%arg0: i32) -> (i32, i32) {
    %c0_i32 = arith.constant 0 : i32
    %c0_i32_0 = arith.constant 0 : i32
    %c0_i32_1 = arith.constant 0 : i32
    return %c0_i32, %c0_i32_0 : i32, i32
  }
  func.func @transform_4(%arg0: i32) -> (i32, i32) {
    %c0_i32 = arith.constant 0 : i32
    %c0_i32_0 = arith.constant 0 : i32
    %c0_i32_1 = arith.constant 0 : i32
    return %c0_i32, %c0_i32_0 : i32, i32
  }
  func.func @transform_5(%arg0: i32) -> (i32, i32) {
    %c0_i32 = arith.constant 0 : i32
    %c0_i32_0 = arith.constant 0 : i32
    %c0_i32_1 = arith.constant 0 : i32
    return %c0_i32, %c0_i32_0 : i32, i32
  }
}

module attributes {stable_mosaic.version = 11 : i64} {
  func.func @kernel(%arg0: i32, %arg1: i32, %arg2: memref<1x8x8x128xbf16, #tpu.memory_space<vmem>>, %arg3: memref<1x1x8x128xbf16, #tpu.memory_space<vmem>>, %arg4: memref<1x1x8x128xbf16, #tpu.memory_space<vmem>>, %arg5: memref<1152x128xbf16, #tpu.memory_space<vmem>>, %arg6: memref<2x128xf32, #tpu.memory_space<vmem>>, %arg7: memref<1x4x4x128xbf16, #tpu.memory_space<vmem>>, %arg8: memref<10x24x128xbf16, #tpu.memory_space<vmem>>, %arg9: memref<64x384xbf16, #tpu.memory_space<vmem>>) attributes {dimension_semantics = [#tpu.dimension_semantics<parallel>, #tpu.dimension_semantics<parallel>], iteration_bounds = array<i64: 2, 1>, scalar_prefetch = 0 : i64, scratch_operands = 2 : i64, tpu.core_type = #tpu.core_type<tc>, window_params = [{transform_indices = @transform_0, window_bounds = array<i64: 1, 8, 8, 128>}, {transform_indices = @transform_1, window_bounds = array<i64: 1, 1, 8, 128>}, {transform_indices = @transform_2, window_bounds = array<i64: 1, 1, 8, 128>}, {pipeline_mode = #tpu.pipeline_mode<synchronous>, transform_indices = @transform_3, window_bounds = array<i64: 1152, 128>}, {pipeline_mode = #tpu.pipeline_mode<synchronous>, transform_indices = @transform_4, window_bounds = array<i64: 2, 128>}, {transform_indices = @transform_5, window_bounds = array<i64: 1, 4, 4, 128>}]} {
    %cst = arith.constant 0.000000e+00 : bf16
    %0 = vector.broadcast %cst : bf16 to vector<10x1x128xbf16>
    %cst_0 = arith.constant 0.000000e+00 : bf16
    %1 = vector.broadcast %cst_0 : bf16 to vector<1x8x128xbf16>
    %c0 = arith.constant 0 : index
    %c7 = arith.constant 7 : index
    %c0_1 = arith.constant 0 : index
    %2 = vector.load %arg8[%c0, %c7, %c0_1] : memref<10x24x128xbf16, #tpu.memory_space<vmem>>, vector<10x1x128xbf16>
    tpu.vector_store %arg8[%c0, %c7, %c0_1], %0 {strides = array<i32>} : memref<10x24x128xbf16, #tpu.memory_space<vmem>>, vector<10x1x128xbf16>,
    %c0_2 = arith.constant 0 : index
    %c16 = arith.constant 16 : index
    %c0_3 = arith.constant 0 : index
    %3 = vector.load %arg8[%c0_2, %c16, %c0_3] : memref<10x24x128xbf16, #tpu.memory_space<vmem>>, vector<10x1x128xbf16>
    tpu.vector_store %arg8[%c0_2, %c16, %c0_3], %0 {strides = array<i32>} : memref<10x24x128xbf16, #tpu.memory_space<vmem>>, vector<10x1x128xbf16>,
    %c0_4 = arith.constant 0 : index
    %c0_5 = arith.constant 0 : index
    %c0_6 = arith.constant 0 : index
    %c0_7 = arith.constant 0 : index
    %4 = vector.load %arg2[%c0_4, %c0_5, %c0_6, %c0_7] : memref<1x8x8x128xbf16, #tpu.memory_space<vmem>>, vector<1x8x8x128xbf16>
    %5 = vector.shape_cast %4 : vector<1x8x8x128xbf16> to vector<8x8x128xbf16>
    %c1 = arith.constant 1 : index
    %c8 = arith.constant 8 : index
    %c0_8 = arith.constant 0 : index
    %6 = vector.load %arg8[%c1, %c8, %c0_8] : memref<10x24x128xbf16, #tpu.memory_space<vmem>>, vector<8x8x128xbf16>
    tpu.vector_store %arg8[%c1, %c8, %c0_8], %5 {strides = array<i32>} : memref<10x24x128xbf16, #tpu.memory_space<vmem>>, vector<8x8x128xbf16>,
    %c0_i32 = arith.constant 0 : i32
    %7 = arith.cmpi eq, %arg1, %c0_i32 : i32
    %8 = arith.extui %7 : i1 to i32
    %c0_i32_9 = arith.constant 0 : i32
    %9 = arith.cmpi ne, %8, %c0_i32_9 : i32
    scf.if %9 {
      %c0_81 = arith.constant 0 : index
      %c8_82 = arith.constant 8 : index
      %c0_83 = arith.constant 0 : index
      %77 = vector.load %arg8[%c0_81, %c8_82, %c0_83] : memref<10x24x128xbf16, #tpu.memory_space<vmem>>, vector<1x8x128xbf16>
      tpu.vector_store %arg8[%c0_81, %c8_82, %c0_83], %1 {strides = array<i32>} : memref<10x24x128xbf16, #tpu.memory_space<vmem>>, vector<1x8x128xbf16>,
    } else {
    }
    %c0_i32_10 = arith.constant 0 : i32
    %10 = arith.cmpi sgt, %arg1, %c0_i32_10 : i32
    %11 = arith.extui %10 : i1 to i32
    %c0_i32_11 = arith.constant 0 : i32
    %12 = arith.cmpi ne, %11, %c0_i32_11 : i32
    scf.if %12 {
      %c0_81 = arith.constant 0 : index
      %c0_82 = arith.constant 0 : index
      %c0_83 = arith.constant 0 : index
      %c0_84 = arith.constant 0 : index
      %77 = vector.load %arg3[%c0_81, %c0_82, %c0_83, %c0_84] : memref<1x1x8x128xbf16, #tpu.memory_space<vmem>>, vector<1x1x8x128xbf16>
      %78 = vector.shape_cast %77 : vector<1x1x8x128xbf16> to vector<1x8x128xbf16>
      %c0_85 = arith.constant 0 : index
      %c8_86 = arith.constant 8 : index
      %c0_87 = arith.constant 0 : index
      %79 = vector.load %arg8[%c0_85, %c8_86, %c0_87] : memref<10x24x128xbf16, #tpu.memory_space<vmem>>, vector<1x8x128xbf16>
      tpu.vector_store %arg8[%c0_85, %c8_86, %c0_87], %78 {strides = array<i32>} : memref<10x24x128xbf16, #tpu.memory_space<vmem>>, vector<1x8x128xbf16>,
    } else {
    }
    %c0_i32_12 = arith.constant 0 : i32
    %13 = arith.cmpi eq, %arg1, %c0_i32_12 : i32
    %14 = arith.extui %13 : i1 to i32
    %c0_i32_13 = arith.constant 0 : i32
    %15 = arith.cmpi ne, %14, %c0_i32_13 : i32
    scf.if %15 {
      %c9_81 = arith.constant 9 : index
      %c8_82 = arith.constant 8 : index
      %c0_83 = arith.constant 0 : index
      %77 = vector.load %arg8[%c9_81, %c8_82, %c0_83] : memref<10x24x128xbf16, #tpu.memory_space<vmem>>, vector<1x8x128xbf16>
      tpu.vector_store %arg8[%c9_81, %c8_82, %c0_83], %1 {strides = array<i32>} : memref<10x24x128xbf16, #tpu.memory_space<vmem>>, vector<1x8x128xbf16>,
    } else {
    }
    %c0_i32_14 = arith.constant 0 : i32
    %16 = arith.cmpi slt, %arg1, %c0_i32_14 : i32
    %17 = arith.extui %16 : i1 to i32
    %c0_i32_15 = arith.constant 0 : i32
    %18 = arith.cmpi ne, %17, %c0_i32_15 : i32
    scf.if %18 {
      %c0_81 = arith.constant 0 : index
      %c0_82 = arith.constant 0 : index
      %c0_83 = arith.constant 0 : index
      %c0_84 = arith.constant 0 : index
      %77 = vector.load %arg4[%c0_81, %c0_82, %c0_83, %c0_84] : memref<1x1x8x128xbf16, #tpu.memory_space<vmem>>, vector<1x1x8x128xbf16>
      %78 = vector.shape_cast %77 : vector<1x1x8x128xbf16> to vector<1x8x128xbf16>
      %c9_85 = arith.constant 9 : index
      %c8_86 = arith.constant 8 : index
      %c0_87 = arith.constant 0 : index
      %79 = vector.load %arg8[%c9_85, %c8_86, %c0_87] : memref<10x24x128xbf16, #tpu.memory_space<vmem>>, vector<1x8x128xbf16>
      tpu.vector_store %arg8[%c9_85, %c8_86, %c0_87], %78 {strides = array<i32>} : memref<10x24x128xbf16, #tpu.memory_space<vmem>>, vector<1x8x128xbf16>,
    } else {
    }
    %c0_16 = arith.constant 0 : index
    %c7_17 = arith.constant 7 : index
    %c0_18 = arith.constant 0 : index
    %19 = vector.load %arg8[%c0_16, %c7_17, %c0_18] : memref<10x24x128xbf16, #tpu.memory_space<vmem>>, vector<8x8x128xbf16>
    %20 = vector.shape_cast %19 : vector<8x8x128xbf16> to vector<64x128xbf16>
    %c0_19 = arith.constant 0 : index
    %c0_20 = arith.constant 0 : index
    %21 = vector.load %arg9[%c0_19, %c0_20] : memref<64x384xbf16, #tpu.memory_space<vmem>>, vector<64x128xbf16>
    tpu.vector_store %arg9[%c0_19, %c0_20], %20 {strides = array<i32>} : memref<64x384xbf16, #tpu.memory_space<vmem>>, vector<64x128xbf16>,
    %c0_21 = arith.constant 0 : index
    %c8_22 = arith.constant 8 : index
    %c0_23 = arith.constant 0 : index
    %22 = vector.load %arg8[%c0_21, %c8_22, %c0_23] : memref<10x24x128xbf16, #tpu.memory_space<vmem>>, vector<8x8x128xbf16>
    %23 = vector.shape_cast %22 : vector<8x8x128xbf16> to vector<64x128xbf16>
    %c0_24 = arith.constant 0 : index
    %c128 = arith.constant 128 : index
    %24 = vector.load %arg9[%c0_24, %c128] : memref<64x384xbf16, #tpu.memory_space<vmem>>, vector<64x128xbf16>
    tpu.vector_store %arg9[%c0_24, %c128], %23 {strides = array<i32>} : memref<64x384xbf16, #tpu.memory_space<vmem>>, vector<64x128xbf16>,
    %c0_25 = arith.constant 0 : index
    %c9 = arith.constant 9 : index
    %c0_26 = arith.constant 0 : index
    %25 = vector.load %arg8[%c0_25, %c9, %c0_26] : memref<10x24x128xbf16, #tpu.memory_space<vmem>>, vector<8x8x128xbf16>
    %26 = vector.shape_cast %25 : vector<8x8x128xbf16> to vector<64x128xbf16>
    %c0_27 = arith.constant 0 : index
    %c256 = arith.constant 256 : index
    %27 = vector.load %arg9[%c0_27, %c256] : memref<64x384xbf16, #tpu.memory_space<vmem>>, vector<64x128xbf16>
    tpu.vector_store %arg9[%c0_27, %c256], %26 {strides = array<i32>} : memref<64x384xbf16, #tpu.memory_space<vmem>>, vector<64x128xbf16>,
    %c0_28 = arith.constant 0 : index
    %c0_29 = arith.constant 0 : index
    %28 = vector.load %arg9[%c0_28, %c0_29] : memref<64x384xbf16, #tpu.memory_space<vmem>>, vector<64x384xbf16>
    %c0_30 = arith.constant 0 : index
    %c0_31 = arith.constant 0 : index
    %29 = vector.load %arg5[%c0_30, %c0_31] : memref<1152x128xbf16, #tpu.memory_space<vmem>>, vector<384x128xbf16>
    %cst_32 = arith.constant dense<0.000000e+00> : vector<64x128xf32>
    %30 = tpu.matmul %28, %29, %cst_32 {dimension_numbers = #tpu.dot_dimension_numbers<[1], [0], [0], [1], [0, 0, 1, 1], [], []>} : vector<64x384xbf16>, vector<384x128xbf16>, vector<64x128xf32> -> vector<64x128xf32>
    %c1_33 = arith.constant 1 : index
    %c7_34 = arith.constant 7 : index
    %c0_35 = arith.constant 0 : index
    %31 = vector.load %arg8[%c1_33, %c7_34, %c0_35] : memref<10x24x128xbf16, #tpu.memory_space<vmem>>, vector<8x8x128xbf16>
    %32 = vector.shape_cast %31 : vector<8x8x128xbf16> to vector<64x128xbf16>
    %c0_36 = arith.constant 0 : index
    %c0_37 = arith.constant 0 : index
    %33 = vector.load %arg9[%c0_36, %c0_37] : memref<64x384xbf16, #tpu.memory_space<vmem>>, vector<64x128xbf16>
    tpu.vector_store %arg9[%c0_36, %c0_37], %32 {strides = array<i32>} : memref<64x384xbf16, #tpu.memory_space<vmem>>, vector<64x128xbf16>,
    %c1_38 = arith.constant 1 : index
    %c8_39 = arith.constant 8 : index
    %c0_40 = arith.constant 0 : index
    %34 = vector.load %arg8[%c1_38, %c8_39, %c0_40] : memref<10x24x128xbf16, #tpu.memory_space<vmem>>, vector<8x8x128xbf16>
    %35 = vector.shape_cast %34 : vector<8x8x128xbf16> to vector<64x128xbf16>
    %c0_41 = arith.constant 0 : index
    %c128_42 = arith.constant 128 : index
    %36 = vector.load %arg9[%c0_41, %c128_42] : memref<64x384xbf16, #tpu.memory_space<vmem>>, vector<64x128xbf16>
    tpu.vector_store %arg9[%c0_41, %c128_42], %35 {strides = array<i32>} : memref<64x384xbf16, #tpu.memory_space<vmem>>, vector<64x128xbf16>,
    %c1_43 = arith.constant 1 : index
    %c9_44 = arith.constant 9 : index
    %c0_45 = arith.constant 0 : index
    %37 = vector.load %arg8[%c1_43, %c9_44, %c0_45] : memref<10x24x128xbf16, #tpu.memory_space<vmem>>, vector<8x8x128xbf16>
    %38 = vector.shape_cast %37 : vector<8x8x128xbf16> to vector<64x128xbf16>
    %c0_46 = arith.constant 0 : index
    %c256_47 = arith.constant 256 : index
    %39 = vector.load %arg9[%c0_46, %c256_47] : memref<64x384xbf16, #tpu.memory_space<vmem>>, vector<64x128xbf16>
    tpu.vector_store %arg9[%c0_46, %c256_47], %38 {strides = array<i32>} : memref<64x384xbf16, #tpu.memory_space<vmem>>, vector<64x128xbf16>,
    %c0_48 = arith.constant 0 : index
    %c0_49 = arith.constant 0 : index
    %40 = vector.load %arg9[%c0_48, %c0_49] : memref<64x384xbf16, #tpu.memory_space<vmem>>, vector<64x384xbf16>
    %c384 = arith.constant 384 : index
    %c0_50 = arith.constant 0 : index
    %41 = vector.load %arg5[%c384, %c0_50] : memref<1152x128xbf16, #tpu.memory_space<vmem>>, vector<384x128xbf16>
    %cst_51 = arith.constant dense<0.000000e+00> : vector<64x128xf32>
    %42 = tpu.matmul %40, %41, %cst_51 {dimension_numbers = #tpu.dot_dimension_numbers<[1], [0], [0], [1], [0, 0, 1, 1], [], []>} : vector<64x384xbf16>, vector<384x128xbf16>, vector<64x128xf32> -> vector<64x128xf32>
    %43 = arith.addf %30, %42 : vector<64x128xf32>
    %c2 = arith.constant 2 : index
    %c7_52 = arith.constant 7 : index
    %c0_53 = arith.constant 0 : index
    %44 = vector.load %arg8[%c2, %c7_52, %c0_53] : memref<10x24x128xbf16, #tpu.memory_space<vmem>>, vector<8x8x128xbf16>
    %45 = vector.shape_cast %44 : vector<8x8x128xbf16> to vector<64x128xbf16>
    %c0_54 = arith.constant 0 : index
    %c0_55 = arith.constant 0 : index
    %46 = vector.load %arg9[%c0_54, %c0_55] : memref<64x384xbf16, #tpu.memory_space<vmem>>, vector<64x128xbf16>
    tpu.vector_store %arg9[%c0_54, %c0_55], %45 {strides = array<i32>} : memref<64x384xbf16, #tpu.memory_space<vmem>>, vector<64x128xbf16>,
    %c2_56 = arith.constant 2 : index
    %c8_57 = arith.constant 8 : index
    %c0_58 = arith.constant 0 : index
    %47 = vector.load %arg8[%c2_56, %c8_57, %c0_58] : memref<10x24x128xbf16, #tpu.memory_space<vmem>>, vector<8x8x128xbf16>
    %48 = vector.shape_cast %47 : vector<8x8x128xbf16> to vector<64x128xbf16>
    %c0_59 = arith.constant 0 : index
    %c128_60 = arith.constant 128 : index
    %49 = vector.load %arg9[%c0_59, %c128_60] : memref<64x384xbf16, #tpu.memory_space<vmem>>, vector<64x128xbf16>
    tpu.vector_store %arg9[%c0_59, %c128_60], %48 {strides = array<i32>} : memref<64x384xbf16, #tpu.memory_space<vmem>>, vector<64x128xbf16>,
    %c2_61 = arith.constant 2 : index
    %c9_62 = arith.constant 9 : index
    %c0_63 = arith.constant 0 : index
    %50 = vector.load %arg8[%c2_61, %c9_62, %c0_63] : memref<10x24x128xbf16, #tpu.memory_space<vmem>>, vector<8x8x128xbf16>
    %51 = vector.shape_cast %50 : vector<8x8x128xbf16> to vector<64x128xbf16>
    %c0_64 = arith.constant 0 : index
    %c256_65 = arith.constant 256 : index
    %52 = vector.load %arg9[%c0_64, %c256_65] : memref<64x384xbf16, #tpu.memory_space<vmem>>, vector<64x128xbf16>
    tpu.vector_store %arg9[%c0_64, %c256_65], %51 {strides = array<i32>} : memref<64x384xbf16, #tpu.memory_space<vmem>>, vector<64x128xbf16>,
    %c0_66 = arith.constant 0 : index
    %c0_67 = arith.constant 0 : index
    %53 = vector.load %arg9[%c0_66, %c0_67] : memref<64x384xbf16, #tpu.memory_space<vmem>>, vector<64x384xbf16>
    %c768 = arith.constant 768 : index
    %c0_68 = arith.constant 0 : index
    %54 = vector.load %arg5[%c768, %c0_68] : memref<1152x128xbf16, #tpu.memory_space<vmem>>, vector<384x128xbf16>
    %cst_69 = arith.constant dense<0.000000e+00> : vector<64x128xf32>
    %55 = tpu.matmul %53, %54, %cst_69 {dimension_numbers = #tpu.dot_dimension_numbers<[1], [0], [0], [1], [0, 0, 1, 1], [], []>} : vector<64x384xbf16>, vector<384x128xbf16>, vector<64x128xf32> -> vector<64x128xf32>
    %56 = arith.addf %43, %55 : vector<64x128xf32>
    %c0_70 = arith.constant 0 : index
    %c0_71 = arith.constant 0 : index
    %57 = vector.load %arg6[%c0_70, %c0_71] : memref<2x128xf32, #tpu.memory_space<vmem>>, vector<1x128xf32>
    %58 = vector.shape_cast %57 : vector<1x128xf32> to vector<128xf32>
    %59 = vector.shape_cast %58 : vector<128xf32> to vector<1x128xf32>
    %60 = vector.broadcast %59 : vector<1x128xf32> to vector<64x128xf32>
    %61 = arith.mulf %56, %60 : vector<64x128xf32>
    %c1_72 = arith.constant 1 : index
    %c0_73 = arith.constant 0 : index
    %62 = vector.load %arg6[%c1_72, %c0_73] : memref<2x128xf32, #tpu.memory_space<vmem>>, vector<1x128xf32>
    %63 = vector.shape_cast %62 : vector<1x128xf32> to vector<128xf32>
    %64 = vector.shape_cast %63 : vector<128xf32> to vector<1x128xf32>
    %65 = vector.broadcast %64 : vector<1x128xf32> to vector<64x128xf32>
    %66 = arith.addf %61, %65 : vector<64x128xf32>
    %cst_74 = arith.constant 0.000000e+00 : f32
    %67 = vector.broadcast %cst_74 : f32 to vector<64x128xf32>
    %68 = arith.maximumf %66, %67 : vector<64x128xf32>
    %69 = arith.truncf %68 : vector<64x128xf32> to vector<64x128xbf16>
    %70 = vector.shape_cast %69 : vector<64x128xbf16> to vector<4x2x8x128xbf16>
    %cst_75 = arith.constant dense<0xFF80> : vector<4x8x128xbf16>
    %71 = vector.multi_reduction <maximumf>, %70, %cst_75 [1] : vector<4x2x8x128xbf16> to vector<4x8x128xbf16>
    %72 = vector.shape_cast %71 : vector<4x8x128xbf16> to vector<4x4x2x128xbf16>
    %cst_76 = arith.constant dense<0xFF80> : vector<4x4x128xbf16>
    %73 = vector.multi_reduction <maximumf>, %72, %cst_76 [2] : vector<4x4x2x128xbf16> to vector<4x4x128xbf16>
    %c0_77 = arith.constant 0 : index
    %c0_78 = arith.constant 0 : index
    %c0_79 = arith.constant 0 : index
    %c0_80 = arith.constant 0 : index
    %74 = vector.load %arg7[%c0_77, %c0_78, %c0_79, %c0_80] : memref<1x4x4x128xbf16, #tpu.memory_space<vmem>>, vector<1x4x4x128xbf16>
    %75 = vector.shape_cast %74 : vector<1x4x4x128xbf16> to vector<4x4x128xbf16>
    %76 = vector.shape_cast %73 : vector<4x4x128xbf16> to vector<1x4x4x128xbf16>
    tpu.vector_store %arg7[%c0_77, %c0_78, %c0_79, %c0_80], %76 {strides = array<i32>} : memref<1x4x4x128xbf16, #tpu.memory_space<vmem>>, vector<1x4x4x128xbf16>,
    return
  }
  func.func @transform_0(%arg0: i32, %arg1: i32) -> (i32, i32, i32, i32) {
    %c0_i32 = arith.constant 0 : i32
    %c0_i32_0 = arith.constant 0 : i32
    %c0_i32_1 = arith.constant 0 : i32
    return %arg0, %arg1, %c0_i32, %c0_i32_0 : i32, i32, i32, i32
  }
  func.func @transform_1(%arg0: i32, %arg1: i32) -> (i32, i32, i32, i32) {
    %c8_i32 = arith.constant 8 : i32
    %0 = arith.muli %arg1, %c8_i32 : i32
    %c1_i32 = arith.constant 1 : i32
    %1 = arith.subi %0, %c1_i32 : i32
    %c0_i32 = arith.constant 0 : i32
    %2 = arith.maxsi %1, %c0_i32 : i32
    %c0_i32_0 = arith.constant 0 : i32
    %c0_i32_1 = arith.constant 0 : i32
    %c0_i32_2 = arith.constant 0 : i32
    return %arg0, %2, %c0_i32_0, %c0_i32_1 : i32, i32, i32, i32
  }
  func.func @transform_2(%arg0: i32, %arg1: i32) -> (i32, i32, i32, i32) {
    %c1_i32 = arith.constant 1 : i32
    %0 = arith.addi %arg1, %c1_i32 : i32
    %c8_i32 = arith.constant 8 : i32
    %1 = arith.muli %0, %c8_i32 : i32
    %c7_i32 = arith.constant 7 : i32
    %2 = arith.minsi %1, %c7_i32 : i32
    %c0_i32 = arith.constant 0 : i32
    %c0_i32_0 = arith.constant 0 : i32
    %c0_i32_1 = arith.constant 0 : i32
    return %arg0, %2, %c0_i32, %c0_i32_0 : i32, i32, i32, i32
  }
  func.func @transform_3(%arg0: i32, %arg1: i32) -> (i32, i32) {
    %c0_i32 = arith.constant 0 : i32
    %c0_i32_0 = arith.constant 0 : i32
    %c0_i32_1 = arith.constant 0 : i32
    return %c0_i32, %c0_i32_0 : i32, i32
  }
  func.func @transform_4(%arg0: i32, %arg1: i32) -> (i32, i32) {
    %c0_i32 = arith.constant 0 : i32
    %c0_i32_0 = arith.constant 0 : i32
    %c0_i32_1 = arith.constant 0 : i32
    return %c0_i32, %c0_i32_0 : i32, i32
  }
  func.func @transform_5(%arg0: i32, %arg1: i32) -> (i32, i32, i32, i32) {
    %c0_i32 = arith.constant 0 : i32
    %c0_i32_0 = arith.constant 0 : i32
    %c0_i32_1 = arith.constant 0 : i32
    return %arg0, %arg1, %c0_i32, %c0_i32_0 : i32, i32, i32, i32
  }
}

</mosaic_0001>

<bundles_post_ra>
// kernel: searchable_cnn_forward.5
= control target key start
LH: loop header
LB: loop body
LE: loop exit
PB: predicated region body
PF: predicated region fallthrough
CT: control target
= control target key end

     0   :  { %v2118_v22 = vmov 1966171168   ;;  %v291_v24 = vlaneseq  ;;  %vm2121_vm0 = vmmov 0   ;;  %s2633_s1 = inlined_call_operand.vmem [shape: bf16[2048,128], index: 1, kind: input, shape index: {}]   ;;  %s2634_s0 = inlined_call_operand.vmem [shape: bf16[2,2048], index: 0, kind: input, shape index: {}]   ;;  %s2635_s3 = inlined_call_operand.vmem [shape: f32[128,128], index: 3, kind: input, shape index: {}]   ;;  %s2636_s2 = inlined_call_operand.vmem [shape: f32[1,128], index: 2, kind: input, shape index: {}]   ;;  %s2637_s4 = inlined_call_operand.vmem [shape: f32[1,128], index: 4, kind: input, shape index: {}]   ;;  %s2638_s5 = inlined_call_operand.vmem [shape: f32[2,128], index: 5, kind: output, shape index: {}]  }
   0x1   :  { %v1988_v0 = vld [vmem:[%s2633_s1 + $0x40] sm:$0xff]   ;;  %v1992_v4 = vld [vmem:[%s2633_s1 + $0x48] sm:$0xff]   ;;  %v1996_v8 = vld [vmem:[%s2633_s1 + $0x50] sm:$0xff]   ;;  %v289_v23 = vunpack.c.l.s4 %v2118_v22 }
   0x2   :  { %v1989_v1 = vld [vmem:[%s2633_s1 + $0xc0] sm:$0xff]   ;;  %1732 = vmatprep.subr.bf16.mxu0 %v1988_v0  ;;  %v1993_v5 = vld [vmem:[%s2633_s1 + $0xc8] sm:$0xff]   ;;  %v1997_v9 = vld [vmem:[%s2633_s1 + $0xd0] sm:$0xff]   ;;  %v292_v30 = vshrl.u32 %v291_v24, 7 }
   0x3   :  { %v1990_v2 = vld [vmem:[%s2633_s1] sm:$0xff]   ;;  %1754 = vmatprep.subr.bf16.mxu1 %v1989_v1  ;;  %v1994_v6 = vld [vmem:[%s2633_s1 + $0x8] sm:$0xff]   ;;  %v1998_v10 = vld [vmem:[%s2633_s1 + $0x10] sm:$0xff]   ;;  %v290_v29 = vunpack.c.0.s8 %v289_v23 }
   0x4   :  { %v1991_v3 = vld [vmem:[%s2633_s1 + $0x80] sm:$0xff]   ;;  %1733 = vmatpush3.bf16.msra.mxu0 %v1990_v2  ;;  %v1995_v7 = vld [vmem:[%s2633_s1 + $0x88] sm:$0xff]   ;;  %v1999_v11 = vld [vmem:[%s2633_s1 + $0x90] sm:$0xff]  }
   0x5   :  { %1755 = vmatpush3.bf16.msra.mxu1 %v1991_v3  ;;  %1734 = vmatprep.subr.bf16.mxu0 %v1992_v4  ;;  %v2000_v12 = vld [vmem:[%s2633_s1 + $0x58] sm:$0xff]   ;;  %v2004_v16 = vld [vmem:[%s2633_s1 + $0x60] sm:$0xff]   ;;  %v2008_v20 = vld [vmem:[%s2633_s1 + $0x68] sm:$0xff]   ;;  %v2242_v35 = vsub.s32 %v290_v29, %v292_v30 }
   0x6   :  { %1756 = vmatprep.subr.bf16.mxu1 %v1993_v5  ;;  %v2001_v13 = vld [vmem:[%s2633_s1 + $0xd8] sm:$0xff]   ;;  %v2005_v17 = vld [vmem:[%s2633_s1 + $0xe0] sm:$0xff]   ;;  %v2009_v21 = vld [vmem:[%s2633_s1 + $0xe8] sm:$0xff]  }
   0x7   :  { %v2002_v14 = vld [vmem:[%s2633_s1 + $0x18] sm:$0xff]   ;;  %v2006_v18 = vld [vmem:[%s2633_s1 + $0x20] sm:$0xff]   ;;  %v2010_v25 = vld [vmem:[%s2633_s1 + $0x28] sm:$0xff]  }
   0x8   :  { %1735 = vmatpush3.bf16.msra.mxu0 %v1994_v6  ;;  %v2003_v15 = vld [vmem:[%s2633_s1 + $0x98] sm:$0xff]   ;;  %v2007_v19 = vld [vmem:[%s2633_s1 + $0xa0] sm:$0xff]   ;;  %v2011_v26 = vld [vmem:[%s2633_s1 + $0xa8] sm:$0xff]  }
   0x9   :  { %1757 = vmatpush3.bf16.msra.mxu1 %v1995_v7  ;;  %1736 = vmatprep.subr.bf16.mxu0 %v1996_v8  ;;  %v2012_v27 = vld [vmem:[%s2633_s1 + $0x70] sm:$0xff]   ;;  %v2016_v33 = vld [vmem:[%s2633_s1 + $0x78] sm:$0xff]   ;;  %v27_v38 = vld [vmem:[%s2634_s0] sm:$0xff] }
   0xa   :  { %1758 = vmatprep.subr.bf16.mxu1 %v1997_v9  ;;  %v2013_v28 = vld [vmem:[%s2633_s1 + $0xf0] sm:$0xff]   ;;  %v2017_v34 = vld [vmem:[%s2633_s1 + $0xf8] sm:$0xff]   ;;  %v287_v39 = vcombine.high %v27_v38, %v27_v38  ;;  %v294_v40 = vrot.slane %v27_v38, %v2242_v35  ;;  %v2022_v41 = vld [vmem:[%s2633_s1 + $0x140] sm:$0xff]  }
   0xb   :  { %v2014_v31 = vld [vmem:[%s2633_s1 + $0x30] sm:$0xff]   ;;  %v2018_v36 = vld [vmem:[%s2633_s1 + $0x38] sm:$0xff]   ;;  %v2023_v42 = vld [vmem:[%s2633_s1 + $0x1c0] sm:$0xff]  }
   0xc   :  { %1737 = vmatpush3.bf16.msra.mxu0 %v1998_v10  ;;  %v2015_v32 = vld [vmem:[%s2633_s1 + $0xb0] sm:$0xff]   ;;  %v2019_v37 = vld [vmem:[%s2633_s1 + $0xb8] sm:$0xff]   ;;  %v302_v43 = vcombine.high %v294_v40, %v294_v40  ;;  %v310_v44 = vrot.slane %v294_v40, %v2242_v35  ;;  %v2262_v45 = vrot.slane %v287_v39, %v2242_v35  ;;  %v2024_v47 = vld [vmem:[%s2633_s1 + $0x100] sm:$0xff]  }
   0xd   :  { %1759 = vmatpush3.bf16.msra.mxu1 %v1999_v11  ;;  %1738 = vmatprep.subr.bf16.mxu0 %v2000_v12  ;;  %v2026_v50 = vld [vmem:[%s2633_s1 + $0x148] sm:$0xff]   ;;  %v2025_v52 = vld [vmem:[%s2633_s1 + $0x180] sm:$0xff]   ;;  %v2030_v57 = vld [vmem:[%s2633_s1 + $0x150] sm:$0xff]  }
   0xe   :  { %1760 = vmatprep.subr.bf16.mxu1 %v2001_v13  ;;  %v324_v46 = vrot.slane %v302_v43, %v2242_v35  ;;  %v303_v48 = vcombine.high %v2262_v45, %v2262_v45  ;;  %v332_v49 = vcombine.high %v310_v44, %v310_v44  ;;  %v2027_v54 = vld [vmem:[%s2633_s1 + $0x1c8] sm:$0xff]   ;;  %v2031_v59 = vld [vmem:[%s2633_s1 + $0x1d0] sm:$0xff]   ;;  %v2034_v61 = vld [vmem:[%s2633_s1 + $0x158] sm:$0xff]  }
   0xf   :  { %v2028_v55 = vld [vmem:[%s2633_s1 + $0x108] sm:$0xff]   ;;  %v2032_v60 = vld [vmem:[%s2633_s1 + $0x110] sm:$0xff]   ;;  %v2035_v63 = vld [vmem:[%s2633_s1 + $0x1d8] sm:$0xff]  }
  0x10   :  { %1739 = vmatpush3.bf16.msra.mxu0 %v2002_v14  ;;  %1201 = vmatprep.mubr.bf16.mxu0 %v324_v46  ;;  %v334_v51 = vcombine.high %v324_v46, %v324_v46  ;;  %v331_v53 = vrot.slane %v303_v48, %v2242_v35  ;;  %v2029_v58 = vld [vmem:[%s2633_s1 + $0x188] sm:$0xff]   ;;  %v2033_v62 = vld [vmem:[%s2633_s1 + $0x190] sm:$0xff]   ;;  %v2036_v0 = vld [vmem:[%s2633_s1 + $0x118] sm:$0xff]  }
  0x11   :  { %1761 = vmatpush3.bf16.msra.mxu1 %v2003_v15  ;;  %1740 = vmatprep.subr.bf16.mxu0 %v2004_v16  ;;  %v2038_v1 = vld [vmem:[%s2633_s1 + $0x160] sm:$0xff]   ;;  %v2037_v2 = vld [vmem:[%s2633_s1 + $0x198] sm:$0xff]   ;;  %v2322_v5 = vld [vmem:[%s2634_s0 + $0x8] sm:$0xff] }
  0x12   :  { %1762 = vmatprep.subr.bf16.mxu1 %v2005_v17  ;;  %1241 = vmatprep.mubr.bf16.mxu1 %v334_v51  ;;  %v335_v56 = vcombine.high %v331_v53, %v331_v53  ;;  %v2039_v3 = vld [vmem:[%s2633_s1 + $0x1e0] sm:$0xff]   ;;  %v2042_v6 = vld [vmem:[%s2633_s1 + $0x168] sm:$0xff]   ;;  %v2046_v10 = vld [vmem:[%s2633_s1 + $0x170] sm:$0xff]   ;;  %v2344_v12 = vrot.slane %v2322_v5, %v2242_v35  ;;  %v336_v46 = vcombine.high %v2322_v5, %v2322_v5 }
  0x13   :  { %v2040_v4 = vld [vmem:[%s2633_s1 + $0x120] sm:$0xff]   ;;  %v2043_v8 = vld [vmem:[%s2633_s1 + $0x1e8] sm:$0xff]   ;;  %v2047_v13 = vld [vmem:[%s2633_s1 + $0x1f0] sm:$0xff]  }
  0x14   :  { %1741 = vmatpush3.bf16.msra.mxu0 %v2006_v18  ;;  %v2041_v7 = vld [vmem:[%s2633_s1 + $0x1a0] sm:$0xff]   ;;  %v2044_v9 = vld [vmem:[%s2633_s1 + $0x128] sm:$0xff]   ;;  %v2048_v14 = vld [vmem:[%s2633_s1 + $0x130] sm:$0xff]   ;;  %v351_v17 = vcombine.high %v2344_v12, %v2344_v12 }
  0x15   :  { %1763 = vmatpush3.bf16.msra.mxu1 %v2007_v19  ;;  %1742 = vmatprep.subr.bf16.mxu0 %v2008_v20  ;;  %v2045_v11 = vld [vmem:[%s2633_s1 + $0x1a8] sm:$0xff]   ;;  %v2050_v15 = vld [vmem:[%s2633_s1 + $0x178] sm:$0xff]   ;;  %v2049_v16 = vld [vmem:[%s2633_s1 + $0x1b0] sm:$0xff]   ;;  %v317_v20 = vrot.slane %v2262_v45, %v2242_v35 }
  0x16   :  { %1764 = vmatprep.subr.bf16.mxu1 %v2009_v21  ;;  %v2051_v18 = vld [vmem:[%s2633_s1 + $0x1f8] sm:$0xff]   ;;  %v2054_v21 = vld [vmem:[%s2633_s1 + $0x240] sm:$0xff]   ;;  %v373_v23 = vrot.slane %v351_v17, %v2242_v35  ;;  %v2059_v30 = vld [vmem:[%s2633_s1 + $0x2c8] sm:$0xff]  }
  0x17   :  { %v2052_v19 = vld [vmem:[%s2633_s1 + $0x138] sm:$0xff]   ;;  %v2055_v24 = vld [vmem:[%s2633_s1 + $0x2c0] sm:$0xff]   ;;  %v2065_v38 = vld [vmem:[%s2633_s1 + $0x290] sm:$0xff]  }
  0x18   :  { %1743 = vmatpush3.bf16.msra.mxu0 %v2010_v25  ;;  %v2053_v22 = vld [vmem:[%s2633_s1 + $0x1b8] sm:$0xff]   ;;  %v2056_v25 = vld [vmem:[%s2633_s1 + $0x200] sm:$0xff]   ;;  %v383_v29 = vcombine.high %v373_v23, %v373_v23  ;;  %v2074_v45 = vld [vmem:[%s2633_s1 + $0x268] sm:$0xff]  }
  0x19   :  { %1765 = vmatpush3.bf16.msra.mxu1 %v2011_v26  ;;  %1744 = vmatprep.subr.bf16.mxu0 %v2012_v27  ;;  %v333_v26 = vcombine.high %v317_v20, %v317_v20  ;;  %v2058_v27 = vld [vmem:[%s2633_s1 + $0x248] sm:$0xff]   ;;  %v2067_v39 = vld [vmem:[%s2633_s1 + $0x2d8] sm:$0xff]   ;;  %v2071_v43 = vld [vmem:[%s2633_s1 + $0x2e0] sm:$0xff]  }
  0x1a   :  { %1766 = vmatprep.subr.bf16.mxu1 %v2013_v28  ;;  %v2057_v28 = vld [vmem:[%s2633_s1 + $0x280] sm:$0xff]   ;;  %v2068_v40 = vld [vmem:[%s2633_s1 + $0x218] sm:$0xff]   ;;  %v2075_v48 = vld [vmem:[%s2633_s1 + $0x2e8] sm:$0xff]  }
  0x1b   :  { %v2077_v51 = vld [vmem:[%s2633_s1 + $0x2a8] sm:$0xff]   ;;  %v2101_v17 = vld [vmem:[%s2633_s1 + $0x398] sm:$0xff]  }
  0x1c   :  { %1745 = vmatpush3.bf16.msra.mxu0 %v2014_v31  ;;  %v2060_v31 = vld [vmem:[%s2633_s1 + $0x208] sm:$0xff]  }
  0x1d   :  { %1767 = vmatpush3.bf16.msra.mxu1 %v2015_v32  ;;  %1746 = vmatprep.subr.bf16.mxu0 %v2016_v33  ;;  %v2062_v32 = vld [vmem:[%s2633_s1 + $0x250] sm:$0xff]   ;;  %v2061_v33 = vld [vmem:[%s2633_s1 + $0x288] sm:$0xff]  }
  0x1e   :  { %1768 = vmatprep.subr.bf16.mxu1 %v2017_v34  ;;  %v2063_v34 = vld [vmem:[%s2633_s1 + $0x2d0] sm:$0xff]  }
  0x20   :  { %1747 = vmatpush3.bf16.msra.mxu0 %v2018_v36  ;;  %v2064_v36 = vld [vmem:[%s2633_s1 + $0x210] sm:$0xff]  }
  0x21   :  { %1769 = vmatpush3.bf16.msra.mxu1 %v2019_v37  ;;  %1776 = vmatprep.subr.bf16.mxu0 %v2022_v41  ;;  %v2066_v37 = vld [vmem:[%s2633_s1 + $0x258] sm:$0xff]   ;;  %v2070_v41 = vld [vmem:[%s2633_s1 + $0x260] sm:$0xff]  }
  0x22   :  { %1798 = vmatprep.subr.bf16.mxu1 %v2023_v42  ;;  %v2069_v42 = vld [vmem:[%s2633_s1 + $0x298] sm:$0xff]  }
  0x23   :  { %1202 = vmatmul.mubr.bf16.vlgmr.msra.gmra.mrb[0].mxu0 %v310_v44  ;;  %v2072_v44 = vld [vmem:[%s2633_s1 + $0x220] sm:$0xff]  }
  0x24   :  { %1777 = vmatpush3.bf16.msra.mxu0 %v2024_v47  ;;  %1242 = vmatmul.mubr.bf16.vlgmr.msra.gmra.mrb[0].mxu1 %v332_v49  ;;  %v2073_v47 = vld [vmem:[%s2633_s1 + $0x2a0] sm:$0xff]   ;;  %v2076_v49 = vld [vmem:[%s2633_s1 + $0x228] sm:$0xff]  }
  0x25   :  { %1778 = vmatprep.subr.bf16.mxu0 %v2026_v50  ;;  %1799 = vmatpush3.bf16.msra.mxu1 %v2025_v52  ;;  %v2078_v50 = vld [vmem:[%s2633_s1 + $0x270] sm:$0xff]   ;;  %v2450_v52 = vrot.slane %v336_v46, %v2242_v35  ;;  %v1511_v46 = vld [vmem:[%s2635_s3 + $0x38] sm:$0xff] }
  0x26   :  { %1281 = vmatprep.mubr.bf16.mxu0 %v331_v53  ;;  %1800 = vmatprep.subr.bf16.mxu1 %v2027_v54  ;;  %v2079_v53 = vld [vmem:[%s2633_s1 + $0x2f0] sm:$0xff]  }
  0x27   :  { %1321 = vmatprep.mubr.bf16.mxu1 %v335_v56  ;;  %v2080_v54 = vld [vmem:[%s2633_s1 + $0x230] sm:$0xff]  }
  0x28   :  { %1779 = vmatpush3.bf16.msra.mxu0 %v2028_v55  ;;  %v2082_v55 = vld [vmem:[%s2633_s1 + $0x278] sm:$0xff]   ;;  %v2081_v56 = vld [vmem:[%s2633_s1 + $0x2b0] sm:$0xff]  }
  0x29   :  { %1780 = vmatprep.subr.bf16.mxu0 %v2030_v57  ;;  %1801 = vmatpush3.bf16.msra.mxu1 %v2029_v58  ;;  %v352_v57 = vcombine.high %v2450_v52, %v2450_v52  ;;  %v2083_v58 = vld [vmem:[%s2633_s1 + $0x2f8] sm:$0xff]  }
  0x2a   :  { %1802 = vmatprep.subr.bf16.mxu1 %v2031_v59  ;;  %v2084_v59 = vld [vmem:[%s2633_s1 + $0x238] sm:$0xff]  }
  0x2c   :  { %1781 = vmatpush3.bf16.msra.mxu0 %v2032_v60  ;;  %v359_v60 = vrot.slane %v2344_v12, %v2242_v35  ;;  %v2098_v12 = vld [vmem:[%s2633_s1 + $0x358] sm:$0xff]  }
  0x2d   :  { %1782 = vmatprep.subr.bf16.mxu0 %v2034_v61  ;;  %1803 = vmatpush3.bf16.msra.mxu1 %v2033_v62  ;;  %v2086_v61 = vld [vmem:[%s2633_s1 + $0x340] sm:$0xff]   ;;  %v2085_v62 = vld [vmem:[%s2633_s1 + $0x2b8] sm:$0xff]  }
  0x2e   :  { %1804 = vmatprep.subr.bf16.mxu1 %v2035_v63  ;;  %v380_v63 = vrot.slane %v352_v57, %v2242_v35 }
  0x30   :  { %1783 = vmatpush3.bf16.msra.mxu0 %v2036_v0  ;;  %v2087_v0 = vld [vmem:[%s2633_s1 + $0x3c0] sm:$0xff]   ;;  %v384_v5 = vcombine.high %v380_v63, %v380_v63 }
  0x31   :  { %1784 = vmatprep.subr.bf16.mxu0 %v2038_v1  ;;  %1805 = vmatpush3.bf16.msra.mxu1 %v2037_v2  ;;  %v2088_v1 = vld [vmem:[%s2633_s1 + $0x300] sm:$0xff]   ;;  %v381_v2 = vcombine.high %v359_v60, %v359_v60 }
  0x32   :  { %1806 = vmatprep.subr.bf16.mxu1 %v2039_v3  ;;  %v2090_v3 = vld [vmem:[%s2633_s1 + $0x348] sm:$0xff]  }
  0x34   :  { %1785 = vmatpush3.bf16.msra.mxu0 %v2040_v4  ;;  %v2089_v4 = vld [vmem:[%s2633_s1 + $0x380] sm:$0xff]  }
  0x35   :  { %1786 = vmatprep.subr.bf16.mxu0 %v2042_v6  ;;  %1807 = vmatpush3.bf16.msra.mxu1 %v2041_v7  ;;  %v2091_v6 = vld [vmem:[%s2633_s1 + $0x3c8] sm:$0xff]  }
  0x36   :  { %1808 = vmatprep.subr.bf16.mxu1 %v2043_v8  ;;  %v2092_v7 = vld [vmem:[%s2633_s1 + $0x308] sm:$0xff]   ;;  %v2094_v8 = vld [vmem:[%s2633_s1 + $0x350] sm:$0xff]  }
  0x38   :  { %1787 = vmatpush3.bf16.msra.mxu0 %v2044_v9  ;;  %v2093_v9 = vld [vmem:[%s2633_s1 + $0x388] sm:$0xff]  }
  0x39   :  { %1788 = vmatprep.subr.bf16.mxu0 %v2046_v10  ;;  %1809 = vmatpush3.bf16.msra.mxu1 %v2045_v11  ;;  %v2095_v10 = vld [vmem:[%s2633_s1 + $0x3d0] sm:$0xff]  }
  0x3a   :  { %1810 = vmatprep.subr.bf16.mxu1 %v2047_v13  ;;  %v2096_v11 = vld [vmem:[%s2633_s1 + $0x310] sm:$0xff]  }
  0x3b   :  { %v2097_v13 = vld [vmem:[%s2633_s1 + $0x390] sm:$0xff]  }
  0x3c   :  { %1789 = vmatpush3.bf16.msra.mxu0 %v2048_v14  ;;  %v2099_v14 = vld [vmem:[%s2633_s1 + $0x3d8] sm:$0xff]  }
  0x3d   :  { %1790 = vmatprep.subr.bf16.mxu0 %v2050_v15  ;;  %1811 = vmatpush3.bf16.msra.mxu1 %v2049_v16  ;;  %v2100_v15 = vld [vmem:[%s2633_s1 + $0x318] sm:$0xff]   ;;  %v2102_v16 = vld [vmem:[%s2633_s1 + $0x360] sm:$0xff]  }
  0x3e   :  { %1812 = vmatprep.subr.bf16.mxu1 %v2051_v18  ;;  %v2103_v18 = vld [vmem:[%s2633_s1 + $0x3e0] sm:$0xff]  }
  0x40   :  { %1791 = vmatpush3.bf16.msra.mxu0 %v2052_v19  ;;  %v2104_v19 = vld [vmem:[%s2633_s1 + $0x320] sm:$0xff]  }
  0x41   :  { %1820 = vmatprep.subr.bf16.mxu0 %v2054_v21  ;;  %1813 = vmatpush3.bf16.msra.mxu1 %v2053_v22  ;;  %v2105_v21 = vld [vmem:[%s2633_s1 + $0x3a0] sm:$0xff]   ;;  %v2107_v22 = vld [vmem:[%s2633_s1 + $0x3e8] sm:$0xff]  }
  0x42   :  { %1842 = vmatprep.subr.bf16.mxu1 %v2055_v24  ;;  %v2110_v24 = vld [vmem:[%s2633_s1 + $0x370] sm:$0xff]  }
  0x43   :  { %1282 = vmatmul.mubr.bf16.vlgmr.msra.gmra.mrb[4].mxu0 %v317_v20  ;;  %v2106_v20 = vld [vmem:[%s2633_s1 + $0x368] sm:$0xff]  }
  0x44   :  { %1821 = vmatpush3.bf16.msra.mxu0 %v2056_v25  ;;  %1361 = vmatprep.mubr.bf16.mxu0 %v373_v23  ;;  %v2108_v23 = vld [vmem:[%s2633_s1 + $0x328] sm:$0xff]  }
  0x45   :  { %1322 = vmatmul.mubr.bf16.vlgmr.msra.gmra.mrb[4].mxu1 %v333_v26  ;;  %1822 = vmatprep.subr.bf16.mxu0 %v2058_v27  ;;  %v2109_v25 = vld [vmem:[%s2633_s1 + $0x3a8] sm:$0xff]   ;;  %v2111_v26 = vld [vmem:[%s2633_s1 + $0x3f0] sm:$0xff]  }
  0x46   :  { %1843 = vmatpush3.bf16.msra.mxu1 %v2057_v28  ;;  %1401 = vmatprep.mubr.bf16.mxu1 %v383_v29  ;;  %v2112_v27 = vld [vmem:[%s2633_s1 + $0x330] sm:$0xff]   ;;  %v2114_v28 = vld [vmem:[%s2633_s1 + $0x378] sm:$0xff]  }
  0x47   :  { %1844 = vmatprep.subr.bf16.mxu1 %v2059_v30  ;;  %v2113_v29 = vld [vmem:[%s2633_s1 + $0x3b0] sm:$0xff]   ;;  %v2115_v30 = vld [vmem:[%s2633_s1 + $0x3f8] sm:$0xff]  }
  0x48   :  { %1823 = vmatpush3.bf16.msra.mxu0 %v2060_v31  ;;  %v2116_v31 = vld [vmem:[%s2633_s1 + $0x338] sm:$0xff]  }
  0x49   :  { %1824 = vmatprep.subr.bf16.mxu0 %v2062_v32  ;;  %v366_v32 = vrot.slane %v2450_v52, %v2242_v35  ;;  %v1505_v35 = vld [vmem:[%s2635_s3 + $0x8] sm:$0xff] }
  0x4a   :  { %1845 = vmatpush3.bf16.msra.mxu1 %v2061_v33  ;;  %v2117_v33 = vld [vmem:[%s2633_s1 + $0x3b8] sm:$0xff]  }
  0x4b   :  { %1846 = vmatprep.subr.bf16.mxu1 %v2063_v34  ;;  %v382_v34 = vcombine.high %v366_v32, %v366_v32 }
  0x4c   :  { %1825 = vmatpush3.bf16.msra.mxu0 %v2064_v36  ;;  %v2119_v36 = vmov 0.0|0.0  }
  0x4d   :  { %1826 = vmatprep.subr.bf16.mxu0 %v2066_v37  ;;  %v1504_v37 = vld [vmem:[%s2635_s3] sm:$0xff] }
  0x4e   :  { %1847 = vmatpush3.bf16.msra.mxu1 %v2065_v38  ;;  %v1506_v38 = vld [vmem:[%s2635_s3 + $0x10] sm:$0xff] }
  0x4f   :  { %1848 = vmatprep.subr.bf16.mxu1 %v2067_v39  ;;  %v1961_v39 = vpack.c.bf16 %v1505_v35, %v1504_v37 }
  0x50   :  { %1827 = vmatpush3.bf16.msra.mxu0 %v2068_v40  ;;  %v1507_v40 = vld [vmem:[%s2635_s3 + $0x18] sm:$0xff] }
  0x51   :  { %1828 = vmatprep.subr.bf16.mxu0 %v2070_v41  ;;  %v1964_v41 = vpack.c.bf16 %v1507_v40, %v1506_v38 }
  0x52   :  { %1849 = vmatpush3.bf16.msra.mxu1 %v2069_v42  ;;  %v1508_v42 = vld [vmem:[%s2635_s3 + $0x20] sm:$0xff] }
  0x53   :  { %1850 = vmatprep.subr.bf16.mxu1 %v2071_v43  ;;  %v1509_v43 = vld [vmem:[%s2635_s3 + $0x28] sm:$0xff] }
  0x54   :  { %1829 = vmatpush3.bf16.msra.mxu0 %v2072_v44  ;;  %v1967_v44 = vpack.c.bf16 %v1509_v43, %v1508_v42 }
  0x55   :  { %1830 = vmatprep.subr.bf16.mxu0 %v2074_v45  ;;  %v1510_v45 = vld [vmem:[%s2635_s3 + $0x30] sm:$0xff] }
  0x56   :  { %1851 = vmatpush3.bf16.msra.mxu1 %v2073_v47  ;;  %v2120_v47 = vmov 0.0  }
  0x57   :  { %1852 = vmatprep.subr.bf16.mxu1 %v2075_v48  ;;  %25 = vst [vmem:[#allocation2] sm:$0x3] %v2120_v47  ;;  %v1970_v48 = vpack.c.bf16 %v1511_v46, %v1510_v45  ;;  %v1730_v46 = vld [vmem:[%s2636_s2] ss:$0 sm:$0xff] }
  0x58   :  { %1831 = vmatpush3.bf16.msra.mxu0 %v2076_v49  ;;  %v1512_v49 = vld [vmem:[%s2635_s3 + $0x40] sm:$0xff] }
  0x59   :  { %1832 = vmatprep.subr.bf16.mxu0 %v2078_v50  ;;  %v1513_v50 = vld [vmem:[%s2635_s3 + $0x48] sm:$0xff] }
  0x5a   :  { %1853 = vmatpush3.bf16.msra.mxu1 %v2077_v51  ;;  %v1514_v51 = vld [vmem:[%s2635_s3 + $0x50] sm:$0xff]  ;;  %v1973_v52 = vpack.c.bf16 %v1513_v50, %v1512_v49  ;;  %v1731_v50 = vld [vmem:[%s2637_s4] ss:$0 sm:$0xff] }
  0x5b   :  { %1854 = vmatprep.subr.bf16.mxu1 %v2079_v53  ;;  %v1515_v53 = vld [vmem:[%s2635_s3 + $0x58] sm:$0xff] }
  0x5c   :  { %1833 = vmatpush3.bf16.msra.mxu0 %v2080_v54  ;;  %v1976_v54 = vpack.c.bf16 %v1515_v53, %v1514_v51 }
  0x5d   :  { %1834 = vmatprep.subr.bf16.mxu0 %v2082_v55  ;;  %v1516_v55 = vld [vmem:[%s2635_s3 + $0x60] sm:$0xff] }
  0x5e   :  { %1855 = vmatpush3.bf16.msra.mxu1 %v2081_v56  ;;  %v1517_v56 = vld [vmem:[%s2635_s3 + $0x68] sm:$0xff]  ;;  %v26_v43 = vld [vmem:[#allocation2] sm:$0x3] }
  0x5f   :  { %1856 = vmatprep.subr.bf16.mxu1 %v2083_v58  ;;  %v1979_v57 = vpack.c.bf16 %v1517_v56, %v1516_v55  ;;  %v1518_v58 = vld [vmem:[%s2635_s3 + $0x70] sm:$0xff] }
  0x60   :  { %1835 = vmatpush3.bf16.msra.mxu0 %v2084_v59  ;;  %v1519_v59 = vld [vmem:[%s2635_s3 + $0x78] sm:$0xff] }
  0x61   :  { %1864 = vmatprep.subr.bf16.mxu0 %v2086_v61 }
  0x62   :  { %1857 = vmatpush3.bf16.msra.mxu1 %v2085_v62 }
  0x63   :  { %1362 = vmatmul.mubr.bf16.vlgmr.msra.gmra.mrb[8].mxu0 %v359_v60  ;;  %1886 = vmatprep.subr.bf16.mxu1 %v2087_v0  ;;  %v1982_v60 = vpack.c.bf16 %v1519_v59, %v1518_v58 }
  0x64   :  { %1865 = vmatpush3.bf16.msra.mxu0 %v2088_v1  ;;  %1441 = vmatprep.mubr.bf16.mxu0 %v380_v63 }
  0x65   :  { %1402 = vmatmul.mubr.bf16.vlgmr.msra.gmra.mrb[8].mxu1 %v381_v2  ;;  %1866 = vmatprep.subr.bf16.mxu0 %v2090_v3 }
  0x66   :  { %1887 = vmatpush3.bf16.msra.mxu1 %v2089_v4  ;;  %1481 = vmatprep.mubr.bf16.mxu1 %v384_v5 }
  0x67   :  { %1888 = vmatprep.subr.bf16.mxu1 %v2091_v6 }
  0x68   :  { %1867 = vmatpush3.bf16.msra.mxu0 %v2092_v7 }
  0x69   :  { %1868 = vmatprep.subr.bf16.mxu0 %v2094_v8 }
  0x6a   :  { %1889 = vmatpush3.bf16.msra.mxu1 %v2093_v9 }
  0x6b   :  { %1890 = vmatprep.subr.bf16.mxu1 %v2095_v10 }
  0x6c   :  { %1869 = vmatpush3.bf16.msra.mxu0 %v2096_v11 }
  0x6d   :  { %1870 = vmatprep.subr.bf16.mxu0 %v2098_v12 }
  0x6e   :  { %1891 = vmatpush3.bf16.msra.mxu1 %v2097_v13 }
  0x6f   :  { %1892 = vmatprep.subr.bf16.mxu1 %v2099_v14 }
  0x70   :  { %1871 = vmatpush3.bf16.msra.mxu0 %v2100_v15 }
  0x71   :  { %1872 = vmatprep.subr.bf16.mxu0 %v2102_v16 }
  0x72   :  { %1893 = vmatpush3.bf16.msra.mxu1 %v2101_v17 }
  0x73   :  { %1894 = vmatprep.subr.bf16.mxu1 %v2103_v18 }
  0x74   :  { %1873 = vmatpush3.bf16.msra.mxu0 %v2104_v19 }
  0x75   :  { %1874 = vmatprep.subr.bf16.mxu0 %v2106_v20 }
  0x76   :  { %1895 = vmatpush3.bf16.msra.mxu1 %v2105_v21 }
  0x77   :  { %1896 = vmatprep.subr.bf16.mxu1 %v2107_v22 }
  0x78   :  { %1875 = vmatpush3.bf16.msra.mxu0 %v2108_v23 }
  0x79   :  { %1876 = vmatprep.subr.bf16.mxu0 %v2110_v24 }
  0x7a   :  { %1897 = vmatpush3.bf16.msra.mxu1 %v2109_v25 }
  0x7b   :  { %1898 = vmatprep.subr.bf16.mxu1 %v2111_v26 }
  0x7c   :  { %1877 = vmatpush3.bf16.msra.mxu0 %v2112_v27 }
  0x7d   :  { %1878 = vmatprep.subr.bf16.mxu0 %v2114_v28 }
  0x7e   :  { %1899 = vmatpush3.bf16.msra.mxu1 %v2113_v29 }
  0x7f   :  { %1900 = vmatprep.subr.bf16.mxu1 %v2115_v30 }
  0x80   :  { %1879 = vmatpush3.bf16.msra.mxu0 %v2116_v31 }
  0x81   :  { %1960 = vmatprep.subr.bf16.mxu0 %v2119_v36 }
  0x82   :  { %1901 = vmatpush3.bf16.msra.mxu1 %v2117_v33 }
  0x83   :  { %1442 = vmatmul.mubr.bf16.vlgmr.msra.gmra.mrb[12].mxu0 %v366_v32 }
  0x84   :  { %1962 = vmatpush3.bf16.msra.mxu0 %v1961_v39  ;;  %1957 = vmatprep.mubr.msk.f32.mxu0 %vm2121_vm0, %v2120_v47 }
  0x85   :  { %1482 = vmatmul.mubr.bf16.vlgmr.msra.gmra.mrb[12].mxu1 %v382_v34  ;;  %1963 = vmatprep.subr.bf16.mxu0 %v2119_v36 }
  0x88   :  { %1965 = vmatpush3.bf16.msra.mxu0 %v1964_v41 }
  0x89   :  { %1966 = vmatprep.subr.bf16.mxu0 %v2119_v36 }
  0x8c   :  { %1968 = vmatpush3.bf16.msra.mxu0 %v1967_v44 }
  0x8d   :  { %1969 = vmatprep.subr.bf16.mxu0 %v2119_v36 }
  0x90   :  { %1971 = vmatpush3.bf16.msra.mxu0 %v1970_v48 }
  0x91   :  { %1972 = vmatprep.subr.bf16.mxu0 %v2119_v36 }
  0x94   :  { %1974 = vmatpush3.bf16.msra.mxu0 %v1973_v52 }
  0x95   :  { %1975 = vmatprep.subr.bf16.mxu0 %v2119_v36 }
  0x98   :  { %1977 = vmatpush3.bf16.msra.mxu0 %v1976_v54 }
  0x99   :  { %1978 = vmatprep.subr.bf16.mxu0 %v2119_v36 }
  0x9c   :  { %1980 = vmatpush3.bf16.msra.mxu0 %v1979_v57 }
  0x9d   :  { %1981 = vmatprep.subr.bf16.mxu0 %v2119_v36 }
  0xa0   :  { %1983 = vmatpush3.bf16.msra.mxu0 %v1982_v60 }
  0xf6   :  { %v1748_v61 = vpop.f32.mrb[0].mxu0 }
  0xf7   :  { %v1749_v62 = vpop.f32.mrb[1].mxu0  ;;  %v1770_v63 = vpop.f32.mrb[0].mxu1 }
  0xf8   :  { %v1750_v0 = vadd.f32 %v1749_v62, %v1748_v61  ;;  %v1751_v1 = vpop.f32.mrb[2].mxu0  ;;  %v1771_v2 = vpop.f32.mrb[1].mxu1 }
  0xf9   :  { %v1752_v3 = vpop.f32.mrb[3].mxu0  ;;  %v1772_v4 = vadd.f32 %v1771_v2, %v1770_v63  ;;  %v1773_v5 = vpop.f32.mrb[2].mxu1 }
  0xfa   :  { %v1774_v6 = vpop.f32.mrb[3].mxu1 }
  0xfb   :  { %v1244_v7 = vadd.f32 %v1772_v4, %v1750_v0 }
 0x116   :  { %v1792_v8 = vpop.f32.mrb[4].mxu0 }
 0x117   :  { %v1793_v9 = vpop.f32.mrb[5].mxu0 }
 0x118   :  { %v1814_v10 = vpop.f32.mrb[4].mxu1  ;;  %v1794_v11 = vadd.f32 %v1793_v9, %v1792_v8  ;;  %v1795_v12 = vpop.f32.mrb[6].mxu0 }
 0x119   :  { %v1815_v13 = vpop.f32.mrb[5].mxu1  ;;  %v1796_v14 = vpop.f32.mrb[7].mxu0 }
 0x11a   :  { %v1284_v15 = vadd.f32 %v1794_v11, %v1244_v7  ;;  %v1816_v16 = vadd.f32 %v1815_v13, %v1814_v10  ;;  %v1817_v17 = vpop.f32.mrb[6].mxu1 }
 0x11b   :  { %v1818_v18 = vpop.f32.mrb[7].mxu1 }
 0x11c   :  { %v1324_v19 = vadd.f32 %v1816_v16, %v1284_v15 }
 0x136   :  { %v1836_v20 = vpop.f32.mrb[8].mxu0 }
 0x137   :  { %v1837_v21 = vpop.f32.mrb[9].mxu0 }
 0x138   :  { %v1858_v22 = vpop.f32.mrb[8].mxu1  ;;  %v1838_v23 = vadd.f32 %v1837_v21, %v1836_v20  ;;  %v1839_v24 = vpop.f32.mrb[10].mxu0 }
 0x139   :  { %v1859_v25 = vpop.f32.mrb[9].mxu1  ;;  %v1840_v26 = vpop.f32.mrb[11].mxu0 }
 0x13a   :  { %v1364_v27 = vadd.f32 %v1838_v23, %v1324_v19  ;;  %v1860_v28 = vadd.f32 %v1859_v25, %v1858_v22  ;;  %v1861_v29 = vpop.f32.mrb[10].mxu1 }
 0x13b   :  { %v1862_v30 = vpop.f32.mrb[11].mxu1 }
 0x13c   :  { %v1404_v31 = vadd.f32 %v1860_v28, %v1364_v27 }
 0x156   :  { %v1880_v32 = vpop.f32.mrb[12].mxu0 }
 0x157   :  { %v1881_v33 = vpop.f32.mrb[13].mxu0 }
 0x158   :  { %v1902_v34 = vpop.f32.mrb[12].mxu1  ;;  %v1882_v36 = vadd.f32 %v1881_v33, %v1880_v32  ;;  %v1883_v37 = vpop.f32.mrb[14].mxu0 }
 0x159   :  { %v1903_v35 = vpop.f32.mrb[13].mxu1  ;;  %v1884_v38 = vpop.f32.mrb[15].mxu0 }
 0x15a   :  { %v1444_v39 = vadd.f32 %v1882_v36, %v1404_v31  ;;  %v1904_v40 = vadd.f32 %v1903_v35, %v1902_v34  ;;  %v1905_v41 = vpop.f32.mrb[14].mxu1 }
 0x15b   :  { %v1906_v42 = vpop.f32.mrb[15].mxu1 }
 0x15c   :  { %v1484_v44 = vadd.f32 %v1904_v40, %v1444_v39 }
 0x15e   :  { %v1489_v45 = vadd.f32 %v1484_v44, %v26_v43 }
 0x160   :  { %1490 = vst [vmem:[#allocation2] sm:$0x3] %v1489_v45 }
 0x167   :  { %v1494_v47 = vld [vmem:[#allocation2] sm:$0x3] }
 0x168   :  { %v1502_v48 = vadd.f32 %v1730_v46, %v1494_v47 }
 0x16a   :  { %v1503_v49 = vmax.f32 %v1502_v48, 0.0 }
 0x16c   :  { %1958 = vmatmul.mubr.f32.vlgmr.msra.gmra.mrb[16].mxu0 %v1503_v49 }
 0x23f   :  { %v1593_v51 = vpop.f32.mrb[16].mxu0 }
 0x240   :  { %v1594_v52 = vadd.f32 %v1731_v50, %v1593_v51  ;;  %v1959_v53 = vpop.f32.mrb[17].mxu0 }
 0x242   :  { %1597 = vst [vmem:[%s2638_s5] sm:$0x3] %v1594_v52 }

// kernel: searchable_cnn_forward.4
= control target key start
LH: loop header
LB: loop body
LE: loop exit
PB: predicated region body
PF: predicated region fallthrough
CT: control target
= control target key end

     0   :  { %s3931_s18 = smov 0   ;;  %s3933_s19 = smov 0   ;;  %s4514_s0 = inlined_call_operand.vmem [shape: bf16[2,8,8,128], index: 0, kind: input, shape index: {}, may-alias: {0,1,2}]   ;;  %s4515_s1 = inlined_call_operand.vmem [shape: bf16[2,8,8,128], index: 1, kind: input, shape index: {}, may-alias: {0,1,2}]   ;;  %s4516_s2 = inlined_call_operand.vmem [shape: bf16[2,8,8,128], index: 2, kind: input, shape index: {}, may-alias: {0,1,2}]   ;;  %s4517_s3 = inlined_call_operand.vmem [shape: bf16[1152,128], index: 3, kind: input, shape index: {}]   ;;  %s4518_s4 = inlined_call_operand.vmem [shape: f32[2,128], index: 4, kind: input, shape index: {}]   ;;  %s4519_s5 = inlined_call_operand.vmem [shape: bf16[2,4,4,128], index: 5, kind: output, shape index: {}]  }
   0x1   :  { %s3935_s20 = smov 0  }
   0x2 LB: > { %s27_s1 = sadd.s32 1, %s3892_s19  ;;  %p3325_p0 = scmp.ge.s32.totalorder %s3896_s20, 1  ;;  %s3896_s20 = sphi %s3935_s20, %s15_s20   ;;  %s3892_s19 = sphi %s3933_s19, %s4529_s19   ;;  %s3888_s18 = sphi %s3931_s18, %s4528_s18  }
   0x3   : > { %p29_p1 = scmp.ge.s32.totalorder %s27_s1, 2  ;;  %p270_p2 = scmp.lt.s32.totalorder %s3896_s20, 3 }
   0x5   : > { %s4531_s1 = smov (%p29_p1, %s27_s1), 0  ;;  %p271_p3 = pnand %p3325_p0, %p270_p2 }
   0x6   : > { %v3790_v0 = vld [vmem:[%s4517_s3 + $0x100] sm:$0xff] (!%p271_p3)   ;;  %v3793_v3 = vld [vmem:[%s4517_s3 + $0x108] sm:$0xff] (!%p271_p3)   ;;  %v3796_v6 = vld [vmem:[%s4517_s3 + $0x110] sm:$0xff] (!%p271_p3)   ;;  %v3898_v7 = vmov (!%p271_p3), 0   ;;  %p331_p4 = scmp.lt.s32.totalorder (!%p271_p3), %s3888_s18, 1  ;;  %vm384_vm0 = vcmask (!%p271_p3), 1043459  }
   0x7   : > { %274 = sbr.rel (%p271_p3) target bundleno = 459 (0x1cb), region = 40  ;;  %v3791_v1 = vld [vmem:[%s4517_s3 + $0x140] sm:$0xff] (!%p271_p3)   ;;  %3495 = vmatprep.subr.bf16.mxu0 (!%p271_p3), %v3790_v0  ;;  %v3794_v4 = vld [vmem:[%s4517_s3 + $0x148] sm:$0xff] (!%p271_p3)   ;;  %471 = vst [vmem:[#allocation2 + $0x4] sm:$0xf] (!%p271_p3), %v3898_v7  ;;  %v3797_v8 = vld [vmem:[%s4517_s3 + $0x150] sm:$0xff] (!%p271_p3)  }
   0x8   : > { %v3792_v2 = vld [vmem:[%s4517_s3 + $0xc0] sm:$0xff] (!%p271_p3)   ;;  %3651 = vmatprep.subr.bf16.mxu1 (!%p271_p3), %v3791_v1  ;;  %v3795_v5 = vld [vmem:[%s4517_s3 + $0xc8] sm:$0xff] (!%p271_p3)   ;;  %482 = vst [vmem:[#allocation2 + $0x70] sm:$0xf] (!%p271_p3), %v3898_v7  ;;  %v3798_v9 = vld [vmem:[%s4517_s3 + $0xd0] sm:$0xff] (!%p271_p3)   ;;  %vm417_vm1 = vcmask (!%p271_p3), 1040384  }
   0x9   : > { %3496 = vmatpush3.bf16.msra.mxu0 (!%p271_p3), %v3792_v2  ;;  %3652 = vmatpush3.bf16.msra.mxu1 (!%p271_p3), %v3791_v1  ;;  %v3799_v10 = vld [vmem:[%s4517_s3 + $0x118] sm:$0xff] (!%p271_p3)   ;;  %v3802_v13 = vld [vmem:[%s4517_s3 + $0x120] sm:$0xff] (!%p271_p3)   ;;  %v3805_v16 = vld [vmem:[%s4517_s3 + $0x128] sm:$0xff] (!%p271_p3)   ;;  %vm385_vm2 = vsmask.f32 (!%p271_p3), 7950  ;;  %vm2536_vm11 = vcmask (!%p271_p3), 1043456  }
   0xa   : > { %3497 = vmatprep.subr.bf16.mxu0 (!%p271_p3), %v3793_v3  ;;  %3653 = vmatprep.subr.bf16.mxu1 (!%p271_p3), %v3794_v4  ;;  %v3800_v11 = vld [vmem:[%s4517_s3 + $0x158] sm:$0xff] (!%p271_p3)   ;;  %v3803_v14 = vld [vmem:[%s4517_s3 + $0x160] sm:$0xff] (!%p271_p3)   ;;  %v3806_v17 = vld [vmem:[%s4517_s3 + $0x168] sm:$0xff] (!%p271_p3)   ;;  %vm418_vm4 = vsmask.f32 (!%p271_p3), 256  ;;  %vm3132_vm12 = vcmask (!%p271_p3), 1041409  }
   0xb   : > { %v3801_v12 = vld [vmem:[%s4517_s3 + $0xd8] sm:$0xff] (!%p271_p3)   ;;  %v3804_v15 = vld [vmem:[%s4517_s3 + $0xe0] sm:$0xff] (!%p271_p3)   ;;  %v3807_v18 = vld [vmem:[%s4517_s3 + $0xe8] sm:$0xff] (!%p271_p3)   ;;  %vm506_vm6 = vsmask.f32 (!%p271_p3), 4368  ;;  %vm3135_vm13 = vcmask (!%p271_p3), 1042434  }
   0xc   : > { %v3808_v19 = vld [vmem:[%s4517_s3 + $0x130] sm:$0xff] (!%p271_p3)   ;;  %v3811_v22 = vld [vmem:[%s4517_s3 + $0x138] sm:$0xff] (!%p271_p3)   ;;  %vm4033_vm3 = vmand (!%p271_p3), %vm384_vm0, %vm385_vm2  ;;  %vm684_vm7 = vsmask.f32 (!%p271_p3), 3328  ;;  %vm685_vm8 = vsmask.f32 (!%p271_p3), 7440 }
   0xd   : > { %3498 = vmatpush3.bf16.msra.mxu0 (!%p271_p3), %v3795_v5  ;;  %3654 = vmatpush3.bf16.msra.mxu1 (!%p271_p3), %v3794_v4  ;;  %v3809_v20 = vld [vmem:[%s4517_s3 + $0x170] sm:$0xff] (!%p271_p3)   ;;  %v3812_v23 = vld [vmem:[%s4517_s3 + $0x178] sm:$0xff] (!%p271_p3)   ;;  %v390_v27 = vld [vmem:[#allocation2 + $0xc] sm:$0x8] (!%p271_p3) }
   0xe   : > { %3499 = vmatprep.subr.bf16.mxu0 %v3796_v6  ;;  %3655 = vmatprep.subr.bf16.mxu1 %v3797_v8  ;;  %s4533_s18 = smov (!%p331_p4, %s3888_s18), 1  ;;  %v3810_v21 = vld [vmem:[%s4517_s3 + $0xf0] sm:$0xff]   ;;  %v393_v28 = vld [vmem:[#allocation2 + $0x18] sm:$0x8]  ;;  %v391_v29 = vsel %vm4033_vm3, 0, %v390_v27  ;;  %vm4043_vm5 = vmand %vm417_vm1, %vm418_vm4 }
   0xf   : > { %s3482_s6 = sshll.u32 %s4533_s18, 5  ;;  %v394_v30 = vsel %vm4033_vm3, 0, %v393_v28  ;;  %v423_v32 = vld [vmem:[#allocation2 + $0x14] sm:$0x1]  ;;  %v3813_v33 = vld [vmem:[%s4517_s3 + $0xf8] sm:$0xff]   ;;  %v3815_v37 = vld [vmem:[%s4517_s3 + $0x40] sm:$0xff]  }
  0x10   : > { %s4019_s15 = scalar_lea.vmem %s4514_s0, %s3482_s6  ;;  %392 = vst [vmem:[#allocation2 + $0xc] sm:$0x8] %v391_v29  ;;  %395 = vst [vmem:[#allocation2 + $0x18] sm:$0x8] %v394_v30  ;;  %v424_v34 = vsel %vm4043_vm5, 0, %v423_v32  ;;  %v4060_v38 = vld [vmem:[%s4517_s3 + $0x80] sm:$0xff]  }
  0x11   : > { %3500 = vmatpush3.bf16.msra.mxu0 %v3798_v9  ;;  %3656 = vmatpush3.bf16.msra.mxu1 %v3797_v8  ;;  %v450_v24 = vld [vmem:[%s4019_s15] sm:$0xf]  ;;  %v451_v25 = vld [vmem:[%s4019_s15 + $0x4] sm:$0xf]  ;;  %425 = vst [vmem:[#allocation2 + $0x14] sm:$0x1] %v424_v34  ;;  %vm4071_vm9 = vmor %vm418_vm4, %vm506_vm6 }
  0x12   : > { %3501 = vmatprep.subr.bf16.mxu0 %v3799_v10  ;;  %3657 = vmatprep.subr.bf16.mxu1 %v3800_v11  ;;  %459 = vst [vmem:[#allocation2 + $0x10] sm:$0xf] %v450_v24  ;;  %460 = vst [vmem:[#allocation2 + $0x1c] sm:$0xf] %v451_v25  ;;  %v426_v35 = vld [vmem:[#allocation2 + $0x20] sm:$0x1] }
  0x13   : > { %v427_v36 = vsel %vm4043_vm5, 0, %v426_v35  ;;  %v429_v39 = vld [vmem:[#allocation2 + $0x2c] sm:$0x1]  ;;  %v432_v40 = vld [vmem:[#allocation2 + $0x38] sm:$0x1]  ;;  %vm4084_vm10 = vmor %vm684_vm7, %vm685_vm8  ;;  %s3486_s10 = sshll.u32 %s4533_s18, 3 }
  0x14   : > { %428 = vst [vmem:[#allocation2 + $0x20] sm:$0x1] %v427_v36  ;;  %v430_v41 = vsel %vm4043_vm5, 0, %v429_v39  ;;  %v433_v42 = vsel %vm4043_vm5, 0, %v432_v40  ;;  %v452_v43 = vld [vmem:[%s4019_s15 + $0x8] sm:$0xf]  ;;  %s4438_s13 = scalar_lea.vmem %s4519_s5, %s3486_s10 }
  0x15   : > { %3502 = vmatpush3.bf16.msra.mxu0 %v3801_v12  ;;  %3658 = vmatpush3.bf16.msra.mxu1 %v3800_v11  ;;  %v453_v44 = vld [vmem:[%s4019_s15 + $0xc] sm:$0xf]  ;;  %431 = vst [vmem:[#allocation2 + $0x2c] sm:$0x1] %v430_v41  ;;  %434 = vst [vmem:[#allocation2 + $0x38] sm:$0x1] %v433_v42 }
  0x16   : > { %3503 = vmatprep.subr.bf16.mxu0 %v3802_v13  ;;  %3659 = vmatprep.subr.bf16.mxu1 %v3803_v14  ;;  %461 = vst [vmem:[#allocation2 + $0x28] sm:$0xf] %v452_v43  ;;  %462 = vst [vmem:[#allocation2 + $0x34] sm:$0xf] %v453_v44  ;;  %v3817_v12 = vld [vmem:[%s4517_s3] sm:$0xff]   ;;  %v3818_v29 = vld [vmem:[%s4517_s3 + $0x48] sm:$0xff]  }
  0x17   : > { %v879_v49 = vld [vmem:[#allocation2 + $0xc] sm:$0x8]  ;;  %v881_v50 = vld [vmem:[#allocation2 + $0x18] sm:$0x8] }
  0x18   : > { %v896_v53 = vshrl.u32 %v879_v49, 16  ;;  %v909_v54 = vshrl.u32 %v881_v50, 16  ;;  %v1056_v57 = vld [vmem:[#allocation2 + $0x14] sm:$0x1]  ;;  %v3820_v44 = vld [vmem:[%s4517_s3 + $0x8] sm:$0xff]  }
  0x19   : > { %3504 = vmatpush3.bf16.msra.mxu0 %v3804_v15  ;;  %3660 = vmatpush3.bf16.msra.mxu1 %v3803_v14  ;;  %v3814_v45 = vld [vmem:[#allocation2 + $0x10] ss:$12 sps:$4 sm:$0xff]   ;;  %v1081_v5 = vshll.u32 %v1056_v57, 16 }
  0x1a   : > { %3505 = vmatprep.subr.bf16.mxu0 %v3805_v16  ;;  %3661 = vmatprep.subr.bf16.mxu1 %v3806_v17  ;;  %v880_v46 = vld [vmem:[#allocation2 + $0x10] sm:$0xf]  ;;  %v882_v47 = vld [vmem:[#allocation2 + $0x1c] sm:$0xf]  ;;  %v3354_v63 = vrot.slane %v896_v53, 11  ;;  %v3355_v0 = vrot.slane %v909_v54, 11 }
  0x1b   : > { %v1055_v48 = vld [vmem:[#allocation2 + $0x10] sm:$0xf]  ;;  %1439 = vmatprep.mubr.bf16.mxu0 %v3814_v45  ;;  %v901_v51 = vshrl.u32 %v880_v46, 16  ;;  %v904_v52 = vshll.u32 %v880_v46, 16  ;;  %v914_v55 = vshrl.u32 %v882_v47, 16  ;;  %v917_v56 = vshll.u32 %v882_v47, 16 }
  0x1c   : > { %v1057_v59 = vld [vmem:[#allocation2 + $0x1c] sm:$0xf]  ;;  %v1058_v60 = vld [vmem:[#allocation2 + $0x20] sm:$0x1]  ;;  %v1072_v61 = vshrl.u32 %v1055_v48, 16  ;;  %v1075_v2 = vshll.u32 %v1055_v48, 16 }
  0x1d   : > { %3506 = vmatpush3.bf16.msra.mxu0 %v3807_v18  ;;  %3662 = vmatpush3.bf16.msra.mxu1 %v3806_v17  ;;  %v903_v58 = vrot.slane %v901_v51, 7  ;;  %v916_v1 = vrot.slane %v914_v55, 7  ;;  %v1086_v6 = vshrl.u32 %v1057_v59, 16  ;;  %v1089_v9 = vshll.u32 %v1057_v59, 16  ;;  %v1059_v11 = vld [vmem:[#allocation2 + $0x28] sm:$0xf] }
  0x1e   : > { %3507 = vmatprep.subr.bf16.mxu0 %v3808_v19  ;;  %3663 = vmatprep.subr.bf16.mxu1 %v3809_v20  ;;  %v1074_v4 = vrot.slane %v1072_v61, 4  ;;  %v1077_v8 = vrot.slane %v1075_v2, 5  ;;  %v1095_v10 = vshll.u32 %v1058_v60, 16  ;;  %v1083_v14 = vrot.slane %v1081_v5, 5  ;;  %v1060_v16 = vld [vmem:[#allocation2 + $0x2c] sm:$0x1] }
  0x1f   : > { %v906_v3 = vor.u32 %v904_v52, %v903_v58  ;;  %v919_v7 = vor.u32 %v917_v56, %v916_v1  ;;  %v1088_v15 = vrot.slane %v1086_v6, 4  ;;  %v1061_v17 = vld [vmem:[#allocation2 + $0x34] sm:$0xf]  ;;  %v1100_v25 = vshrl.u32 %v1059_v11, 16  ;;  %v396_v51 = vld [vmem:[#allocation2 + $0x24] sm:$0x8] }
  0x20   : > { %v1078_v19 = vor.u32 %v1077_v8, %v1074_v4  ;;  %v1103_v27 = vshll.u32 %v1059_v11, 16  ;;  %v1109_v28 = vshll.u32 %v1060_v16, 16  ;;  %v1117_v34 = vshll.u32 %v1061_v17, 16  ;;  %v3822_v47 = vld [vmem:[%s4517_s3 + $0x50] sm:$0xff]   ;;  %v884_v56 = vld [vmem:[#allocation2 + $0x28] sm:$0xf] }
  0x21   : > { %3508 = vmatpush3.bf16.msra.mxu0 %v3810_v21  ;;  %3664 = vmatpush3.bf16.msra.mxu1 %v3809_v20  ;;  %v907_v13 = vsel %vm4071_vm9, %v3354_v63, %v906_v3  ;;  %v920_v18 = vsel %vm4071_vm9, %v3355_v0, %v919_v7  ;;  %v1091_v20 = vrot.slane %v1089_v9, 5  ;;  %v1097_v21 = vrot.slane %v1095_v10, 5  ;;  %v3821_v50 = vld [vmem:[#allocation2 + $0x28] ss:$12 sps:$4 sm:$0xff]   ;;  %v399_v55 = vld [vmem:[#allocation2 + $0x30] sm:$0x8] }
  0x22   : > { %3509 = vmatprep.subr.bf16.mxu0 %v3811_v22  ;;  %3665 = vmatprep.subr.bf16.mxu1 %v3812_v23  ;;  %v1062_v22 = vld [vmem:[#allocation2 + $0x38] sm:$0x1]  ;;  %v1079_v30 = vrot.slane %v1078_v19, 4  ;;  %v1102_v35 = vrot.slane %v1100_v25, 4  ;;  %v1105_v36 = vrot.slane %v1103_v27, 5  ;;  %v1119_v43 = vrot.slane %v1117_v34, 5 }
  0x23   : > { %v1092_v32 = vor.u32 %v1091_v20, %v1088_v15  ;;  %v1123_v39 = vshll.u32 %v1062_v22, 16  ;;  %v397_v54 = vsel %vm4033_vm3, 0, %v396_v51  ;;  %v400_v58 = vsel %vm4033_vm3, 0, %v399_v55  ;;  %v886_v59 = vld [vmem:[#allocation2 + $0x34] sm:$0xf]  ;;  %v3819_v63 = vld [vmem:[%s4517_s3 + $0x88] sm:$0xff]  }
  0x24   : > { %v1084_v40 = vsel %vm4084_vm10, %v1079_v30, %v1083_v14  ;;  %v1106_v45 = vor.u32 %v1105_v36, %v1102_v35  ;;  %398 = vst [vmem:[#allocation2 + $0x24] sm:$0x8] %v397_v54  ;;  %v927_v60 = vshrl.u32 %v884_v56, 16  ;;  %401 = vst [vmem:[#allocation2 + $0x30] sm:$0x8] %v400_v58  ;;  %v940_v0 = vshrl.u32 %v886_v59, 16 }
  0x25   : > { %3510 = vmatpush3.bf16.msra.mxu0 %v3813_v33  ;;  %3666 = vmatpush3.bf16.msra.mxu1 %v3812_v23  ;;  %v3362_v23 = vcombine.low %v907_v13, %v920_v18  ;;  %v1114_v33 = vshrl.u32 %v1061_v17, 16  ;;  %v1093_v41 = vrot.slane %v1092_v32, 4  ;;  %v1125_v46 = vrot.slane %v1123_v39, 5  ;;  %v3824_v3 = vld [vmem:[%s4517_s3 + $0x10] sm:$0xff]   ;;  %v3825_v6 = vld [vmem:[%s4517_s3 + $0x58] sm:$0xff]   ;;  %v3832_v32 = vld [vmem:[%s4517_s3 + $0x68] sm:$0xff]  }
  0x26   : > { %3547 = vmatprep.subr.bf16.mxu0 %v3815_v37  ;;  %3675 = vmatprep.subr.bf16.mxu1 %v4060_v38  ;;  %v1111_v37 = vrot.slane %v1109_v28, 5  ;;  %v1107_v53 = vrot.slane %v1106_v45, 4  ;;  %v930_v2 = vshll.u32 %v884_v56, 16  ;;  %v929_v5 = vrot.slane %v927_v60, 7  ;;  %v3823_v9 = vld [vmem:[%s4517_s3 + $0x90] sm:$0xff]   ;;  %v3827_v10 = vld [vmem:[%s4517_s3 + $0x18] sm:$0xff]  }
  0x27   : > { %v1116_v42 = vrot.slane %v1114_v33, 4  ;;  %v1098_v48 = vsel %vm4084_vm10, %v1093_v41, %v1097_v21  ;;  %v942_v7 = vrot.slane %v940_v0, 7  ;;  %v943_v8 = vshll.u32 %v886_v59, 16  ;;  %v454_v11 = vld [vmem:[%s4019_s15 + $0x10] sm:$0xf]  ;;  %v3826_v27 = vld [vmem:[%s4517_s3 + $0x98] sm:$0xff]  }
  0x28   : > { %1440 = vmatmul.mubr.bf16.vlgmr.msra.gmra.mrb[0].mxu0 %v3362_v23  ;;  %v3370_v52 = vcombine.low %v1084_v40, %v1098_v48  ;;  %v1112_v61 = vsel %vm4084_vm10, %v1107_v53, %v1111_v37  ;;  %v455_v13 = vld [vmem:[%s4019_s15 + $0x14] sm:$0xf]  ;;  %463 = vst [vmem:[#allocation2 + $0x40] sm:$0xf] %v454_v11  ;;  %v402_v14 = vld [vmem:[#allocation2 + $0x3c] sm:$0x8]  ;;  %v932_v17 = vor.u32 %v930_v2, %v929_v5 }
  0x29   : > { %3548 = vmatpush3.bf16.msra.mxu0 %v3817_v12  ;;  %v1120_v49 = vor.u32 %v1119_v43, %v1116_v42  ;;  %1447 = vmatprep.mubr.bf16.mxu0 %v3821_v50  ;;  %464 = vst [vmem:[#allocation2 + $0x4c] sm:$0xf] %v455_v13  ;;  %v403_v18 = vsel %vm4033_vm3, 0, %v402_v14  ;;  %v405_v19 = vld [vmem:[#allocation2 + $0x48] sm:$0x8]  ;;  %v945_v20 = vor.u32 %v943_v8, %v942_v7  ;;  %v3829_v23 = vld [vmem:[%s4517_s3 + $0x60] sm:$0xff]  }
  0x2a   : > { %3549 = vmatprep.subr.bf16.mxu0 %v3818_v29  ;;  %3667 = vmatprep.mubr.bf16.mxu1 %v3370_v52  ;;  %404 = vst [vmem:[#allocation2 + $0x3c] sm:$0x8] %v403_v18  ;;  %v406_v21 = vsel %vm4033_vm3, 0, %v405_v19  ;;  %v3831_v29 = vld [vmem:[%s4517_s3 + $0x20] sm:$0xff]   ;;  %v3836_v50 = vld [vmem:[%s4517_s3 + $0x70] sm:$0xff]   ;;  %v3833_v52 = vld [vmem:[%s4517_s3 + $0xa8] sm:$0xff]  }
  0x2b   : > { %v1121_v57 = vrot.slane %v1120_v49, 4  ;;  %v883_v12 = vld [vmem:[#allocation2 + $0x24] sm:$0x8]  ;;  %v885_v15 = vld [vmem:[#allocation2 + $0x30] sm:$0x8]  ;;  %v3839_v13 = vld [vmem:[%s4517_s3 + $0x78] sm:$0xff]  }
  0x2c   : > { %v922_v16 = vshrl.u32 %v883_v12, 16  ;;  %407 = vst [vmem:[#allocation2 + $0x48] sm:$0x8] %v406_v21  ;;  %v3830_v35 = vld [vmem:[%s4517_s3 + $0xa0] sm:$0xff]   ;;  %v456_v53 = vld [vmem:[%s4019_s15 + $0x18] sm:$0xf] }
  0x2d   : > { %3550 = vmatpush3.bf16.msra.mxu0 %v3820_v44  ;;  %v1126_v1 = vsel %vm4084_vm10, %v1121_v57, %v1125_v46  ;;  %v3834_v46 = vld [vmem:[%s4517_s3 + $0x28] sm:$0xff]   ;;  %v457_v54 = vld [vmem:[%s4019_s15 + $0x1c] sm:$0xf]  ;;  %465 = vst [vmem:[#allocation2 + $0x58] sm:$0xf] %v456_v53  ;;  %v3838_v60 = vld [vmem:[%s4517_s3 + $0x30] sm:$0xff]  }
  0x2e   : > { %3551 = vmatprep.subr.bf16.mxu0 %v3822_v47  ;;  %v3371_v4 = vcombine.low %v1112_v61, %v1126_v1  ;;  %v3356_v22 = vrot.slane %v922_v16, 11  ;;  %466 = vst [vmem:[#allocation2 + $0x64] sm:$0xf] %v457_v54  ;;  %v408_v58 = vld [vmem:[#allocation2 + $0x54] sm:$0x8]  ;;  %v3840_v18 = vld [vmem:[%s4517_s3 + $0xb8] sm:$0xff]  }
  0x2f   : > { %v888_v34 = vld [vmem:[#allocation2 + $0x40] sm:$0xf]  ;;  %v409_v61 = vsel %vm4033_vm3, 0, %v408_v58  ;;  %v435_v0 = vld [vmem:[#allocation2 + $0x44] sm:$0x1]  ;;  %v3837_v2 = vld [vmem:[%s4517_s3 + $0xb0] sm:$0xff]  }
  0x30   : > { %3668 = vmatmul.mubr.bf16.vlgmr.msra.gmra.mrb[0].mxu1 %v3371_v4  ;;  %v933_v28 = vsel %vm4071_vm9, %v3356_v22, %v932_v17  ;;  %v3828_v36 = vld [vmem:[#allocation2 + $0x40] ss:$12 sps:$4 sm:$0xff]   ;;  %v953_v40 = vshrl.u32 %v888_v34, 16  ;;  %v956_v41 = vshll.u32 %v888_v34, 16  ;;  %v438_v1 = vld [vmem:[#allocation2 + $0x50] sm:$0x1] }
  0x31   : > { %3552 = vmatpush3.bf16.msra.mxu0 %v3824_v3  ;;  %3676 = vmatpush3.bf16.msra.mxu1 %v4060_v38  ;;  %v935_v38 = vshrl.u32 %v885_v15, 16  ;;  %v890_v37 = vld [vmem:[#allocation2 + $0x4c] sm:$0xf]  ;;  %v887_v39 = vld [vmem:[#allocation2 + $0x3c] sm:$0x8]  ;;  %v436_v5 = vsel %vm4043_vm5, 0, %v435_v0 }
  0x32   : > { %3553 = vmatprep.subr.bf16.mxu0 %v3825_v6  ;;  %3677 = vmatprep.subr.bf16.mxu1 %v3819_v63  ;;  %v966_v42 = vshrl.u32 %v890_v37, 16  ;;  %v969_v43 = vshll.u32 %v890_v37, 16  ;;  %v948_v45 = vshrl.u32 %v887_v39, 16  ;;  %v955_v47 = vrot.slane %v953_v40, 7  ;;  %v411_v59 = vld [vmem:[#allocation2 + $0x60] sm:$0x8] }
  0x33   : > { %v3357_v25 = vrot.slane %v935_v38, 11  ;;  %v889_v44 = vld [vmem:[#allocation2 + $0x48] sm:$0x8]  ;;  %410 = vst [vmem:[#allocation2 + $0x54] sm:$0x8] %v409_v61  ;;  %v439_v6 = vsel %vm4043_vm5, 0, %v438_v1 }
  0x34   : > { %v961_v48 = vshrl.u32 %v889_v44, 16  ;;  %v968_v49 = vrot.slane %v966_v42, 7  ;;  %v3358_v51 = vrot.slane %v948_v45, 11  ;;  %v958_v55 = vor.u32 %v956_v41, %v955_v47  ;;  %v1063_v7 = vld [vmem:[#allocation2 + $0x40] sm:$0xf]  ;;  %v3841_v19 = vld [vmem:[%s4517_s3 + $0x38] sm:$0xff]  }
  0x35   : > { %3554 = vmatpush3.bf16.msra.mxu0 %v3827_v10  ;;  %3678 = vmatpush3.bf16.msra.mxu1 %v3819_v63  ;;  %v946_v30 = vsel %vm4071_vm9, %v3357_v25, %v945_v20  ;;  %v412_v63 = vsel %vm4033_vm3, 0, %v411_v59  ;;  %v1065_v8 = vld [vmem:[#allocation2 + $0x4c] sm:$0xf]  ;;  %437 = vst [vmem:[#allocation2 + $0x44] sm:$0x1] %v436_v5  ;;  %v1128_v10 = vshrl.u32 %v1063_v7, 16 }
  0x36   : > { %3679 = vmatprep.subr.bf16.mxu1 %v3823_v9  ;;  %3555 = vmatprep.subr.bf16.mxu0 %v3829_v23  ;;  %v3363_v33 = vcombine.low %v933_v28, %v946_v30  ;;  %v3359_v56 = vrot.slane %v961_v48, 11  ;;  %v971_v57 = vor.u32 %v969_v43, %v968_v49  ;;  %v959_v3 = vsel %vm4071_vm9, %v3358_v51, %v958_v55  ;;  %v441_v20 = vld [vmem:[#allocation2 + $0x5c] sm:$0x1]  ;;  %v444_v21 = vld [vmem:[#allocation2 + $0x68] sm:$0x1]  ;;  %v3843_v22 = vld [vmem:[%s4517_s3 + $0x1c0] sm:$0xff]  }
  0x37   : > { %413 = vst [vmem:[#allocation2 + $0x60] sm:$0x8] %v412_v63  ;;  %440 = vst [vmem:[#allocation2 + $0x50] sm:$0x1] %v439_v6  ;;  %v1131_v11 = vshll.u32 %v1063_v7, 16  ;;  %v1142_v12 = vshrl.u32 %v1065_v8, 16 }
  0x38   : > { %1448 = vmatmul.mubr.bf16.gmra.mrb[4].mxu0 %v3363_v33  ;;  %v972_v4 = vsel %vm4071_vm9, %v3359_v56, %v971_v57  ;;  %v1145_v14 = vshll.u32 %v1065_v8, 16  ;;  %v1130_v15 = vrot.slane %v1128_v10, 4  ;;  %v3835_v23 = vld [vmem:[#allocation2 + $0x58] ss:$12 sps:$4 sm:$0xff]   ;;  %v442_v30 = vsel %vm4043_vm5, 0, %v441_v20 }
  0x39   : > { %3680 = vmatpush3.bf16.msra.mxu1 %v3823_v9  ;;  %3556 = vmatpush3.bf16.msra.mxu0 %v3831_v29  ;;  %v3364_v9 = vcombine.low %v959_v3, %v972_v4  ;;  %v1133_v16 = vrot.slane %v1131_v11, 5  ;;  %v1144_v17 = vrot.slane %v1142_v12, 4  ;;  %v894_v28 = vld [vmem:[#allocation2 + $0x64] sm:$0xf]  ;;  %443 = vst [vmem:[#allocation2 + $0x5c] sm:$0x1] %v442_v30 }
  0x3a   : > { %3681 = vmatprep.subr.bf16.mxu1 %v3826_v27  ;;  %3557 = vmatprep.subr.bf16.mxu0 %v3832_v32  ;;  %v1147_v38 = vrot.slane %v1145_v14, 5  ;;  %v445_v32 = vsel %vm4043_vm5, 0, %v444_v21  ;;  %v891_v33 = vld [vmem:[#allocation2 + $0x54] sm:$0x8]  ;;  %v992_v40 = vshrl.u32 %v894_v28, 16  ;;  %v995_v41 = vshll.u32 %v894_v28, 16 }
  0x3b   : > { %1455 = vmatprep.mubr.bf16.mxu0 %v3828_v36  ;;  %v1134_v25 = vor.u32 %v1133_v16, %v1130_v15  ;;  %446 = vst [vmem:[#allocation2 + $0x68] sm:$0x1] %v445_v32  ;;  %v974_v37 = vshrl.u32 %v891_v33, 16  ;;  %v1069_v55 = vld [vmem:[#allocation2 + $0x64] sm:$0xf] }
  0x3c   : > { %v1148_v29 = vor.u32 %v1147_v38, %v1144_v17  ;;  %v1064_v42 = vld [vmem:[#allocation2 + $0x44] sm:$0x1]  ;;  %v1170_v61 = vshrl.u32 %v1069_v55, 16  ;;  %v1173_v63 = vshll.u32 %v1069_v55, 16  ;;  %v387_v21 = vld [vmem:[#allocation2] sm:$0x8] }
  0x3d   : > { %3682 = vmatpush3.bf16.msra.mxu1 %v3826_v27  ;;  %3558 = vmatpush3.bf16.msra.mxu0 %v3834_v46  ;;  %v892_v27 = vld [vmem:[#allocation2 + $0x58] sm:$0xf]  ;;  %v1135_v45 = vrot.slane %v1134_v25, 4  ;;  %v1137_v46 = vshll.u32 %v1064_v42, 16  ;;  %v3360_v48 = vrot.slane %v974_v37, 11  ;;  %v4198_v58 = vld [vmem:[%s4517_s3 + $0x200] sm:$0xff]  }
  0x3e   : > { %3683 = vmatprep.subr.bf16.mxu1 %v3830_v35  ;;  %3559 = vmatprep.subr.bf16.mxu0 %v3836_v50  ;;  %v893_v34 = vld [vmem:[#allocation2 + $0x60] sm:$0x8]  ;;  %v982_v36 = vshll.u32 %v892_v27, 16  ;;  %v1066_v44 = vld [vmem:[#allocation2 + $0x50] sm:$0x1]  ;;  %v1149_v47 = vrot.slane %v1148_v29, 4 }
  0x3f   : > { %v987_v39 = vshrl.u32 %v893_v34, 16  ;;  %v994_v50 = vrot.slane %v992_v40, 7  ;;  %v1151_v51 = vshll.u32 %v1066_v44, 16  ;;  %v1139_v54 = vrot.slane %v1137_v46, 5  ;;  %v3842_v38 = vld [vmem:[#allocation2 + $0x4] ss:$12 sps:$4 sm:$0xff]  }
  0x40   : > { %1456 = vmatmul.mubr.bf16.gmra.mrb[8].mxu0 %v3364_v9  ;;  %v1068_v6 = vld [vmem:[#allocation2 + $0x5c] sm:$0x1]  ;;  %v1172_v8 = vrot.slane %v1170_v61, 4  ;;  %v1175_v9 = vrot.slane %v1173_v63, 5  ;;  %v493_v28 = vld [vmem:[#allocation2 + $0x10] sm:$0xf] }
  0x41   : > { %3684 = vmatpush3.bf16.msra.mxu1 %v3830_v35  ;;  %3560 = vmatpush3.bf16.msra.mxu0 %v3838_v60  ;;  %v979_v35 = vshrl.u32 %v892_v27, 16  ;;  %v3361_v49 = vrot.slane %v987_v39, 11  ;;  %v997_v59 = vor.u32 %v995_v41, %v994_v50  ;;  %v1153_v60 = vrot.slane %v1151_v51, 5  ;;  %v668_v39 = vld [vmem:[#allocation2 + $0x4] sm:$0xf] }
  0x42   : > { %3685 = vmatprep.subr.bf16.mxu1 %v3833_v52  ;;  %3561 = vmatprep.subr.bf16.mxu0 %v3839_v13  ;;  %v1140_v1 = vsel %vm4084_vm10, %v1135_v45, %v1139_v54  ;;  %v1070_v7 = vld [vmem:[#allocation2 + $0x68] sm:$0x1]  ;;  %v1165_v13 = vshll.u32 %v1068_v6, 16  ;;  %v1176_v14 = vor.u32 %v1175_v9, %v1172_v8  ;;  %v388_v27 = vsel %vm4033_vm3, 0, %v387_v21  ;;  %v670_v40 = vld [vmem:[#allocation2 + $0x10] sm:$0xf] }
  0x43   : > { %1463 = vmatprep.mubr.bf16.mxu0 %v3835_v23  ;;  %v981_v43 = vrot.slane %v979_v35, 7  ;;  %v998_v4 = vsel %vm4071_vm9, %v3361_v49, %v997_v59  ;;  %v1154_v5 = vsel %vm4084_vm10, %v1149_v47, %v1153_v60  ;;  %v1179_v15 = vshll.u32 %v1070_v7, 16  ;;  %v492_v23 = vld [vmem:[#allocation2 + $0xc] sm:$0x8]  ;;  %389 = vst [vmem:[#allocation2] sm:$0x8] %v388_v27 }
  0x44   : > { %v3372_v11 = vcombine.low %v1140_v1, %v1154_v5  ;;  %v1167_v17 = vrot.slane %v1165_v13, 5  ;;  %v522_v32 = vshrl.u32 %v492_v23, 16  ;;  %v527_v33 = vshrl.u32 %v493_v28, 16  ;;  %v420_v35 = vld [vmem:[#allocation2 + $0x8] sm:$0x1] }
  0x45   : > { %3686 = vmatpush3.bf16.msra.mxu1 %v3833_v52  ;;  %3562 = vmatpush3.bf16.msra.mxu0 %v3841_v19  ;;  %v1067_v52 = vld [vmem:[#allocation2 + $0x58] sm:$0xf]  ;;  %v984_v53 = vor.u32 %v982_v36, %v981_v43  ;;  %v1181_v19 = vrot.slane %v1179_v15, 5  ;;  %v530_v34 = vshll.u32 %v493_v28, 16  ;;  %v421_v37 = vsel %vm4043_vm5, 0, %v420_v35 }
  0x46   : > { %3687 = vmatprep.subr.bf16.mxu1 %v3837_v2  ;;  %3599 = vmatprep.subr.bf16.mxu0 %v3843_v22  ;;  %v1156_v56 = vshrl.u32 %v1067_v52, 16  ;;  %v1159_v57 = vshll.u32 %v1067_v52, 16  ;;  %v491_v22 = vld [vmem:[#allocation2 + $0x4] sm:$0xf]  ;;  %v529_v42 = vrot.slane %v527_v33, 7  ;;  %v688_v44 = vshrl.u32 %v668_v39, 16 }
  0x47   : > { %v985_v0 = vsel %vm4071_vm9, %v3360_v48, %v984_v53  ;;  %3671 = vmatprep.mubr.bf16.mxu1 %v3372_v11  ;;  %v514_v29 = vshrl.u32 %v491_v22, 16  ;;  %v517_v36 = vshll.u32 %v491_v22, 16  ;;  %422 = vst [vmem:[#allocation2 + $0x8] sm:$0x1] %v421_v37  ;;  %v671_v43 = vld [vmem:[#allocation2 + $0x14] sm:$0x1] }
  0x48   : > { %v1161_v3 = vrot.slane %v1159_v57, 5  ;;  %v3365_v10 = vcombine.low %v985_v0, %v998_v4  ;;  %v691_v45 = vshll.u32 %v668_v39, 16  ;;  %v3335_v46 = vrot.slane %v522_v32, 11  ;;  %v672_v59 = vld [vmem:[#allocation2 + $0x1c] sm:$0xf]  ;;  %v3848_v37 = vld [vmem:[%s4517_s3 + $0x188] sm:$0xff]  }
  0x49   : > { %3688 = vmatpush3.bf16.msra.mxu1 %v3837_v2  ;;  %v1158_v2 = vrot.slane %v1156_v56, 4  ;;  %v516_v41 = vrot.slane %v514_v29, 7  ;;  %v702_v47 = vshrl.u32 %v670_v40, 16  ;;  %v705_v48 = vshll.u32 %v670_v40, 16  ;;  %v673_v60 = vld [vmem:[#allocation2 + $0x20] sm:$0x1] }
  0x4a   : > { %3689 = vmatprep.subr.bf16.mxu1 %v3840_v18  ;;  %1464 = vmatmul.mubr.bf16.gmra.mrb[12].mxu0 %v3365_v10  ;;  %v711_v49 = vshll.u32 %v671_v43, 16  ;;  %v532_v50 = vor.u32 %v530_v34, %v529_v42  ;;  %v690_v51 = vrot.slane %v688_v44, 4  ;;  %v693_v52 = vrot.slane %v691_v45, 5  ;;  %v674_v61 = vld [vmem:[#allocation2 + $0x28] sm:$0xf] }
  0x4b   : > { %v1162_v12 = vor.u32 %v1161_v3, %v1158_v2  ;;  %1713 = vmatprep.mubr.bf16.mxu0 %v3842_v38  ;;  %v704_v53 = vrot.slane %v702_v47, 4  ;;  %v707_v54 = vrot.slane %v705_v48, 5  ;;  %v519_v56 = vor.u32 %v517_v36, %v516_v41  ;;  %v490_v63 = vld [vmem:[#allocation2] sm:$0x8]  ;;  %v675_v2 = vld [vmem:[#allocation2 + $0x2c] sm:$0x1] }
  0x4c   : > { %v713_v55 = vrot.slane %v711_v49, 5  ;;  %v694_v57 = vor.u32 %v693_v52, %v690_v51  ;;  %v533_v0 = vsel %vm4071_vm9, %v3335_v46, %v532_v50  ;;  %v716_v3 = vshrl.u32 %v672_v59, 16  ;;  %v3849_v33 = vld [vmem:[#allocation2 + $0x1c] ss:$12 sps:$4 sm:$0xff]   ;;  %v494_v39 = vld [vmem:[#allocation2 + $0x18] sm:$0x8] }
  0x4d   : > { %3690 = vmatpush3.bf16.msra.mxu1 %v3840_v18  ;;  %v1163_v16 = vrot.slane %v1162_v12, 4  ;;  %v1177_v18 = vrot.slane %v1176_v14, 4  ;;  %v708_v1 = vor.u32 %v707_v54, %v704_v53  ;;  %v719_v4 = vshll.u32 %v672_v59, 16  ;;  %v495_v40 = vld [vmem:[#allocation2 + $0x1c] sm:$0xf]  ;;  %v3847_v41 = vld [vmem:[%s4517_s3 + $0x208] sm:$0xff]  }
  0x4e   : > { %3699 = vmatprep.subr.bf16.mxu1 %v4198_v58  ;;  %v509_v5 = vshrl.u32 %v490_v63, 16  ;;  %v695_v6 = vrot.slane %v694_v57, 4  ;;  %v725_v7 = vshll.u32 %v673_v60, 16  ;;  %v730_v8 = vshrl.u32 %v674_v61, 16  ;;  %v669_v9 = vld [vmem:[#allocation2 + $0x8] sm:$0x1] }
  0x4f   : > { %v1168_v20 = vsel %vm4084_vm10, %v1163_v16, %v1167_v17  ;;  %v1182_v25 = vsel %vm4084_vm10, %v1177_v18, %v1181_v19  ;;  %v709_v10 = vrot.slane %v708_v1, 4  ;;  %v718_v11 = vrot.slane %v716_v3, 4  ;;  %v3845_v18 = vld [vmem:[%s4517_s3 + $0x180] sm:$0xff]   ;;  %v497_v43 = vld [vmem:[#allocation2 + $0x28] sm:$0xf]  ;;  %v3850_v50 = vld [vmem:[%s4517_s3 + $0x1d0] sm:$0xff]  }
  0x50   : > { %v3373_v30 = vcombine.low %v1168_v20, %v1182_v25  ;;  %v721_v12 = vrot.slane %v719_v4, 5  ;;  %v733_v13 = vshll.u32 %v674_v61, 16  ;;  %v3334_v14 = vrot.slane %v509_v5, 11  ;;  %v3846_v25 = vld [vmem:[%s4517_s3 + $0x1c8] sm:$0xff]   ;;  %v496_v42 = vld [vmem:[#allocation2 + $0x24] sm:$0x8] }
  0x51   : > { %v697_v15 = vshll.u32 %v669_v9, 16  ;;  %v727_v16 = vrot.slane %v725_v7, 5  ;;  %v732_v17 = vrot.slane %v730_v8, 4  ;;  %v739_v20 = vshll.u32 %v675_v2, 16  ;;  %v3853_v59 = vld [vmem:[%s4517_s3 + $0x1d8] sm:$0xff]   ;;  %v3851_v61 = vld [vmem:[%s4517_s3 + $0x210] sm:$0xff]  }
  0x52   : > { %3672 = vmatmul.mubr.bf16.gmra.mrb[4].mxu1 %v3373_v30  ;;  %v722_v19 = vor.u32 %v721_v12, %v718_v11  ;;  %v735_v38 = vrot.slane %v733_v13, 5  ;;  %v520_v21 = vsel %vm4071_vm9, %v3334_v14, %v519_v56  ;;  %v714_v23 = vsel %vm4084_vm10, %v709_v10, %v713_v55  ;;  %v3852_v55 = vld [vmem:[%s4517_s3 + $0x190] sm:$0xff]   ;;  %v3855_v1 = vld [vmem:[%s4517_s3 + $0x198] sm:$0xff]   ;;  %v3857_v5 = vld [vmem:[%s4517_s3 + $0x1e0] sm:$0xff]  }
  0x53   : > { %v699_v22 = vrot.slane %v697_v15, 5  ;;  %v3342_v27 = vcombine.low %v520_v21, %v533_v0  ;;  %v741_v30 = vrot.slane %v739_v20, 5  ;;  %v535_v44 = vshrl.u32 %v494_v39, 16  ;;  %v3856_v3 = vld [vmem:[#allocation2 + $0x34] ss:$12 sps:$4 sm:$0xff]   ;;  %v3860_v21 = vld [vmem:[%s4517_s3 + $0x1e8] sm:$0xff]  }
  0x54   : > { %v723_v28 = vrot.slane %v722_v19, 4  ;;  %v736_v29 = vor.u32 %v735_v38, %v732_v17  ;;  %v540_v45 = vshrl.u32 %v495_v40, 16  ;;  %v543_v47 = vshll.u32 %v495_v40, 16  ;;  %v498_v4 = vld [vmem:[#allocation2 + $0x30] sm:$0x8]  ;;  %v3859_v38 = vld [vmem:[%s4517_s3 + $0x1a0] sm:$0xff]  }
  0x55   : > { %v700_v32 = vsel %vm4084_vm10, %v695_v6, %v699_v22  ;;  %1714 = vmatmul.mubr.bf16.vlgmr.msra.gmra.mrb[16].mxu0 %v3342_v27  ;;  %v548_v48 = vshrl.u32 %v496_v42, 16  ;;  %v553_v49 = vshrl.u32 %v497_v43, 16  ;;  %v3336_v52 = vrot.slane %v535_v44, 11  ;;  %v3854_v6 = vld [vmem:[%s4517_s3 + $0x218] sm:$0xff]   ;;  %v499_v7 = vld [vmem:[#allocation2 + $0x34] sm:$0xf] }
  0x56   : > { %v3350_v34 = vcombine.low %v700_v32, %v714_v23  ;;  %v728_v35 = vsel %vm4084_vm10, %v723_v28, %v727_v16  ;;  %v737_v36 = vrot.slane %v736_v29, 4  ;;  %3600 = vmatpush3.bf16.msra.mxu0 %v3845_v18  ;;  %1721 = vmatprep.mubr.bf16.mxu0 %v3849_v33  ;;  %v542_v53 = vrot.slane %v540_v45, 7  ;;  %v500_v8 = vld [vmem:[#allocation2 + $0x3c] sm:$0x8]  ;;  %v501_v9 = vld [vmem:[#allocation2 + $0x40] sm:$0xf] }
  0x57   : > { %3601 = vmatprep.subr.bf16.mxu0 %v3846_v25  ;;  %v556_v54 = vshll.u32 %v497_v43, 16  ;;  %v3337_v56 = vrot.slane %v548_v48, 11  ;;  %v555_v57 = vrot.slane %v553_v49, 7  ;;  %v561_v10 = vshrl.u32 %v498_v4, 16  ;;  %v3858_v23 = vld [vmem:[%s4517_s3 + $0x220] sm:$0xff]   ;;  %v3862_v27 = vld [vmem:[%s4517_s3 + $0x1a8] sm:$0xff]  }
  0x58   : > { %3691 = vmatprep.mubr.bf16.mxu1 %v3350_v34  ;;  %v742_v46 = vsel %vm4084_vm10, %v737_v36, %v741_v30  ;;  %v545_v60 = vor.u32 %v543_v47, %v542_v53  ;;  %v566_v11 = vshrl.u32 %v499_v7, 16  ;;  %v569_v12 = vshll.u32 %v499_v7, 16  ;;  %v3861_v29 = vld [vmem:[%s4517_s3 + $0x228] sm:$0xff]   ;;  %v676_v33 = vld [vmem:[#allocation2 + $0x34] sm:$0xf] }
  0x59   : > { %v3351_v51 = vcombine.low %v728_v35, %v742_v46  ;;  %v558_v63 = vor.u32 %v556_v54, %v555_v57  ;;  %v574_v13 = vshrl.u32 %v500_v8, 16  ;;  %v579_v14 = vshrl.u32 %v501_v9, 16  ;;  %v3863_v30 = vld [vmem:[#allocation2 + $0x4c] ss:$12 sps:$4 sm:$0xff]   ;;  %v678_v35 = vld [vmem:[#allocation2 + $0x40] sm:$0xf] }
  0x5a   : > { %3602 = vmatpush3.bf16.msra.mxu0 %v3848_v37  ;;  %v546_v0 = vsel %vm4071_vm9, %v3336_v52, %v545_v60  ;;  %v582_v15 = vshll.u32 %v501_v9, 16  ;;  %v3338_v16 = vrot.slane %v561_v10, 11  ;;  %v568_v17 = vrot.slane %v566_v11, 7  ;;  %v677_v34 = vld [vmem:[#allocation2 + $0x38] sm:$0x1] }
  0x5b   : > { %3692 = vmatmul.mubr.bf16.vlgmr.msra.gmra.mrb[0].mxu1 %v3351_v51  ;;  %3603 = vmatprep.subr.bf16.mxu0 %v3850_v50  ;;  %v559_v2 = vsel %vm4071_vm9, %v3337_v56, %v558_v63  ;;  %v3339_v18 = vrot.slane %v574_v13, 11  ;;  %v581_v19 = vrot.slane %v579_v14, 7  ;;  %v679_v36 = vld [vmem:[#allocation2 + $0x44] sm:$0x1]  ;;  %v744_v37 = vshrl.u32 %v676_v33, 16  ;;  %v3864_v63 = vld [vmem:[%s4517_s3 + $0x1f0] sm:$0xff]  }
  0x5c   : > { %3700 = vmatpush3.bf16.msra.mxu1 %v4198_v58  ;;  %v3343_v58 = vcombine.low %v546_v0, %v559_v2  ;;  %v571_v20 = vor.u32 %v569_v12, %v568_v17  ;;  %v747_v39 = vshll.u32 %v676_v33, 16  ;;  %v753_v40 = vshll.u32 %v677_v34, 16  ;;  %v502_v44 = vld [vmem:[#allocation2 + $0x48] sm:$0x8]  ;;  %v503_v45 = vld [vmem:[#allocation2 + $0x4c] sm:$0xf] }
  0x5d   : > { %3701 = vmatprep.subr.bf16.mxu1 %v3847_v41  ;;  %v584_v22 = vor.u32 %v582_v15, %v581_v19  ;;  %v761_v42 = vshll.u32 %v678_v35, 16  ;;  %v767_v43 = vshll.u32 %v679_v36, 16  ;;  %v746_v46 = vrot.slane %v744_v37, 4  ;;  %v504_v50 = vld [vmem:[#allocation2 + $0x54] sm:$0x8]  ;;  %v3867_v33 = vld [vmem:[%s4517_s3 + $0x1f8] sm:$0xff]  }
  0x5e   : > { %3604 = vmatpush3.bf16.msra.mxu0 %v3852_v55  ;;  %v572_v25 = vsel %vm4071_vm9, %v3338_v16, %v571_v20  ;;  %v749_v47 = vrot.slane %v747_v39, 5  ;;  %v755_v48 = vrot.slane %v753_v40, 5  ;;  %v505_v53 = vld [vmem:[#allocation2 + $0x58] sm:$0xf]  ;;  %v587_v54 = vshrl.u32 %v502_v44, 16  ;;  %v3866_v15 = vld [vmem:[%s4517_s3 + $0x1b0] sm:$0xff]  }
  0x5f   : > { %3605 = vmatprep.subr.bf16.mxu0 %v3853_v59  ;;  %1722 = vmatmul.mubr.bf16.gmra.mrb[20].mxu0 %v3343_v58  ;;  %v585_v28 = vsel %vm4071_vm9, %v3339_v18, %v584_v22  ;;  %v763_v51 = vrot.slane %v761_v42, 5  ;;  %v769_v52 = vrot.slane %v767_v43, 5  ;;  %v592_v55 = vshrl.u32 %v503_v45, 16  ;;  %v681_v4 = vld [vmem:[#allocation2 + $0x50] sm:$0x1]  ;;  %v3869_v40 = vld [vmem:[%s4517_s3 + $0x1b8] sm:$0xff]  }
  0x60   : > { %3702 = vmatpush3.bf16.msra.mxu1 %v3847_v41  ;;  %1729 = vmatprep.mubr.bf16.mxu0 %v3856_v3  ;;  %v3344_v32 = vcombine.low %v572_v25, %v585_v28  ;;  %v758_v41 = vshrl.u32 %v678_v35, 16  ;;  %v750_v56 = vor.u32 %v749_v47, %v746_v46  ;;  %v595_v57 = vshll.u32 %v503_v45, 16  ;;  %v682_v8 = vld [vmem:[#allocation2 + $0x58] sm:$0xf]  ;;  %v683_v12 = vld [vmem:[#allocation2 + $0x5c] sm:$0x1] }
  0x61   : > { %3703 = vmatprep.subr.bf16.mxu1 %v3851_v61  ;;  %v600_v59 = vshrl.u32 %v504_v50, 16  ;;  %v605_v60 = vshrl.u32 %v505_v53, 16  ;;  %v594_v2 = vrot.slane %v592_v55, 7  ;;  %v608_v3 = vshll.u32 %v505_v53, 16  ;;  %v3868_v35 = vld [vmem:[%s4517_s3 + $0x238] sm:$0xff]  }
  0x62   : > { %3606 = vmatpush3.bf16.msra.mxu0 %v3855_v1  ;;  %v760_v49 = vrot.slane %v758_v41, 4  ;;  %v3340_v1 = vrot.slane %v587_v54, 11  ;;  %v751_v58 = vrot.slane %v750_v56, 4  ;;  %v781_v14 = vshll.u32 %v681_v4, 16  ;;  %v3870_v41 = vld [vmem:[#allocation2 + $0x1c] ss:$12 sps:$4 sm:$0xff]  }
  0x63   : > { %3607 = vmatprep.subr.bf16.mxu0 %v3857_v5  ;;  %v3865_v5 = vld [vmem:[%s4517_s3 + $0x230] sm:$0xff]   ;;  %v607_v7 = vrot.slane %v605_v60, 7  ;;  %v597_v11 = vor.u32 %v595_v57, %v594_v2  ;;  %v786_v19 = vshrl.u32 %v682_v8, 16  ;;  %v789_v28 = vshll.u32 %v682_v8, 16  ;;  %v1988_v42 = vld [vmem:[#allocation2 + $0x1c] sm:$0xf] }
  0x64   : > { %3704 = vmatpush3.bf16.msra.mxu1 %v3851_v61  ;;  %v680_v61 = vld [vmem:[#allocation2 + $0x4c] sm:$0xf]  ;;  %v764_v0 = vor.u32 %v763_v51, %v760_v49  ;;  %v756_v16 = vsel %vm4084_vm10, %v751_v58, %v755_v48  ;;  %v783_v22 = vrot.slane %v781_v14, 5  ;;  %v1989_v43 = vld [vmem:[#allocation2 + $0x20] sm:$0x1]  ;;  %v2005_v48 = vshrl.u32 %v1988_v42, 16 }
  0x65   : > { %3705 = vmatprep.subr.bf16.mxu1 %v3854_v6  ;;  %v772_v9 = vshrl.u32 %v680_v61, 16  ;;  %v775_v13 = vshll.u32 %v680_v61, 16  ;;  %v610_v17 = vor.u32 %v608_v3, %v607_v7  ;;  %v598_v20 = vsel %vm4071_vm9, %v3340_v1, %v597_v11  ;;  %v1990_v46 = vld [vmem:[#allocation2 + $0x28] sm:$0xf]  ;;  %v1991_v47 = vld [vmem:[#allocation2 + $0x2c] sm:$0x1] }
  0x66   : > { %3608 = vmatpush3.bf16.msra.mxu0 %v3859_v38  ;;  %v765_v10 = vrot.slane %v764_v0, 4  ;;  %v791_v34 = vrot.slane %v789_v28, 5  ;;  %v2008_v49 = vshll.u32 %v1988_v42, 16  ;;  %v2014_v50 = vshll.u32 %v1989_v43, 16  ;;  %v1812_v53 = vld [vmem:[#allocation2 + $0x18] sm:$0x8] }
  0x67   : > { %3609 = vmatprep.subr.bf16.mxu0 %v3860_v21  ;;  %1730 = vmatmul.mubr.bf16.gmra.mrb[24].mxu0 %v3344_v32  ;;  %v774_v18 = vrot.slane %v772_v9, 4  ;;  %v777_v21 = vrot.slane %v775_v13, 5  ;;  %v795_v32 = vshll.u32 %v683_v12, 16  ;;  %v2019_v51 = vshrl.u32 %v1990_v46, 16  ;;  %v1813_v57 = vld [vmem:[#allocation2 + $0x1c] sm:$0xf] }
  0x68   : > { %3706 = vmatpush3.bf16.msra.mxu1 %v3854_v6  ;;  %1737 = vmatprep.mubr.bf16.mxu0 %v3863_v30  ;;  %v3341_v6 = vrot.slane %v600_v59, 11  ;;  %v770_v38 = vsel %vm4084_vm10, %v765_v10, %v769_v52  ;;  %v2022_v52 = vshll.u32 %v1990_v46, 16  ;;  %v2007_v55 = vrot.slane %v2005_v48, 4  ;;  %v1814_v59 = vld [vmem:[#allocation2 + $0x24] sm:$0x8] }
  0x69   : > { %3707 = vmatprep.subr.bf16.mxu1 %v3858_v23  ;;  %v778_v30 = vor.u32 %v777_v21, %v774_v18  ;;  %v797_v39 = vrot.slane %v795_v32, 5  ;;  %v2028_v56 = vshll.u32 %v1991_v47, 16  ;;  %v2010_v61 = vrot.slane %v2008_v49, 5  ;;  %v1815_v1 = vld [vmem:[#allocation2 + $0x28] sm:$0xf] }
  0x6a   : > { %3610 = vmatpush3.bf16.msra.mxu0 %v3862_v27  ;;  %v611_v25 = vsel %vm4071_vm9, %v3341_v6, %v610_v17  ;;  %v788_v27 = vrot.slane %v786_v19, 4  ;;  %v2021_v0 = vrot.slane %v2019_v51, 4  ;;  %v2024_v2 = vrot.slane %v2022_v52, 5  ;;  %v1992_v58 = vld [vmem:[#allocation2 + $0x34] sm:$0xf] }
  0x6b   : > { %3611 = vmatprep.subr.bf16.mxu0 %v3864_v63  ;;  %v779_v36 = vrot.slane %v778_v30, 4  ;;  %v2016_v63 = vrot.slane %v2014_v50, 5  ;;  %v2030_v3 = vrot.slane %v2028_v56, 5  ;;  %v1829_v4 = vshrl.u32 %v1812_v53, 16  ;;  %v1993_v10 = vld [vmem:[#allocation2 + $0x38] sm:$0x1] }
  0x6c   : > { %3708 = vmatpush3.bf16.msra.mxu1 %v3858_v23  ;;  %v3352_v23 = vcombine.low %v756_v16, %v770_v38  ;;  %v792_v37 = vor.u32 %v791_v34, %v788_v27  ;;  %v2011_v6 = vor.u32 %v2010_v61, %v2007_v55  ;;  %v1837_v7 = vshll.u32 %v1813_v57, 16  ;;  %v1995_v27 = vld [vmem:[#allocation2 + $0x44] sm:$0x1]  ;;  %v3871_v42 = vld [vmem:[#allocation2 + $0x34] ss:$12 sps:$4 sm:$0xff]  }
  0x6d   : > { %3709 = vmatprep.subr.bf16.mxu1 %v3861_v29  ;;  %v784_v44 = vsel %vm4084_vm10, %v779_v36, %v783_v22  ;;  %v1842_v8 = vshrl.u32 %v1814_v59, 16  ;;  %v1847_v9 = vshrl.u32 %v1815_v1, 16  ;;  %v2025_v11 = vor.u32 %v2024_v2, %v2021_v0  ;;  %v1997_v36 = vld [vmem:[#allocation2 + $0x50] sm:$0x1]  ;;  %v1998_v43 = vld [vmem:[#allocation2 + $0x58] sm:$0xf] }
  0x6e   : > { %3612 = vmatpush3.bf16.msra.mxu0 %v3866_v15  ;;  %3695 = vmatprep.mubr.bf16.mxu1 %v3352_v23  ;;  %v793_v45 = vrot.slane %v792_v37, 4  ;;  %v3422_v12 = vrot.slane %v1829_v4, 11  ;;  %v1850_v14 = vshll.u32 %v1815_v1, 16  ;;  %v1994_v15 = vld [vmem:[#allocation2 + $0x40] sm:$0xf]  ;;  %v2012_v16 = vrot.slane %v2011_v6, 4 }
  0x6f   : > { %3613 = vmatprep.subr.bf16.mxu0 %v3867_v33  ;;  %v3423_v17 = vrot.slane %v1842_v8, 11  ;;  %v1849_v18 = vrot.slane %v1847_v9, 7  ;;  %v2033_v19 = vshrl.u32 %v1992_v58, 16  ;;  %v2026_v38 = vrot.slane %v2025_v11, 4  ;;  %v1999_v47 = vld [vmem:[#allocation2 + $0x5c] sm:$0x1] }
  0x70   : > { %3710 = vmatpush3.bf16.msra.mxu1 %v3861_v29  ;;  %v3345_v29 = vcombine.low %v598_v20, %v611_v25  ;;  %v798_v54 = vsel %vm4084_vm10, %v793_v45, %v797_v39  ;;  %v2036_v21 = vshll.u32 %v1992_v58, 16  ;;  %v2042_v22 = vshll.u32 %v1993_v10, 16  ;;  %v1816_v49 = vld [vmem:[#allocation2 + $0x30] sm:$0x8]  ;;  %v1819_v2 = vld [vmem:[#allocation2 + $0x40] sm:$0xf] }
  0x71   : > { %3711 = vmatprep.subr.bf16.mxu1 %v3865_v5  ;;  %v3353_v60 = vcombine.low %v784_v44, %v798_v54  ;;  %v2017_v23 = vsel %vm4084_vm10, %v2012_v16, %v2016_v63  ;;  %v1852_v25 = vor.u32 %v1850_v14, %v1849_v18  ;;  %v2035_v28 = vrot.slane %v2033_v19, 4  ;;  %v1817_v54 = vld [vmem:[#allocation2 + $0x34] sm:$0xf]  ;;  %v2000_v11 = vld [vmem:[#allocation2 + $0x64] sm:$0xf] }
  0x72   : > { %1738 = vmatmul.mubr.bf16.gmra.mrb[28].mxu0 %v3345_v29  ;;  %v2047_v29 = vshrl.u32 %v1994_v15, 16  ;;  %v2031_v30 = vsel %vm4084_vm10, %v2026_v38, %v2030_v3  ;;  %v2038_v33 = vrot.slane %v2036_v21, 5  ;;  %v2044_v34 = vrot.slane %v2042_v22, 5  ;;  %v447_v6 = vld [vmem:[#allocation2 + $0x74] sm:$0x1] }
  0x73   : > { %3614 = vmatpush3.bf16.msra.mxu0 %v3869_v40  ;;  %2372 = vmatprep.mubr.bf16.mxu0 %v3870_v41  ;;  %v3438_v37 = vcombine.low %v2017_v23, %v2031_v30  ;;  %v1853_v39 = vsel %vm4071_vm9, %v3423_v17, %v1852_v25  ;;  %v2050_v41 = vshll.u32 %v1994_v15, 16  ;;  %v2056_v46 = vshll.u32 %v1995_v27, 16  ;;  %v2002_v17 = vld [vmem:[#allocation2 + $0x70] sm:$0xf]  ;;  %v1823_v31 = vld [vmem:[#allocation2 + $0x58] sm:$0xf] }
  0x74   : > { %3712 = vmatpush3.bf16.msra.mxu1 %v3865_v5  ;;  %v1834_v5 = vshrl.u32 %v1813_v57, 16  ;;  %v2049_v40 = vrot.slane %v2047_v29, 4  ;;  %v2039_v45 = vor.u32 %v2038_v33, %v2035_v28  ;;  %v2070_v52 = vshll.u32 %v1997_v36, 16 }
  0x75   : > { %3713 = vmatprep.subr.bf16.mxu1 %v3868_v35  ;;  %3696 = vmatmul.mubr.bf16.gmra.mrb[4].mxu1 %v3353_v60  ;;  %v2052_v50 = vrot.slane %v2050_v41, 5  ;;  %v2075_v53 = vshrl.u32 %v1998_v43, 16  ;;  %v2058_v56 = vrot.slane %v2056_v46, 5  ;;  %v2078_v59 = vshll.u32 %v1998_v43, 16  ;;  %v1818_v60 = vld [vmem:[#allocation2 + $0x3c] sm:$0x8] }
  0x76   : > { %v1836_v13 = vrot.slane %v1834_v5, 7  ;;  %3715 = vmatprep.mubr.bf16.mxu1 %v3438_v37  ;;  %v2040_v55 = vrot.slane %v2039_v45, 4  ;;  %v2072_v0 = vrot.slane %v2070_v52, 5  ;;  %v2084_v5 = vshll.u32 %v1999_v47, 16  ;;  %v1821_v37 = vld [vmem:[#allocation2 + $0x4c] sm:$0xf] }
  0x77   : > { %v2053_v61 = vor.u32 %v2052_v50, %v2049_v40  ;;  %v2077_v1 = vrot.slane %v2075_v53, 4  ;;  %v2080_v4 = vrot.slane %v2078_v59, 5  ;;  %v1855_v58 = vshrl.u32 %v1816_v49, 16  ;;  %v3872_v43 = vld [vmem:[#allocation2 + $0x4c] ss:$12 sps:$4 sm:$0xff]  }
  0x78   : > { %3714 = vmatpush3.bf16.msra.mxu1 %v3868_v35  ;;  %v1839_v20 = vor.u32 %v1837_v7, %v1836_v13  ;;  %v1996_v35 = vld [vmem:[#allocation2 + $0x4c] sm:$0xf]  ;;  %v2045_v3 = vsel %vm4084_vm10, %v2040_v55, %v2044_v34  ;;  %v1860_v9 = vshrl.u32 %v1817_v54, 16  ;;  %v1863_v10 = vshll.u32 %v1817_v54, 16 }
  0x79   : > { %v2061_v48 = vshrl.u32 %v1996_v35, 16  ;;  %v2064_v51 = vshll.u32 %v1996_v35, 16  ;;  %v2054_v7 = vrot.slane %v2053_v61, 4  ;;  %v2081_v13 = vor.u32 %v2080_v4, %v2077_v1 }
  0x7a   : > { %v1840_v32 = vsel %vm4071_vm9, %v3422_v12, %v1839_v20  ;;  %v2001_v12 = vld [vmem:[#allocation2 + $0x68] sm:$0x1]  ;;  %v2086_v14 = vrot.slane %v2084_v5, 5  ;;  %v3424_v15 = vrot.slane %v1855_v58, 11  ;;  %v1868_v16 = vshrl.u32 %v1818_v60, 16 }
  0x7b   : > { %v3430_v44 = vcombine.low %v1840_v32, %v1853_v39  ;;  %v2063_v57 = vrot.slane %v2061_v48, 4  ;;  %v2066_v63 = vrot.slane %v2064_v51, 5  ;;  %v2059_v18 = vsel %vm4084_vm10, %v2054_v7, %v2058_v56  ;;  %v1820_v32 = vld [vmem:[#allocation2 + $0x48] sm:$0x8]  ;;  %v1825_v5 = vld [vmem:[#allocation2 + $0x64] sm:$0xf] }
  0x7c   : > { %v1862_v38 = vrot.slane %v1860_v9, 7  ;;  %v1873_v20 = vshrl.u32 %v1819_v2, 16  ;;  %v3439_v21 = vcombine.low %v2045_v3, %v2059_v18  ;;  %v2082_v22 = vrot.slane %v2081_v13, 4  ;;  %v1827_v9 = vld [vmem:[#allocation2 + $0x70] sm:$0xf] }
  0x7d   : > { %2373 = vmatmul.mubr.bf16.vlgmr.msra.gmra.mrb[32].mxu0 %v3430_v44  ;;  %v2067_v8 = vor.u32 %v2066_v63, %v2063_v57  ;;  %v3425_v23 = vrot.slane %v1868_v16, 11  ;;  %v1876_v25 = vshll.u32 %v1819_v2, 16  ;;  %v448_v30 = vsel %vm4043_vm5, 0, %v447_v6  ;;  %v1822_v44 = vld [vmem:[#allocation2 + $0x54] sm:$0x8] }
  0x7e   : > { %2380 = vmatprep.mubr.bf16.mxu0 %v3871_v42  ;;  %v1865_v28 = vor.u32 %v1863_v10, %v1862_v38  ;;  %v1875_v29 = vrot.slane %v1873_v20, 7  ;;  %3716 = vmatmul.mubr.bf16.vlgmr.msra.gmra.mrb[0].mxu1 %v3439_v21  ;;  %v2087_v33 = vsel %vm4084_vm10, %v2082_v22, %v2086_v14  ;;  %449 = vst [vmem:[#allocation2 + $0x74] sm:$0x1] %v448_v30  ;;  %v2089_v34 = vshrl.u32 %v2000_v11, 16  ;;  %v414_v57 = vld [vmem:[#allocation2 + $0x6c] sm:$0x8] }
  0x7f   : > { %v2068_v19 = vrot.slane %v2067_v8, 4  ;;  %v2092_v35 = vshll.u32 %v2000_v11, 16  ;;  %v2098_v36 = vshll.u32 %v2001_v12, 16  ;;  %v2103_v42 = vshrl.u32 %v2002_v17, 16  ;;  %v3873_v38 = vld [vmem:[#allocation2 + $0x64] ss:$12 sps:$4 sm:$0xff]  }
  0x80   : > { %v1866_v40 = vsel %vm4071_vm9, %v3424_v15, %v1865_v28  ;;  %v1878_v41 = vor.u32 %v1876_v25, %v1875_v29  ;;  %v2091_v45 = vrot.slane %v2089_v34, 4  ;;  %v2106_v48 = vshll.u32 %v2002_v17, 16 }
  0x81   : > { %v2073_v27 = vsel %vm4084_vm10, %v2068_v19, %v2072_v0  ;;  %v2094_v46 = vrot.slane %v2092_v35, 5  ;;  %v2100_v47 = vrot.slane %v2098_v36, 5  ;;  %v2105_v50 = vrot.slane %v2103_v42, 4  ;;  %v1824_v0 = vld [vmem:[#allocation2 + $0x60] sm:$0x8] }
  0x82   : > { %v3440_v39 = vcombine.low %v2073_v27, %v2087_v33  ;;  %v1879_v49 = vsel %vm4071_vm9, %v3425_v23, %v1878_v41  ;;  %v1881_v51 = vshrl.u32 %v1820_v32, 16  ;;  %v1886_v52 = vshrl.u32 %v1821_v37, 16 }
  0x83   : > { %v3431_v53 = vcombine.low %v1866_v40, %v1879_v49  ;;  %v2095_v54 = vor.u32 %v2094_v46, %v2091_v45  ;;  %v2108_v55 = vrot.slane %v2106_v48, 5  ;;  %v1889_v56 = vshll.u32 %v1821_v37, 16 }
  0x84   : > { %3719 = vmatprep.mubr.bf16.mxu1 %v3440_v39  ;;  %v3426_v59 = vrot.slane %v1881_v51, 11  ;;  %v1888_v60 = vrot.slane %v1886_v52, 7  ;;  %v1894_v61 = vshrl.u32 %v1822_v44, 16  ;;  %v1899_v63 = vshrl.u32 %v1823_v31, 16 }
  0x85   : > { %2381 = vmatmul.mubr.bf16.gmra.mrb[36].mxu0 %v3431_v53  ;;  %v2096_v1 = vrot.slane %v2095_v54, 4  ;;  %v2109_v2 = vor.u32 %v2108_v55, %v2105_v50  ;;  %v1902_v3 = vshll.u32 %v1823_v31, 16  ;;  %v415_v4 = vsel %vm4033_vm3, 0, %v414_v57  ;;  %v2003_v58 = vld [vmem:[#allocation2 + $0x74] sm:$0x1] }
  0x86   : > { %2388 = vmatprep.mubr.bf16.mxu0 %v3872_v43  ;;  %v1891_v6 = vor.u32 %v1889_v56, %v1888_v60  ;;  %v3427_v7 = vrot.slane %v1894_v61, 11  ;;  %v1901_v8 = vrot.slane %v1899_v63, 7  ;;  %416 = vst [vmem:[#allocation2 + $0x6c] sm:$0x8] %v415_v4  ;;  %v2112_v11 = vshll.u32 %v2003_v58, 16 }
  0x87   : > { %v2110_v10 = vrot.slane %v2109_v2, 4  ;;  %v1907_v12 = vshrl.u32 %v1824_v0, 16  ;;  %v1912_v15 = vshrl.u32 %v1825_v5, 16  ;;  %v1915_v16 = vshll.u32 %v1825_v5, 16 }
  0x88   : > { %v1892_v13 = vsel %vm4071_vm9, %v3426_v59, %v1891_v6  ;;  %v1904_v14 = vor.u32 %v1902_v3, %v1901_v8  ;;  %v2101_v26 = vsel %vm4084_vm10, %v2096_v1, %v2100_v47  ;;  %v2114_v17 = vrot.slane %v2112_v11, 5 }
  0x89   : > { %v1925_v18 = vshrl.u32 %v1827_v9, 16  ;;  %v1914_v20 = vrot.slane %v1912_v15, 7  ;;  %v1928_v21 = vshll.u32 %v1827_v9, 16  ;;  %v3428_v28 = vrot.slane %v1907_v12, 11 }
  0x8a   : > { %v1905_v19 = vsel %vm4071_vm9, %v3427_v7, %v1904_v14  ;;  %v2115_v22 = vsel %vm4084_vm10, %v2110_v10, %v2114_v17 }
  0x8b   : > { %v3432_v23 = vcombine.low %v1892_v13, %v1905_v19  ;;  %v1927_v25 = vrot.slane %v1925_v18, 7  ;;  %v3441_v27 = vcombine.low %v2101_v26, %v2115_v22  ;;  %v1917_v29 = vor.u32 %v1915_v16, %v1914_v20 }
  0x8d   : > { %2389 = vmatmul.mubr.bf16.gmra.mrb[40].mxu0 %v3432_v23  ;;  %v1826_v30 = vld [vmem:[#allocation2 + $0x6c] sm:$0x8]  ;;  %3720 = vmatmul.mubr.bf16.gmra.mrb[4].mxu1 %v3441_v27  ;;  %v1930_v33 = vor.u32 %v1928_v21, %v1927_v25  ;;  %v1918_v34 = vsel %vm4071_vm9, %v3428_v28, %v1917_v29 }
  0x8e   : > { %2396 = vmatprep.mubr.bf16.mxu0 %v3873_v38  ;;  %v1920_v32 = vshrl.u32 %v1826_v30, 16 }
  0x90   : > { %v3429_v35 = vrot.slane %v1920_v32, 11 }
  0x92   : > { %v1931_v36 = vsel %vm4071_vm9, %v3429_v35, %v1930_v33 }
  0x93   : > { %v3433_v24 = vcombine.low %v1918_v34, %v1931_v36 }
  0x95   : > { %2397 = vmatmul.mubr.bf16.gmra.mrb[44].mxu0 %v3433_v24 }
  0xfb   : > { %v3511_v37 = vpop.f32.mrb[0].mxu0 }
  0xfc   : > { %v3512_v39 = vpop.f32.mrb[1].mxu0 }
  0xfd   : > { %v3513_v40 = vadd.f32 %v3512_v39, %v3511_v37  ;;  %v3514_v41 = vpop.f32.mrb[2].mxu0 }
  0xfe   : > { %v3515_v42 = vpop.f32.mrb[3].mxu0 }
  0xff   : > { %v3516_v43 = vadd.f32 %v3515_v42, %v3514_v41 }
 0x10b   : > { %v3517_v44 = vpop.f32.mrb[4].mxu0 }
 0x10c   : > { %v3518_v31 = vpop.f32.mrb[5].mxu0 }
 0x10d   : > { %v3519_v45 = vadd.f32 %v3518_v31, %v3517_v44  ;;  %v3520_v46 = vpop.f32.mrb[6].mxu0 }
 0x10e   : > { %v3521_v47 = vpop.f32.mrb[7].mxu0 }
 0x10f   : > { %v3522_v48 = vadd.f32 %v3521_v47, %v3520_v46  ;;  %v3899_v46 = vmov 1966171168  }
 0x110   : > { %v2571_v47 = vunpack.c.l.s4 %v3899_v46 }
 0x113   : > { %v3523_v49 = vpop.f32.mrb[8].mxu0 }
 0x114   : > { %v3524_v50 = vpop.f32.mrb[9].mxu0 }
 0x115   : > { %v3525_v51 = vadd.f32 %v3524_v50, %v3523_v49  ;;  %v3526_v52 = vpop.f32.mrb[10].mxu0 }
 0x116   : > { %v3527_v62 = vpop.f32.mrb[11].mxu0 }
 0x117   : > { %v3528_v53 = vadd.f32 %v3527_v62, %v3526_v52 }
 0x11d   : > { %v3529_v54 = vpop.f32.mrb[12].mxu0 }
 0x11e   : > { %v3530_v55 = vpop.f32.mrb[13].mxu0 }
 0x11f   : > { %v3531_v56 = vadd.f32 %v3530_v55, %v3529_v54  ;;  %v3532_v57 = vpop.f32.mrb[14].mxu0 }
 0x120   : > { %v3533_v59 = vpop.f32.mrb[15].mxu0 }
 0x121   : > { %v3534_v60 = vadd.f32 %v3533_v59, %v3532_v57 }
 0x128   : > { %v3563_v61 = vpop.f32.mrb[16].mxu0 }
 0x129   : > { %v3564_v63 = vpop.f32.mrb[17].mxu0 }
 0x12a   : > { %v3565_v0 = vadd.f32 %v3564_v63, %v3563_v61  ;;  %v3566_v1 = vpop.f32.mrb[18].mxu0 }
 0x12b   : > { %v3567_v2 = vpop.f32.mrb[19].mxu0 }
 0x12c   : > { %v3726_v3 = vadd.f32 %v3565_v0, %v3513_v40  ;;  %v3568_v4 = vadd.f32 %v3567_v2, %v3566_v1  ;;  %v4363_v40 = vld [vmem:[%s4518_s4] ss:$0 sm:$0xff] }
 0x12e   : > { %v3732_v5 = vadd.f32 %v3568_v4, %v3516_v43  ;;  %v4368_v43 = vld [vmem:[%s4518_s4 + $0x1] ss:$0 sm:$0xff] }
 0x132   : > { %v3569_v58 = vpop.f32.mrb[20].mxu0 }
 0x133   : > { %v3570_v6 = vpop.f32.mrb[21].mxu0 }
 0x134   : > { %v3571_v7 = vadd.f32 %v3570_v6, %v3569_v58  ;;  %v3572_v8 = vpop.f32.mrb[22].mxu0 }
 0x135   : > { %v3573_v9 = vpop.f32.mrb[23].mxu0 }
 0x136   : > { %v3723_v10 = vadd.f32 %v3571_v7, %v3519_v45  ;;  %v3574_v11 = vadd.f32 %v3573_v9, %v3572_v8 }
 0x138   : > { %v3729_v12 = vadd.f32 %v3574_v11, %v3522_v48  ;;  %v2573_v48 = vlaneseq }
 0x13a   : > { %v3575_v13 = vpop.f32.mrb[24].mxu0  ;;  %v2574_v57 = vshrl.u32 %v2573_v48, 7 }
 0x13b   : > { %v3576_v14 = vpop.f32.mrb[25].mxu0 }
 0x13c   : > { %v3577_v15 = vadd.f32 %v3576_v14, %v3575_v13  ;;  %v3578_v16 = vpop.f32.mrb[26].mxu0 }
 0x13d   : > { %v3579_v26 = vpop.f32.mrb[27].mxu0 }
 0x13e   : > { %v4352_v17 = vadd.f32 %v3577_v15, %v3525_v51  ;;  %v3580_v18 = vadd.f32 %v3579_v26, %v3578_v16 }
 0x140   : > { %v4354_v19 = vadd.f32 %v3580_v18, %v3528_v53 }
 0x145   : > { %v3581_v38 = vpop.f32.mrb[28].mxu0 }
 0x146   : > { %v3582_v20 = vpop.f32.mrb[29].mxu0 }
 0x147   : > { %v3583_v21 = vadd.f32 %v3582_v20, %v3581_v38  ;;  %v3584_v22 = vpop.f32.mrb[30].mxu0 }
 0x148   : > { %v3585_v23 = vpop.f32.mrb[31].mxu0 }
 0x149   : > { %v4356_v25 = vadd.f32 %v3583_v21, %v3531_v56  ;;  %v3586_v27 = vadd.f32 %v3585_v23, %v3584_v22  ;;  %v2572_v56 = vunpack.c.0.s8 %v2571_v47 }
 0x14b   : > { %v4358_v28 = vadd.f32 %v3586_v27, %v3534_v60  ;;  %v4374_v4 = vsub.s32 %v2572_v56, %v2574_v57 }
 0x150   : > { %v3615_v29 = vpop.f32.mrb[32].mxu0 }
 0x151   : > { %v3616_v30 = vpop.f32.mrb[33].mxu0  ;;  %v3717_v37 = vpop.f32.mrb[0].mxu1 }
 0x152   : > { %v3617_v32 = vadd.f32 %v3616_v30, %v3615_v29  ;;  %v3618_v33 = vpop.f32.mrb[34].mxu0  ;;  %v2439_v39 = vpop.f32.mrb[1].mxu1 }
 0x153   : > { %v3619_v34 = vpop.f32.mrb[35].mxu0  ;;  %v3718_v42 = vpop.f32.mrb[2].mxu1 }
 0x154   : > { %v3727_v35 = vadd.f32 %v3726_v3, %v3617_v32  ;;  %v3620_v36 = vadd.f32 %v3619_v34, %v3618_v33  ;;  %v2442_v44 = vpop.f32.mrb[3].mxu1 }
 0x156   : > { %v3733_v24 = vadd.f32 %v3732_v5, %v3620_v36  ;;  %v3728_v41 = vadd.f32 %v3727_v35, %v2439_v39  ;;  %v3900_v5 = vmov 1983009808  }
 0x157   : > { %v2892_v58 = vunpack.c.l.s4 %v3900_v5 }
 0x158   : > { %v2483_v31 = vmul.f32 %v3728_v41, %v4363_v40  ;;  %v3734_v45 = vadd.f32 %v3733_v24, %v2442_v44  ;;  %v3621_v51 = vpop.f32.mrb[36].mxu0 }
 0x159   : > { %v3622_v52 = vpop.f32.mrb[37].mxu0  ;;  %v2893_v20 = vunpack.c.0.s8 %v2892_v58 }
 0x15a   : > { %v2496_v49 = vadd.f32 %v4368_v43, %v2483_v31  ;;  %v2484_v50 = vmul.f32 %v3734_v45, %v4363_v40  ;;  %v3623_v54 = vadd.f32 %v3622_v52, %v3621_v51  ;;  %v3624_v55 = vpop.f32.mrb[38].mxu0 }
 0x15b   : > { %v3625_v59 = vpop.f32.mrb[39].mxu0  ;;  %v4392_v44 = vsub.s32 %v2893_v20, %v2574_v57 }
 0x15c   : > { %v2504_v62 = vmax.f32 %v2496_v49, 0.0  ;;  %v2497_v53 = vadd.f32 %v4368_v43, %v2484_v50  ;;  %v3724_v63 = vadd.f32 %v3723_v10, %v3623_v54  ;;  %v3626_v0 = vadd.f32 %v3625_v59, %v3624_v55 }
 0x15e   : > { %v3487_v60 = vpack.c.bf16 %v2504_v62, %v2504_v62  ;;  %v2505_v61 = vmax.f32 %v2497_v53, 0.0  ;;  %v3725_v2 = vadd.f32 %v3724_v63, %v3717_v37  ;;  %v3730_v3 = vadd.f32 %v3729_v12, %v3626_v0 }
 0x160   : > { %v3488_v1 = vpack.c.bf16 %v2505_v61, %v2505_v61  ;;  %v2539_v6 = vsel %vm2536_vm11, %v3487_v60, 4286644096  ;;  %v2485_v8 = vmul.f32 %v3725_v2, %v4363_v40  ;;  %v3731_v9 = vadd.f32 %v3730_v3, %v3718_v42  ;;  %v3627_v11 = vpop.f32.mrb[40].mxu0  ;;  %v4379_v14 = vpop.f32.mrb[4].mxu1 }
 0x161   : > { %v3628_v10 = vpop.f32.mrb[41].mxu0  ;;  %v2455_v16 = vpop.f32.mrb[5].mxu1 }
 0x162   : > { %v2542_v7 = vsel %vm2536_vm11, %v3488_v1, 4286644096  ;;  %v2498_v15 = vadd.f32 %v4368_v43, %v2485_v8  ;;  %v2486_v12 = vmul.f32 %v3731_v9, %v4363_v40  ;;  %v3629_v26 = vadd.f32 %v3628_v10, %v3627_v11  ;;  %v3630_v18 = vpop.f32.mrb[42].mxu0  ;;  %v4384_v21 = vpop.f32.mrb[6].mxu1 }
 0x163   : > { %v2544_v13 = vmax.bf16 %v2542_v7, %v2539_v6  ;;  %v3631_v22 = vpop.f32.mrb[43].mxu0  ;;  %v2458_v29 = vpop.f32.mrb[7].mxu1 }
 0x164   : > { %v2506_v23 = vmax.f32 %v2498_v15, 0.0  ;;  %v2499_v27 = vadd.f32 %v4368_v43, %v2486_v12  ;;  %v3739_v30 = vadd.f32 %v4352_v17, %v3629_v26  ;;  %v3632_v32 = vadd.f32 %v3631_v22, %v3630_v18 }
 0x165   : > { %v2576_v38 = vrot.slane %v2544_v13, %v4374_v4 }
 0x166   : > { %v3489_v35 = vpack.c.bf16 %v2506_v23, %v2506_v23  ;;  %v2507_v36 = vmax.f32 %v2499_v27, 0.0  ;;  %v3740_v24 = vadd.f32 %v3739_v30, %v2455_v16  ;;  %v3745_v37 = vadd.f32 %v4354_v19, %v3632_v32 }
 0x167   : > { %v2577_v33 = vcombine.high %v2576_v38, %v2576_v38  ;;  %v2584_v34 = vrot.slane %v2576_v38, %v4374_v4 }
 0x168   : > { %v2546_v17 = vsel %vm2536_vm11, %v3489_v35, 4286644096  ;;  %v3490_v46 = vpack.c.bf16 %v2507_v36, %v2507_v36  ;;  %v3633_v47 = vpop.f32.mrb[44].mxu0  ;;  %v2487_v19 = vmul.f32 %v3740_v24, %v4363_v40  ;;  %v3746_v6 = vadd.f32 %v3745_v37, %v2458_v29 }
 0x169   : > { %v2591_v39 = vrot.slane %v2577_v33, %v4374_v4  ;;  %v2592_v41 = vcombine.high %v2584_v34, %v2584_v34  ;;  %v2668_v42 = vsel %vm417_vm1, %v2584_v34, 4286644096  ;;  %v3634_v51 = vpop.f32.mrb[45].mxu0 }
 0x16a   : > { %v2670_v31 = vunpack.i.l.bf16 %v2668_v42  ;;  %v2671_v45 = vunpack.i.h.bf16 %v2668_v42  ;;  %v4398_v55 = vpop.f32.mrb[46].mxu0  ;;  %v2549_v59 = vsel %vm2536_vm11, %v3490_v46, 4286644096  ;;  %v2500_v60 = vadd.f32 %v4368_v43, %v2487_v19 }
 0x16b   : > { %v2593_v48 = vcombine.high %v2591_v39, %v2591_v39  ;;  %v2681_v49 = vsel %vm417_vm1, %v2591_v39, 4286644096  ;;  %v2694_v50 = vsel %vm417_vm1, %v2592_v41, 4286644096  ;;  %v4403_v61 = vpop.f32.mrb[47].mxu0  ;;  %v2551_v5 = vmax.bf16 %v2549_v59, %v2546_v17 }
 0x16c   : > { %v2672_v52 = vmax.f32 %v2670_v31, %v2671_v45  ;;  %v2683_v62 = vunpack.i.l.bf16 %v2681_v49  ;;  %v2684_v53 = vunpack.i.h.bf16 %v2681_v49  ;;  %v2696_v54 = vunpack.i.l.bf16 %v2694_v50 }
 0x16d   : > { %v2697_v56 = vunpack.i.h.bf16 %v2694_v50  ;;  %v2707_v57 = vsel %vm417_vm1, %v2593_v48, 4286644096  ;;  %v2508_v58 = vmax.f32 %v2500_v60, 0.0  ;;  %v3635_v11 = vadd.f32 %v3634_v51, %v3633_v47 }
 0x16e   : > { %v2673_v63 = vrot.slane %v2672_v52, 4  ;;  %v2685_v0 = vmax.f32 %v2683_v62, %v2684_v53  ;;  %v2709_v1 = vunpack.i.l.bf16 %v2707_v57  ;;  %v2710_v2 = vunpack.i.h.bf16 %v2707_v57 }
 0x16f   : > { %v2698_v3 = vmax.f32 %v2696_v54, %v2697_v56  ;;  %v2600_v10 = vrot.slane %v2551_v5, %v4374_v4  ;;  %v3491_v15 = vpack.c.bf16 %v2508_v58, %v2508_v58  ;;  %v2488_v16 = vmul.f32 %v3746_v6, %v4363_v40 }
 0x170   : > { %v2674_v7 = vmax.f32 %v2672_v52, %v2673_v63  ;;  %v2686_v8 = vrot.slane %v2685_v0, 4  ;;  %v2711_v9 = vmax.f32 %v2709_v1, %v2710_v2  ;;  %v4408_v38 = vadd.f32 %v4356_v25, %v3635_v11 }
 0x171   : > { %v2699_v13 = vrot.slane %v2698_v3, 4  ;;  %v2601_v22 = vcombine.high %v2600_v10, %v2600_v10  ;;  %v2608_v23 = vrot.slane %v2600_v10, %v4374_v4  ;;  %v4412_v27 = vsel %vm2536_vm11, %v3491_v15, 4286644096 }
 0x172   : > { %v2675_v12 = vrot.slane %v2674_v7, 2  ;;  %v2687_v26 = vmax.f32 %v2685_v0, %v2686_v8  ;;  %v2712_v18 = vrot.slane %v2711_v9, 4  ;;  %v4415_v33 = vadd.f32 %v4368_v43, %v2488_v16 }
 0x173   : > { %v2700_v20 = vmax.f32 %v2698_v3, %v2699_v13  ;;  %v2615_v35 = vrot.slane %v2601_v22, %v4374_v4  ;;  %v2616_v36 = vcombine.high %v2608_v23, %v2608_v23  ;;  %v2720_v25 = vsel %vm417_vm1, %v2608_v23, 4286644096 }
 0x174   : > { %v2676_v29 = vmax.f32 %v2674_v7, %v2675_v12  ;;  %v2688_v30 = vrot.slane %v2687_v26, 2  ;;  %v2713_v32 = vmax.f32 %v2711_v9, %v2712_v18  ;;  %v2722_v41 = vunpack.i.l.bf16 %v2720_v25 }
 0x175   : > { %v2701_v34 = vrot.slane %v2700_v20, 2  ;;  %v2617_v31 = vcombine.high %v2615_v35, %v2615_v35  ;;  %v2723_v45 = vunpack.i.h.bf16 %v2720_v25  ;;  %v2733_v17 = vsel %vm417_vm1, %v2615_v35, 4286644096 }
 0x176   : > { %v2677_v24 = vrot.slane %v2676_v29, 1  ;;  %v2689_v37 = vmax.f32 %v2687_v26, %v2688_v30  ;;  %v2714_v39 = vrot.slane %v2713_v32, 2  ;;  %v2735_v49 = vunpack.i.l.bf16 %v2733_v17 }
 0x177   : > { %v2702_v42 = vmax.f32 %v2700_v20, %v2701_v34  ;;  %v2724_v19 = vmax.f32 %v2722_v41, %v2723_v45  ;;  %v2736_v51 = vunpack.i.h.bf16 %v2733_v17  ;;  %v2746_v52 = vsel %vm417_vm1, %v2616_v36, 4286644096 }
 0x178   : > { %v2678_v46 = vmax.f32 %v2676_v29, %v2677_v24  ;;  %v2690_v47 = vrot.slane %v2689_v37, 1  ;;  %v2715_v48 = vmax.f32 %v2713_v32, %v2714_v39  ;;  %v2748_v56 = vunpack.i.l.bf16 %v2746_v52 }
 0x179   : > { %v2703_v50 = vrot.slane %v2702_v42, 1  ;;  %v2725_v59 = vrot.slane %v2724_v19, 4  ;;  %v2737_v60 = vmax.f32 %v2735_v49, %v2736_v51  ;;  %v2749_v63 = vunpack.i.h.bf16 %v2746_v52 }
 0x17a   : > { %v2679_v62 = vpack.i.bf16 %v2678_v46, %v2678_v46  ;;  %v2691_v53 = vmax.f32 %v2689_v37, %v2690_v47  ;;  %v2716_v54 = vrot.slane %v2715_v48, 1  ;;  %v2759_v3 = vsel %vm417_vm1, %v2617_v31, 4286644096 }
 0x17b   : > { %v2704_v57 = vmax.f32 %v2702_v42, %v2703_v50  ;;  %v2726_v58 = vmax.f32 %v2724_v19, %v2725_v59  ;;  %v2738_v6 = vrot.slane %v2737_v60, 4  ;;  %v2750_v7 = vmax.f32 %v2748_v56, %v2749_v63 }
 0x17c   : > { %v2692_v0 = vpack.i.bf16 %v2691_v53, %v2691_v53  ;;  %v2717_v1 = vmax.f32 %v2715_v48, %v2716_v54  ;;  %v2897_v2 = vrot.slane %v2679_v62, %v4392_v44  ;;  %v2761_v13 = vunpack.i.l.bf16 %v2759_v3 }
 0x17d   : > { %v2705_v5 = vpack.i.bf16 %v2704_v57, %v2704_v57  ;;  %v2727_v15 = vrot.slane %v2726_v58, 2  ;;  %v2739_v16 = vmax.f32 %v2737_v60, %v2738_v6  ;;  %v2751_v12 = vrot.slane %v2750_v7, 4 }
 0x17e   : > { %v2718_v8 = vpack.i.bf16 %v2717_v1, %v2717_v1  ;;  %v2904_v9 = vrot.slane %v2692_v0, %v4392_v44  ;;  %v3009_v11 = vrot.slane %v2897_v2, %v4392_v44  ;;  %v2762_v22 = vunpack.i.h.bf16 %v2759_v3 }
 0x17f   : > { %v2911_v10 = vrot.slane %v2705_v5, %v4392_v44  ;;  %v2728_v29 = vmax.f32 %v2726_v58, %v2727_v15  ;;  %v2740_v30 = vrot.slane %v2739_v16, 2  ;;  %v2752_v32 = vmax.f32 %v2750_v7, %v2751_v12 }
 0x180   : > { %v2918_v26 = vrot.slane %v2718_v8, %v4392_v44  ;;  %v3016_v18 = vrot.slane %v2904_v9, %v4392_v44  ;;  %v3115_v20 = vunpack.c.l.b16 %v3009_v11  ;;  %v2763_v36 = vmax.f32 %v2761_v13, %v2762_v22 }
 0x181   : > { %v3023_v23 = vrot.slane %v2911_v10, %v4392_v44  ;;  %v2509_v25 = vmax.f32 %v4415_v33, 0.0  ;;  %v2729_v37 = vrot.slane %v2728_v29, 1  ;;  %v2741_v39 = vmax.f32 %v2739_v16, %v2740_v30 }
 0x182   : > { %v3030_v34 = vrot.slane %v2918_v26, %v4392_v44  ;;  %v3116_v35 = vunpack.c.l.b16 %v3016_v18  ;;  %v2753_v41 = vrot.slane %v2752_v32, 2  ;;  %v2764_v45 = vrot.slane %v2763_v36, 4 }
 0x183   : > { %v3117_v24 = vunpack.c.l.b16 %v3023_v23  ;;  %v3492_v17 = vpack.c.bf16 %v2509_v25, %v2509_v25  ;;  %v2730_v47 = vmax.f32 %v2728_v29, %v2729_v37  ;;  %v2742_v48 = vrot.slane %v2741_v39, 1 }
 0x184   : > { %v3118_v42 = vunpack.c.l.b16 %v3030_v34  ;;  %v3131_v31 = vrot.slane %v3116_v35, 7  ;;  %v2754_v49 = vmax.f32 %v2752_v32, %v2753_v41  ;;  %v2765_v51 = vmax.f32 %v2763_v36, %v2764_v45 }
 0x185   : > { %v3134_v46 = vrot.slane %v3117_v24, 6  ;;  %v2556_v52 = vsel %vm2536_vm11, %v3492_v17, 4286644096  ;;  %v2731_v62 = vpack.i.bf16 %v2730_v47, %v2730_v47  ;;  %v2743_v53 = vmax.f32 %v2741_v39, %v2742_v48 }
 0x186   : > { %v3133_v50 = vsel %vm3132_vm12, %v3131_v31, %v3115_v20  ;;  %v3137_v19 = vrot.slane %v3118_v42, 5  ;;  %v2755_v54 = vrot.slane %v2754_v49, 1  ;;  %v2766_v57 = vrot.slane %v2765_v51, 2 }
 0x187   : > { %v3136_v33 = vsel %vm3135_vm13, %v3134_v46, %v3133_v50  ;;  %v2558_v59 = vmax.bf16 %v2556_v52, %v4412_v27  ;;  %v3737_v60 = vadd.f32 %v4408_v38, %v4379_v14  ;;  %v2744_v0 = vpack.i.bf16 %v2743_v53, %v2743_v53 }
 0x188   : > { %v3139_v56 = vsel %vm384_vm0, %v3137_v19, %v3136_v33  ;;  %v2756_v1 = vmax.f32 %v2754_v49, %v2755_v54  ;;  %v2925_v2 = vrot.slane %v2731_v62, %v4392_v44  ;;  %v2767_v3 = vmax.f32 %v2765_v51, %v2766_v57 }
 0x189   : > { %v3158_v63 = vpack.c.b16 %v3139_v56, %v3139_v56  ;;  %v2624_v5 = vrot.slane %v2558_v59, %v4374_v4  ;;  %v2489_v58 = vmul.f32 %v3737_v60, %v4363_v40  ;;  %v3638_v6 = vadd.f32 %v4403_v61, %v4398_v55 }
 0x18a   : > { %v2757_v7 = vpack.i.bf16 %v2756_v1, %v2756_v1  ;;  %v2932_v27 = vrot.slane %v2744_v0, %v4392_v44  ;;  %v3037_v8 = vrot.slane %v2925_v2, %v4392_v44  ;;  %v2768_v14 = vrot.slane %v2767_v3, 1 }
 0x18b   : > { %3476 = vst.sshfl [vmem:[%s4438_s13] sm:$0x3 pattern:$0x76325410] %v3158_v63  ;;  %v2625_v38 = vcombine.high %v2624_v5, %v2624_v5  ;;  %v2632_v9 = vrot.slane %v2624_v5, %v4374_v4  ;;  %v2502_v11 = vadd.f32 %v4368_v43, %v2489_v58  ;;  %v3742_v16 = vadd.f32 %v4358_v28, %v3638_v6 }
 0x18c   : > { %v2939_v13 = vrot.slane %v2757_v7, %v4392_v44  ;;  %v3044_v10 = vrot.slane %v2932_v27, %v4392_v44  ;;  %v3119_v15 = vunpack.c.l.b16 %v3037_v8  ;;  %v2769_v55 = vmax.f32 %v2767_v3, %v2768_v14 }
 0x18d   : > { %v2639_v61 = vrot.slane %v2625_v38, %v4374_v4  ;;  %v2640_v12 = vcombine.high %v2632_v9, %v2632_v9  ;;  %v2772_v26 = vsel %vm417_vm1, %v2632_v9, 4286644096  ;;  %v2510_v51 = vmax.f32 %v2502_v11, 0.0 }
 0x18e   : > { %v3051_v18 = vrot.slane %v2939_v13, %v4392_v44  ;;  %v3120_v20 = vunpack.c.l.b16 %v3044_v10  ;;  %v2774_v22 = vunpack.i.l.bf16 %v2772_v26  ;;  %v2775_v23 = vunpack.i.h.bf16 %v2772_v26 }
 0x18f   : > { %v2770_v29 = vpack.i.bf16 %v2769_v55, %v2769_v55  ;;  %v2641_v30 = vcombine.high %v2639_v61, %v2639_v61  ;;  %v2785_v32 = vsel %vm417_vm1, %v2639_v61, 4286644096  ;;  %v2798_v34 = vsel %vm417_vm1, %v2640_v12, 4286644096 }
 0x190   : > { %v3121_v35 = vunpack.c.l.b16 %v3051_v18  ;;  %v3140_v36 = vrot.slane %v3120_v20, 7  ;;  %v2776_v28 = vmax.f32 %v2774_v22, %v2775_v23  ;;  %v2787_v25 = vunpack.i.l.bf16 %v2785_v32 }
 0x191   : > { %v2946_v24 = vrot.slane %v2770_v29, %v4392_v44  ;;  %v2788_v37 = vunpack.i.h.bf16 %v2785_v32  ;;  %v2800_v39 = vunpack.i.l.bf16 %v2798_v34  ;;  %v2801_v41 = vunpack.i.h.bf16 %v2798_v34 }
 0x192   : > { %v3141_v42 = vsel %vm3132_vm12, %v3140_v36, %v3119_v15  ;;  %v3142_v31 = vrot.slane %v3121_v35, 6  ;;  %v2777_v45 = vrot.slane %v2776_v28, 4  ;;  %v2811_v17 = vsel %vm417_vm1, %v2641_v30, 4286644096 }
 0x193   : > { %v3058_v46 = vrot.slane %v2946_v24, %v4392_v44  ;;  %v2789_v47 = vmax.f32 %v2787_v25, %v2788_v37  ;;  %v2802_v48 = vmax.f32 %v2800_v39, %v2801_v41  ;;  %v2813_v49 = vunpack.i.l.bf16 %v2811_v17 }
 0x194   : > { %v2778_v50 = vmax.f32 %v2776_v28, %v2777_v45  ;;  %v2814_v19 = vunpack.i.h.bf16 %v2811_v17  ;;  %v3743_v53 = vadd.f32 %v3742_v16, %v4384_v21  ;;  %v3143_v54 = vsel %vm3135_vm13, %v3142_v31, %v3141_v42 }
 0x195   : > { %v3122_v52 = vunpack.c.l.b16 %v3058_v46  ;;  %v2790_v33 = vrot.slane %v2789_v47, 4  ;;  %v2803_v62 = vrot.slane %v2802_v48, 4  ;;  %v3493_v59 = vpack.c.bf16 %v2510_v51, %v2510_v51 }
 0x196   : > { %v2779_v56 = vrot.slane %v2778_v50, 2  ;;  %v2815_v57 = vmax.f32 %v2813_v49, %v2814_v19  ;;  %v2490_v1 = vmul.f32 %v3743_v53, %v4363_v40 }
 0x197   : > { %v3144_v60 = vrot.slane %v3122_v52, 5  ;;  %v2791_v63 = vmax.f32 %v2789_v47, %v2790_v33  ;;  %v2804_v0 = vmax.f32 %v2802_v48, %v2803_v62  ;;  %v2560_v5 = vsel %vm2536_vm11, %v3493_v59, 4286644096 }
 0x198   : > { %v2780_v2 = vmax.f32 %v2778_v50, %v2779_v56  ;;  %v2816_v3 = vrot.slane %v2815_v57, 4  ;;  %v2503_v21 = vadd.f32 %v4368_v43, %v2490_v1 }
 0x199   : > { %v3145_v58 = vsel %vm384_vm0, %v3144_v60, %v3143_v54  ;;  %v2792_v6 = vrot.slane %v2791_v63, 2  ;;  %v2805_v7 = vrot.slane %v2804_v0, 2 }
 0x19a   : > { %v3159_v27 = vpack.c.b16 %v3145_v58, %v3145_v58  ;;  %v2781_v8 = vrot.slane %v2780_v2, 1  ;;  %v2817_v14 = vmax.f32 %v2815_v57, %v2816_v3  ;;  %v2511_v11 = vmax.f32 %v2503_v21, 0.0 }
 0x19b   : > { %v2793_v38 = vmax.f32 %v2791_v63, %v2792_v6  ;;  %v2806_v9 = vmax.f32 %v2804_v0, %v2805_v7 }
 0x19c   : > { %3477 = vst.sshfl [vmem:[%s4438_s13 + $0x2] sm:$0x3 pattern:$0x76325410] %v3159_v27  ;;  %v2782_v13 = vmax.f32 %v2780_v2, %v2781_v8  ;;  %v2818_v10 = vrot.slane %v2817_v14, 2  ;;  %v3494_v16 = vpack.c.bf16 %v2511_v11, %v2511_v11 }
 0x19d   : > { %v2794_v40 = vrot.slane %v2793_v38, 1  ;;  %v2807_v15 = vrot.slane %v2806_v9, 1 }
 0x19e   : > { %v2783_v55 = vpack.i.bf16 %v2782_v13, %v2782_v13  ;;  %v2819_v61 = vmax.f32 %v2817_v14, %v2818_v10  ;;  %v2563_v18 = vsel %vm2536_vm11, %v3494_v16, 4286644096 }
 0x19f   : > { %v2795_v12 = vmax.f32 %v2793_v38, %v2794_v40  ;;  %v2808_v26 = vmax.f32 %v2806_v9, %v2807_v15  ;;  %v2565_v22 = vmax.bf16 %v2563_v18, %v2560_v5 }
 0x1a0   : > { %v2820_v20 = vrot.slane %v2819_v61, 1  ;;  %v2953_v43 = vrot.slane %v2783_v55, %v4392_v44 }
 0x1a1   : > { %v2796_v23 = vpack.i.bf16 %v2795_v12, %v2795_v12  ;;  %v2809_v29 = vpack.i.bf16 %v2808_v26, %v2808_v26  ;;  %v2648_v34 = vrot.slane %v2565_v22, %v4374_v4 }
 0x1a2   : > { %v2821_v30 = vmax.f32 %v2819_v61, %v2820_v20  ;;  %v3065_v32 = vrot.slane %v2953_v43, %v4392_v44 }
 0x1a3   : > { %v2960_v35 = vrot.slane %v2796_v23, %v4392_v44  ;;  %v2967_v36 = vrot.slane %v2809_v29, %v4392_v44  ;;  %v2649_v25 = vcombine.high %v2648_v34, %v2648_v34  ;;  %v2656_v24 = vrot.slane %v2648_v34, %v4374_v4 }
 0x1a4   : > { %v2822_v28 = vpack.i.bf16 %v2821_v30, %v2821_v30  ;;  %v3123_v41 = vunpack.c.l.b16 %v3065_v32 }
 0x1a5   : > { %v3072_v37 = vrot.slane %v2960_v35, %v4392_v44  ;;  %v3079_v39 = vrot.slane %v2967_v36, %v4392_v44  ;;  %v2663_v31 = vrot.slane %v2649_v25, %v4374_v4  ;;  %v2664_v45 = vcombine.high %v2656_v24, %v2656_v24 }
 0x1a6   : > { %v2974_v42 = vrot.slane %v2822_v28, %v4392_v44  ;;  %v2824_v17 = vsel %vm417_vm1, %v2656_v24, 4286644096 }
 0x1a7   : > { %v3124_v46 = vunpack.c.l.b16 %v3072_v37  ;;  %v3125_v47 = vunpack.c.l.b16 %v3079_v39  ;;  %v2826_v48 = vunpack.i.l.bf16 %v2824_v17  ;;  %v2827_v49 = vunpack.i.h.bf16 %v2824_v17 }
 0x1a8   : > { %v3086_v50 = vrot.slane %v2974_v42, %v4392_v44  ;;  %v2665_v19 = vcombine.high %v2663_v31, %v2663_v31  ;;  %v2837_v51 = vsel %vm417_vm1, %v2663_v31, 4286644096  ;;  %v2850_v52 = vsel %vm417_vm1, %v2664_v45, 4286644096 }
 0x1a9   : > { %v3146_v33 = vrot.slane %v3124_v46, 7  ;;  %v3148_v62 = vrot.slane %v3125_v47, 6  ;;  %v2828_v53 = vmax.f32 %v2826_v48, %v2827_v49  ;;  %v2839_v54 = vunpack.i.l.bf16 %v2837_v51 }
 0x1aa   : > { %v3126_v56 = vunpack.c.l.b16 %v3086_v50  ;;  %v2840_v4 = vunpack.i.h.bf16 %v2837_v51  ;;  %v2852_v57 = vunpack.i.l.bf16 %v2850_v52  ;;  %v2853_v59 = vunpack.i.h.bf16 %v2850_v52 }
 0x1ab   : > { %v3147_v60 = vsel %vm3132_vm12, %v3146_v33, %v3123_v41  ;;  %v2829_v63 = vrot.slane %v2828_v53, 4  ;;  %v2863_v0 = vsel %vm417_vm1, %v2665_v19, 4286644096 }
 0x1ac   : > { %v3149_v1 = vsel %vm3135_vm13, %v3148_v62, %v3147_v60  ;;  %v3150_v2 = vrot.slane %v3126_v56, 5  ;;  %v2841_v3 = vmax.f32 %v2839_v54, %v2840_v4  ;;  %v2854_v5 = vmax.f32 %v2852_v57, %v2853_v59 }
 0x1ad   : > { %v2830_v58 = vmax.f32 %v2828_v53, %v2829_v63  ;;  %v2865_v6 = vunpack.i.l.bf16 %v2863_v0  ;;  %v2866_v7 = vunpack.i.h.bf16 %v2863_v0 }
 0x1ae   : > { %v3151_v21 = vsel %vm384_vm0, %v3150_v2, %v3149_v1  ;;  %v2842_v27 = vrot.slane %v2841_v3, 4  ;;  %v2855_v8 = vrot.slane %v2854_v5, 4 }
 0x1af   : > { %v3160_v14 = vpack.c.b16 %v3151_v21, %v3151_v21  ;;  %v2831_v38 = vrot.slane %v2830_v58, 2  ;;  %v2867_v9 = vmax.f32 %v2865_v6, %v2866_v7 }
 0x1b0   : > { %v2843_v11 = vmax.f32 %v2841_v3, %v2842_v27  ;;  %v2856_v13 = vmax.f32 %v2854_v5, %v2855_v8 }
 0x1b1   : > { %3478 = vst.sshfl [vmem:[%s4438_s13 + $0x4] sm:$0x3 pattern:$0x76325410] %v3160_v14  ;;  %v2832_v10 = vmax.f32 %v2830_v58, %v2831_v38  ;;  %v2868_v40 = vrot.slane %v2867_v9, 4 }
 0x1b2   : > { %v2844_v15 = vrot.slane %v2843_v11, 2  ;;  %v2857_v16 = vrot.slane %v2856_v13, 2 }
 0x1b3   : > { %v2833_v55 = vrot.slane %v2832_v10, 1  ;;  %v2869_v61 = vmax.f32 %v2867_v9, %v2868_v40 }
 0x1b4   : > { %v2845_v12 = vmax.f32 %v2843_v11, %v2844_v15  ;;  %v2858_v26 = vmax.f32 %v2856_v13, %v2857_v16 }
 0x1b5   : > { %v2834_v18 = vmax.f32 %v2832_v10, %v2833_v55  ;;  %v2870_v20 = vrot.slane %v2869_v61, 2 }
 0x1b6   : > { %v2846_v43 = vrot.slane %v2845_v12, 1  ;;  %v2859_v22 = vrot.slane %v2858_v26, 1 }
 0x1b7   : > { %v2835_v23 = vpack.i.bf16 %v2834_v18, %v2834_v18  ;;  %v2871_v29 = vmax.f32 %v2869_v61, %v2870_v20 }
 0x1b8   : > { %v2847_v30 = vmax.f32 %v2845_v12, %v2846_v43  ;;  %v2860_v32 = vmax.f32 %v2858_v26, %v2859_v22 }
 0x1b9   : > { %v2872_v34 = vrot.slane %v2871_v29, 1  ;;  %v2981_v28 = vrot.slane %v2835_v23, %v4392_v44 }
 0x1ba   : > { %v2848_v35 = vpack.i.bf16 %v2847_v30, %v2847_v30  ;;  %v2861_v36 = vpack.i.bf16 %v2860_v32, %v2860_v32 }
 0x1bb   : > { %v2873_v25 = vmax.f32 %v2871_v29, %v2872_v34  ;;  %v3093_v41 = vrot.slane %v2981_v28, %v4392_v44 }
 0x1bc   : > { %v2988_v24 = vrot.slane %v2848_v35, %v4392_v44  ;;  %v2995_v37 = vrot.slane %v2861_v36, %v4392_v44 }
 0x1bd   : > { %v2874_v39 = vpack.i.bf16 %v2873_v25, %v2873_v25  ;;  %v3127_v48 = vunpack.c.l.b16 %v3093_v41 }
 0x1be   : > { %v3100_v42 = vrot.slane %v2988_v24, %v4392_v44  ;;  %v3107_v31 = vrot.slane %v2995_v37, %v4392_v44 }
 0x1bf   : > { %v3002_v45 = vrot.slane %v2874_v39, %v4392_v44 }
 0x1c0   : > { %v3128_v17 = vunpack.c.l.b16 %v3100_v42  ;;  %v3129_v46 = vunpack.c.l.b16 %v3107_v31 }
 0x1c1   : > { %v3114_v47 = vrot.slane %v3002_v45, %v4392_v44 }
 0x1c2   : > { %v3152_v49 = vrot.slane %v3128_v17, 7  ;;  %v3154_v50 = vrot.slane %v3129_v46, 6 }
 0x1c3   : > { %v3130_v19 = vunpack.c.l.b16 %v3114_v47 }
 0x1c4   : > { %v3153_v51 = vsel %vm3132_vm12, %v3152_v49, %v3127_v48 }
 0x1c5   : > { %v3155_v52 = vsel %vm3135_vm13, %v3154_v50, %v3153_v51  ;;  %v3156_v33 = vrot.slane %v3130_v19, 5 }
 0x1c7   : > { %v3157_v62 = vsel %vm384_vm0, %v3156_v33, %v3155_v52 }
 0x1c8   : > { %v3161_v53 = vpack.c.b16 %v3157_v62, %v3157_v62 }
 0x1ca   : > { %3479 = vst.sshfl [vmem:[%s4438_s13 + $0x6] sm:$0x3 pattern:$0x76325410] %v3161_v53 }
 0x1cb PF: > { %s15_s20 = sadd.s32 1, %s3896_s20   ;;  %s4528_s18 = smov %s3892_s19 }
 0x1cc   : > { %p12_p5 = scmp.ge.s32.totalorder %s15_s20, 4   ;;  %s4529_s19 = smov %s4531_s1 }
 0x1ce   :  { %14 = sbr.rel (!%p12_p5) target bundleno = 2 (0x2), region = 96 }

// kernel: searchable_cnn_forward.3
= control target key start
LH: loop header
LB: loop body
LE: loop exit
PB: predicated region body
PF: predicated region fallthrough
CT: control target
= control target key end

     0   :  { %s6523_s18 = smov 0   ;;  %s6525_s19 = smov 0   ;;  %s8142_s0 = inlined_call_operand.vmem [shape: bf16[2,16,16,8], index: 0, kind: input, shape index: {}, may-alias: {0,1,2}]   ;;  %s8143_s1 = inlined_call_operand.vmem [shape: bf16[2,16,16,8], index: 1, kind: input, shape index: {}, may-alias: {0,1,2}]   ;;  %s8144_s2 = inlined_call_operand.vmem [shape: bf16[2,16,16,8], index: 2, kind: input, shape index: {}, may-alias: {0,1,2}]   ;;  %s8145_s3 = inlined_call_operand.vmem [shape: bf16[72,128], index: 3, kind: input, shape index: {}]   ;;  %s8146_s4 = inlined_call_operand.vmem [shape: f32[2,128], index: 4, kind: input, shape index: {}]   ;;  %s8147_s5 = inlined_call_operand.vmem [shape: bf16[2,8,8,128], index: 5, kind: output, shape index: {}]  }
   0x1   :  { %s6527_s20 = smov 0  }
   0x2 LB: > { %s27_s1 = sadd.s32 1, %s6483_s19  ;;  %p5990_p0 = scmp.ge.s32.totalorder %s6487_s20, 1  ;;  %s6487_s20 = sphi %s6527_s20, %s15_s20   ;;  %s6483_s19 = sphi %s6525_s19, %s8164_s19   ;;  %s6479_s18 = sphi %s6523_s18, %s8163_s18  }
   0x3   : > { %p29_p1 = scmp.ge.s32.totalorder %s27_s1, 2  ;;  %p273_p2 = scmp.lt.s32.totalorder %s6487_s20, 3 }
   0x5   : > { %s8166_s1 = smov (%p29_p1, %s27_s1), 0  ;;  %p274_p3 = pnand %p5990_p0, %p273_p2 }
   0x7   : > { %277 = sbr.rel (%p274_p3) target bundleno = 839 (0x347), region = 40 }
   0xe   : > { %vm668_vm0 = vcmask 64516   ;;  %vm670_vm1 = vcmask 60416   ;;  %v6489_v0 = vmov 0   ;;  %vm450_vm2 = vcmask 61444   ;;  %v453_v1 = vld [vmem:[#allocation2 + $0x8] sm:$0x10] }
   0xf   : > { %706 = vst.msk [vmem:[#allocation2] sm:$0xf0] %vm668_vm0, %v6489_v0  ;;  %728 = vst.msk [vmem:[#allocation2 + $0x110] sm:$0xf0] %vm668_vm0, %v6489_v0  ;;  %vm451_vm3 = vsmask.f32 4352 }
  0x10   : > { %707 = vst.msk [vmem:[#allocation2 + $0x8] sm:$0xf] %vm670_vm1, %v6489_v0  ;;  %729 = vst.msk [vmem:[#allocation2 + $0x118] sm:$0xf] %vm670_vm1, %v6489_v0  ;;  %p337_p4 = scmp.lt.s32.totalorder %s6479_s18, 1  ;;  %vm1148_vm5 = vcmask 1043456  }
  0x11   : > { %vm6546_vm4 = vmand %vm450_vm2, %vm451_vm3  ;;  %v456_v3 = vld [vmem:[#allocation2 + $0x18] sm:$0x10]  ;;  %v459_v4 = vld [vmem:[#allocation2 + $0x28] sm:$0x10]  ;;  %vm1294_vm6 = vsmask.f32 3328 }
  0x12   : > { %v454_v5 = vsel %vm6546_vm4, 0, %v453_v1  ;;  %s8168_s18 = smov (!%p337_p4, %s6479_s18), 1  ;;  %v457_v6 = vsel %vm6546_vm4, 0, %v456_v3  ;;  %v460_v7 = vsel %vm6546_vm4, 0, %v459_v4  ;;  %v462_v8 = vld [vmem:[#allocation2 + $0x38] sm:$0x10] }
  0x13   : > { %455 = vst [vmem:[#allocation2 + $0x8] sm:$0x10] %v454_v5  ;;  %458 = vst [vmem:[#allocation2 + $0x18] sm:$0x10] %v457_v6  ;;  %v463_v9 = vsel %vm6546_vm4, 0, %v462_v8  ;;  %s6157_s2 = sshll.u32 %s8168_s18, 7 }
  0x14   : > { %461 = vst [vmem:[#allocation2 + $0x28] sm:$0x10] %v460_v7  ;;  %v465_v10 = vld [vmem:[#allocation2 + $0x48] sm:$0x10]  ;;  %v468_v11 = vld [vmem:[#allocation2 + $0x58] sm:$0x10]  ;;  %s6568_s23 = scalar_lea.vmem %s8142_s0, %s6157_s2 }
  0x15   : > { %464 = vst [vmem:[#allocation2 + $0x38] sm:$0x10] %v463_v9  ;;  %v466_v12 = vsel %vm6546_vm4, 0, %v465_v10  ;;  %v469_v13 = vsel %vm6546_vm4, 0, %v468_v11  ;;  %v471_v14 = vld [vmem:[#allocation2 + $0x68] sm:$0x10] }
  0x16   : > { %467 = vst [vmem:[#allocation2 + $0x48] sm:$0x10] %v466_v12  ;;  %470 = vst [vmem:[#allocation2 + $0x58] sm:$0x10] %v469_v13  ;;  %v472_v15 = vsel %vm6546_vm4, 0, %v471_v14  ;;  %s6490_s24 = smov 8  }
  0x17   : > { %v6424_v16 = vld [vmem:[%s6568_s23] ss:$0 sps:$4 sm:$0xff]   ;;  %473 = vst [vmem:[#allocation2 + $0x68] sm:$0x10] %v472_v15  ;;  %v1084_v17 = vld [vmem:[#allocation2] sm:$0xf0] }
  0x18   : > { %v1085_v18 = vld [vmem:[#allocation2 + $0x8] sm:$0xf]  ;;  %v1262_v19 = vld [vmem:[#allocation2] sm:$0xf0]  ;;  %v1149_v20 = vrot.slane %v1084_v17, 4  ;;  %s6491_s25 = smov 16  }
  0x19   : > { %v1150_v21 = vrot.slane %v1085_v18, 4  ;;  %v1296_v22 = vshrl.u32 %v1262_v19, 16  ;;  %v1299_v23 = vshll.u32 %v1262_v19, 16  ;;  %v6425_v24 = vld [vmem:[%s6568_s23 + $0x4] ss:$0 sps:$4 sm:$0xff]   ;;  %vm393_vm7 = vcmask 60419  }
  0x1a   : > { %669 = vst.msk [vmem:[#allocation2 + $0x10] sm:$0xf0] %vm668_vm0, %v6424_v16  ;;  %v6426_v25 = vld [vmem:[%s6568_s23 + $0x10] ss:$0 sps:$4 sm:$0xff]   ;;  %v1263_v27 = vld [vmem:[#allocation2 + $0x8] sm:$0x1f] }
  0x1b   : > { %v1151_v26 = vsel %vm1148_vm5, %v1149_v20, %v1150_v21  ;;  %v1298_v28 = vrot.slane %v1296_v22, 4  ;;  %v1301_v29 = vrot.slane %v1299_v23, 5  ;;  %671 = vst.msk [vmem:[#allocation2 + $0x18] sm:$0xf] %vm670_vm1, %v6425_v24  ;;  %v6427_v30 = vld [vmem:[%s6568_s23 + $0x14] ss:$0 sps:$4 sm:$0xff]  }
  0x1c   : > { %1197 = vrot.lane.b32.xlu0 %v1151_v26, %s6490_s24  ;;  %v1304_v31 = vshrl.u32 %v1263_v27, 16  ;;  %v1307_v32 = vshll.u32 %v1263_v27, 16  ;;  %674 = vst.msk [vmem:[#allocation2 + $0x30] sm:$0xf0] %vm668_vm0, %v6426_v25  ;;  %v6428_v33 = vld [vmem:[%s6568_s23 + $0x8] ss:$0 sps:$4 sm:$0xff]  }
  0x1d   : > { %675 = vst.msk [vmem:[#allocation2 + $0x38] sm:$0xf] %vm670_vm1, %v6427_v30  ;;  %v6429_v34 = vld [vmem:[%s6568_s23 + $0xc] ss:$0 sps:$4 sm:$0xff]   ;;  %v1302_v35 = vor.u32 %v1301_v29, %v1298_v28  ;;  %v6430_v38 = vld [vmem:[%s6568_s23 + $0x20] ss:$0 sps:$4 sm:$0xff]  }
  0x1e   : > { %v1306_v36 = vrot.slane %v1304_v31, 4  ;;  %v1309_v37 = vrot.slane %v1307_v32, 5  ;;  %672 = vst.msk [vmem:[#allocation2 + $0x20] sm:$0xf0] %vm668_vm0, %v6428_v33  ;;  %v6431_v39 = vld [vmem:[%s6568_s23 + $0x24] ss:$0 sps:$4 sm:$0xff]  }
  0x1f   : > { %673 = vst.msk [vmem:[#allocation2 + $0x28] sm:$0xf] %vm670_vm1, %v6429_v34  ;;  %v474_v40 = vld [vmem:[#allocation2 + $0x78] sm:$0x10]  ;;  %v6432_v44 = vld [vmem:[%s6568_s23 + $0x18] ss:$0 sps:$4 sm:$0xff]  }
  0x20   : > { %v1310_v41 = vor.u32 %v1309_v37, %v1306_v36  ;;  %678 = vst.msk [vmem:[#allocation2 + $0x50] sm:$0xf0] %vm668_vm0, %v6430_v38  ;;  %v6433_v46 = vld [vmem:[%s6568_s23 + $0x1c] ss:$0 sps:$4 sm:$0xff]   ;;  %676 = vst.msk [vmem:[#allocation2 + $0x40] sm:$0xf0] %vm668_vm0, %v6432_v44 }
  0x21   : > { %v1086_v42 = vld [vmem:[#allocation2 + $0x10] sm:$0xf0]  ;;  %679 = vst.msk [vmem:[#allocation2 + $0x58] sm:$0xf] %vm670_vm1, %v6431_v39  ;;  %677 = vst.msk [vmem:[#allocation2 + $0x48] sm:$0xf] %vm670_vm1, %v6433_v46 }
  0x22   : > { %v1987_v43 = vld [vmem:[#allocation2 + $0x10] sm:$0xf0]  ;;  %v1152_v45 = vrot.slane %v1086_v42, 4  ;;  %v1311_v48 = vsel %vm1294_vm6, %v1302_v35, %v1310_v41  ;;  %v1087_v49 = vld [vmem:[#allocation2 + $0x18] sm:$0xf]  ;;  %v475_v61 = vsel %vm6546_vm4, 0, %v474_v40 }
  0x23   : > { %v1264_v47 = vld [vmem:[#allocation2 + $0x10] sm:$0xf0]  ;;  %v1988_v50 = vld [vmem:[#allocation2 + $0x18] sm:$0xf]  ;;  %1567 = vrot.lane.b32.xlu1 %v1311_v48, %s6491_s25  ;;  %v1153_v52 = vrot.slane %v1087_v49, 4  ;;  %v2051_v54 = vrot.slane %v1987_v43, 4 }
  0x24   : > { %v1265_v51 = vld [vmem:[#allocation2 + $0x18] sm:$0x1f]  ;;  %v1090_v53 = vld [vmem:[#allocation2 + $0x30] sm:$0xf0]  ;;  %v2052_v55 = vrot.slane %v1988_v50, 4  ;;  %v1313_v56 = vshrl.u32 %v1264_v47, 16 }
  0x25   : > { %v1091_v57 = vld [vmem:[#allocation2 + $0x38] sm:$0xf]  ;;  %v1158_v58 = vrot.slane %v1090_v53, 4  ;;  %v1316_v59 = vshll.u32 %v1264_v47, 16  ;;  %v1321_v60 = vshrl.u32 %v1265_v51, 16  ;;  %v1154_v62 = vsel %vm1148_vm5, %v1152_v45, %v1153_v52  ;;  %s6161_s21 = sshll.u32 %s8168_s18, 5 }
  0x26   : > { %v1159_v63 = vrot.slane %v1091_v57, 4  ;;  %v1315_v0 = vrot.slane %v1313_v56, 4  ;;  %v1324_v1 = vshll.u32 %v1265_v51, 16  ;;  %476 = vst [vmem:[#allocation2 + $0x78] sm:$0x10] %v475_v61  ;;  %1199 = vrot.lane.b32.xlu0 %v1154_v62, %s6490_s24  ;;  %v2053_v13 = vsel %vm1148_vm5, %v2051_v54, %v2052_v55 }
  0x27   : > { %v1088_v3 = vld [vmem:[#allocation2 + $0x20] sm:$0xf0]  ;;  %v1089_v4 = vld [vmem:[#allocation2 + $0x28] sm:$0xf]  ;;  %v1268_v11 = vld [vmem:[#allocation2 + $0x30] sm:$0xf0] }
  0x28   : > { %v1989_v5 = vld [vmem:[#allocation2 + $0x20] sm:$0xf0]  ;;  %v1160_v6 = vsel %vm1148_vm5, %v1158_v58, %v1159_v63  ;;  %v1155_v7 = vrot.slane %v1088_v3, 4  ;;  %v1156_v8 = vrot.slane %v1089_v4, 4  ;;  %v1990_v9 = vld [vmem:[#allocation2 + $0x28] sm:$0xf] }
  0x29   : > { %v2054_v10 = vrot.slane %v1989_v5, 4  ;;  %1203 = vrot.lane.b32.xlu1 %v1160_v6, %s6490_s24  ;;  %v2055_v12 = vrot.slane %v1990_v9, 4  ;;  %v1094_v14 = vld [vmem:[#allocation2 + $0x50] sm:$0xf0]  ;;  %v1095_v15 = vld [vmem:[#allocation2 + $0x58] sm:$0xf] }
  0x2a   : > { %v1318_v16 = vrot.slane %v1316_v59, 5  ;;  %v1157_v17 = vsel %vm1148_vm5, %v1155_v7, %v1156_v8  ;;  %v1164_v18 = vrot.slane %v1094_v14, 4  ;;  %v1165_v19 = vrot.slane %v1095_v15, 4  ;;  %v1092_v20 = vld [vmem:[#allocation2 + $0x40] sm:$0xf0] }
  0x2b   : > { %v1323_v21 = vrot.slane %v1321_v60, 4  ;;  %1201 = vrot.lane.b32.xlu0 %v1157_v17, %s6490_s24  ;;  %v2056_v22 = vsel %vm1148_vm5, %v2054_v10, %v2055_v12  ;;  %v1093_v23 = vld [vmem:[#allocation2 + $0x48] sm:$0xf]  ;;  %v1161_v24 = vrot.slane %v1092_v20, 4  ;;  %v1326_v26 = vrot.slane %v1324_v1, 5 }
  0x2c   : > { %v1319_v25 = vor.u32 %v1318_v16, %v1315_v0  ;;  %v1266_v27 = vld [vmem:[#allocation2 + $0x20] sm:$0xf0]  ;;  %v1269_v28 = vld [vmem:[#allocation2 + $0x38] sm:$0x1f]  ;;  %v1166_v29 = vsel %vm1148_vm5, %v1164_v18, %v1165_v19  ;;  %v1162_v30 = vrot.slane %v1093_v23, 4  ;;  %v1347_v37 = vshrl.u32 %v1268_v11, 16 }
  0x2d   : > { %v1267_v31 = vld [vmem:[#allocation2 + $0x28] sm:$0x1f]  ;;  %v1330_v32 = vshrl.u32 %v1266_v27, 16  ;;  %v1333_v33 = vshll.u32 %v1266_v27, 16  ;;  %2101 = vrot.lane.b32.xlu1 %v2056_v22, %s6490_s24  ;;  %v1327_v34 = vor.u32 %v1326_v26, %v1323_v21  ;;  %v2163_v38 = vld [vmem:[#allocation2 + $0x10] sm:$0xf0] }
  0x2e   : > { %v1338_v35 = vshrl.u32 %v1267_v31, 16  ;;  %v1341_v36 = vshll.u32 %v1267_v31, 16  ;;  %v1163_v39 = vsel %vm1148_vm5, %v1161_v24, %v1162_v30  ;;  %v1350_v42 = vshll.u32 %v1268_v11, 16  ;;  %v2164_v43 = vld [vmem:[#allocation2 + $0x18] sm:$0x1f] }
  0x2f   : > { %v1332_v40 = vrot.slane %v1330_v32, 4  ;;  %v1335_v41 = vrot.slane %v1333_v33, 5  ;;  %2099 = vrot.lane.b32.xlu0 %v2053_v13, %s6490_s24  ;;  %v1328_v44 = vsel %vm1294_vm6, %v1319_v25, %v1327_v34  ;;  %v1349_v47 = vrot.slane %v1347_v37, 4  ;;  %v2165_v52 = vld [vmem:[#allocation2 + $0x20] sm:$0xf0] }
  0x30   : > { %v1340_v45 = vrot.slane %v1338_v35, 4  ;;  %v1343_v46 = vrot.slane %v1341_v36, 5  ;;  %v1352_v49 = vrot.slane %v1350_v42, 5  ;;  %v1355_v50 = vshrl.u32 %v1269_v28, 16  ;;  %v2166_v57 = vld [vmem:[#allocation2 + $0x28] sm:$0x1f] }
  0x31   : > { %v1336_v48 = vor.u32 %v1335_v41, %v1332_v40  ;;  %v1358_v51 = vshll.u32 %v1269_v28, 16  ;;  %1207 = vrot.lane.b32.xlu1 %v1166_v29, %s6490_s24  ;;  %v2196_v54 = vshrl.u32 %v2163_v38, 16  ;;  %v2199_v55 = vshll.u32 %v2163_v38, 16  ;;  %v1270_v62 = vld [vmem:[#allocation2 + $0x40] sm:$0xf0] }
  0x32   : > { %v1344_v53 = vor.u32 %v1343_v46, %v1340_v45  ;;  %v2204_v56 = vshrl.u32 %v2164_v43, 16  ;;  %v1353_v58 = vor.u32 %v1352_v49, %v1349_v47  ;;  %v1357_v59 = vrot.slane %v1355_v50, 4  ;;  %v1271_v11 = vld [vmem:[#allocation2 + $0x48] sm:$0x1f]  ;;  %v1272_v17 = vld [vmem:[#allocation2 + $0x50] sm:$0xf0] }
  0x33   : > { %v1360_v60 = vrot.slane %v1358_v51, 5  ;;  %v2207_v61 = vshll.u32 %v2164_v43, 16  ;;  %1205 = vrot.lane.b32.xlu0 %v1163_v39, %s6490_s24  ;;  %v2198_v0 = vrot.slane %v2196_v54, 4  ;;  %v2201_v1 = vrot.slane %v2199_v55, 5  ;;  %v1273_v18 = vld [vmem:[#allocation2 + $0x58] sm:$0x1f] }
  0x34   : > { %v1345_v63 = vsel %vm1294_vm6, %v1336_v48, %v1344_v53  ;;  %v2206_v3 = vrot.slane %v2204_v56, 4  ;;  %v2213_v6 = vshrl.u32 %v2165_v52, 16  ;;  %v2216_v7 = vshll.u32 %v2165_v52, 16  ;;  %v1991_v23 = vld [vmem:[#allocation2 + $0x30] sm:$0xf0]  ;;  %v6454_v52 = vld [vmem:[%s8145_s3] sm:$0xff]  }
  0x35   : > { %v1361_v4 = vor.u32 %v1360_v60, %v1357_v59  ;;  %v2209_v5 = vrot.slane %v2207_v61, 5  ;;  %1569 = vrot.lane.b32.xlu1 %v1328_v44, %s6491_s25  ;;  %v2202_v8 = vor.u32 %v2201_v1, %v2198_v0  ;;  %v2221_v9 = vshrl.u32 %v2166_v57, 16  ;;  %v1992_v28 = vld [vmem:[#allocation2 + $0x38] sm:$0xf]  ;;  %v1993_v29 = vld [vmem:[#allocation2 + $0x40] sm:$0xf0]  ;;  %6252 = vmatprep.subr.bf16.mxu0 %v6454_v52 }
  0x36   : > { %v2224_v10 = vshll.u32 %v2166_v57, 16  ;;  %v1364_v12 = vshrl.u32 %v1270_v62, 16  ;;  %v2215_v15 = vrot.slane %v2213_v6, 4  ;;  %v2218_v16 = vrot.slane %v2216_v7, 5  ;;  %v1994_v30 = vld [vmem:[#allocation2 + $0x48] sm:$0xf]  ;;  %6253 = vmatpush3.bf16.msra.mxu0 %v6454_v52 }
  0x37   : > { %v1362_v13 = vsel %vm1294_vm6, %v1353_v58, %v1361_v4  ;;  %v2210_v14 = vor.u32 %v2209_v5, %v2206_v3  ;;  %1571 = vrot.lane.b32.xlu0 %v1345_v63, %s6491_s25  ;;  %v2223_v19 = vrot.slane %v2221_v9, 4  ;;  %v1367_v22 = vshll.u32 %v1270_v62, 16  ;;  %v2167_v35 = vld [vmem:[#allocation2 + $0x30] sm:$0xf0]  ;;  %v2168_v40 = vld [vmem:[#allocation2 + $0x38] sm:$0x1f] }
  0x38   : > { %v2226_v20 = vrot.slane %v2224_v10, 5  ;;  %v1366_v21 = vrot.slane %v1364_v12, 4  ;;  %v2219_v25 = vor.u32 %v2218_v16, %v2215_v15  ;;  %v1372_v26 = vshrl.u32 %v1271_v11, 16  ;;  %v2169_v45 = vld [vmem:[#allocation2 + $0x40] sm:$0xf0] }
  0x39   : > { %v2211_v24 = vsel %vm1294_vm6, %v2202_v8, %v2210_v14  ;;  %v1375_v27 = vshll.u32 %v1271_v11, 16  ;;  %1573 = vrot.lane.b32.xlu1 %v1362_v13, %s6491_s25  ;;  %v1369_v32 = vrot.slane %v1367_v22, 5  ;;  %v1381_v33 = vshrl.u32 %v1272_v17, 16  ;;  %v2170_v50 = vld [vmem:[#allocation2 + $0x48] sm:$0x1f] }
  0x3a   : > { %v2227_v31 = vor.u32 %v2226_v20, %v2223_v19  ;;  %v1384_v34 = vshll.u32 %v1272_v17, 16  ;;  %v1374_v36 = vrot.slane %v1372_v26, 4  ;;  %v1389_v38 = vshrl.u32 %v1273_v18, 16  ;;  %v6434_v51 = vld [vmem:[%s6568_s23 + $0x28] ss:$0 sps:$4 sm:$0xff]  }
  0x3b   : > { %v1377_v37 = vrot.slane %v1375_v27, 5  ;;  %v1392_v39 = vshll.u32 %v1273_v18, 16  ;;  %2467 = vrot.lane.b32.xlu0 %v2211_v24, %s6491_s25  ;;  %v1370_v42 = vor.u32 %v1369_v32, %v1366_v21  ;;  %v1383_v43 = vrot.slane %v1381_v33, 4  ;;  %v6435_v57 = vld [vmem:[%s6568_s23 + $0x2c] ss:$0 sps:$4 sm:$0xff]  }
  0x3c   : > { %v2228_v41 = vsel %vm1294_vm6, %v2219_v25, %v2227_v31  ;;  %v1386_v44 = vrot.slane %v1384_v34, 5  ;;  %v1391_v47 = vrot.slane %v1389_v38, 4  ;;  %v2057_v49 = vrot.slane %v1991_v23, 4  ;;  %680 = vst.msk [vmem:[#allocation2 + $0x60] sm:$0xf0] %vm668_vm0, %v6434_v51 }
  0x3d   : > { %v1378_v46 = vor.u32 %v1377_v37, %v1374_v36  ;;  %v1394_v48 = vrot.slane %v1392_v39, 5  ;;  %2469 = vrot.lane.b32.xlu1 %v2228_v41, %s6491_s25  ;;  %v2058_v54 = vrot.slane %v1992_v28, 4  ;;  %v2060_v55 = vrot.slane %v1993_v29, 4  ;;  %681 = vst.msk [vmem:[#allocation2 + $0x68] sm:$0xf] %vm670_vm1, %v6435_v57 }
  0x3e   : > { %v1387_v53 = vor.u32 %v1386_v44, %v1383_v43  ;;  %v2061_v56 = vrot.slane %v1994_v30, 4  ;;  %v2230_v60 = vshrl.u32 %v2167_v35, 16  ;;  %v2233_v61 = vshll.u32 %v2167_v35, 16  ;;  %v6436_v3 = vld [vmem:[%s6568_s23 + $0x30] ss:$0 sps:$4 sm:$0xff]  }
  0x3f   : > { %v1379_v58 = vsel %vm1294_vm6, %v1370_v42, %v1378_v46  ;;  %v1395_v59 = vor.u32 %v1394_v48, %v1391_v47  ;;  %v2059_v62 = vsel %vm1148_vm5, %v2057_v49, %v2058_v54  ;;  %v2238_v0 = vshrl.u32 %v2168_v40, 16  ;;  %v6437_v4 = vld [vmem:[%s6568_s23 + $0x34] ss:$0 sps:$4 sm:$0xff]   ;;  %682 = vst.msk [vmem:[#allocation2 + $0x70] sm:$0xf0] %vm668_vm0, %v6436_v3 }
  0x40   : > { %1575 = vrot.lane.b32.xlu0 %v1379_v58, %s6491_s25  ;;  %v2062_v63 = vsel %vm1148_vm5, %v2060_v55, %v2061_v56  ;;  %v2241_v1 = vshll.u32 %v2168_v40, 16  ;;  %v2232_v6 = vrot.slane %v2230_v60, 4  ;;  %v2235_v7 = vrot.slane %v2233_v61, 5  ;;  %v6636_v9 = vld [vmem:[#allocation2 + $0x50] sm:$0xf0] }
  0x41   : > { %v1396_v5 = vsel %vm1294_vm6, %v1387_v53, %v1395_v59  ;;  %v2247_v8 = vshrl.u32 %v2169_v45, 16  ;;  %v2240_v10 = vrot.slane %v2238_v0, 4  ;;  %v2250_v12 = vshll.u32 %v2169_v45, 16  ;;  %683 = vst.msk [vmem:[#allocation2 + $0x78] sm:$0xf] %vm670_vm1, %v6437_v4  ;;  %v6456_v53 = vld [vmem:[%s8145_s3 + $0xc] sm:$0xff]  }
  0x42   : > { %1577 = vrot.lane.b32.xlu1 %v1396_v5, %s6491_s25  ;;  %v2243_v11 = vrot.slane %v2241_v1, 5  ;;  %v2255_v13 = vshrl.u32 %v2170_v50, 16  ;;  %v6641_v14 = vld [vmem:[#allocation2 + $0x58] sm:$0xf]  ;;  %v2236_v15 = vor.u32 %v2235_v7, %v2232_v6  ;;  %v2258_v17 = vshll.u32 %v2170_v50, 16  ;;  %6216 = vmatprep.subr.bf16.mxu1 %v6456_v53 }
  0x43   : > { %v2249_v16 = vrot.slane %v2247_v8, 4  ;;  %v2063_v18 = vrot.slane %v6636_v9, 4  ;;  %v2171_v19 = vld [vmem:[#allocation2 + $0x50] sm:$0xf0]  ;;  %v2252_v21 = vrot.slane %v2250_v12, 5  ;;  %v2064_v23 = vrot.slane %v6641_v14, 4  ;;  %6217 = vmatpush3.bf16.msra.mxu1 %v6456_v53 }
  0x44   : > { %2103 = vrot.lane.b32.xlu0 %v2059_v62, %s6490_s24  ;;  %v2244_v20 = vor.u32 %v2243_v11, %v2240_v10  ;;  %v2257_v22 = vrot.slane %v2255_v13, 4  ;;  %v6646_v24 = vld [vmem:[#allocation2 + $0x58] sm:$0x1f]  ;;  %v2260_v25 = vrot.slane %v2258_v17, 5  ;;  %v2264_v26 = vshrl.u32 %v2171_v19, 16 }
  0x45   : > { %v2267_v27 = vshll.u32 %v2171_v19, 16  ;;  %v2272_v28 = vshrl.u32 %v6646_v24, 16  ;;  %v2253_v30 = vor.u32 %v2252_v21, %v2249_v16  ;;  %v1096_v31 = vld [vmem:[#allocation2 + $0x60] sm:$0xf0]  ;;  %v1097_v35 = vld [vmem:[#allocation2 + $0x68] sm:$0xf]  ;;  %v2065_v21 = vsel %vm1148_vm5, %v2063_v18, %v2064_v23 }
  0x46   : > { %2105 = vrot.lane.b32.xlu1 %v2062_v63, %s6490_s24  ;;  %v2245_v29 = vsel %vm1294_vm6, %v2236_v15, %v2244_v20  ;;  %v1274_v32 = vld [vmem:[#allocation2 + $0x60] sm:$0xf0]  ;;  %v2261_v34 = vor.u32 %v2260_v25, %v2257_v22  ;;  %v1167_v36 = vrot.slane %v1096_v31, 4  ;;  %v1275_v37 = vld [vmem:[#allocation2 + $0x68] sm:$0x1f]  ;;  %v1168_v39 = vrot.slane %v1097_v35, 4 }
  0x47   : > { %v6651_v33 = vld [vmem:[#allocation2 + $0x60] sm:$0xf0]  ;;  %v1398_v38 = vshrl.u32 %v1274_v32, 16  ;;  %v1401_v40 = vshll.u32 %v1274_v32, 16  ;;  %v1406_v41 = vshrl.u32 %v1275_v37, 16  ;;  %v1409_v42 = vshll.u32 %v1275_v37, 16 }
  0x48   : > { %2471 = vrot.lane.b32.xlu0 %v2245_v29, %s6491_s25  ;;  %v2262_v43 = vsel %vm1294_vm6, %v2253_v30, %v2261_v34  ;;  %v1098_v44 = vld [vmem:[#allocation2 + $0x70] sm:$0xf0]  ;;  %v1099_v45 = vld [vmem:[#allocation2 + $0x78] sm:$0xf]  ;;  %v2066_v47 = vrot.slane %v6651_v33, 4  ;;  %v1169_v48 = vsel %vm1148_vm5, %v1167_v36, %v1168_v39  ;;  %v2266_v10 = vrot.slane %v2264_v26, 4 }
  0x49   : > { %v1400_v46 = vrot.slane %v1398_v38, 4  ;;  %v1170_v49 = vrot.slane %v1098_v44, 4  ;;  %v1171_v50 = vrot.slane %v1099_v45, 4  ;;  %v1403_v51 = vrot.slane %v1401_v40, 5  ;;  %v1276_v52 = vld [vmem:[#allocation2 + $0x70] sm:$0xf0] }
  0x4a   : > { %2473 = vrot.lane.b32.xlu1 %v2262_v43, %s6491_s25  ;;  %v1408_v54 = vrot.slane %v1406_v41, 4  ;;  %v1411_v55 = vrot.slane %v1409_v42, 5  ;;  %v1277_v56 = vld [vmem:[#allocation2 + $0x78] sm:$0x1f]  ;;  %v1415_v57 = vshrl.u32 %v1276_v52, 16  ;;  %v1418_v58 = vshll.u32 %v1276_v52, 16 }
  0x4b   : > { %v1172_v59 = vsel %vm1148_vm5, %v1170_v49, %v1171_v50  ;;  %v1404_v60 = vor.u32 %v1403_v51, %v1400_v46  ;;  %v1423_v61 = vshrl.u32 %v1277_v56, 16  ;;  %v1426_v62 = vshll.u32 %v1277_v56, 16  ;;  %v1998_v63 = vld [vmem:[#allocation2 + $0x68] sm:$0xf]  ;;  %v2173_v0 = vld [vmem:[#allocation2 + $0x60] sm:$0xf0] }
  0x4c   : > { %1209 = vrot.lane.b32.xlu0 %v1169_v48, %s6490_s24  ;;  %v477_v1 = vld [vmem:[#allocation2 + $0x88] sm:$0x10]  ;;  %v1412_v3 = vor.u32 %v1411_v55, %v1408_v54  ;;  %v1417_v4 = vrot.slane %v1415_v57, 4  ;;  %v1420_v5 = vrot.slane %v1418_v58, 5  ;;  %v2269_v11 = vrot.slane %v2267_v27, 5 }
  0x4d   : > { %v2174_v6 = vld [vmem:[#allocation2 + $0x68] sm:$0x1f]  ;;  %v1425_v7 = vrot.slane %v1423_v61, 4  ;;  %v1428_v8 = vrot.slane %v1426_v62, 5  ;;  %v6438_v12 = vld [vmem:[%s6568_s23 + $0x38] ss:$0 sps:$4 sm:$0xff]  }
  0x4e   : > { %1211 = vrot.lane.b32.xlu1 %v1172_v59, %s6490_s24  ;;  %v1413_v13 = vsel %vm1294_vm6, %v1404_v60, %v1412_v3  ;;  %v1421_v15 = vor.u32 %v1420_v5, %v1417_v4  ;;  %v2067_v16 = vrot.slane %v1998_v63, 4  ;;  %v2274_v17 = vrot.slane %v2272_v28, 4  ;;  %v6439_v19 = vld [vmem:[%s6568_s23 + $0x3c] ss:$0 sps:$4 sm:$0xff]   ;;  %684 = vst.msk [vmem:[#allocation2 + $0x80] sm:$0xf0] %vm668_vm0, %v6438_v12 }
  0x4f   : > { %v1429_v20 = vor.u32 %v1428_v8, %v1425_v7  ;;  %v2275_v22 = vshll.u32 %v6646_v24, 16  ;;  %v2281_v25 = vshrl.u32 %v2173_v0, 16  ;;  %v6440_v26 = vld [vmem:[%s6568_s23 + $0x40] ss:$0 sps:$4 sm:$0xff]   ;;  %v2284_v27 = vshll.u32 %v2173_v0, 16 }
  0x50   : > { %1579 = vrot.lane.b32.xlu0 %v1413_v13, %s6491_s25  ;;  %v2289_v29 = vshrl.u32 %v2174_v6, 16  ;;  %v2292_v30 = vshll.u32 %v2174_v6, 16  ;;  %685 = vst.msk [vmem:[#allocation2 + $0x88] sm:$0xf] %vm670_vm1, %v6439_v19  ;;  %v6441_v28 = vld [vmem:[%s6568_s23 + $0x44] ss:$0 sps:$4 sm:$0xff]   ;;  %v2270_v9 = vor.u32 %v2269_v11, %v2266_v10  ;;  %v2068_v39 = vsel %vm1148_vm5, %v2066_v47, %v2067_v16 }
  0x51   : > { %v478_v31 = vsel %vm6546_vm4, 0, %v477_v1  ;;  %v1430_v14 = vsel %vm1294_vm6, %v1421_v15, %v1429_v20  ;;  %v2277_v32 = vrot.slane %v2275_v22, 5  ;;  %v2283_v18 = vrot.slane %v2281_v25, 4  ;;  %686 = vst.msk [vmem:[#allocation2 + $0x90] sm:$0xf0] %vm668_vm0, %v6440_v26 }
  0x52   : > { %479 = vst [vmem:[#allocation2 + $0x88] sm:$0x10] %v478_v31  ;;  %v480_v23 = vld [vmem:[#allocation2 + $0x98] sm:$0x10]  ;;  %v6682_v24 = vld [vmem:[#allocation2 + $0x70] sm:$0xf0]  ;;  %1581 = vrot.lane.b32.xlu1 %v1430_v14, %s6491_s25 }
  0x53   : > { %v2286_v34 = vrot.slane %v2284_v27, 5  ;;  %v2291_v35 = vrot.slane %v2289_v29, 4  ;;  %v2294_v36 = vrot.slane %v2292_v30, 5  ;;  %687 = vst.msk [vmem:[#allocation2 + $0x98] sm:$0xf] %vm670_vm1, %v6441_v28  ;;  %v481_v37 = vsel %vm6546_vm4, 0, %v480_v23 }
  0x54   : > { %v6688_v38 = vld [vmem:[#allocation2 + $0x78] sm:$0xf]  ;;  %2107 = vrot.lane.b32.xlu0 %v2065_v21, %s6490_s24  ;;  %v2278_v40 = vor.u32 %v2277_v32, %v2274_v17  ;;  %482 = vst [vmem:[#allocation2 + $0x98] sm:$0x10] %v481_v37  ;;  %v2069_v41 = vrot.slane %v6682_v24, 4  ;;  %vm1067_vm10 = vcmask 64512  }
  0x55   : > { %v2070_v42 = vrot.slane %v6688_v38, 4  ;;  %v2175_v43 = vld [vmem:[#allocation2 + $0x70] sm:$0xf0]  ;;  %v2176_v44 = vld [vmem:[#allocation2 + $0x78] sm:$0x1f]  ;;  %v2287_v45 = vor.u32 %v2286_v34, %v2283_v18  ;;  %v2295_v46 = vor.u32 %v2294_v36, %v2291_v35  ;;  %vm1245_vm11 = vcmask 130112  }
  0x56   : > { %v2298_v48 = vshrl.u32 %v2175_v43, 16  ;;  %v2301_v49 = vshll.u32 %v2175_v43, 16  ;;  %v2279_v50 = vsel %vm1294_vm6, %v2270_v9, %v2278_v40  ;;  %v2306_v51 = vshrl.u32 %v2176_v44, 16  ;;  %v6442_v33 = vld [vmem:[%s6568_s23 + $0x48] ss:$0 sps:$4 sm:$0xff]   ;;  %2109 = vrot.lane.b32.xlu1 %v2068_v39, %s6490_s24 }
  0x57   : > { %v2309_v52 = vshll.u32 %v2176_v44, 16  ;;  %v6443_v53 = vld [vmem:[%s6568_s23 + $0x4c] ss:$0 sps:$4 sm:$0xff]   ;;  %v1100_v47 = vld [vmem:[#allocation2 + $0x80] sm:$0xf0]  ;;  %v2296_v56 = vsel %vm1294_vm6, %v2287_v45, %v2295_v46  ;;  %v2071_v45 = vsel %vm1148_vm5, %v2069_v41, %v2070_v42  ;;  %vm1615_vm12 = vcmask 195712  }
  0x58   : > { %v1278_v54 = vld [vmem:[#allocation2 + $0x80] sm:$0xf0]  ;;  %2475 = vrot.lane.b32.xlu0 %v2279_v50, %s6491_s25  ;;  %v1101_v57 = vld [vmem:[#allocation2 + $0x88] sm:$0xf]  ;;  %v1173_v58 = vrot.slane %v1100_v47, 4  ;;  %v2300_v29 = vrot.slane %v2298_v48, 4 }
  0x59   : > { %v6700_v55 = vld [vmem:[#allocation2 + $0x80] sm:$0xf0]  ;;  %v1432_v59 = vshrl.u32 %v1278_v54, 16  ;;  %v1435_v60 = vshll.u32 %v1278_v54, 16  ;;  %688 = vst.msk [vmem:[#allocation2 + $0xa0] sm:$0xf0] %vm668_vm0, %v6442_v33 }
  0x5a   : > { %689 = vst.msk [vmem:[#allocation2 + $0xa8] sm:$0xf] %vm670_vm1, %v6443_v53  ;;  %v1174_v61 = vrot.slane %v1101_v57, 4  ;;  %v1102_v62 = vld [vmem:[#allocation2 + $0x90] sm:$0xf0]  ;;  %v2072_v0 = vrot.slane %v6700_v55, 4  ;;  %2477 = vrot.lane.b32.xlu1 %v2296_v56, %s6491_s25 }
  0x5b   : > { %v1279_v63 = vld [vmem:[#allocation2 + $0x88] sm:$0x1f]  ;;  %v1103_v1 = vld [vmem:[#allocation2 + $0x98] sm:$0xf]  ;;  %v1176_v3 = vrot.slane %v1102_v62, 4  ;;  %v1434_v4 = vrot.slane %v1432_v59, 4 }
  0x5c   : > { %v1437_v5 = vrot.slane %v1435_v60, 5  ;;  %v1440_v6 = vshrl.u32 %v1279_v63, 16  ;;  %v1175_v7 = vsel %vm1148_vm5, %v1173_v58, %v1174_v61  ;;  %v1177_v8 = vrot.slane %v1103_v1, 4  ;;  %v1280_v11 = vld [vmem:[#allocation2 + $0x90] sm:$0xf0] }
  0x5d   : > { %v1443_v10 = vshll.u32 %v1279_v63, 16  ;;  %v1281_v12 = vld [vmem:[#allocation2 + $0x98] sm:$0x1f]  ;;  %1213 = vrot.lane.b32.xlu0 %v1175_v7, %s6490_s24  ;;  %v1449_v16 = vshrl.u32 %v1280_v11, 16  ;;  %v1452_v17 = vshll.u32 %v1280_v11, 16  ;;  %v2303_v30 = vrot.slane %v2301_v49, 5 }
  0x5e   : > { %v1438_v13 = vor.u32 %v1437_v5, %v1434_v4  ;;  %v1442_v15 = vrot.slane %v1440_v6, 4  ;;  %v1178_v19 = vsel %vm1148_vm5, %v1176_v3, %v1177_v8  ;;  %v1457_v21 = vshrl.u32 %v1281_v12, 16  ;;  %v2002_v25 = vld [vmem:[#allocation2 + $0x88] sm:$0xf]  ;;  %v2177_v28 = vld [vmem:[#allocation2 + $0x80] sm:$0xf0] }
  0x5f   : > { %v1445_v20 = vrot.slane %v1443_v10, 5  ;;  %v1460_v22 = vshll.u32 %v1281_v12, 16  ;;  %v1451_v26 = vrot.slane %v1449_v16, 4  ;;  %v1454_v27 = vrot.slane %v1452_v17, 5  ;;  %1215 = vrot.lane.b32.xlu1 %v1178_v19, %s6490_s24  ;;  %v2178_v18 = vld [vmem:[#allocation2 + $0x88] sm:$0x1f] }
  0x60   : > { %v1459_v14 = vrot.slane %v1457_v21, 4  ;;  %v2308_v32 = vrot.slane %v2306_v51, 4  ;;  %v2073_v34 = vrot.slane %v2002_v25, 4  ;;  %v2311_v35 = vrot.slane %v2309_v52, 5  ;;  %v1104_v36 = vld [vmem:[#allocation2 + $0xa0] sm:$0xf0] }
  0x61   : > { %v1446_v31 = vor.u32 %v1445_v20, %v1442_v15  ;;  %v1462_v9 = vrot.slane %v1460_v22, 5  ;;  %v1455_v23 = vor.u32 %v1454_v27, %v1451_v26  ;;  %v2315_v40 = vshrl.u32 %v2177_v28, 16  ;;  %v6444_v44 = vld [vmem:[%s6568_s23 + $0x50] ss:$0 sps:$4 sm:$0xff]   ;;  %v6445_v50 = vld [vmem:[%s6568_s23 + $0x54] ss:$0 sps:$4 sm:$0xff]  }
  0x62   : > { %v2318_v43 = vshll.u32 %v2177_v28, 16  ;;  %v2304_v46 = vor.u32 %v2303_v30, %v2300_v29  ;;  %v2323_v48 = vshrl.u32 %v2178_v18, 16  ;;  %v2326_v49 = vshll.u32 %v2178_v18, 16  ;;  %v1105_v47 = vld [vmem:[#allocation2 + $0xa8] sm:$0xf] }
  0x63   : > { %v1447_v37 = vsel %vm1294_vm6, %v1438_v13, %v1446_v31  ;;  %v1463_v39 = vor.u32 %v1462_v9, %v1459_v14  ;;  %v2312_v52 = vor.u32 %v2311_v35, %v2308_v32  ;;  %v2317_v33 = vrot.slane %v2315_v40, 4  ;;  %690 = vst.msk [vmem:[#allocation2 + $0xb0] sm:$0xf0] %vm668_vm0, %v6444_v44  ;;  %v483_v54 = vld [vmem:[#allocation2 + $0xa8] sm:$0x10] }
  0x64   : > { %1583 = vrot.lane.b32.xlu0 %v1447_v37, %s6491_s25  ;;  %v2320_v53 = vrot.slane %v2318_v43, 5  ;;  %v2325_v38 = vrot.slane %v2323_v48, 4  ;;  %v2328_v56 = vrot.slane %v2326_v49, 5  ;;  %v1179_v24 = vrot.slane %v1104_v36, 4  ;;  %691 = vst.msk [vmem:[#allocation2 + $0xb8] sm:$0xf] %vm670_vm1, %v6445_v50 }
  0x65   : > { %v1464_v51 = vsel %vm1294_vm6, %v1455_v23, %v1463_v39  ;;  %v484_v41 = vsel %vm6546_vm4, 0, %v483_v54  ;;  %v1282_v42 = vld [vmem:[#allocation2 + $0xa0] sm:$0xf0]  ;;  %v2074_v57 = vsel %vm1148_vm5, %v2072_v0, %v2073_v34  ;;  %v486_v61 = vld [vmem:[#allocation2 + $0xb8] sm:$0x10]  ;;  %v1180_v1 = vrot.slane %v1105_v47, 4 }
  0x66   : > { %1585 = vrot.lane.b32.xlu1 %v1464_v51, %s6491_s25  ;;  %v2321_v58 = vor.u32 %v2320_v53, %v2317_v33  ;;  %485 = vst [vmem:[#allocation2 + $0xa8] sm:$0x10] %v484_v41  ;;  %v1466_v59 = vshrl.u32 %v1282_v42, 16  ;;  %v1469_v60 = vshll.u32 %v1282_v42, 16  ;;  %v2003_v62 = vld [vmem:[#allocation2 + $0x90] sm:$0xf0]  ;;  %v2329_v63 = vor.u32 %v2328_v56, %v2325_v38 }
  0x67   : > { %v487_v3 = vsel %vm6546_vm4, 0, %v486_v61  ;;  %v2004_v4 = vld [vmem:[#allocation2 + $0x98] sm:$0xf]  ;;  %v6733_v5 = vld [vmem:[#allocation2 + $0x20] sm:$0xf0]  ;;  %v2313_v55 = vsel %vm1294_vm6, %v2304_v46, %v2312_v52  ;;  %v2075_v0 = vrot.slane %v2003_v62, 4  ;;  %v1181_v19 = vsel %vm1148_vm5, %v1179_v24, %v1180_v1 }
  0x68   : > { %2111 = vrot.lane.b32.xlu0 %v2071_v45, %s6490_s24  ;;  %488 = vst [vmem:[#allocation2 + $0xb8] sm:$0x10] %v487_v3  ;;  %v6736_v6 = vld [vmem:[#allocation2 + $0x28] sm:$0xf]  ;;  %v1468_v7 = vrot.slane %v1466_v59, 4  ;;  %v1471_v8 = vrot.slane %v1469_v60, 5  ;;  %v2330_v13 = vsel %vm1294_vm6, %v2321_v58, %v2329_v63 }
  0x69   : > { %v2076_v10 = vrot.slane %v2004_v4, 4  ;;  %v3395_v11 = vrot.slane %v6733_v5, 4  ;;  %v6740_v12 = vld [vmem:[#allocation2 + $0xa0] sm:$0xf0]  ;;  %v6743_v15 = vld [vmem:[#allocation2 + $0xa8] sm:$0xf] }
  0x6a   : > { %2113 = vrot.lane.b32.xlu1 %v2074_v57, %s6490_s24  ;;  %v2179_v16 = vld [vmem:[#allocation2 + $0x90] sm:$0xf0]  ;;  %v2180_v17 = vld [vmem:[#allocation2 + $0x98] sm:$0x1f]  ;;  %v3396_v22 = vrot.slane %v6736_v6, 4  ;;  %v2078_v9 = vrot.slane %v6740_v12, 4  ;;  %v1472_v39 = vor.u32 %v1471_v8, %v1468_v7 }
  0x6b   : > { %v1106_v20 = vld [vmem:[#allocation2 + $0xb0] sm:$0xf0]  ;;  %v2332_v25 = vshrl.u32 %v2179_v16, 16  ;;  %v1107_v26 = vld [vmem:[#allocation2 + $0xb8] sm:$0xf]  ;;  %v2335_v28 = vshll.u32 %v2179_v16, 16  ;;  %v2077_v53 = vsel %vm1148_vm5, %v2075_v0, %v2076_v10 }
  0x6c   : > { %2479 = vrot.lane.b32.xlu0 %v2313_v55, %s6491_s25  ;;  %v1284_v21 = vld [vmem:[#allocation2 + $0xb0] sm:$0xf0]  ;;  %v1182_v27 = vrot.slane %v1106_v20, 4  ;;  %v1183_v31 = vrot.slane %v1107_v26, 4  ;;  %v2079_v32 = vrot.slane %v6743_v15, 4  ;;  %v2340_v18 = vshrl.u32 %v2180_v17, 16 }
  0x6d   : > { %v1483_v29 = vshrl.u32 %v1284_v21, 16  ;;  %v1486_v30 = vshll.u32 %v1284_v21, 16  ;;  %v1283_v14 = vld [vmem:[#allocation2 + $0xa8] sm:$0x1f]  ;;  %v6753_v43 = vrot.slane %v2332_v25, 4  ;;  %v2343_v44 = vshll.u32 %v2180_v17, 16 }
  0x6e   : > { %2481 = vrot.lane.b32.xlu1 %v2330_v13, %s6491_s25  ;;  %v1474_v23 = vshrl.u32 %v1283_v14, 16  ;;  %v1477_v34 = vshll.u32 %v1283_v14, 16  ;;  %v1184_v37 = vsel %vm1148_vm5, %v1182_v27, %v1183_v31  ;;  %v6755_v45 = vld [vmem:[#allocation2 + $0x30] sm:$0xf0]  ;;  %v6757_v50 = vrot.slane %v2335_v28, 5 }
  0x6f   : > { %v1485_v35 = vrot.slane %v1483_v29, 4  ;;  %v1488_v36 = vrot.slane %v1486_v30, 5  ;;  %v1285_v40 = vld [vmem:[#allocation2 + $0xb8] sm:$0x1f]  ;;  %v3507_v51 = vld [vmem:[#allocation2 + $0x20] sm:$0xf0]  ;;  %v3397_v1 = vsel %vm1148_vm5, %v3395_v11, %v3396_v22 }
  0x70   : > { %1217 = vrot.lane.b32.xlu0 %v1181_v19, %s6490_s24  ;;  %v1476_v46 = vrot.slane %v1474_v23, 4  ;;  %v1479_v48 = vrot.slane %v1477_v34, 5  ;;  %v1491_v49 = vshrl.u32 %v1285_v40, 16  ;;  %v1494_v33 = vshll.u32 %v1285_v40, 16  ;;  %v6763_v54 = vld [vmem:[#allocation2 + $0x38] sm:$0xf] }
  0x71   : > { %v1489_v52 = vor.u32 %v1488_v36, %v1485_v35  ;;  %v6761_v47 = vrot.slane %v2340_v18, 4  ;;  %v3508_v38 = vld [vmem:[#allocation2 + $0x28] sm:$0x1f]  ;;  %v3540_v41 = vshrl.u32 %v3507_v51, 16  ;;  %v3543_v42 = vshll.u32 %v3507_v51, 16 }
  0x72   : > { %1219 = vrot.lane.b32.xlu1 %v1184_v37, %s6490_s24  ;;  %v1480_v56 = vor.u32 %v1479_v48, %v1476_v46  ;;  %v1493_v24 = vrot.slane %v1491_v49, 4  ;;  %v2181_v57 = vld [vmem:[#allocation2 + $0xa0] sm:$0xf0]  ;;  %v1496_v58 = vrot.slane %v1494_v33, 5  ;;  %v2345_v59 = vrot.slane %v2343_v44, 5 }
  0x73   : > { %v3398_v60 = vrot.slane %v6755_v45, 4  ;;  %v3548_v61 = vshrl.u32 %v3508_v38, 16  ;;  %v2182_v62 = vld [vmem:[#allocation2 + $0xa8] sm:$0x1f]  ;;  %v3399_v3 = vrot.slane %v6763_v54, 4  ;;  %v3551_v4 = vshll.u32 %v3508_v38, 16 }
  0x74   : > { %v1481_v63 = vsel %vm1294_vm6, %v1472_v39, %v1480_v56  ;;  %v3509_v5 = vld [vmem:[#allocation2 + $0x30] sm:$0xf0]  ;;  %v3510_v55 = vld [vmem:[#allocation2 + $0x38] sm:$0x1f]  ;;  %v1497_v0 = vor.u32 %v1496_v58, %v1493_v24  ;;  %v2338_v6 = vor.u32 %v6757_v50, %v6753_v43  ;;  %v3542_v7 = vrot.slane %v3540_v41, 4 }
  0x75   : > { %1587 = vrot.lane.b32.xlu0 %v1481_v63, %s6491_s25  ;;  %v2349_v8 = vshrl.u32 %v2181_v57, 16  ;;  %v3545_v10 = vrot.slane %v3543_v42, 5  ;;  %v3550_v13 = vrot.slane %v3548_v61, 4  ;;  %v2352_v16 = vshll.u32 %v2181_v57, 16  ;;  %v6446_v19 = vld [vmem:[%s6568_s23 + $0x58] ss:$0 sps:$4 sm:$0xff]  }
  0x76   : > { %v2357_v17 = vshrl.u32 %v2182_v62, 16  ;;  %v1498_v11 = vsel %vm1294_vm6, %v1489_v52, %v1497_v0  ;;  %v3553_v20 = vrot.slane %v3551_v4, 5  ;;  %v2360_v21 = vshll.u32 %v2182_v62, 16  ;;  %v6447_v25 = vld [vmem:[%s6568_s23 + $0x5c] ss:$0 sps:$4 sm:$0xff]  }
  0x77   : > { %v3557_v22 = vshrl.u32 %v3509_v5, 16  ;;  %1589 = vrot.lane.b32.xlu1 %v1498_v11, %s6491_s25  ;;  %v2351_v26 = vrot.slane %v2349_v8, 4  ;;  %v2354_v27 = vrot.slane %v2352_v16, 5  ;;  %v3560_v30 = vshll.u32 %v3509_v5, 16  ;;  %692 = vst.msk [vmem:[#allocation2 + $0xc0] sm:$0xf0] %vm668_vm0, %v6446_v19 }
  0x78   : > { %v2359_v29 = vrot.slane %v2357_v17, 4  ;;  %v2346_v28 = vor.u32 %v2345_v59, %v6761_v47  ;;  %v2362_v31 = vrot.slane %v2360_v21, 5  ;;  %v3565_v14 = vshrl.u32 %v3510_v55, 16  ;;  %693 = vst.msk [vmem:[#allocation2 + $0xc8] sm:$0xf] %vm670_vm1, %v6447_v25 }
  0x79   : > { %2115 = vrot.lane.b32.xlu0 %v2077_v53, %s6490_s24  ;;  %v3568_v18 = vshll.u32 %v3510_v55, 16  ;;  %v2080_v23 = vsel %vm1148_vm5, %v2078_v9, %v2079_v32  ;;  %v3559_v34 = vrot.slane %v3557_v22, 4  ;;  %v3562_v35 = vrot.slane %v3560_v30, 5  ;;  %v6448_v36 = vld [vmem:[%s6568_s23 + $0x60] ss:$0 sps:$4 sm:$0xff]  }
  0x7a   : > { %v6449_v37 = vld [vmem:[%s6568_s23 + $0x64] ss:$0 sps:$4 sm:$0xff]   ;;  %v3546_v39 = vor.u32 %v3545_v10, %v3542_v7  ;;  %v3554_v40 = vor.u32 %v3553_v20, %v3550_v13  ;;  %v3567_v43 = vrot.slane %v3565_v14, 4  ;;  %v489_v46 = vld [vmem:[#allocation2 + $0xc8] sm:$0x10]  ;;  %v2355_v49 = vor.u32 %v2354_v27, %v2351_v26 }
  0x7b   : > { %v3570_v44 = vrot.slane %v3568_v18, 5  ;;  %v492_v48 = vld [vmem:[#allocation2 + $0xd8] sm:$0x10]  ;;  %3443 = vrot.lane.b32.xlu1 %v3397_v1, %s6490_s24  ;;  %v2363_v50 = vor.u32 %v2362_v31, %v2359_v29  ;;  %694 = vst.msk [vmem:[#allocation2 + $0xd0] sm:$0xf0] %vm668_vm0, %v6448_v36  ;;  %v490_v12 = vsel %vm6546_vm4, 0, %v489_v46  ;;  %v2347_v51 = vsel %vm1294_vm6, %v2338_v6, %v2346_v28 }
  0x7c   : > { %695 = vst.msk [vmem:[#allocation2 + $0xd8] sm:$0xf] %vm670_vm1, %v6449_v37  ;;  %v493_v15 = vsel %vm6546_vm4, 0, %v492_v48  ;;  %v2007_v9 = vld [vmem:[#allocation2 + $0xb0] sm:$0xf0]  ;;  %v3400_v54 = vsel %vm1148_vm5, %v3398_v60, %v3399_v3  ;;  %v3555_v42 = vsel %vm1294_vm6, %v3546_v39, %v3554_v40  ;;  %v3563_v57 = vor.u32 %v3562_v35, %v3559_v34 }
  0x7d   : > { %v2008_v32 = vld [vmem:[#allocation2 + $0xb8] sm:$0xf]  ;;  %2117 = vrot.lane.b32.xlu0 %v2080_v23, %s6490_s24  ;;  %491 = vst [vmem:[#allocation2 + $0xc8] sm:$0x10] %v490_v12  ;;  %494 = vst [vmem:[#allocation2 + $0xd8] sm:$0x10] %v493_v15  ;;  %v3571_v58 = vor.u32 %v3570_v44, %v3567_v43  ;;  %v2364_v63 = vsel %vm1294_vm6, %v2355_v49, %v2363_v50 }
  0x7e   : > { %v2081_v52 = vrot.slane %v2007_v9, 4  ;;  %v2082_v33 = vrot.slane %v2008_v32, 4  ;;  %v3335_v53 = vld [vmem:[#allocation2 + $0x40] sm:$0xf0]  ;;  %v3336_v47 = vld [vmem:[#allocation2 + $0x48] sm:$0xf] }
  0x7f   : > { %v3401_v38 = vrot.slane %v3335_v53, 4  ;;  %v3402_v56 = vrot.slane %v3336_v47, 4  ;;  %v2183_v24 = vld [vmem:[#allocation2 + $0xb0] sm:$0xf0]  ;;  %v6799_v41 = vld [vmem:[#allocation2 + $0xb8] sm:$0x1f]  ;;  %2483 = vrot.lane.b32.xlu1 %v2347_v51, %s6491_s25  ;;  %v3572_v16 = vsel %vm1294_vm6, %v3563_v57, %v3571_v58 }
  0x80   : > { %v1108_v59 = vld [vmem:[#allocation2 + $0xc0] sm:$0xf0]  ;;  %v1109_v1 = vld [vmem:[#allocation2 + $0xc8] sm:$0xf]  ;;  %v2366_v0 = vshrl.u32 %v2183_v24, 16  ;;  %v2369_v6 = vshll.u32 %v2183_v24, 16  ;;  %v6809_v21 = vsel %vm1148_vm5, %v2081_v52, %v2082_v33 }
  0x81   : > { %v1286_v61 = vld [vmem:[#allocation2 + $0xc0] sm:$0xf0]  ;;  %v1185_v45 = vrot.slane %v1108_v59, 4  ;;  %3445 = vrot.lane.b32.xlu0 %v3400_v54, %s6490_s24  ;;  %v1186_v3 = vrot.slane %v1109_v1, 4  ;;  %v2010_v5 = vld [vmem:[#allocation2 + $0xc8] sm:$0xf]  ;;  %v6812_v22 = vsel %vm1148_vm5, %v3401_v38, %v3402_v56 }
  0x82   : > { %v2009_v62 = vld [vmem:[#allocation2 + $0xc0] sm:$0xf0]  ;;  %v1500_v4 = vshrl.u32 %v1286_v61, 16  ;;  %v1503_v60 = vshll.u32 %v1286_v61, 16  ;;  %v2085_v10 = vrot.slane %v2010_v5, 4  ;;  %v2374_v13 = vshrl.u32 %v6799_v41, 16 }
  0x83   : > { %v2084_v55 = vrot.slane %v2009_v62, 4  ;;  %v1187_v17 = vsel %vm1148_vm5, %v1185_v45, %v1186_v3  ;;  %v1110_v19 = vld [vmem:[#allocation2 + $0xd0] sm:$0xf0]  ;;  %v1111_v11 = vld [vmem:[#allocation2 + $0xd8] sm:$0xf]  ;;  %3811 = vrot.lane.b32.xlu1 %v3555_v42, %s6491_s25  ;;  %v2368_v39 = vrot.slane %v2366_v0, 4 }
  0x84   : > { %v1502_v7 = vrot.slane %v1500_v4, 4  ;;  %v1505_v8 = vrot.slane %v1503_v60, 5  ;;  %v1288_v20 = vld [vmem:[#allocation2 + $0xd0] sm:$0xf0]  ;;  %v1188_v25 = vrot.slane %v1110_v19, 4  ;;  %v1189_v26 = vrot.slane %v1111_v11, 4 }
  0x85   : > { %v1287_v27 = vld [vmem:[#allocation2 + $0xc8] sm:$0x1f]  ;;  %v1289_v30 = vld [vmem:[#allocation2 + $0xd8] sm:$0x1f]  ;;  %v6816_v28 = vsel %vm1148_vm5, %v2084_v55, %v2085_v10  ;;  %2485 = vrot.lane.b32.xlu0 %v2364_v63, %s6491_s25  ;;  %v1517_v18 = vshrl.u32 %v1288_v20, 16  ;;  %v1520_v23 = vshll.u32 %v1288_v20, 16 }
  0x86   : > { %v1506_v29 = vor.u32 %v1505_v8, %v1502_v7  ;;  %v1508_v31 = vshrl.u32 %v1287_v27, 16  ;;  %v1511_v14 = vshll.u32 %v1287_v27, 16  ;;  %v3337_v34 = vld [vmem:[#allocation2 + $0x50] sm:$0xf0]  ;;  %v1190_v35 = vsel %vm1148_vm5, %v1188_v25, %v1189_v26  ;;  %v3338_v40 = vld [vmem:[#allocation2 + $0x58] sm:$0xf] }
  0x87   : > { %v1525_v36 = vshrl.u32 %v1289_v30, 16  ;;  %v1528_v37 = vshll.u32 %v1289_v30, 16  ;;  %v1519_v46 = vrot.slane %v1517_v18, 4  ;;  %v1522_v48 = vrot.slane %v1520_v23, 5  ;;  %v748_v49 = vld [vmem:[#allocation2 + $0x8] sm:$0xf]  ;;  %3813 = vrot.lane.b32.xlu1 %v3572_v16, %s6491_s25 }
  0x88   : > { %v1510_v43 = vrot.slane %v1508_v31, 4  ;;  %v1513_v44 = vrot.slane %v1511_v14, 5  ;;  %v2371_v15 = vrot.slane %v2369_v6, 5  ;;  %v2376_v9 = vrot.slane %v2374_v13, 4  ;;  %v3511_v53 = vld [vmem:[#allocation2 + $0x40] sm:$0xf0] }
  0x89   : > { %v1527_v50 = vrot.slane %v1525_v36, 4  ;;  %v1530_v12 = vrot.slane %v1528_v37, 5  ;;  %1221 = vrot.lane.b32.xlu0 %v1187_v17, %s6490_s24  ;;  %v1523_v51 = vor.u32 %v1522_v48, %v1519_v46  ;;  %v2377_v52 = vshll.u32 %v6799_v41, 16  ;;  %v396_v24 = vld [vmem:[#allocation2] sm:$0x8] }
  0x8a   : > { %v1514_v32 = vor.u32 %v1513_v44, %v1510_v43  ;;  %v3404_v33 = vrot.slane %v3337_v34, 4  ;;  %v2372_v54 = vor.u32 %v2371_v15, %v2368_v39  ;;  %v3405_v38 = vrot.slane %v3338_v40, 4  ;;  %v3512_v42 = vld [vmem:[#allocation2 + $0x48] sm:$0x1f]  ;;  %v2185_v61 = vld [vmem:[#allocation2 + $0xc0] sm:$0xf0] }
  0x8b   : > { %v1531_v47 = vor.u32 %v1530_v12, %v1527_v50  ;;  %v788_v56 = vshrl.u32 %v748_v49, 16  ;;  %v2379_v58 = vrot.slane %v2377_v52, 5  ;;  %v791_v59 = vshll.u32 %v748_v49, 16  ;;  %1223 = vrot.lane.b32.xlu1 %v1190_v35, %s6490_s24  ;;  %v2186_v4 = vld [vmem:[#allocation2 + $0xc8] sm:$0x1f] }
  0x8c   : > { %v1515_v57 = vsel %vm1294_vm6, %v1506_v29, %v1514_v32  ;;  %vm394_vm8 = vsmask.f32 7950  ;;  %v6827_v41 = vsel %vm1148_vm5, %v3404_v33, %v3405_v38  ;;  %v3574_v45 = vshrl.u32 %v3511_v53, 16  ;;  %v3513_v0 = vld [vmem:[#allocation2 + $0x50] sm:$0xf0] }
  0x8d   : > { %v1532_v62 = vsel %vm1294_vm6, %v1523_v51, %v1531_v47  ;;  %v6829_v63 = vrot.slane %v788_v56, 3  ;;  %vm6832_vm9 = vmand %vm393_vm7, %vm394_vm8  ;;  %1591 = vrot.lane.b32.xlu0 %v1515_v57, %s6491_s25  ;;  %v2380_v60 = vor.u32 %v2379_v58, %v2376_v9  ;;  %v6837_v3 = vrot.slane %v791_v59, 4  ;;  %v3514_v13 = vld [vmem:[#allocation2 + $0x58] sm:$0x1f]  ;;  %v399_v20 = vld [vmem:[#allocation2 + $0x10] sm:$0x8] }
  0x8e   : > { %v397_v5 = vsel %vm6832_vm9, 0, %v396_v24  ;;  %v3577_v55 = vshll.u32 %v3511_v53, 16  ;;  %v3576_v6 = vrot.slane %v3574_v45, 4  ;;  %v3582_v7 = vshrl.u32 %v3512_v42, 16  ;;  %v750_v30 = vld [vmem:[#allocation2 + $0x18] sm:$0xf]  ;;  %v1198_v51 = vpop.permute.xlu0 %1197 }
  0x8f   : > { %398 = vst [vmem:[#allocation2] sm:$0x8] %v397_v5  ;;  %v3585_v8 = vshll.u32 %v3512_v42, 16  ;;  %v2383_v10 = vshrl.u32 %v2185_v61, 16  ;;  %v2381_v16 = vsel %vm1294_vm6, %v2372_v54, %v2380_v60  ;;  %v794_v17 = vor.u32 %v6837_v3, %v6829_v63  ;;  %1593 = vrot.lane.b32.xlu1 %v1532_v62, %s6491_s25  ;;  %v6450_v31 = vld [vmem:[%s6568_s23 + $0x68] ss:$0 sps:$4 sm:$0xff]  }
  0x90   : > { %v3579_v19 = vrot.slane %v3577_v55, 5  ;;  %v2386_v11 = vshll.u32 %v2185_v61, 16  ;;  %v3584_v25 = vrot.slane %v3582_v7, 4  ;;  %v2391_v29 = vshrl.u32 %v2186_v4, 16  ;;  %v405_v35 = vld [vmem:[#allocation2 + $0x30] sm:$0x8] }
  0x91   : > { %v3587_v26 = vrot.slane %v3585_v8, 5  ;;  %v2385_v27 = vrot.slane %v2383_v10, 4  ;;  %2119 = vrot.lane.b32.xlu0 %v6809_v21, %s6490_s24  ;;  %v2394_v23 = vshll.u32 %v2186_v4, 16  ;;  %v3591_v34 = vshrl.u32 %v3513_v0, 16  ;;  %v6451_v36 = vld [vmem:[%s6568_s23 + $0x6c] ss:$0 sps:$4 sm:$0xff]  }
  0x92   : > { %v3580_v14 = vor.u32 %v3579_v19, %v3576_v6  ;;  %v2388_v18 = vrot.slane %v2386_v11, 5  ;;  %v2393_v39 = vrot.slane %v2391_v29, 4  ;;  %v3594_v40 = vshll.u32 %v3513_v0, 16  ;;  %696 = vst.msk [vmem:[#allocation2 + $0xe0] sm:$0xf0] %vm668_vm0, %v6450_v31 }
  0x93   : > { %v3588_v37 = vor.u32 %v3587_v26, %v3584_v25  ;;  %v3599_v43 = vshrl.u32 %v3514_v13, 16  ;;  %v2396_v46 = vrot.slane %v2394_v23, 5  ;;  %v3593_v48 = vrot.slane %v3591_v34, 4  ;;  %v754_v21 = vld [vmem:[#allocation2 + $0x38] sm:$0xf]  ;;  %3447 = vrot.lane.b32.xlu1 %v6812_v22, %s6490_s24 }
  0x94   : > { %v2389_v44 = vor.u32 %v2388_v18, %v2385_v27  ;;  %v3602_v49 = vshll.u32 %v3514_v13, 16  ;;  %697 = vst.msk [vmem:[#allocation2 + $0xe8] sm:$0xf] %vm670_vm1, %v6451_v36  ;;  %v3596_v12 = vrot.slane %v3594_v40, 5  ;;  %v400_v9 = vsel %vm6832_vm9, 0, %v399_v20 }
  0x95   : > { %v3589_v50 = vsel %vm1294_vm6, %v3580_v14, %v3588_v37  ;;  %v3601_v15 = vrot.slane %v3599_v43, 4  ;;  %v6452_v32 = vld [vmem:[%s6568_s23 + $0x70] ss:$0 sps:$4 sm:$0xff]   ;;  %2121 = vrot.lane.b32.xlu0 %v6816_v28, %s6490_s24  ;;  %v2397_v33 = vor.u32 %v2396_v46, %v2393_v39  ;;  %401 = vst [vmem:[#allocation2 + $0x10] sm:$0x8] %v400_v9  ;;  %v805_v47 = vshrl.u32 %v750_v30, 16  ;;  %v1568_v60 = vpop.permute.xlu1 %1567 }
  0x96   : > { %v747_v52 = vld [vmem:[#allocation2] sm:$0xf8]  ;;  %v3604_v53 = vrot.slane %v3602_v49, 5  ;;  %v808_v22 = vshll.u32 %v750_v30, 16  ;;  %v3597_v56 = vor.u32 %v3596_v12, %v3593_v48  ;;  %v406_v24 = vsel %vm6832_vm9, 0, %v405_v35 }
  0x97   : > { %v780_v54 = vshrl.u32 %v747_v52, 16  ;;  %v783_v38 = vshll.u32 %v747_v52, 16  ;;  %v6453_v42 = vld [vmem:[%s6568_s23 + $0x74] ss:$0 sps:$4 sm:$0xff]   ;;  %698 = vst.msk [vmem:[#allocation2 + $0xf0] sm:$0xf0] %vm668_vm0, %v6452_v32  ;;  %v2398_v57 = vsel %vm1294_vm6, %v2389_v44, %v2397_v33  ;;  %2487 = vrot.lane.b32.xlu1 %v2381_v16, %s6491_s25 }
  0x98   : > { %v3605_v58 = vor.u32 %v3604_v53, %v3601_v15  ;;  %v6864_v28 = vrot.slane %v805_v47, 3  ;;  %v6866_v59 = vrot.slane %v808_v22, 4  ;;  %407 = vst [vmem:[#allocation2 + $0x30] sm:$0x8] %v406_v24  ;;  %v402_v61 = vld [vmem:[#allocation2 + $0x20] sm:$0x8] }
  0x99   : > { %v752_v62 = vld [vmem:[#allocation2 + $0x28] sm:$0xf]  ;;  %v782_v45 = vrot.slane %v780_v54, 3  ;;  %v785_v4 = vrot.slane %v783_v38, 4  ;;  %v839_v5 = vshrl.u32 %v754_v21, 16  ;;  %v842_v55 = vshll.u32 %v754_v21, 16  ;;  %3449 = vrot.lane.b32.xlu0 %v6827_v41, %s6490_s24  ;;  %v6881_v41 = vpop.permute.xlu0 %1199 }
  0x9a   : > { %699 = vst.msk [vmem:[#allocation2 + $0xf8] sm:$0xf] %vm670_vm1, %v6453_v42  ;;  %v495_v0 = vld [vmem:[#allocation2 + $0xe8] sm:$0x10]  ;;  %v3606_v6 = vsel %vm1294_vm6, %v3597_v56, %v3605_v58  ;;  %v811_v7 = vor.u32 %v6866_v59, %v6864_v28  ;;  %v1112_v8 = vld [vmem:[#allocation2 + $0xe0] sm:$0xf0] }
  0x9b   : > { %v403_v10 = vsel %vm6832_vm9, 0, %v402_v61  ;;  %v822_v13 = vshrl.u32 %v752_v62, 16  ;;  %v1290_v16 = vld [vmem:[#allocation2 + $0xe0] sm:$0xf0]  ;;  %v786_v19 = vor.u32 %v785_v4, %v782_v45  ;;  %v6877_v11 = vrot.slane %v839_v5, 3  ;;  %3815 = vrot.lane.b32.xlu1 %v3589_v50, %s6491_s25  ;;  %v6896_v40 = vpop.permute.xlu1 %1203 }
  0x9c   : > { %v6879_v20 = vrot.slane %v842_v55, 4  ;;  %v1113_v25 = vld [vmem:[#allocation2 + $0xe8] sm:$0xf]  ;;  %v1191_v26 = vrot.slane %v1112_v8, 4  ;;  %404 = vst [vmem:[#allocation2 + $0x20] sm:$0x8] %v403_v10 }
  0x9d   : > { %v1192_v27 = vrot.slane %v1113_v25, 4  ;;  %v6883_v29 = vrot.slane %v822_v13, 3  ;;  %v825_v30 = vshll.u32 %v752_v62, 16  ;;  %v496_v31 = vsel %vm6546_vm4, 0, %v495_v0  ;;  %v749_v18 = vld [vmem:[#allocation2 + $0x10] sm:$0xf8]  ;;  %2489 = vrot.lane.b32.xlu0 %v2398_v57, %s6491_s25  ;;  %v6907_v9 = vpop.permute.xlu0 %1201 }
  0x9e   : > { %v795_v14 = vsel %vm451_vm3, %v786_v19, %v794_v17  ;;  %v845_v23 = vor.u32 %v6879_v20, %v6877_v11  ;;  %497 = vst [vmem:[#allocation2 + $0xe8] sm:$0x10] %v496_v31  ;;  %v1534_v34 = vshrl.u32 %v1290_v16, 16  ;;  %v1537_v35 = vshll.u32 %v1290_v16, 16  ;;  %v498_v36 = vld [vmem:[#allocation2 + $0xf8] sm:$0x10] }
  0x9f   : > { %1068 = vst.msk [vmem:[#allocation3] sm:$0xff] %vm1067_vm10, %v795_v14  ;;  %v797_v37 = vshrl.u32 %v749_v18, 16  ;;  %v800_v39 = vshll.u32 %v749_v18, 16  ;;  %v1193_v63 = vsel %vm1148_vm5, %v1191_v26, %v1192_v27  ;;  %v1114_v3 = vld [vmem:[#allocation2 + $0xf0] sm:$0xf0]  ;;  %v6899_v17 = vrot.slane %v825_v30, 4  ;;  %3817 = vrot.lane.b32.xlu1 %v3606_v6, %s6491_s25  ;;  %v6917_v24 = vpop.permute.xlu1 %2101 }
  0xa0   : > { %1246 = vst.msk [vmem:[#allocation3] sm:$0xff] %vm1245_vm11, %v1198_v51  ;;  %v753_v43 = vld [vmem:[#allocation2 + $0x30] sm:$0xf8]  ;;  %v1194_v44 = vrot.slane %v1114_v3, 4  ;;  %v6902_v46 = vrot.slane %v1534_v34, 4  ;;  %v6904_v48 = vrot.slane %v1537_v35, 5 }
  0xa1   : > { %vm2559_vm13 = vcmask 195584   ;;  %1616 = vst.msk [vmem:[#allocation3] sm:$0xff] %vm1615_vm12, %v1568_v60  ;;  %v799_v49 = vrot.slane %v797_v37, 3  ;;  %v802_v21 = vrot.slane %v800_v39, 4  ;;  %v831_v50 = vshrl.u32 %v753_v43, 16  ;;  %1225 = vrot.lane.b32.xlu0 %v1193_v63, %s6490_s24  ;;  %v6926_v6 = vpop.permute.xlu0 %2099 }
  0xa2   : > { %v834_v12 = vshll.u32 %v753_v43, 16  ;;  %v1115_v15 = vld [vmem:[#allocation2 + $0xf8] sm:$0xf]  ;;  %v828_v51 = vor.u32 %v6899_v17, %v6883_v29  ;;  %v1540_v52 = vor.u32 %v6904_v48, %v6902_v46  ;;  %v499_v33 = vsel %vm6546_vm4, 0, %v498_v36  ;;  %v1292_v53 = vld [vmem:[#allocation2 + $0xf0] sm:$0xf0] }
  0xa3   : > { %v1195_v32 = vrot.slane %v1115_v15, 4  ;;  %v1651_v47 = vld [vmem:[#allocation2 + $0x10] sm:$0xf8]  ;;  %v803_v22 = vor.u32 %v802_v21, %v799_v49  ;;  %v833_v54 = vrot.slane %v831_v50, 3  ;;  %v751_v56 = vld [vmem:[#allocation2 + $0x20] sm:$0xf8]  ;;  %v6935_v25 = vpop.permute.xlu1 %1207 }
  0xa4   : > { %v836_v38 = vrot.slane %v834_v12, 4  ;;  %500 = vst [vmem:[#allocation2 + $0xf8] sm:$0x10] %v499_v33  ;;  %v1551_v42 = vshrl.u32 %v1292_v53, 16  ;;  %v814_v58 = vshrl.u32 %v751_v56, 16  ;;  %v817_v61 = vshll.u32 %v751_v56, 16 }
  0xa5   : > { %v1196_v57 = vsel %vm1148_vm5, %v1194_v44, %v1195_v32  ;;  %v1554_v62 = vshll.u32 %v1292_v53, 16  ;;  %v1652_v45 = vld [vmem:[#allocation2 + $0x18] sm:$0xf]  ;;  %v812_v4 = vsel %vm451_vm3, %v803_v22, %v811_v7  ;;  %v1291_v5 = vld [vmem:[#allocation2 + $0xe8] sm:$0x1f]  ;;  %v1684_v0 = vshrl.u32 %v1651_v47, 16  ;;  %v6945_v39 = vpop.permute.xlu0 %1205 }
  0xa6   : > { %v837_v60 = vor.u32 %v836_v38, %v833_v54  ;;  %v6924_v55 = vrot.slane %v1551_v42, 4  ;;  %v411_v8 = vld [vmem:[#allocation2 + $0x50] sm:$0x8]  ;;  %1069 = vst.msk [vmem:[#allocation3 + $0x8] sm:$0xff] %vm1067_vm10, %v812_v4  ;;  %1227 = vrot.lane.b32.xlu1 %v1196_v57, %s6490_s24  ;;  %v816_v10 = vrot.slane %v814_v58, 3  ;;  %v819_v13 = vrot.slane %v817_v61, 4 }
  0xa7   : > { %v1542_v16 = vshrl.u32 %v1291_v5, 16  ;;  %v1545_v19 = vshll.u32 %v1291_v5, 16  ;;  %v758_v11 = vld [vmem:[#allocation2 + $0x58] sm:$0xf]  ;;  %1247 = vst.msk [vmem:[#allocation3 + $0x8] sm:$0xff] %vm1245_vm11, %v6881_v41  ;;  %v6933_v59 = vrot.slane %v1554_v62, 5  ;;  %v1570_v32 = vpop.permute.xlu1 %1569 }
  0xa8   : > { %v846_v28 = vsel %vm451_vm3, %v837_v60, %v845_v23  ;;  %v1686_v7 = vrot.slane %v1684_v0, 3  ;;  %v1687_v20 = vshll.u32 %v1651_v47, 16  ;;  %v2011_v26 = vld [vmem:[#allocation2 + $0xd0] sm:$0xf0]  ;;  %v820_v27 = vor.u32 %v819_v13, %v816_v10  ;;  %v1632_v31 = vld [vmem:[#allocation3] sm:$0xff]  ;;  %1617 = vst.msk [vmem:[#allocation3 + $0x8] sm:$0xff] %vm1615_vm12, %v1570_v32 }
  0xa9   : > { %1071 = vst.msk [vmem:[#allocation3 + $0x18] sm:$0xff] %vm1067_vm10, %v846_v28  ;;  %v1544_v29 = vrot.slane %v1542_v16, 4  ;;  %v1547_v30 = vrot.slane %v1545_v19, 5  ;;  %v1692_v14 = vshrl.u32 %v1652_v45, 16  ;;  %v2012_v18 = vld [vmem:[#allocation2 + $0xd8] sm:$0xf]  ;;  %6256 = vmatprep.mubr.msk.bf16.mxu0 %vm2559_vm13, %v1632_v31  ;;  %v1557_v41 = vor.u32 %v6933_v59, %v6924_v55 }
  0xaa   : > { %1249 = vst.msk [vmem:[#allocation3 + $0x18] sm:$0xff] %vm1245_vm11, %v6896_v40  ;;  %v1689_v23 = vrot.slane %v1687_v20, 4  ;;  %v1695_v34 = vshll.u32 %v1652_v45, 16  ;;  %v412_v35 = vsel %vm6832_vm9, 0, %v411_v8  ;;  %v3339_v36 = vld [vmem:[#allocation2 + $0x60] sm:$0xf0]  ;;  %v829_v63 = vsel %vm451_vm3, %v820_v27, %v828_v51 }
  0xab   : > { %v3340_v37 = vld [vmem:[#allocation2 + $0x68] sm:$0xf]  ;;  %v1548_v3 = vor.u32 %v1547_v30, %v1544_v29  ;;  %v1293_v17 = vld [vmem:[#allocation2 + $0xf8] sm:$0x1f]  ;;  %v1694_v43 = vrot.slane %v1692_v14, 3  ;;  %v873_v40 = vshrl.u32 %v758_v11, 16  ;;  %v1574_v5 = vpop.permute.xlu1 %1573 }
  0xac   : > { %413 = vst [vmem:[#allocation2 + $0x50] sm:$0x8] %v412_v35  ;;  %v408_v44 = vld [vmem:[#allocation2 + $0x40] sm:$0x8]  ;;  %1070 = vst.msk [vmem:[#allocation3 + $0x10] sm:$0xff] %vm1067_vm10, %v829_v63  ;;  %v1559_v49 = vshrl.u32 %v1293_v17, 16  ;;  %v1690_v50 = vor.u32 %v1689_v23, %v1686_v7 }
  0xad   : > { %v1562_v21 = vshll.u32 %v1293_v17, 16  ;;  %v1697_v12 = vrot.slane %v1695_v34, 4  ;;  %v756_v15 = vld [vmem:[#allocation2 + $0x48] sm:$0xf]  ;;  %1248 = vst.msk [vmem:[#allocation3 + $0x10] sm:$0xff] %vm1245_vm11, %v6907_v9  ;;  %v1549_v51 = vsel %vm1294_vm6, %v1540_v52, %v1548_v3  ;;  %v6955_v33 = vrot.slane %v873_v40, 3  ;;  %v1572_v9 = vpop.permute.xlu0 %1571 }
  0xae   : > { %v876_v53 = vshll.u32 %v758_v11, 16  ;;  %v2087_v47 = vrot.slane %v2011_v26, 4  ;;  %v2013_v22 = vld [vmem:[#allocation2 + $0xe0] sm:$0xf0]  ;;  %1595 = vrot.lane.b32.xlu0 %v1549_v51, %s6491_s25  ;;  %v1561_v54 = vrot.slane %v1559_v49, 4  ;;  %v2088_v42 = vrot.slane %v2012_v18, 4 }
  0xaf   : > { %v1564_v38 = vrot.slane %v1562_v21, 5  ;;  %v1698_v56 = vor.u32 %v1697_v12, %v1694_v43  ;;  %v2014_v57 = vld [vmem:[#allocation2 + $0xe8] sm:$0xf]  ;;  %v3407_v46 = vrot.slane %v3339_v36, 4  ;;  %v3408_v48 = vrot.slane %v3340_v37, 4  ;;  %1618 = vst.msk [vmem:[#allocation3 + $0x10] sm:$0xff] %vm1615_vm12, %v1572_v9  ;;  %v6982_v23 = vpop.permute.xlu1 %2469 }
  0xb0   : > { %v6959_v58 = vrot.slane %v876_v53, 4  ;;  %v409_v52 = vsel %vm6832_vm9, 0, %v408_v44  ;;  %v2089_v45 = vsel %vm1148_vm5, %v2087_v47, %v2088_v42  ;;  %v856_v4 = vshrl.u32 %v756_v15, 16  ;;  %v2187_v60 = vld [vmem:[#allocation2 + $0xd0] sm:$0xf0]  ;;  %1619 = vst.msk [vmem:[#allocation3 + $0x18] sm:$0xff] %vm1615_vm12, %v1574_v5 }
  0xb1   : > { %v1565_v61 = vor.u32 %v1564_v38, %v1561_v54  ;;  %v1699_v62 = vsel %vm451_vm3, %v1690_v50, %v1698_v56  ;;  %410 = vst [vmem:[#allocation2 + $0x40] sm:$0x8] %v409_v52  ;;  %v3409_v0 = vsel %vm1148_vm5, %v3407_v46, %v3408_v48  ;;  %v859_v8 = vshll.u32 %v756_v15, 16  ;;  %v2188_v13 = vld [vmem:[#allocation2 + $0xd8] sm:$0x1f]  ;;  %v2468_v20 = vpop.permute.xlu0 %2467  ;;  %v1633_v56 = vld [vmem:[#allocation3 + $0x8] sm:$0xff] }
  0xb2   : > { %1971 = vst.msk [vmem:[#allocation3] sm:$0xff] %vm1067_vm10, %v1699_v62  ;;  %v879_v55 = vor.u32 %v6959_v58, %v6955_v33  ;;  %v2090_v10 = vrot.slane %v2013_v22, 4  ;;  %v3341_v16 = vld [vmem:[#allocation2 + $0x70] sm:$0xf0]  ;;  %2123 = vrot.lane.b32.xlu0 %v2089_v45, %s6490_s24  ;;  %v6975_v28 = vrot.slane %v856_v4, 3  ;;  %v2091_v59 = vrot.slane %v2014_v57, 4 }
  0xb3   : > { %v1566_v19 = vsel %vm1294_vm6, %v1557_v41, %v1565_v61  ;;  %2147 = vst.msk [vmem:[#allocation3] sm:$0xff] %vm1245_vm11, %v6926_v6  ;;  %v757_v11 = vld [vmem:[#allocation2 + $0x50] sm:$0xf8]  ;;  %v2400_v7 = vshrl.u32 %v2187_v60, 16  ;;  %v6978_v29 = vrot.slane %v859_v8, 4  ;;  %v2403_v30 = vshll.u32 %v2187_v60, 16 }
  0xb4   : > { %1597 = vrot.lane.b32.xlu1 %v1566_v19, %s6491_s25  ;;  %v865_v26 = vshrl.u32 %v757_v11, 16  ;;  %v868_v27 = vshll.u32 %v757_v11, 16  ;;  %v3342_v31 = vld [vmem:[#allocation2 + $0x78] sm:$0xf]  ;;  %2515 = vst.msk [vmem:[#allocation3] sm:$0xff] %vm1615_vm12, %v2468_v20  ;;  %v2092_v6 = vsel %vm1148_vm5, %v2090_v10, %v2091_v59  ;;  %v2408_v18 = vshrl.u32 %v2188_v13, 16  ;;  %v1578_v42 = vpop.permute.xlu1 %1577 }
  0xb5   : > { %v2402_v14 = vrot.slane %v2400_v7, 4  ;;  %v2411_v41 = vshll.u32 %v2188_v13, 16  ;;  %v862_v36 = vor.u32 %v6978_v29, %v6975_v28  ;;  %v2405_v37 = vrot.slane %v2403_v30, 5  ;;  %v6989_v63 = vld [vmem:[%s8145_s3 + $0x8] ss:$0 sps:$4 sm:$0xff]   ;;  %v6460_v3 = vld [vmem:[%s8145_s3 + $0x18] sm:$0xff]   ;;  %v6995_v21 = vpop.permute.xlu0 %1575 }
  0xb6   : > { %v867_v34 = vrot.slane %v865_v26, 3  ;;  %v870_v35 = vrot.slane %v868_v27, 4  ;;  %2125 = vrot.lane.b32.xlu0 %v2092_v6, %s6490_s24  ;;  %v2410_v17 = vrot.slane %v2408_v18, 4  ;;  %v3410_v40 = vrot.slane %v3341_v16, 4  ;;  %v3515_v49 = vld [vmem:[#allocation2 + $0x60] sm:$0xf0]  ;;  %6393 = vmatprep.subr.msk.bf16.mxu0 %vm1148_vm5, %v6989_v63 }
  0xb7   : > { %v2413_v43 = vrot.slane %v2411_v41, 5  ;;  %v3411_v44 = vrot.slane %v3342_v31, 4  ;;  %v2406_v15 = vor.u32 %v2405_v37, %v2402_v14  ;;  %v7002_v32 = vsel %vm1148_vm5, %v6989_v63, 0  ;;  %v3516_v51 = vld [vmem:[#allocation2 + $0x68] sm:$0x1f]  ;;  %v1634_v52 = vld [vmem:[#allocation3 + $0x10] sm:$0xff] }
  0xb8   : > { %v871_v50 = vor.u32 %v870_v35, %v867_v34  ;;  %3451 = vrot.lane.b32.xlu1 %v3409_v0, %s6490_s24  ;;  %v755_v12 = vld [vmem:[#allocation2 + $0x40] sm:$0xf8]  ;;  %v3608_v33 = vshrl.u32 %v3515_v49, 16  ;;  %6255 = vmatpush3.bf16.msra.mxu0 %v7002_v32  ;;  %v3611_v58 = vshll.u32 %v3515_v49, 16  ;;  %v3616_v46 = vshrl.u32 %v3516_v51, 16  ;;  %v7018_v20 = vpop.permute.xlu1 %2105 }
  0xb9   : > { %v848_v53 = vshrl.u32 %v755_v12, 16  ;;  %v851_v47 = vshll.u32 %v755_v12, 16  ;;  %v2414_v22 = vor.u32 %v2413_v43, %v2410_v17  ;;  %v3412_v54 = vsel %vm1148_vm5, %v3410_v40, %v3411_v44  ;;  %v1653_v38 = vld [vmem:[#allocation2 + $0x20] sm:$0xf8]  ;;  %v1654_v48 = vld [vmem:[#allocation2 + $0x28] sm:$0xf]  ;;  %6288 = vmatprep.subr.bf16.mxu0 %v6460_v3  ;;  %v7010_v5 = vpop.permute.xlu0 %2103 }
  0xba   : > { %v880_v57 = vsel %vm451_vm3, %v871_v50, %v879_v55  ;;  %v3610_v9 = vrot.slane %v3608_v33, 4  ;;  %3453 = vrot.lane.b32.xlu0 %v3412_v54, %s6490_s24  ;;  %v3619_v4 = vshll.u32 %v3516_v51, 16  ;;  %v2189_v60 = vld [vmem:[#allocation2 + $0xe0] sm:$0xf0]  ;;  %v3613_v55 = vrot.slane %v3611_v58, 5 }
  0xbb   : > { %1073 = vst.msk [vmem:[#allocation3 + $0x28] sm:$0xff] %vm1067_vm10, %v880_v57  ;;  %v850_v61 = vrot.slane %v848_v53, 3  ;;  %v853_v62 = vrot.slane %v851_v47, 4  ;;  %v2415_v45 = vsel %vm1294_vm6, %v2406_v15, %v2414_v22  ;;  %v3618_v0 = vrot.slane %v3616_v46, 4  ;;  %v2190_v13 = vld [vmem:[#allocation2 + $0xe8] sm:$0x1f]  ;;  %6257 = vmatmul.mubr.msk.bf16.vlgmr.msra.gmra.mrb[0].mxu0 %vm2559_vm13, %v1633_v56 }
  0xbc   : > { %1251 = vst.msk [vmem:[#allocation3 + $0x28] sm:$0xff] %vm1245_vm11, %v6935_v25  ;;  %2491 = vrot.lane.b32.xlu1 %v2415_v45, %s6491_s25  ;;  %v1701_v8 = vshrl.u32 %v1653_v38, 16  ;;  %v1704_v10 = vshll.u32 %v1653_v38, 16  ;;  %v3621_v19 = vrot.slane %v3619_v4, 5  ;;  %v1709_v11 = vshrl.u32 %v1654_v48, 16  ;;  %6260 = vmatprep.mubr.msk.bf16.mxu0 %vm2559_vm13, %v1634_v52  ;;  %v2531_v25 = vld [vmem:[#allocation3] sm:$0xff]  ;;  %v7033_v12 = vpop.permute.xlu1 %2473 }
  0xbd   : > { %v854_v16 = vor.u32 %v853_v62, %v850_v61  ;;  %v1712_v59 = vshll.u32 %v1654_v48, 16  ;;  %v3517_v7 = vld [vmem:[#allocation2 + $0x70] sm:$0xf0]  ;;  %1621 = vst.msk [vmem:[#allocation3 + $0x28] sm:$0xff] %vm1615_vm12, %v1578_v42  ;;  %6289 = vmatpush3.bf16.msra.mxu0 %v6460_v3  ;;  %v3614_v26 = vor.u32 %v3613_v55, %v3610_v9  ;;  %v2417_v31 = vshrl.u32 %v2189_v60, 16  ;;  %6220 = vmatprep.mubr.msk.bf16.mxu1 %vm2559_vm13, %v2531_v25  ;;  %v7025_v35 = vpop.permute.xlu0 %2471  ;;  %v1635_v57 = vld [vmem:[#allocation3 + $0x18] sm:$0xff] }
  0xbe   : > { %v1703_v27 = vrot.slane %v1701_v8, 3  ;;  %v1706_v30 = vrot.slane %v1704_v10, 4  ;;  %v3622_v14 = vor.u32 %v3621_v19, %v3618_v0  ;;  %v1711_v18 = vrot.slane %v1709_v11, 3  ;;  %v3518_v34 = vld [vmem:[#allocation2 + $0x78] sm:$0x1f] }
  0xbf   : > { %v863_v6 = vsel %vm451_vm3, %v854_v16, %v862_v36  ;;  %v1714_v41 = vrot.slane %v1712_v59, 4  ;;  %v2419_v3 = vrot.slane %v2417_v31, 4  ;;  %v2420_v17 = vshll.u32 %v2189_v60, 16  ;;  %v2015_v40 = vld [vmem:[#allocation2 + $0xf0] sm:$0xf0] }
  0xc0   : > { %1072 = vst.msk [vmem:[#allocation3 + $0x20] sm:$0xff] %vm1067_vm10, %v863_v6  ;;  %v1707_v37 = vor.u32 %v1706_v30, %v1703_v27  ;;  %v2425_v43 = vshrl.u32 %v2190_v13, 16  ;;  %v3623_v28 = vsel %vm1294_vm6, %v3614_v26, %v3622_v14  ;;  %v2428_v36 = vshll.u32 %v2190_v13, 16  ;;  %v2016_v49 = vld [vmem:[#allocation2 + $0xf8] sm:$0xf]  ;;  %v7048_v4 = vpop.permute.xlu1 %1211 }
  0xc1   : > { %1250 = vst.msk [vmem:[#allocation3 + $0x20] sm:$0xff] %vm1245_vm11, %v6945_v39  ;;  %v1715_v29 = vor.u32 %v1714_v41, %v1711_v18  ;;  %v3625_v44 = vshrl.u32 %v3517_v7, 16  ;;  %v7031_v50 = vld [vmem:[#allocation2 + $0x80] sm:$0xf0]  ;;  %3819 = vrot.lane.b32.xlu1 %v3623_v28, %s6491_s25  ;;  %v2422_v15 = vrot.slane %v2420_v17, 5  ;;  %v3628_v33 = vshll.u32 %v3517_v7, 16  ;;  %v7039_v9 = vpop.permute.xlu0 %1209 }
  0xc2   : > { %v2427_v51 = vrot.slane %v2425_v43, 4  ;;  %v3633_v53 = vshrl.u32 %v3518_v34, 16  ;;  %1620 = vst.msk [vmem:[#allocation3 + $0x20] sm:$0xff] %vm1615_vm12, %v6995_v21  ;;  %v3344_v39 = vld [vmem:[#allocation2 + $0x88] sm:$0xf]  ;;  %v2430_v54 = vrot.slane %v2428_v36, 5 }
  0xc3   : > { %v1655_v47 = vld [vmem:[#allocation2 + $0x30] sm:$0xf8]  ;;  %v1716_v22 = vsel %vm451_vm3, %v1707_v37, %v1715_v29  ;;  %v3627_v38 = vrot.slane %v3625_v44, 4  ;;  %v3636_v56 = vshll.u32 %v3518_v34, 16  ;;  %v1656_v42 = vld [vmem:[#allocation2 + $0x38] sm:$0xf]  ;;  %v2423_v58 = vor.u32 %v2422_v15, %v2419_v3  ;;  %6261 = vmatmul.mubr.msk.bf16.gmra.mrb[4].mxu0 %vm2559_vm13, %v1635_v57 }
  0xc4   : > { %1972 = vst.msk [vmem:[#allocation3 + $0x8] sm:$0xff] %vm1067_vm10, %v1716_v22  ;;  %v3630_v46 = vrot.slane %v3628_v33, 5  ;;  %v3635_v48 = vrot.slane %v3633_v53, 4  ;;  %v2093_v52 = vrot.slane %v2015_v40, 4  ;;  %v2431_v21 = vor.u32 %v2430_v54, %v2427_v51  ;;  %v6457_v45 = vld [vmem:[%s8145_s3 + $0x14] ss:$0 sps:$4 sm:$0xff]   ;;  %v7064_v40 = vpop.permute.xlu1 %1581 }
  0xc5   : > { %2148 = vst.msk [vmem:[#allocation3 + $0x8] sm:$0xff] %vm1245_vm11, %v6917_v24  ;;  %v3638_v61 = vrot.slane %v3636_v56, 5  ;;  %v2094_v62 = vrot.slane %v2016_v49, 4  ;;  %v3413_v55 = vrot.slane %v7031_v50, 4  ;;  %v1718_v0 = vshrl.u32 %v1655_v47, 16  ;;  %6392 = vmatprep.subr.msk.bf16.mxu1 %vm1148_vm5, %v6457_v45  ;;  %v7055_v59 = vpop.permute.xlu0 %1579  ;;  %v1637_v43 = vld [vmem:[#allocation3 + $0x28] sm:$0xff] }
  0xc6   : > { %2516 = vst.msk [vmem:[#allocation3 + $0x8] sm:$0xff] %vm1615_vm12, %v6982_v23  ;;  %v3631_v60 = vor.u32 %v3630_v46, %v3627_v38  ;;  %v1721_v8 = vshll.u32 %v1655_v47, 16  ;;  %v1657_v10 = vld [vmem:[#allocation2 + $0x40] sm:$0xf8]  ;;  %v2432_v24 = vsel %vm1294_vm6, %v2423_v58, %v2431_v21  ;;  %v3414_v16 = vrot.slane %v3344_v39, 4 }
  0xc7   : > { %v3639_v13 = vor.u32 %v3638_v61, %v3635_v48  ;;  %v1726_v19 = vshrl.u32 %v1656_v42, 16  ;;  %v1658_v11 = vld [vmem:[#allocation2 + $0x48] sm:$0xf]  ;;  %2493 = vrot.lane.b32.xlu0 %v2432_v24, %s6491_s25  ;;  %v2095_v23 = vsel %vm1148_vm5, %v2093_v52, %v2094_v62  ;;  %v1720_v7 = vrot.slane %v1718_v0, 3  ;;  %v6458_v14 = vld [vmem:[%s6568_s23 + $0x78] ss:$0 sps:$4 sm:$0xff]  }
  0xc8   : > { %v1723_v25 = vrot.slane %v1721_v8, 4  ;;  %v1729_v26 = vshll.u32 %v1656_v42, 16  ;;  %v2610_v31 = vsel %vm1148_vm5, %v6457_v45, 0  ;;  %v1735_v6 = vshrl.u32 %v1657_v10, 16  ;;  %v6459_v17 = vld [vmem:[%s6568_s23 + $0x7c] ss:$0 sps:$4 sm:$0xff]   ;;  %v7084_v21 = vpop.permute.xlu1 %2109  ;;  %s7744_s23 = scalar_lea.vmem %s8147_s5, %s6161_s21 }
  0xc9   : > { %v3640_v27 = vsel %vm1294_vm6, %v3631_v60, %v3639_v13  ;;  %v1728_v30 = vrot.slane %v1726_v19, 3  ;;  %v1636_v18 = vld [vmem:[#allocation3 + $0x20] sm:$0xff]  ;;  %6219 = vmatpush3.bf16.msra.mxu1 %v2610_v31  ;;  %v1738_v37 = vshll.u32 %v1657_v10, 16  ;;  %v1743_v3 = vshrl.u32 %v1658_v11, 16  ;;  %700 = vst.msk [vmem:[#allocation2 + $0x100] sm:$0xf0] %vm668_vm0, %v6458_v14  ;;  %v7069_v50 = vpop.permute.xlu0 %2107 }
  0xca   : > { %3821 = vrot.lane.b32.xlu1 %v3640_v27, %s6491_s25  ;;  %v1724_v41 = vor.u32 %v1723_v25, %v1720_v7  ;;  %v1731_v34 = vrot.slane %v1729_v26, 4  ;;  %v3415_v28 = vsel %vm1148_vm5, %v3413_v55, %v3414_v16  ;;  %v1737_v29 = vrot.slane %v1735_v6, 3  ;;  %v2191_v44 = vld [vmem:[#allocation2 + $0xf0] sm:$0xf0]  ;;  %v2192_v49 = vld [vmem:[#allocation2 + $0xf8] sm:$0x1f]  ;;  %6264 = vmatprep.mubr.msk.bf16.mxu0 %vm2559_vm13, %v1636_v18 }
  0xcb   : > { %v1746_v36 = vshll.u32 %v1658_v11, 16  ;;  %v6462_v15 = vld [vmem:[%s8145_s3] sm:$0xff]   ;;  %2127 = vrot.lane.b32.xlu0 %v2095_v23, %s6490_s24  ;;  %v1740_v33 = vrot.slane %v1738_v37, 4  ;;  %v1745_v53 = vrot.slane %v1743_v3, 3  ;;  %701 = vst.msk [vmem:[#allocation2 + $0x108] sm:$0xf] %vm670_vm1, %v6459_v17  ;;  %6265 = vmatmul.mubr.msk.bf16.gmra.mrb[8].mxu0 %vm2559_vm13, %v1637_v43 }
  0xcc   : > { %6324 = vmatprep.subr.bf16.mxu1 %v6462_v15  ;;  %v1732_v51 = vor.u32 %v1731_v34, %v1728_v30  ;;  %v2434_v39 = vshrl.u32 %v2191_v44, 16  ;;  %v7076_v47 = vld [vmem:[#allocation2 + $0x90] sm:$0xf0]  ;;  %v2437_v54 = vshll.u32 %v2191_v44, 16  ;;  %v2442_v38 = vshrl.u32 %v2192_v49, 16  ;;  %v7099_v14 = vpop.permute.xlu1 %2477 }
  0xcd   : > { %v1748_v22 = vrot.slane %v1746_v36, 4  ;;  %v2445_v56 = vshll.u32 %v2192_v49, 16  ;;  %v2532_v42 = vld [vmem:[#allocation3 + $0x8] sm:$0xff]  ;;  %v1741_v58 = vor.u32 %v1740_v33, %v1737_v29  ;;  %v7082_v48 = vld [vmem:[#allocation2 + $0x98] sm:$0xf]  ;;  %v7087_v0 = vpop.permute.xlu0 %2475  ;;  %v3416_v8 = vrot.slane %v7076_v47, 4 }
  0xce   : > { %3455 = vrot.lane.b32.xlu1 %v3415_v28, %s6490_s24  ;;  %v1733_v57 = vsel %vm451_vm3, %v1724_v41, %v1732_v51  ;;  %v2436_v46 = vrot.slane %v2434_v39, 4  ;;  %6221 = vmatmul.mubr.msk.bf16.vlgmr.msra.gmra.mrb[0].mxu1 %vm2559_vm13, %v2532_v42  ;;  %v3519_v52 = vld [vmem:[#allocation2 + $0x80] sm:$0xf0]  ;;  %v2439_v62 = vrot.slane %v2437_v54, 5  ;;  %v2444_v45 = vrot.slane %v2442_v38, 4 }
  0xcf   : > { %1973 = vst.msk [vmem:[#allocation3 + $0x10] sm:$0xff] %vm1067_vm10, %v1733_v57  ;;  %v1749_v61 = vor.u32 %v1748_v22, %v1745_v53  ;;  %v2447_v60 = vrot.slane %v2445_v56, 5  ;;  %v3520_v55 = vld [vmem:[#allocation2 + $0x88] sm:$0x1f]  ;;  %6326 = vmatpush3.bf16.msra.mxu1 %v6462_v15  ;;  %v3642_v10 = vshrl.u32 %v3519_v52, 16  ;;  %v3645_v24 = vshll.u32 %v3519_v52, 16 }
  0xd0   : > { %2149 = vst.msk [vmem:[#allocation3 + $0x10] sm:$0xff] %vm1245_vm11, %v7010_v5  ;;  %v3650_v13 = vshrl.u32 %v3520_v55, 16  ;;  %v414_v16 = vld [vmem:[#allocation2 + $0x60] sm:$0x8]  ;;  %6394 = vmatprep.subr.msk.bf16.mxu1 %vm1148_vm5, %v6989_v63  ;;  %v2440_v11 = vor.u32 %v2439_v62, %v2436_v46  ;;  %v3653_v7 = vshll.u32 %v3520_v55, 16  ;;  %v3417_v27 = vrot.slane %v7082_v48, 4 }
  0xd1   : > { %v1750_v19 = vsel %vm451_vm3, %v1741_v58, %v1749_v61  ;;  %v2448_v23 = vor.u32 %v2447_v60, %v2444_v45  ;;  %2517 = vst.msk [vmem:[#allocation3 + $0x10] sm:$0xff] %vm1615_vm12, %v7025_v35  ;;  %v760_v25 = vld [vmem:[#allocation2 + $0x68] sm:$0xf]  ;;  %v417_v26 = vld [vmem:[#allocation2 + $0x70] sm:$0x8]  ;;  %v3644_v30 = vrot.slane %v3642_v10, 4  ;;  %v7106_v37 = vpop.permute.xlu0 %1213  ;;  %v7121_v39 = vpop.permute.xlu1 %1215 }
  0xd2   : > { %1974 = vst.msk [vmem:[#allocation3 + $0x18] sm:$0xff] %vm1067_vm10, %v1750_v19  ;;  %v2017_v5 = vld [vmem:[#allocation2 + $0x100] sm:$0xf0]  ;;  %v3647_v31 = vrot.slane %v3645_v24, 5  ;;  %v3652_v6 = vrot.slane %v3650_v13, 4  ;;  %v3655_v41 = vrot.slane %v3653_v7, 5  ;;  %v3418_v42 = vsel %vm1148_vm5, %v3416_v8, %v3417_v27 }
  0xd3   : > { %2150 = vst.msk [vmem:[#allocation3 + $0x18] sm:$0xff] %vm1245_vm11, %v7018_v20  ;;  %v2018_v63 = vld [vmem:[#allocation2 + $0x108] sm:$0xf]  ;;  %v2096_v18 = vrot.slane %v2017_v5, 4  ;;  %v2449_v35 = vsel %vm1294_vm6, %v2440_v11, %v2448_v23  ;;  %v415_v34 = vsel %vm6832_vm9, 0, %v414_v16  ;;  %6327 = vmatpush3.bf16.msra.mxu1 %v7002_v32  ;;  %v890_v20 = vshrl.u32 %v760_v25, 16 }
  0xd4   : > { %v2097_v3 = vrot.slane %v2018_v63, 4  ;;  %2495 = vrot.lane.b32.xlu1 %v2449_v35, %s6491_s25  ;;  %2518 = vst.msk [vmem:[#allocation3 + $0x18] sm:$0xff] %vm1615_vm12, %v7033_v12  ;;  %v3648_v17 = vor.u32 %v3647_v31, %v3644_v30  ;;  %416 = vst [vmem:[#allocation2 + $0x60] sm:$0x8] %v415_v34  ;;  %v893_v43 = vshll.u32 %v760_v25, 16  ;;  %v3656_v29 = vor.u32 %v3655_v41, %v3652_v6 }
  0xd5   : > { %v762_v28 = vld [vmem:[#allocation2 + $0x78] sm:$0xf]  ;;  %v418_v36 = vsel %vm6832_vm9, 0, %v417_v26  ;;  %v501_v15 = vld [vmem:[#allocation2 + $0x108] sm:$0x10]  ;;  %v7115_v51 = vrot.slane %v890_v20, 3 }
  0xd6   : > { %v907_v44 = vshrl.u32 %v762_v28, 16  ;;  %v910_v49 = vshll.u32 %v762_v28, 16  ;;  %v2098_v32 = vsel %vm1148_vm5, %v2096_v18, %v2097_v3  ;;  %v7117_v33 = vrot.slane %v893_v43, 4  ;;  %419 = vst [vmem:[#allocation2 + $0x70] sm:$0x8] %v418_v36  ;;  %v7136_v10 = vpop.permute.xlu0 %1583 }
  0xd7   : > { %v502_v12 = vsel %vm6546_vm4, 0, %v501_v15  ;;  %v2193_v53 = vld [vmem:[#allocation2 + $0x100] sm:$0xf0]  ;;  %2129 = vrot.lane.b32.xlu0 %v2098_v32, %s6490_s24  ;;  %v3657_v47 = vsel %vm1294_vm6, %v3648_v17, %v3656_v29  ;;  %v3521_v56 = vld [vmem:[#allocation2 + $0x90] sm:$0xf0]  ;;  %vm4677_vm14 = vcmask 1040384  }
  0xd8   : > { %v7125_v22 = vrot.slane %v907_v44, 3  ;;  %v7127_v54 = vrot.slane %v910_v49, 4  ;;  %503 = vst [vmem:[#allocation2 + $0x108] sm:$0x10] %v502_v12  ;;  %v2451_v38 = vshrl.u32 %v2193_v53, 16  ;;  %3823 = vrot.lane.b32.xlu1 %v3657_v47, %s6491_s25  ;;  %v2454_v57 = vshll.u32 %v2193_v53, 16  ;;  %v7143_v27 = vpop.permute.xlu1 %1585 }
  0xd9   : > { %v3522_v58 = vld [vmem:[#allocation2 + $0x98] sm:$0x1f]  ;;  %v3659_v46 = vshrl.u32 %v3521_v56, 16  ;;  %v3662_v48 = vshll.u32 %v3521_v56, 16  ;;  %v2533_v52 = vld [vmem:[#allocation3 + $0x10] sm:$0xff]  ;;  %v896_v61 = vor.u32 %v7117_v33, %v7115_v51  ;;  %vm5767_vm15 = vcmask 1041409  }
  0xda   : > { %v7133_v62 = vrot.slane %v2451_v38, 4  ;;  %v3667_v45 = vshrl.u32 %v3522_v58, 16  ;;  %v3670_v60 = vshll.u32 %v3522_v58, 16  ;;  %6224 = vmatprep.mubr.msk.bf16.mxu1 %vm2559_vm13, %v2533_v52  ;;  %v3347_v55 = vld [vmem:[#allocation2 + $0xa0] sm:$0xf0]  ;;  %v7138_v8 = vrot.slane %v2454_v57, 5  ;;  %v7151_v28 = vpop.permute.xlu0 %2111 }
  0xdb   : > { %v3661_v24 = vrot.slane %v3659_v46, 4  ;;  %v3664_v13 = vrot.slane %v3662_v48, 5  ;;  %v3348_v16 = vld [vmem:[#allocation2 + $0xa8] sm:$0xf]  ;;  %v3419_v19 = vrot.slane %v3347_v55, 4  ;;  %3457 = vrot.lane.b32.xlu0 %v3418_v42, %s6490_s24  ;;  %v913_v23 = vor.u32 %v7127_v54, %v7125_v22  ;;  %v2534_v5 = vld [vmem:[#allocation3 + $0x18] sm:$0xff] }
  0xdc   : > { %v759_v11 = vld [vmem:[#allocation2 + $0x60] sm:$0xf8]  ;;  %v3669_v7 = vrot.slane %v3667_v45, 4  ;;  %v3672_v25 = vrot.slane %v3670_v60, 5  ;;  %v3420_v26 = vrot.slane %v3348_v16, 4  ;;  %v2457_v6 = vor.u32 %v7138_v8, %v7133_v62  ;;  %6225 = vmatmul.mubr.msk.bf16.gmra.mrb[4].mxu1 %vm2559_vm13, %v2534_v5  ;;  %v7155_v47 = vpop.permute.xlu1 %2113 }
  0xdd   : > { %v882_v30 = vshrl.u32 %v759_v11, 16  ;;  %v885_v31 = vshll.u32 %v759_v11, 16  ;;  %v3665_v63 = vor.u32 %v3664_v13, %v3661_v24  ;;  %v3349_v18 = vld [vmem:[#allocation2 + $0xb0] sm:$0xf0]  ;;  %v3350_v35 = vld [vmem:[#allocation2 + $0xb8] sm:$0xf] }
  0xde   : > { %v761_v41 = vld [vmem:[#allocation2 + $0x70] sm:$0xf8]  ;;  %v3673_v34 = vor.u32 %v3672_v25, %v3669_v7  ;;  %v7149_v3 = vsel %vm1148_vm5, %v3419_v19, %v3420_v26  ;;  %v3422_v17 = vrot.slane %v3349_v18, 4  ;;  %v3423_v20 = vrot.slane %v3350_v35, 4  ;;  %v1660_v53 = vld [vmem:[#allocation2 + $0x58] sm:$0xf]  ;;  %v7158_v62 = vpop.permute.xlu0 %2479 }
  0xdf   : > { %v1659_v43 = vld [vmem:[#allocation2 + $0x50] sm:$0xf8]  ;;  %v884_v29 = vrot.slane %v882_v30, 3  ;;  %v887_v36 = vrot.slane %v885_v31, 4  ;;  %v899_v44 = vshrl.u32 %v761_v41, 16  ;;  %v902_v49 = vshll.u32 %v761_v41, 16 }
  0xe0   : > { %v2194_v15 = vld [vmem:[#allocation2 + $0x108] sm:$0x1f]  ;;  %v3674_v33 = vsel %vm1294_vm6, %v3665_v63, %v3673_v34  ;;  %v3424_v12 = vsel %vm1148_vm5, %v3422_v17, %v3423_v20  ;;  %v1752_v56 = vshrl.u32 %v1659_v43, 16  ;;  %v1661_v42 = vld [vmem:[#allocation2 + $0x60] sm:$0xf8]  ;;  %v1755_v46 = vshll.u32 %v1659_v43, 16  ;;  %v7162_v7 = vpop.permute.xlu1 %2481 }
  0xe1   : > { %v2459_v32 = vshrl.u32 %v2194_v15, 16  ;;  %v2462_v51 = vshll.u32 %v2194_v15, 16  ;;  %v888_v22 = vor.u32 %v887_v36, %v884_v29  ;;  %v901_v54 = vrot.slane %v899_v44, 3  ;;  %3825 = vrot.lane.b32.xlu1 %v3674_v33, %s6491_s25  ;;  %v1662_v52 = vld [vmem:[#allocation2 + $0x68] sm:$0xf] }
  0xe2   : > { %v904_v38 = vrot.slane %v902_v49, 4  ;;  %v1760_v48 = vshrl.u32 %v1660_v53, 16  ;;  %v1754_v55 = vrot.slane %v1752_v56, 3  ;;  %v1763_v8 = vshll.u32 %v1660_v53, 16  ;;  %v3523_v11 = vld [vmem:[#allocation2 + $0xa0] sm:$0xf0]  ;;  %v7172_v34 = vpop.permute.xlu0 %1217 }
  0xe3   : > { %v2461_v57 = vrot.slane %v2459_v32, 4  ;;  %v2464_v58 = vrot.slane %v2462_v51, 5  ;;  %v897_v45 = vsel %vm451_vm3, %v888_v22, %v896_v61  ;;  %v1757_v13 = vrot.slane %v1755_v46, 4  ;;  %v3524_v30 = vld [vmem:[#allocation2 + $0xa8] sm:$0x1f] }
  0xe4   : > { %v905_v60 = vor.u32 %v904_v38, %v901_v54  ;;  %1074 = vst.msk [vmem:[#allocation3 + $0x30] sm:$0xff] %vm1067_vm10, %v897_v45  ;;  %v1762_v16 = vrot.slane %v1760_v48, 3  ;;  %v1769_v19 = vshrl.u32 %v1661_v42, 16  ;;  %v1765_v61 = vrot.slane %v1763_v8, 4  ;;  %v3525_v41 = vld [vmem:[#allocation2 + $0xb0] sm:$0xf0]  ;;  %v7180_v53 = vpop.permute.xlu1 %1219 }
  0xe5   : > { %v2465_v24 = vor.u32 %v2464_v58, %v2461_v57  ;;  %1252 = vst.msk [vmem:[#allocation3 + $0x30] sm:$0xff] %vm1245_vm11, %v7039_v9  ;;  %3461 = vrot.lane.b32.xlu1 %v3424_v12, %s6490_s24  ;;  %v1772_v26 = vshll.u32 %v1661_v42, 16  ;;  %v1777_v5 = vshrl.u32 %v1662_v52, 16  ;;  %v1758_v63 = vor.u32 %v1757_v13, %v1754_v55  ;;  %v3526_v9 = vld [vmem:[#allocation2 + $0xb8] sm:$0x1f] }
  0xe6   : > { %v914_v25 = vsel %vm451_vm3, %v905_v60, %v913_v23  ;;  %1622 = vst.msk [vmem:[#allocation3 + $0x30] sm:$0xff] %vm1615_vm12, %v7055_v59  ;;  %v1771_v18 = vrot.slane %v1769_v19, 3  ;;  %v1780_v35 = vshll.u32 %v1662_v52, 16  ;;  %v1766_v23 = vor.u32 %v1765_v61, %v1762_v16  ;;  %v3352_v49 = vld [vmem:[#allocation2 + $0xc8] sm:$0xf] }
  0xe7   : > { %1075 = vst.msk [vmem:[#allocation3 + $0x38] sm:$0xff] %vm1067_vm10, %v914_v25  ;;  %v2466_v31 = vsel %vm1294_vm6, %v2457_v6, %v2465_v24  ;;  %v1774_v17 = vrot.slane %v1772_v26, 4  ;;  %v1779_v20 = vrot.slane %v1777_v5, 3  ;;  %v3676_v43 = vshrl.u32 %v3523_v11, 16  ;;  %v3351_v6 = vld [vmem:[#allocation2 + $0xc0] sm:$0xf0]  ;;  %v7190_v13 = vpop.permute.xlu0 %1587 }
  0xe8   : > { %1253 = vst.msk [vmem:[#allocation3 + $0x38] sm:$0xff] %vm1245_vm11, %v7048_v4  ;;  %2497 = vrot.lane.b32.xlu0 %v2466_v31, %s6491_s25  ;;  %v1782_v59 = vrot.slane %v1780_v35, 4  ;;  %v3679_v29 = vshll.u32 %v3523_v11, 16  ;;  %v3684_v36 = vshrl.u32 %v3524_v30, 16  ;;  %v3687_v44 = vshll.u32 %v3524_v30, 16 }
  0xe9   : > { %1623 = vst.msk [vmem:[#allocation3 + $0x38] sm:$0xff] %vm1615_vm12, %v7064_v40  ;;  %v1767_v15 = vsel %vm451_vm3, %v1758_v63, %v1766_v23  ;;  %v1775_v32 = vor.u32 %v1774_v17, %v1771_v18  ;;  %v3678_v51 = vrot.slane %v3676_v43, 4  ;;  %v3693_v4 = vshrl.u32 %v3525_v41, 16  ;;  %v3353_v33 = vld [vmem:[#allocation2 + $0xd0] sm:$0xf0] }
  0xea   : > { %v3354_v12 = vld [vmem:[#allocation2 + $0xd8] sm:$0xf]  ;;  %1975 = vst.msk [vmem:[#allocation3 + $0x20] sm:$0xff] %vm1067_vm10, %v1767_v15  ;;  %v1783_v22 = vor.u32 %v1782_v59, %v1779_v20  ;;  %v3681_v54 = vrot.slane %v3679_v29, 5  ;;  %v3686_v38 = vrot.slane %v3684_v36, 4  ;;  %v3689_v40 = vrot.slane %v3687_v44, 5 }
  0xeb   : > { %v420_v56 = vld [vmem:[#allocation2 + $0x80] sm:$0x8]  ;;  %2151 = vst.msk [vmem:[#allocation3 + $0x20] sm:$0xff] %vm1245_vm11, %v7069_v50  ;;  %v3695_v42 = vrot.slane %v3693_v4, 4  ;;  %v3696_v57 = vshll.u32 %v3525_v41, 16  ;;  %v3701_v58 = vshrl.u32 %v3526_v9, 16  ;;  %v7203_v41 = vpop.permute.xlu1 %1589 }
  0xec   : > { %3459 = vrot.lane.b32.xlu0 %v7149_v3, %s6490_s24  ;;  %v3704_v46 = vshll.u32 %v3526_v9, 16  ;;  %v764_v48 = vld [vmem:[#allocation2 + $0x88] sm:$0xf]  ;;  %v1784_v52 = vsel %vm451_vm3, %v1775_v32, %v1783_v22  ;;  %v3682_v45 = vor.u32 %v3681_v54, %v3678_v51  ;;  %v3690_v60 = vor.u32 %v3689_v40, %v3686_v38  ;;  %2519 = vst.msk [vmem:[#allocation3 + $0x20] sm:$0xff] %vm1615_vm12, %v7087_v0  ;;  %v423_v8 = vld [vmem:[#allocation2 + $0x90] sm:$0x8] }
  0xed   : > { %v3425_v55 = vrot.slane %v3351_v6, 4  ;;  %v766_v24 = vld [vmem:[#allocation2 + $0x98] sm:$0xf]  ;;  %1976 = vst.msk [vmem:[#allocation3 + $0x28] sm:$0xff] %vm1067_vm10, %v1784_v52  ;;  %v3698_v50 = vrot.slane %v3696_v57, 5  ;;  %v3703_v3 = vrot.slane %v3701_v58, 4  ;;  %v7209_v6 = vpop.permute.xlu0 %2115 }
  0xee   : > { %v3706_v16 = vrot.slane %v3704_v46, 5  ;;  %v1638_v19 = vld [vmem:[#allocation3 + $0x30] sm:$0xff]  ;;  %v3426_v11 = vrot.slane %v3352_v49, 4  ;;  %2152 = vst.msk [vmem:[#allocation3 + $0x28] sm:$0xff] %vm1245_vm11, %v7084_v21  ;;  %v3691_v25 = vsel %vm1294_vm6, %v3682_v45, %v3690_v60  ;;  %v3428_v0 = vrot.slane %v3353_v33, 4 }
  0xef   : > { %6268 = vmatprep.mubr.msk.bf16.mxu0 %vm2559_vm13, %v1638_v19  ;;  %v3429_v61 = vrot.slane %v3354_v12, 4  ;;  %v421_v26 = vsel %vm6832_vm9, 0, %v420_v56  ;;  %v3527_v5 = vld [vmem:[#allocation2 + $0xc0] sm:$0xf0]  ;;  %v3699_v30 = vor.u32 %v3698_v50, %v3695_v42  ;;  %2520 = vst.msk [vmem:[#allocation3 + $0x28] sm:$0xff] %vm1615_vm12, %v7099_v14  ;;  %v924_v18 = vshrl.u32 %v764_v48, 16  ;;  %v7222_v56 = vpop.permute.xlu1 %3443 }
  0xf0   : > { %3827 = vrot.lane.b32.xlu0 %v3691_v25, %s6491_s25  ;;  %v3707_v31 = vor.u32 %v3706_v16, %v3703_v3  ;;  %v3427_v63 = vsel %vm1148_vm5, %v3425_v55, %v3426_v11  ;;  %v1639_v21 = vld [vmem:[#allocation3 + $0x38] sm:$0xff]  ;;  %422 = vst [vmem:[#allocation2 + $0x80] sm:$0x8] %v421_v26  ;;  %v3528_v35 = vld [vmem:[#allocation2 + $0xc8] sm:$0x1f]  ;;  %v927_v23 = vshll.u32 %v764_v48, 16 }
  0xf1   : > { %6269 = vmatmul.mubr.msk.bf16.gmra.mrb[12].mxu0 %vm2559_vm13, %v1639_v21  ;;  %v3430_v9 = vsel %vm1148_vm5, %v3428_v0, %v3429_v61  ;;  %v424_v17 = vsel %vm6832_vm9, 0, %v423_v8  ;;  %v941_v20 = vshrl.u32 %v766_v24, 16  ;;  %v3529_v43 = vld [vmem:[#allocation2 + $0xd0] sm:$0xf0]  ;;  %v7212_v59 = vrot.slane %v924_v18, 3  ;;  %v7227_v52 = vpop.permute.xlu0 %2117 }
  0xf2   : > { %v3708_v14 = vsel %vm1294_vm6, %v3699_v30, %v3707_v31  ;;  %425 = vst [vmem:[#allocation2 + $0x90] sm:$0x8] %v424_v17  ;;  %v944_v29 = vshll.u32 %v766_v24, 16  ;;  %v3710_v36 = vshrl.u32 %v3527_v5, 16  ;;  %v3530_v44 = vld [vmem:[#allocation2 + $0xd8] sm:$0x1f] }
  0xf3   : > { %3829 = vrot.lane.b32.xlu1 %v3708_v14, %s6491_s25  ;;  %v7215_v49 = vrot.slane %v927_v23, 4  ;;  %v7217_v15 = vrot.slane %v941_v20, 3  ;;  %v3713_v32 = vshll.u32 %v3527_v5, 16  ;;  %v3718_v51 = vshrl.u32 %v3528_v35, 16  ;;  %v3355_v4 = vld [vmem:[#allocation2 + $0xe0] sm:$0xf0]  ;;  %v7233_v31 = vpop.permute.xlu1 %2483 }
  0xf4   : > { %3463 = vrot.lane.b32.xlu0 %v3427_v63, %s6490_s24  ;;  %v7220_v33 = vrot.slane %v944_v29, 4  ;;  %v3712_v12 = vrot.slane %v3710_v36, 4  ;;  %v3721_v22 = vshll.u32 %v3528_v35, 16  ;;  %v3727_v54 = vshrl.u32 %v3529_v43, 16  ;;  %v2535_v38 = vld [vmem:[#allocation3 + $0x20] sm:$0xff] }
  0xf5   : > { %v3356_v40 = vld [vmem:[#allocation2 + $0xe8] sm:$0xf]  ;;  %v930_v42 = vor.u32 %v7215_v49, %v7212_v59  ;;  %v3715_v57 = vrot.slane %v3713_v32, 5  ;;  %v3720_v58 = vrot.slane %v3718_v51, 4  ;;  %v3730_v46 = vshll.u32 %v3529_v43, 16  ;;  %6228 = vmatprep.mubr.msk.bf16.mxu1 %vm2559_vm13, %v2535_v38  ;;  %v7235_v23 = vpop.permute.xlu0 %3445 }
  0xf6   : > { %v3357_v48 = vld [vmem:[#allocation2 + $0xf0] sm:$0xf0]  ;;  %v947_v45 = vor.u32 %v7220_v33, %v7217_v15  ;;  %v3723_v60 = vrot.slane %v3721_v22, 5  ;;  %v3729_v55 = vrot.slane %v3727_v54, 4  ;;  %v3735_v8 = vshrl.u32 %v3530_v44, 16  ;;  %v2536_v25 = vld [vmem:[#allocation3 + $0x28] sm:$0xff] }
  0xf7   : > { %v3358_v24 = vld [vmem:[#allocation2 + $0xf8] sm:$0xf]  ;;  %3465 = vrot.lane.b32.xlu1 %v3430_v9, %s6490_s24  ;;  %v763_v50 = vld [vmem:[#allocation2 + $0x80] sm:$0xf8]  ;;  %v3716_v3 = vor.u32 %v3715_v57, %v3712_v12  ;;  %v3732_v16 = vrot.slane %v3730_v46, 5  ;;  %v3738_v19 = vshll.u32 %v3530_v44, 16  ;;  %6229 = vmatmul.mubr.msk.bf16.gmra.mrb[8].mxu1 %vm2559_vm13, %v2536_v25  ;;  %v7240_v12 = vpop.permute.xlu1 %3811 }
  0xf8   : > { %v3431_v11 = vrot.slane %v3355_v4, 4  ;;  %v916_v0 = vshrl.u32 %v763_v50, 16  ;;  %v919_v61 = vshll.u32 %v763_v50, 16  ;;  %v3724_v26 = vor.u32 %v3723_v60, %v3720_v58  ;;  %v1663_v30 = vld [vmem:[#allocation2 + $0x70] sm:$0xf8] }
  0xf9   : > { %v3737_v5 = vrot.slane %v3735_v8, 4  ;;  %v765_v63 = vld [vmem:[#allocation2 + $0x90] sm:$0xf8]  ;;  %v3733_v21 = vor.u32 %v3732_v16, %v3729_v55  ;;  %v3740_v18 = vrot.slane %v3738_v19, 5  ;;  %v3432_v35 = vrot.slane %v3356_v40, 4  ;;  %v7244_v58 = vpop.permute.xlu0 %2485 }
  0xfa   : > { %v3434_v9 = vrot.slane %v3357_v48, 4  ;;  %v918_v17 = vrot.slane %v916_v0, 3  ;;  %v921_v20 = vrot.slane %v919_v61, 4  ;;  %v933_v43 = vshrl.u32 %v765_v63, 16  ;;  %v1664_v59 = vld [vmem:[#allocation2 + $0x78] sm:$0xf] }
  0xfb   : > { %v936_v14 = vshll.u32 %v765_v63, 16  ;;  %v3725_v29 = vsel %vm1294_vm6, %v3716_v3, %v3724_v26  ;;  %v3741_v36 = vor.u32 %v3740_v18, %v3737_v5  ;;  %v3433_v44 = vsel %vm1148_vm5, %v3431_v11, %v3432_v35  ;;  %v1665_v33 = vld [vmem:[#allocation2 + $0x80] sm:$0xf8]  ;;  %v1666_v57 = vld [vmem:[#allocation2 + $0x88] sm:$0xf]  ;;  %v7253_v61 = vpop.permute.xlu1 %3813 }
  0xfc   : > { %v3435_v49 = vrot.slane %v3358_v24, 4  ;;  %v922_v15 = vor.u32 %v921_v20, %v918_v17  ;;  %v935_v32 = vrot.slane %v933_v43, 3  ;;  %3831 = vrot.lane.b32.xlu0 %v3725_v29, %s6491_s25  ;;  %v1786_v4 = vshrl.u32 %v1663_v30, 16  ;;  %v3531_v8 = vld [vmem:[#allocation2 + $0xe0] sm:$0xf0] }
  0xfd   : > { %v938_v51 = vrot.slane %v936_v14, 4  ;;  %v3742_v22 = vsel %vm1294_vm6, %v3733_v21, %v3741_v36  ;;  %v1789_v38 = vshll.u32 %v1663_v30, 16  ;;  %v1794_v40 = vshrl.u32 %v1664_v59, 16  ;;  %v3532_v0 = vld [vmem:[#allocation2 + $0xe8] sm:$0x1f]  ;;  %v7258_v21 = vpop.permute.xlu0 %1221 }
  0xfe   : > { %v3436_v54 = vsel %vm1148_vm5, %v3434_v9, %v3435_v49  ;;  %v931_v46 = vsel %vm451_vm3, %v922_v15, %v930_v42  ;;  %3833 = vrot.lane.b32.xlu1 %v3742_v22, %s6491_s25  ;;  %v1788_v60 = vrot.slane %v1786_v4, 3  ;;  %v1797_v55 = vshll.u32 %v1664_v59, 16  ;;  %v3534_v17 = vld [vmem:[#allocation2 + $0xf8] sm:$0x1f]  ;;  %v3359_v59 = vld [vmem:[#allocation2 + $0x100] sm:$0xf0] }
  0xff   : > { %v939_v48 = vor.u32 %v938_v51, %v935_v32  ;;  %1076 = vst.msk [vmem:[#allocation3 + $0x40] sm:$0xff] %vm1067_vm10, %v931_v46  ;;  %v1791_v24 = vrot.slane %v1789_v38, 4  ;;  %v1796_v50 = vrot.slane %v1794_v40, 3  ;;  %v1803_v3 = vshrl.u32 %v1665_v33, 16  ;;  %v3360_v49 = vld [vmem:[#allocation2 + $0x108] sm:$0xf]  ;;  %v7266_v32 = vpop.permute.xlu1 %1223 }
 0x100   : > { %v1806_v16 = vshll.u32 %v1665_v33, 16  ;;  %1254 = vst.msk [vmem:[#allocation3 + $0x40] sm:$0xff] %vm1245_vm11, %v7106_v37  ;;  %3467 = vrot.lane.b32.xlu0 %v3433_v44, %s6490_s24  ;;  %v1799_v42 = vrot.slane %v1797_v55, 4  ;;  %v1811_v11 = vshrl.u32 %v1666_v57, 16  ;;  %v1814_v25 = vshll.u32 %v1666_v57, 16 }
 0x101   : > { %v948_v19 = vsel %vm451_vm3, %v939_v48, %v947_v45  ;;  %1624 = vst.msk [vmem:[#allocation3 + $0x40] sm:$0xff] %vm1615_vm12, %v7136_v10  ;;  %v1792_v26 = vor.u32 %v1791_v24, %v1788_v60  ;;  %v1805_v5 = vrot.slane %v1803_v3, 3  ;;  %v3744_v63 = vshrl.u32 %v3531_v8, 16  ;;  %v3533_v37 = vld [vmem:[#allocation2 + $0xf0] sm:$0xf0] }
 0x102   : > { %1077 = vst.msk [vmem:[#allocation3 + $0x48] sm:$0xff] %vm1067_vm10, %v948_v19  ;;  %v1808_v30 = vrot.slane %v1806_v16, 4  ;;  %3469 = vrot.lane.b32.xlu1 %v3436_v54, %s6490_s24  ;;  %v1800_v45 = vor.u32 %v1799_v42, %v1796_v50  ;;  %v1813_v18 = vrot.slane %v1811_v11, 3  ;;  %v1816_v35 = vrot.slane %v1814_v25, 4  ;;  %v3361_v15 = vld [vmem:[#allocation2 + $0x110] sm:$0xf0]  ;;  %v7269_v54 = vpop.permute.xlu0 %1591 }
 0x103   : > { %1255 = vst.msk [vmem:[#allocation3 + $0x48] sm:$0xff] %vm1245_vm11, %v7121_v39  ;;  %v3747_v9 = vshll.u32 %v3531_v8, 16  ;;  %v3746_v20 = vrot.slane %v3744_v63, 4  ;;  %v3752_v43 = vshrl.u32 %v3532_v0, 16  ;;  %v3755_v14 = vshll.u32 %v3532_v0, 16  ;;  %v7279_v25 = vpop.permute.xlu1 %1593 }
 0x104   : > { %1625 = vst.msk [vmem:[#allocation3 + $0x48] sm:$0xff] %vm1615_vm12, %v7143_v27  ;;  %v1809_v10 = vor.u32 %v1808_v30, %v1805_v5  ;;  %v1801_v29 = vsel %vm451_vm3, %v1792_v26, %v1800_v45  ;;  %v1817_v36 = vor.u32 %v1816_v35, %v1813_v18  ;;  %v3761_v39 = vshrl.u32 %v3533_v37, 16  ;;  %v3362_v22 = vld [vmem:[#allocation2 + $0x118] sm:$0xf]  ;;  %v426_v48 = vld [vmem:[#allocation2 + $0xa0] sm:$0x8] }
 0x105   : > { %v3749_v44 = vrot.slane %v3747_v9, 5  ;;  %1977 = vst.msk [vmem:[#allocation3 + $0x30] sm:$0xff] %vm1067_vm10, %v1801_v29  ;;  %v3754_v51 = vrot.slane %v3752_v43, 4  ;;  %v3757_v4 = vrot.slane %v3755_v14, 5  ;;  %v3764_v33 = vshll.u32 %v3533_v37, 16 }
 0x106   : > { %v3769_v27 = vshrl.u32 %v3534_v17, 16  ;;  %2153 = vst.msk [vmem:[#allocation3 + $0x30] sm:$0xff] %vm1245_vm11, %v7151_v28  ;;  %v1818_v38 = vsel %vm451_vm3, %v1809_v10, %v1817_v36  ;;  %v3763_v57 = vrot.slane %v3761_v39, 4  ;;  %v3772_v46 = vshll.u32 %v3534_v17, 16  ;;  %v768_v60 = vld [vmem:[#allocation2 + $0xa8] sm:$0xf]  ;;  %v7289_v17 = vpop.permute.xlu0 %2119 }
 0x107   : > { %v3750_v40 = vor.u32 %v3749_v44, %v3746_v20  ;;  %1978 = vst.msk [vmem:[#allocation3 + $0x38] sm:$0xff] %vm1067_vm10, %v1818_v38  ;;  %v3758_v55 = vor.u32 %v3757_v4, %v3754_v51  ;;  %v3766_v8 = vrot.slane %v3764_v33, 5  ;;  %v3437_v50 = vrot.slane %v3359_v59, 4  ;;  %v429_v3 = vld [vmem:[#allocation2 + $0xb0] sm:$0x8]  ;;  %v7298_v44 = vpop.permute.xlu1 %3447 }
 0x108   : > { %v3771_v24 = vrot.slane %v3769_v27, 4  ;;  %2521 = vst.msk [vmem:[#allocation3 + $0x30] sm:$0xff] %vm1615_vm12, %v7158_v62  ;;  %v3774_v28 = vrot.slane %v3772_v46, 5  ;;  %v3438_v16 = vrot.slane %v3360_v49, 4  ;;  %v3440_v19 = vrot.slane %v3361_v15, 4 }
 0x109   : > { %2154 = vst.msk [vmem:[#allocation3 + $0x38] sm:$0xff] %vm1245_vm11, %v7155_v47  ;;  %v3441_v42 = vrot.slane %v3362_v22, 4  ;;  %v770_v11 = vld [vmem:[#allocation2 + $0xb8] sm:$0xf]  ;;  %v3759_v0 = vsel %vm1294_vm6, %v3750_v40, %v3758_v55  ;;  %v3767_v26 = vor.u32 %v3766_v8, %v3763_v57  ;;  %v427_v62 = vsel %vm6832_vm9, 0, %v426_v48 }
 0x10a   : > { %2522 = vst.msk [vmem:[#allocation3 + $0x38] sm:$0xff] %vm1615_vm12, %v7162_v7  ;;  %v958_v5 = vshrl.u32 %v768_v60, 16  ;;  %v3535_v30 = vld [vmem:[#allocation2 + $0x100] sm:$0xf0]  ;;  %v3536_v63 = vld [vmem:[#allocation2 + $0x108] sm:$0x1f]  ;;  %3835 = vrot.lane.b32.xlu0 %v3759_v0, %s6491_s25  ;;  %v3775_v47 = vor.u32 %v3774_v28, %v3771_v24  ;;  %v3439_v37 = vsel %vm1148_vm5, %v3437_v50, %v3438_v16  ;;  %v7313_v16 = vpop.permute.xlu0 %2121 }
 0x10b   : > { %v3442_v45 = vsel %vm1148_vm5, %v3440_v19, %v3441_v42  ;;  %428 = vst [vmem:[#allocation2 + $0xa0] sm:$0x8] %v427_v62  ;;  %v961_v18 = vshll.u32 %v768_v60, 16  ;;  %v504_v35 = vld [vmem:[#allocation2 + $0x118] sm:$0x10]  ;;  %v430_v10 = vsel %vm6832_vm9, 0, %v429_v3  ;;  %v7315_v2 = vpop.permute.xlu1 %2487 }
 0x10c   : > { %v3537_v9 = vld [vmem:[#allocation2 + $0x110] sm:$0xf0]  ;;  %v7291_v7 = vrot.slane %v958_v5, 3  ;;  %v975_v20 = vshrl.u32 %v770_v11, 16  ;;  %v978_v43 = vshll.u32 %v770_v11, 16  ;;  %v3776_v14 = vsel %vm1294_vm6, %v3767_v26, %v3775_v47 }
 0x10d   : > { %v7296_v59 = vrot.slane %v961_v18, 4  ;;  %431 = vst [vmem:[#allocation2 + $0xb0] sm:$0x8] %v430_v10  ;;  %v3778_v29 = vshrl.u32 %v3535_v30, 16  ;;  %v3781_v36 = vshll.u32 %v3535_v30, 16  ;;  %3837 = vrot.lane.b32.xlu1 %v3776_v14, %s6491_s25  ;;  %v3786_v15 = vshrl.u32 %v3536_v63, 16 }
 0x10e   : > { %v7301_v39 = vrot.slane %v975_v20, 3  ;;  %v7303_v49 = vrot.slane %v978_v43, 4  ;;  %v3789_v51 = vshll.u32 %v3536_v63, 16  ;;  %v1667_v4 = vld [vmem:[#allocation2 + $0x90] sm:$0xf8]  ;;  %3471 = vrot.lane.b32.xlu0 %v3439_v37, %s6490_s24  ;;  %v505_v38 = vsel %vm6546_vm4, 0, %v504_v35 }
 0x10f   : > { %v964_v33 = vor.u32 %v7296_v59, %v7291_v7  ;;  %v3780_v27 = vrot.slane %v3778_v29, 4  ;;  %v3783_v22 = vrot.slane %v3781_v36, 5  ;;  %v2537_v40 = vld [vmem:[#allocation3 + $0x30] sm:$0xff]  ;;  %v1668_v57 = vld [vmem:[#allocation2 + $0x98] sm:$0xf]  ;;  %v3788_v48 = vrot.slane %v3786_v15, 4 }
 0x110   : > { %v981_v46 = vor.u32 %v7303_v49, %v7301_v39  ;;  %v3791_v60 = vrot.slane %v3789_v51, 5  ;;  %506 = vst [vmem:[#allocation2 + $0x118] sm:$0x10] %v505_v38  ;;  %v3795_v55 = vshrl.u32 %v3537_v9, 16  ;;  %6232 = vmatprep.mubr.msk.bf16.mxu1 %vm2559_vm13, %v2537_v40  ;;  %v3798_v24 = vshll.u32 %v3537_v9, 16 }
 0x111   : > { %v3784_v8 = vor.u32 %v3783_v22, %v3780_v27  ;;  %v2538_v50 = vld [vmem:[#allocation3 + $0x38] sm:$0xff]  ;;  %v1820_v3 = vshrl.u32 %v1667_v4, 16  ;;  %v1823_v28 = vshll.u32 %v1667_v4, 16  ;;  %3473 = vrot.lane.b32.xlu1 %v3442_v45, %s6490_s24  ;;  %v1828_v0 = vshrl.u32 %v1668_v57, 16  ;;  %v2995_v47 = vld [vmem:[#allocation2 + $0x20] sm:$0xf8] }
 0x112   : > { %v767_v19 = vld [vmem:[#allocation2 + $0xa0] sm:$0xf8]  ;;  %v3792_v42 = vor.u32 %v3791_v60, %v3788_v48  ;;  %v7318_v11 = vrot.slane %v3795_v55, 4  ;;  %6233 = vmatmul.mubr.msk.bf16.gmra.mrb[12].mxu1 %vm2559_vm13, %v2538_v50  ;;  %v1831_v26 = vshll.u32 %v1668_v57, 16  ;;  %v7321_v30 = vrot.slane %v3798_v24, 5  ;;  %v7332_v48 = vpop.permute.xlu0 %3449  ;;  %v7334_v60 = vpop.permute.xlu1 %3815 }
 0x113   : > { %v950_v62 = vshrl.u32 %v767_v19, 16  ;;  %v953_v5 = vshll.u32 %v767_v19, 16  ;;  %v1822_v63 = vrot.slane %v1820_v3, 3  ;;  %v1825_v35 = vrot.slane %v1823_v28, 4  ;;  %v2996_v7 = vld [vmem:[#allocation2 + $0x28] sm:$0xf] }
 0x114   : > { %v769_v37 = vld [vmem:[#allocation2 + $0xb0] sm:$0xf8]  ;;  %v3793_v18 = vsel %vm1294_vm6, %v3784_v8, %v3792_v42  ;;  %v1830_v9 = vrot.slane %v1828_v0, 3  ;;  %v1833_v45 = vrot.slane %v1831_v26, 4  ;;  %v3801_v59 = vor.u32 %v7321_v30, %v7318_v11  ;;  %v1669_v51 = vld [vmem:[#allocation2 + $0xa0] sm:$0xf8] }
 0x115   : > { %v952_v10 = vrot.slane %v950_v62, 3  ;;  %v955_v20 = vrot.slane %v953_v5, 4  ;;  %v967_v43 = vshrl.u32 %v769_v37, 16  ;;  %v970_v14 = vshll.u32 %v769_v37, 16  ;;  %3839 = vrot.lane.b32.xlu0 %v3793_v18, %s6491_s25  ;;  %v7330_v4 = vld [vmem:[%s8145_s3 + $0x20] ss:$0 sps:$4 sm:$0xff]  }
 0x116   : > { %v1826_v29 = vor.u32 %v1825_v35, %v1822_v63  ;;  %v1834_v36 = vor.u32 %v1833_v45, %v1830_v9  ;;  %v3028_v15 = vshrl.u32 %v2995_v47, 16  ;;  %v3031_v57 = vshll.u32 %v2995_v47, 16  ;;  %v7336_v24 = vld [vmem:[#allocation3 + $0x40] sm:$0xff]  ;;  %6395 = vmatprep.subr.msk.bf16.mxu0 %vm1148_vm5, %v7330_v4  ;;  %v1670_v0 = vld [vmem:[#allocation2 + $0xa8] sm:$0xf] }
 0x117   : > { %v956_v27 = vor.u32 %v955_v20, %v952_v10  ;;  %v969_v22 = vrot.slane %v967_v43, 3  ;;  %v972_v38 = vrot.slane %v970_v14, 4  ;;  %v3538_v40 = vld [vmem:[#allocation2 + $0x118] sm:$0x1f]  ;;  %v3036_v11 = vshrl.u32 %v2996_v7, 16  ;;  %v7359_v20 = vpop.permute.xlu0 %2489 }
 0x118   : > { %v3803_v55 = vshrl.u32 %v3538_v40, 16  ;;  %v3806_v8 = vshll.u32 %v3538_v40, 16  ;;  %v1835_v50 = vsel %vm451_vm3, %v1826_v29, %v1834_v36  ;;  %v3030_v3 = vrot.slane %v3028_v15, 3  ;;  %v2997_v63 = vld [vmem:[#allocation2 + $0x30] sm:$0xf8] }
 0x119   : > { %v965_v28 = vsel %vm451_vm3, %v956_v27, %v964_v33  ;;  %v973_v19 = vor.u32 %v972_v38, %v969_v22  ;;  %1979 = vst.msk [vmem:[#allocation3 + $0x40] sm:$0xff] %vm1067_vm10, %v1835_v50  ;;  %v3033_v42 = vrot.slane %v3031_v57, 4  ;;  %v3039_v5 = vshll.u32 %v2996_v7, 16  ;;  %v2998_v35 = vld [vmem:[#allocation2 + $0x38] sm:$0xf] }
 0x11a   : > { %1078 = vst.msk [vmem:[#allocation3 + $0x50] sm:$0xff] %vm1067_vm10, %v965_v28  ;;  %v3805_v26 = vrot.slane %v3803_v55, 4  ;;  %v3808_v62 = vrot.slane %v3806_v8, 5  ;;  %v1837_v30 = vshrl.u32 %v1669_v51, 16  ;;  %v3038_v37 = vrot.slane %v3036_v11, 3 }
 0x11b   : > { %2155 = vst.msk [vmem:[#allocation3 + $0x40] sm:$0xff] %vm1245_vm11, %v7209_v6  ;;  %1256 = vst.msk [vmem:[#allocation3 + $0x50] sm:$0xff] %vm1245_vm11, %v7172_v34  ;;  %v982_v33 = vsel %vm451_vm3, %v973_v19, %v981_v46  ;;  %v3034_v47 = vor.u32 %v3033_v42, %v3030_v3  ;;  %v1840_v18 = vshll.u32 %v1669_v51, 16  ;;  %v3041_v9 = vrot.slane %v3039_v5, 4  ;;  %v432_v10 = vld [vmem:[#allocation2 + $0xc0] sm:$0x8] }
 0x11c   : > { %2523 = vst.msk [vmem:[#allocation3 + $0x40] sm:$0xff] %vm1615_vm12, %v7233_v31  ;;  %v3809_v6 = vor.u32 %v3808_v62, %v3805_v26  ;;  %1626 = vst.msk [vmem:[#allocation3 + $0x50] sm:$0xff] %vm1615_vm12, %v7190_v13  ;;  %v1839_v34 = vrot.slane %v1837_v30, 3  ;;  %v1845_v45 = vshrl.u32 %v1670_v0, 16  ;;  %v1848_v49 = vshll.u32 %v1670_v0, 16  ;;  %v7361_v31 = vpop.permute.xlu1 %3817  ;;  %v7375_v5 = vld [vmem:[#allocation3 + $0x48] sm:$0xff] }
 0x11d   : > { %1079 = vst.msk [vmem:[#allocation3 + $0x58] sm:$0xff] %vm1067_vm10, %v982_v33  ;;  %v1842_v39 = vrot.slane %v1840_v18, 4  ;;  %v3045_v46 = vshrl.u32 %v2997_v63, 16  ;;  %v3048_v7 = vshll.u32 %v2997_v63, 16  ;;  %v3042_v13 = vor.u32 %v3041_v9, %v3038_v37  ;;  %v772_v36 = vld [vmem:[#allocation2 + $0xc8] sm:$0xf]  ;;  %v7387_v37 = vpop.permute.xlu0 %1225 }
 0x11e   : > { %1257 = vst.msk [vmem:[#allocation3 + $0x58] sm:$0xff] %vm1245_vm11, %v7180_v53  ;;  %v3810_v43 = vsel %vm1294_vm6, %v3801_v59, %v3809_v6  ;;  %v1847_v14 = vrot.slane %v1845_v45, 3  ;;  %v3053_v29 = vshrl.u32 %v2998_v35, 16  ;;  %v435_v15 = vld [vmem:[#allocation2 + $0xd0] sm:$0x8]  ;;  %v1850_v51 = vrot.slane %v1848_v49, 4 }
 0x11f   : > { %1627 = vst.msk [vmem:[#allocation3 + $0x58] sm:$0xff] %vm1615_vm12, %v7203_v41  ;;  %3841 = vrot.lane.b32.xlu1 %v3810_v43, %s6491_s25  ;;  %v1843_v53 = vor.u32 %v1842_v39, %v1839_v34  ;;  %v3047_v27 = vrot.slane %v3045_v46, 3  ;;  %v3050_v22 = vrot.slane %v3048_v7, 4  ;;  %v774_v38 = vld [vmem:[#allocation2 + $0xd8] sm:$0xf]  ;;  %v3043_v40 = vsel %vm451_vm3, %v3034_v47, %v3042_v13 }
 0x120   : > { %v3055_v57 = vrot.slane %v3053_v29, 3  ;;  %v3056_v55 = vshll.u32 %v2998_v35, 16  ;;  %v433_v59 = vsel %vm6832_vm9, 0, %v432_v10  ;;  %3315 = vst.msk [vmem:[#allocation3] sm:$0xff] %vm1067_vm10, %v3043_v40  ;;  %v1851_v41 = vor.u32 %v1850_v51, %v1847_v14  ;;  %v1671_v28 = vld [vmem:[#allocation2 + $0xb0] sm:$0xf8]  ;;  %v7389_v18 = vpop.permute.xlu1 %1227 }
 0x121   : > { %v3051_v8 = vor.u32 %v3050_v22, %v3047_v27  ;;  %434 = vst [vmem:[#allocation2 + $0xc0] sm:$0x8] %v433_v59  ;;  %v992_v50 = vshrl.u32 %v772_v36, 16  ;;  %v995_v3 = vshll.u32 %v772_v36, 16  ;;  %v1672_v19 = vld [vmem:[#allocation2 + $0xb8] sm:$0xf] }
 0x122   : > { %3491 = vst.msk [vmem:[#allocation3] sm:$0xff] %vm1245_vm11, %v7222_v56  ;;  %v3058_v42 = vrot.slane %v3056_v55, 4  ;;  %v436_v0 = vsel %vm6832_vm9, 0, %v435_v15  ;;  %v1009_v26 = vshrl.u32 %v774_v38, 16  ;;  %v1012_v62 = vshll.u32 %v774_v38, 16  ;;  %v7411_v55 = vpop.permute.xlu0 %1595 }
 0x123   : > { %v2539_v11 = vld [vmem:[#allocation3 + $0x40] sm:$0xff]  ;;  %v1852_v30 = vsel %vm451_vm3, %v1843_v53, %v1851_v41  ;;  %3859 = vst.msk [vmem:[#allocation3] sm:$0xff] %vm1615_vm12, %v7240_v12  ;;  %v7381_v63 = vrot.slane %v992_v50, 3  ;;  %v7383_v33 = vrot.slane %v995_v3, 4  ;;  %437 = vst [vmem:[#allocation2 + $0xd0] sm:$0x8] %v436_v0 }
 0x124   : > { %6236 = vmatprep.mubr.msk.bf16.mxu1 %vm2559_vm13, %v2539_v11  ;;  %v3952_v56 = vsel %vm1148_vm5, %v7330_v4, 0  ;;  %v2999_v47 = vld [vmem:[#allocation2 + $0x40] sm:$0xf8]  ;;  %1980 = vst.msk [vmem:[#allocation3 + $0x48] sm:$0xff] %vm1067_vm10, %v1852_v30  ;;  %v3059_v35 = vor.u32 %v3058_v42, %v3055_v57  ;;  %v7392_v6 = vrot.slane %v1009_v26, 3  ;;  %v1854_v12 = vshrl.u32 %v1671_v28, 16 }
 0x125   : > { %6291 = vmatpush3.bf16.msra.mxu0 %v3952_v56  ;;  %v3000_v9 = vld [vmem:[#allocation2 + $0x48] sm:$0xf]  ;;  %2156 = vst.msk [vmem:[#allocation3 + $0x48] sm:$0xff] %vm1245_vm11, %v7227_v52  ;;  %v7396_v34 = vrot.slane %v1012_v62, 4  ;;  %v1857_v45 = vshll.u32 %v1671_v28, 16  ;;  %v1862_v4 = vshrl.u32 %v1672_v19, 16  ;;  %v998_v7 = vor.u32 %v7383_v33, %v7381_v63 }
 0x126   : > { %v1865_v39 = vshll.u32 %v1672_v19, 16  ;;  %v7398_v49 = vld [vmem:[#allocation2 + $0xc8] sm:$0xf]  ;;  %v3060_v46 = vsel %vm451_vm3, %v3051_v8, %v3059_v35  ;;  %2524 = vst.msk [vmem:[#allocation3 + $0x48] sm:$0xff] %vm1615_vm12, %v7244_v58  ;;  %v1856_v10 = vrot.slane %v1854_v12, 3  ;;  %v3062_v43 = vshrl.u32 %v2999_v47, 16  ;;  %v7413_v59 = vpop.permute.xlu1 %1597 }
 0x127   : > { %3316 = vst.msk [vmem:[#allocation3 + $0x8] sm:$0xff] %vm1067_vm10, %v3060_v46  ;;  %v1859_v52 = vrot.slane %v1857_v45, 4  ;;  %v1864_v13 = vrot.slane %v1862_v4, 3  ;;  %v3065_v29 = vshll.u32 %v2999_v47, 16  ;;  %v3070_v53 = vshrl.u32 %v3000_v9, 16  ;;  %v7418_v0 = vld [vmem:[#allocation3 + $0x50] sm:$0xff] }
 0x128   : > { %v1867_v14 = vrot.slane %v1865_v39, 4  ;;  %3492 = vst.msk [vmem:[#allocation3 + $0x8] sm:$0xff] %vm1245_vm11, %v7235_v23  ;;  %v771_v36 = vld [vmem:[#allocation2 + $0xc0] sm:$0xf8]  ;;  %v3064_v15 = vrot.slane %v3062_v43, 3  ;;  %v3073_v51 = vshll.u32 %v3000_v9, 16  ;;  %v1015_v23 = vor.u32 %v7396_v34, %v7392_v6 }
 0x129   : > { %v1879_v58 = vshrl.u32 %v7398_v49, 16  ;;  %3860 = vst.msk [vmem:[#allocation3 + $0x8] sm:$0xff] %vm1615_vm12, %v7253_v61  ;;  %v984_v27 = vshrl.u32 %v771_v36, 16  ;;  %v987_v22 = vshll.u32 %v771_v36, 16  ;;  %v1860_v38 = vor.u32 %v1859_v52, %v1856_v10  ;;  %v1673_v57 = vld [vmem:[#allocation2 + $0xc0] sm:$0xf8] }
 0x12a   : > { %v1868_v40 = vor.u32 %v1867_v14, %v1864_v13  ;;  %v773_v41 = vld [vmem:[#allocation2 + $0xd0] sm:$0xf8]  ;;  %v3875_v8 = vld [vmem:[#allocation3] sm:$0xff]  ;;  %v3067_v50 = vrot.slane %v3065_v29, 4  ;;  %v3072_v3 = vrot.slane %v3070_v53, 3  ;;  %v3075_v28 = vrot.slane %v3073_v51, 4  ;;  %v7422_v45 = vpop.permute.xlu1 %3451 }
 0x12b   : > { %v986_v19 = vrot.slane %v984_v27, 3  ;;  %v989_v42 = vrot.slane %v987_v22, 4  ;;  %v1001_v61 = vshrl.u32 %v773_v41, 16  ;;  %v1004_v11 = vshll.u32 %v773_v41, 16  ;;  %6292 = vmatprep.mubr.msk.bf16.mxu0 %vm2559_vm13, %v3875_v8  ;;  %v3001_v33 = vld [vmem:[#allocation2 + $0x50] sm:$0xf8] }
 0x12c   : > { %v1869_v26 = vsel %vm451_vm3, %v1860_v38, %v1868_v40  ;;  %v3068_v62 = vor.u32 %v3067_v50, %v3064_v15  ;;  %v3076_v30 = vor.u32 %v3075_v28, %v3072_v3  ;;  %v1871_v63 = vshrl.u32 %v1673_v57, 16  ;;  %v3002_v56 = vld [vmem:[#allocation2 + $0x58] sm:$0xf]  ;;  %v438_v34 = vld [vmem:[#allocation2 + $0xe0] sm:$0x8] }
 0x12d   : > { %v990_v47 = vor.u32 %v989_v42, %v986_v19  ;;  %v1003_v35 = vrot.slane %v1001_v61, 3  ;;  %v1006_v6 = vrot.slane %v1004_v11, 4  ;;  %v2540_v12 = vld [vmem:[#allocation3 + $0x48] sm:$0xff]  ;;  %1981 = vst.msk [vmem:[#allocation3 + $0x50] sm:$0xff] %vm1067_vm10, %v1869_v26  ;;  %v1874_v9 = vshll.u32 %v1673_v57, 16 }
 0x12e   : > { %6237 = vmatmul.mubr.msk.bf16.gmra.mrb[16].mxu1 %vm2559_vm13, %v2540_v12  ;;  %2157 = vst.msk [vmem:[#allocation3 + $0x50] sm:$0xff] %vm1245_vm11, %v7289_v17  ;;  %v3077_v4 = vsel %vm451_vm3, %v3068_v62, %v3076_v30  ;;  %v1873_v39 = vrot.slane %v1871_v63, 3  ;;  %v1881_v46 = vrot.slane %v1879_v58, 3  ;;  %v1882_v10 = vshll.u32 %v7398_v49, 16  ;;  %v776_v43 = vld [vmem:[#allocation2 + $0xe8] sm:$0xf]  ;;  %v7433_v17 = vpop.permute.xlu0 %2123  ;;  %v7453_v28 = vpop.permute.xlu1 %2491 }
 0x12f   : > { %v999_v52 = vsel %vm451_vm3, %v990_v47, %v998_v7  ;;  %v1007_v13 = vor.u32 %v1006_v6, %v1003_v35  ;;  %3317 = vst.msk [vmem:[#allocation3 + $0x10] sm:$0xff] %vm1067_vm10, %v3077_v4  ;;  %v1876_v14 = vrot.slane %v1874_v9, 4  ;;  %v3079_v29 = vshrl.u32 %v3001_v33, 16  ;;  %v441_v36 = vld [vmem:[#allocation2 + $0xf0] sm:$0x8] }
 0x130   : > { %2525 = vst.msk [vmem:[#allocation3 + $0x50] sm:$0xff] %vm1615_vm12, %v7315_v2  ;;  %v778_v15 = vld [vmem:[#allocation2 + $0xf8] sm:$0xf]  ;;  %v3876_v53 = vld [vmem:[#allocation3 + $0x8] sm:$0xff]  ;;  %v1884_v49 = vrot.slane %v1882_v10, 4  ;;  %v3082_v7 = vshll.u32 %v3001_v33, 16 }
 0x131   : > { %1080 = vst.msk [vmem:[#allocation3 + $0x60] sm:$0xff] %vm1067_vm10, %v999_v52  ;;  %v3087_v51 = vshrl.u32 %v3002_v56, 16  ;;  %v3090_v58 = vshll.u32 %v3002_v56, 16  ;;  %v1016_v2 = vsel %vm451_vm3, %v1007_v13, %v1015_v23  ;;  %6293 = vmatmul.mubr.msk.bf16.vlgmr.msra.gmra.mrb[0].mxu0 %vm2559_vm13, %v3876_v53  ;;  %v1877_v27 = vor.u32 %v1876_v14, %v1873_v39  ;;  %v1675_v41 = vld [vmem:[#allocation2 + $0xd0] sm:$0xf8] }
 0x132   : > { %3493 = vst.msk [vmem:[#allocation3 + $0x10] sm:$0xff] %vm1245_vm11, %v7298_v44  ;;  %1258 = vst.msk [vmem:[#allocation3 + $0x60] sm:$0xff] %vm1245_vm11, %v7258_v21  ;;  %v3081_v22 = vrot.slane %v3079_v29, 3  ;;  %v439_v38 = vsel %vm6832_vm9, 0, %v438_v34  ;;  %v1885_v44 = vor.u32 %v1884_v49, %v1881_v46  ;;  %v3084_v40 = vrot.slane %v3082_v7, 4  ;;  %v7467_v33 = vpop.permute.xlu0 %2125 }
 0x133   : > { %3861 = vst.msk [vmem:[#allocation3 + $0x10] sm:$0xff] %vm1615_vm12, %v7334_v60  ;;  %1628 = vst.msk [vmem:[#allocation3 + $0x60] sm:$0xff] %vm1615_vm12, %v7269_v54  ;;  %v3089_v21 = vrot.slane %v3087_v51, 3  ;;  %v3092_v57 = vrot.slane %v3090_v58, 4  ;;  %v1026_v23 = vshrl.u32 %v776_v43, 16  ;;  %v1029_v8 = vshll.u32 %v776_v43, 16 }
 0x134   : > { %1081 = vst.msk [vmem:[#allocation3 + $0x68] sm:$0xff] %vm1067_vm10, %v1016_v2  ;;  %440 = vst [vmem:[#allocation2 + $0xe0] sm:$0x8] %v439_v38  ;;  %v442_v60 = vsel %vm6832_vm9, 0, %v441_v36  ;;  %v1043_v50 = vshrl.u32 %v778_v15, 16  ;;  %v7457_v54 = vld [vmem:[#allocation3 + $0x58] sm:$0xff]  ;;  %v1886_v19 = vsel %vm451_vm3, %v1877_v27, %v1885_v44  ;;  %v3085_v42 = vor.u32 %v3084_v40, %v3081_v22 }
 0x135   : > { %1259 = vst.msk [vmem:[#allocation3 + $0x68] sm:$0xff] %vm1245_vm11, %v7266_v32  ;;  %v1676_v3 = vld [vmem:[#allocation2 + $0xd8] sm:$0xf]  ;;  %v3093_v61 = vor.u32 %v3092_v57, %v3089_v21  ;;  %443 = vst [vmem:[#allocation2 + $0xf0] sm:$0x8] %v442_v60  ;;  %v1046_v32 = vshll.u32 %v778_v15, 16 }
 0x136   : > { %1629 = vst.msk [vmem:[#allocation3 + $0x68] sm:$0xff] %vm1615_vm12, %v7279_v25  ;;  %v3003_v11 = vld [vmem:[#allocation2 + $0x60] sm:$0xf8]  ;;  %v7461_v26 = vrot.slane %v1026_v23, 3  ;;  %v7463_v62 = vrot.slane %v1029_v8, 4  ;;  %v7465_v30 = vrot.slane %v1043_v50, 3  ;;  %v7489_v38 = vpop.permute.xlu0 %3453 }
 0x137   : > { %1982 = vst.msk [vmem:[#allocation3 + $0x58] sm:$0xff] %vm1067_vm10, %v1886_v19  ;;  %v1888_v63 = vshrl.u32 %v1675_v41, 16  ;;  %v3094_v25 = vsel %vm451_vm3, %v3085_v42, %v3093_v61  ;;  %v2541_v56 = vld [vmem:[#allocation3 + $0x50] sm:$0xff]  ;;  %v7472_v47 = vrot.slane %v1046_v32, 4  ;;  %v1891_v35 = vshll.u32 %v1675_v41, 16 }
 0x138   : > { %2158 = vst.msk [vmem:[#allocation3 + $0x58] sm:$0xff] %vm1245_vm11, %v7313_v16  ;;  %v1896_v6 = vshrl.u32 %v1676_v3, 16  ;;  %v3004_v12 = vld [vmem:[#allocation2 + $0x68] sm:$0xf]  ;;  %6240 = vmatprep.mubr.msk.bf16.mxu1 %vm2559_vm13, %v2541_v56  ;;  %v1899_v34 = vshll.u32 %v1676_v3, 16  ;;  %v3096_v4 = vshrl.u32 %v3003_v11, 16  ;;  %v1032_v16 = vor.u32 %v7463_v62, %v7461_v26 }
 0x139   : > { %3318 = vst.msk [vmem:[#allocation3 + $0x18] sm:$0xff] %vm1067_vm10, %v3094_v25  ;;  %v1890_v9 = vrot.slane %v1888_v63, 3  ;;  %v1893_v46 = vrot.slane %v1891_v35, 4  ;;  %v3099_v43 = vshll.u32 %v3003_v11, 16  ;;  %v3104_v29 = vshrl.u32 %v3004_v12, 16 }
 0x13a   : > { %2526 = vst.msk [vmem:[#allocation3 + $0x58] sm:$0xff] %vm1615_vm12, %v7359_v20  ;;  %v3877_v39 = vld [vmem:[#allocation3 + $0x10] sm:$0xff]  ;;  %v1898_v10 = vrot.slane %v1896_v6, 3  ;;  %v1049_v20 = vor.u32 %v7472_v47, %v7465_v30  ;;  %v1901_v13 = vrot.slane %v1899_v34, 4  ;;  %v3098_v14 = vrot.slane %v3096_v4, 3  ;;  %v7491_v23 = vld [vmem:[#allocation3 + $0x60] sm:$0xff] }
 0x13b   : > { %3494 = vst.msk [vmem:[#allocation3 + $0x18] sm:$0xff] %vm1245_vm11, %v7332_v48  ;;  %v775_v52 = vld [vmem:[#allocation2 + $0xe0] sm:$0xf8]  ;;  %6296 = vmatprep.mubr.msk.bf16.mxu0 %vm2559_vm13, %v3877_v39  ;;  %v7487_v48 = vpop.permute.xlu1 %3819  ;;  %v1894_v53 = vor.u32 %v1893_v46, %v1890_v9  ;;  %v3101_v49 = vrot.slane %v3099_v43, 4  ;;  %v1678_v51 = vld [vmem:[#allocation2 + $0xe8] sm:$0xf] }
 0x13c   : > { %3862 = vst.msk [vmem:[#allocation3 + $0x18] sm:$0xff] %vm1615_vm12, %v7361_v31  ;;  %v1018_v36 = vshrl.u32 %v775_v52, 16  ;;  %v1021_v15 = vshll.u32 %v775_v52, 16  ;;  %v1677_v7 = vld [vmem:[#allocation2 + $0xe0] sm:$0xf8]  ;;  %v1902_v2 = vor.u32 %v1901_v13, %v1898_v10  ;;  %v3106_v31 = vrot.slane %v3104_v29, 3  ;;  %v2494_v10 = vpop.permute.xlu0 %2493 }
 0x13d   : > { %v777_v58 = vld [vmem:[#allocation2 + $0xf0] sm:$0xf8]  ;;  %v3107_v27 = vshll.u32 %v3004_v12, 16  ;;  %v1905_v22 = vshrl.u32 %v1677_v7, 16  ;;  %v3102_v60 = vor.u32 %v3101_v49, %v3098_v14  ;;  %v1908_v11 = vshll.u32 %v1677_v7, 16 }
 0x13e   : > { %v1020_v44 = vrot.slane %v1018_v36, 3  ;;  %v1023_v40 = vrot.slane %v1021_v15, 4  ;;  %v1035_v21 = vshrl.u32 %v777_v58, 16  ;;  %v1038_v57 = vshll.u32 %v777_v58, 16  ;;  %v3005_v41 = vld [vmem:[#allocation2 + $0x70] sm:$0xf8] }
 0x13f   : > { %v1903_v8 = vsel %vm451_vm3, %v1894_v53, %v1902_v2  ;;  %v3109_v50 = vrot.slane %v3107_v27, 4  ;;  %v1907_v3 = vrot.slane %v1905_v22, 3  ;;  %v1913_v62 = vshrl.u32 %v1678_v51, 16  ;;  %v3006_v63 = vld [vmem:[#allocation2 + $0x78] sm:$0xf]  ;;  %v7498_v56 = vpop.permute.xlu1 %3821 }
 0x140   : > { %v1024_v19 = vor.u32 %v1023_v40, %v1020_v44  ;;  %v1037_v42 = vrot.slane %v1035_v21, 3  ;;  %v1040_v61 = vrot.slane %v1038_v57, 4  ;;  %1983 = vst.msk [vmem:[#allocation3 + $0x60] sm:$0xff] %vm1067_vm10, %v1903_v8  ;;  %v1916_v30 = vshll.u32 %v1678_v51, 16  ;;  %v1679_v34 = vld [vmem:[#allocation2 + $0xf0] sm:$0xf8]  ;;  %v2128_v8 = vpop.permute.xlu0 %2127 }
 0x141   : > { %v2542_v32 = vld [vmem:[#allocation3 + $0x58] sm:$0xff]  ;;  %2159 = vst.msk [vmem:[#allocation3 + $0x60] sm:$0xff] %vm1245_vm11, %v7433_v17  ;;  %v3110_v26 = vor.u32 %v3109_v50, %v3106_v31  ;;  %v3113_v25 = vshrl.u32 %v3005_v41, 16  ;;  %v1910_v12 = vrot.slane %v1908_v11, 4  ;;  %v3116_v9 = vshll.u32 %v3005_v41, 16 }
 0x142   : > { %6241 = vmatmul.mubr.msk.bf16.gmra.mrb[20].mxu1 %vm2559_vm13, %v2542_v32  ;;  %v1033_v47 = vsel %vm451_vm3, %v1024_v19, %v1032_v16  ;;  %v1041_v35 = vor.u32 %v1040_v61, %v1037_v42  ;;  %2527 = vst.msk [vmem:[#allocation3 + $0x60] sm:$0xff] %vm1615_vm12, %v7453_v28  ;;  %v1915_v4 = vrot.slane %v1913_v62, 3  ;;  %v1918_v39 = vrot.slane %v1916_v30, 4  ;;  %v1680_v43 = vld [vmem:[#allocation2 + $0xf8] sm:$0xf] }
 0x143   : > { %v3878_v6 = vld [vmem:[#allocation3 + $0x18] sm:$0xff]  ;;  %1082 = vst.msk [vmem:[#allocation3 + $0x70] sm:$0xff] %vm1067_vm10, %v1033_v47  ;;  %v3111_v17 = vsel %vm451_vm3, %v3102_v60, %v3110_v26  ;;  %v3115_v46 = vrot.slane %v3113_v25, 3  ;;  %v1911_v28 = vor.u32 %v1910_v12, %v1907_v3  ;;  %v3118_v52 = vrot.slane %v3116_v9, 4  ;;  %v7515_v53 = vpop.permute.xlu1 %3455  ;;  %v3008_v51 = vld [vmem:[#allocation2 + $0x88] sm:$0xf] }
 0x144   : > { %6297 = vmatmul.mubr.msk.bf16.gmra.mrb[4].mxu0 %vm2559_vm13, %v3878_v6  ;;  %1260 = vst.msk [vmem:[#allocation3 + $0x70] sm:$0xff] %vm1245_vm11, %v7387_v37  ;;  %v1050_v16 = vsel %vm451_vm3, %v1041_v35, %v1049_v20  ;;  %v3121_v13 = vshrl.u32 %v3006_v63, 16  ;;  %v1919_v14 = vor.u32 %v1918_v39, %v1915_v4  ;;  %v3124_v29 = vshll.u32 %v3006_v63, 16  ;;  %v3007_v37 = vld [vmem:[#allocation2 + $0x80] sm:$0xf8] }
 0x145   : > { %3319 = vst.msk [vmem:[#allocation3 + $0x20] sm:$0xff] %vm1067_vm10, %v3111_v17  ;;  %1083 = vst.msk [vmem:[#allocation3 + $0x78] sm:$0xff] %vm1067_vm10, %v1050_v16  ;;  %v1922_v36 = vshrl.u32 %v1679_v34, 16  ;;  %v1925_v15 = vshll.u32 %v1679_v34, 16  ;;  %v3119_v20 = vor.u32 %v3118_v52, %v3115_v46  ;;  %v1930_v7 = vshrl.u32 %v1680_v43, 16 }
 0x146   : > { %1630 = vst.msk [vmem:[#allocation3 + $0x70] sm:$0xff] %vm1615_vm12, %v7411_v55  ;;  %v3123_v49 = vrot.slane %v3121_v13, 3  ;;  %v1933_v55 = vshll.u32 %v1680_v43, 16  ;;  %v1920_v58 = vsel %vm451_vm3, %v1911_v28, %v1919_v14  ;;  %v3126_v2 = vrot.slane %v3124_v29, 4  ;;  %v444_v22 = vld [vmem:[#allocation2 + $0x100] sm:$0x8] }
 0x147   : > { %3495 = vst.msk [vmem:[#allocation3 + $0x20] sm:$0xff] %vm1245_vm11, %v7422_v45  ;;  %1261 = vst.msk [vmem:[#allocation3 + $0x78] sm:$0xff] %vm1245_vm11, %v7389_v18  ;;  %v7523_v45 = vld [vmem:[#allocation3 + $0x68] sm:$0xff]  ;;  %v1924_v31 = vrot.slane %v1922_v36, 3  ;;  %v1927_v27 = vrot.slane %v1925_v15, 4  ;;  %v1932_v18 = vrot.slane %v1930_v7, 3  ;;  %v2496_v63 = vpop.permute.xlu1 %2495 }
 0x148   : > { %3863 = vst.msk [vmem:[#allocation3 + $0x20] sm:$0xff] %vm1615_vm12, %v7487_v48  ;;  %1631 = vst.msk [vmem:[#allocation3 + $0x78] sm:$0xff] %vm1615_vm12, %v7413_v59  ;;  %v1935_v44 = vrot.slane %v1933_v55, 4  ;;  %v3130_v40 = vshrl.u32 %v3007_v37, 16  ;;  %v3133_v48 = vshll.u32 %v3007_v37, 16  ;;  %v3127_v57 = vor.u32 %v3126_v2, %v3123_v49 }
 0x149   : > { %1984 = vst.msk [vmem:[#allocation3 + $0x68] sm:$0xff] %vm1067_vm10, %v1920_v58  ;;  %v1682_v21 = vld [vmem:[#allocation2 + $0x108] sm:$0xf]  ;;  %v2543_v59 = vld [vmem:[#allocation3 + $0x60] sm:$0xff]  ;;  %v1928_v41 = vor.u32 %v1927_v27, %v1924_v31  ;;  %v3138_v60 = vshrl.u32 %v3008_v51, 16  ;;  %v3141_v50 = vshll.u32 %v3008_v51, 16  ;;  %v7550_v14 = vpop.permute.xlu0 %2129 }
 0x14a   : > { %2160 = vst.msk [vmem:[#allocation3 + $0x68] sm:$0xff] %vm1245_vm11, %v7467_v33  ;;  %v3009_v3 = vld [vmem:[#allocation2 + $0x90] sm:$0xf8]  ;;  %6244 = vmatprep.mubr.msk.bf16.mxu1 %vm2559_vm13, %v2543_v59  ;;  %v1936_v19 = vor.u32 %v1935_v44, %v1932_v18  ;;  %v3132_v42 = vrot.slane %v3130_v40, 3  ;;  %v3135_v61 = vrot.slane %v3133_v48, 4  ;;  %v445_v32 = vsel %vm6832_vm9, 0, %v444_v22 }
 0x14b   : > { %2528 = vst.msk [vmem:[#allocation3 + $0x68] sm:$0xff] %vm1615_vm12, %v2494_v10  ;;  %v3010_v11 = vld [vmem:[#allocation2 + $0x98] sm:$0xf]  ;;  %v3128_v33 = vsel %vm451_vm3, %v3119_v20, %v3127_v57  ;;  %v3140_v26 = vrot.slane %v3138_v60, 3  ;;  %v3143_v62 = vrot.slane %v3141_v50, 4  ;;  %v1947_v30 = vshrl.u32 %v1682_v21, 16  ;;  %v3824_v15 = vpop.permute.xlu1 %3823 }
 0x14c   : > { %446 = vst [vmem:[#allocation2 + $0x100] sm:$0x8] %v445_v32  ;;  %v3011_v25 = vld [vmem:[#allocation2 + $0xa0] sm:$0xf8]  ;;  %3320 = vst.msk [vmem:[#allocation3 + $0x28] sm:$0xff] %vm1067_vm10, %v3128_v33  ;;  %v1937_v35 = vsel %vm451_vm3, %v1928_v41, %v1936_v19  ;;  %v3136_v6 = vor.u32 %v3135_v61, %v3132_v42  ;;  %v1950_v12 = vshll.u32 %v1682_v21, 16 }
 0x14d   : > { %v7535_v47 = vld [vmem:[#allocation3 + $0x70] sm:$0xff]  ;;  %v3147_v9 = vshrl.u32 %v3009_v3, 16  ;;  %3496 = vst.msk [vmem:[#allocation3 + $0x28] sm:$0xff] %vm1245_vm11, %v7489_v38  ;;  %v3144_v34 = vor.u32 %v3143_v62, %v3140_v26  ;;  %v7541_v4 = vrot.slane %v1947_v30, 3  ;;  %v3150_v39 = vshll.u32 %v3009_v3, 16 }
 0x14e   : > { %1985 = vst.msk [vmem:[#allocation3 + $0x70] sm:$0xff] %vm1067_vm10, %v1937_v35  ;;  %v3155_v46 = vshrl.u32 %v3010_v11, 16  ;;  %v3012_v10 = vld [vmem:[#allocation2 + $0xa8] sm:$0xf]  ;;  %v7547_v43 = vrot.slane %v1950_v12, 4  ;;  %v3158_v38 = vshll.u32 %v3010_v11, 16  ;;  %v3458_v11 = vpop.permute.xlu0 %3457 }
 0x14f   : > { %v3879_v17 = vld [vmem:[#allocation3 + $0x20] sm:$0xff]  ;;  %3864 = vst.msk [vmem:[#allocation3 + $0x28] sm:$0xff] %vm1615_vm12, %v7498_v56  ;;  %v3149_v16 = vrot.slane %v3147_v9, 3  ;;  %v3164_v28 = vshrl.u32 %v3011_v25, 16  ;;  %v3013_v52 = vld [vmem:[#allocation2 + $0xb0] sm:$0xf8]  ;;  %v3145_v13 = vsel %vm451_vm3, %v3136_v6, %v3144_v34 }
 0x150   : > { %2161 = vst.msk [vmem:[#allocation3 + $0x70] sm:$0xff] %vm1245_vm11, %v2128_v8  ;;  %6300 = vmatprep.mubr.msk.bf16.mxu0 %vm2559_vm13, %v3879_v17  ;;  %v3152_v29 = vrot.slane %v3150_v39, 4  ;;  %v3157_v36 = vrot.slane %v3155_v46, 3  ;;  %v3167_v56 = vshll.u32 %v3011_v25, 16  ;;  %v3014_v37 = vld [vmem:[#allocation2 + $0xb8] sm:$0xf]  ;;  %v1953_v20 = vor.u32 %v7547_v43, %v7541_v4 }
 0x151   : > { %2529 = vst.msk [vmem:[#allocation3 + $0x70] sm:$0xff] %vm1615_vm12, %v2496_v63  ;;  %v3160_v49 = vrot.slane %v3158_v38, 4  ;;  %v3166_v7 = vrot.slane %v3164_v28, 3  ;;  %v3172_v55 = vshrl.u32 %v3012_v10, 16  ;;  %v3175_v31 = vshll.u32 %v3012_v10, 16  ;;  %v7568_v28 = vld [vmem:[#allocation3 + $0x78] sm:$0xff] }
 0x152   : > { %3321 = vst.msk [vmem:[#allocation3 + $0x30] sm:$0xff] %vm1067_vm10, %v3145_v13  ;;  %v2544_v51 = vld [vmem:[#allocation3 + $0x68] sm:$0xff]  ;;  %v3153_v58 = vor.u32 %v3152_v29, %v3149_v16  ;;  %v3169_v2 = vrot.slane %v3167_v56, 4  ;;  %v3181_v27 = vshrl.u32 %v3013_v52, 16  ;;  %v3015_v22 = vld [vmem:[#allocation2 + $0xc0] sm:$0xf8] }
 0x153   : > { %3497 = vst.msk [vmem:[#allocation3 + $0x30] sm:$0xff] %vm1245_vm11, %v7515_v53  ;;  %v1681_v18 = vld [vmem:[#allocation2 + $0x100] sm:$0xf8]  ;;  %6245 = vmatmul.mubr.msk.bf16.gmra.mrb[24].mxu1 %vm2559_vm13, %v2544_v51  ;;  %v3161_v44 = vor.u32 %v3160_v49, %v3157_v36  ;;  %v3174_v40 = vrot.slane %v3172_v55, 3  ;;  %v3184_v48 = vshll.u32 %v3013_v52, 16  ;;  %v3189_v21 = vshrl.u32 %v3014_v37, 16  ;;  %v3826_v9 = vpop.permute.xlu1 %3825 }
 0x154   : > { %3865 = vst.msk [vmem:[#allocation3 + $0x30] sm:$0xff] %vm1615_vm12, %v3824_v15  ;;  %v1939_v57 = vshrl.u32 %v1681_v18, 16  ;;  %v1942_v59 = vshll.u32 %v1681_v18, 16  ;;  %v3170_v41 = vor.u32 %v3169_v2, %v3166_v7  ;;  %v3177_v8 = vrot.slane %v3175_v31, 4  ;;  %v3016_v53 = vld [vmem:[#allocation2 + $0xc8] sm:$0xf] }
 0x155   : > { %v3162_v60 = vsel %vm451_vm3, %v3153_v58, %v3161_v44  ;;  %v3183_v50 = vrot.slane %v3181_v27, 3  ;;  %v3186_v3 = vrot.slane %v3184_v48, 4  ;;  %v3191_v19 = vrot.slane %v3189_v21, 3  ;;  %v3017_v62 = vld [vmem:[#allocation2 + $0xd0] sm:$0xf8] }
 0x156   : > { %v1941_v42 = vrot.slane %v1939_v57, 3  ;;  %v1944_v61 = vrot.slane %v1942_v59, 4  ;;  %v3880_v32 = vld [vmem:[#allocation3 + $0x28] sm:$0xff]  ;;  %3322 = vst.msk [vmem:[#allocation3 + $0x38] sm:$0xff] %vm1067_vm10, %v3162_v60  ;;  %v3178_v33 = vor.u32 %v3177_v8, %v3174_v40  ;;  %v3192_v26 = vshll.u32 %v3014_v37, 16 }
 0x157   : > { %6301 = vmatmul.mubr.msk.bf16.gmra.mrb[8].mxu0 %vm2559_vm13, %v3880_v32  ;;  %3498 = vst.msk [vmem:[#allocation3 + $0x38] sm:$0xff] %vm1245_vm11, %v3458_v11  ;;  %v3187_v63 = vor.u32 %v3186_v3, %v3183_v50  ;;  %v3198_v25 = vshrl.u32 %v3015_v22, 16  ;;  %v3201_v35 = vshll.u32 %v3015_v22, 16  ;;  %v3206_v6 = vshrl.u32 %v3016_v53, 16  ;;  %v3018_v39 = vld [vmem:[#allocation2 + $0xd8] sm:$0xf]  ;;  %v3462_v58 = vpop.permute.xlu1 %3461 }
 0x158   : > { %v2545_v30 = vld [vmem:[#allocation3 + $0x70] sm:$0xff]  ;;  %v1945_v12 = vor.u32 %v1944_v61, %v1941_v42  ;;  %v3179_v34 = vsel %vm451_vm3, %v3170_v41, %v3178_v33  ;;  %v3194_v17 = vrot.slane %v3192_v26, 4  ;;  %v3209_v4 = vshll.u32 %v3016_v53, 16  ;;  %3866 = vst.msk [vmem:[#allocation3 + $0x38] sm:$0xff] %vm1615_vm12, %v3826_v9  ;;  %v3019_v38 = vld [vmem:[#allocation2 + $0xe0] sm:$0xf8] }
 0x159   : > { %6248 = vmatprep.mubr.msk.bf16.mxu1 %vm2559_vm13, %v2545_v30  ;;  %3323 = vst.msk [vmem:[#allocation3 + $0x40] sm:$0xff] %vm1067_vm10, %v3179_v34  ;;  %v3200_v46 = vrot.slane %v3198_v25, 3  ;;  %v3203_v10 = vrot.slane %v3201_v35, 4  ;;  %v3208_v43 = vrot.slane %v3206_v6, 3  ;;  %v3215_v16 = vshrl.u32 %v3017_v62, 16 }
 0x15a   : > { %v1954_v52 = vsel %vm451_vm3, %v1945_v12, %v1953_v20  ;;  %v3195_v13 = vor.u32 %v3194_v17, %v3191_v19  ;;  %v3211_v36 = vrot.slane %v3209_v4, 4  ;;  %v3218_v15 = vshll.u32 %v3017_v62, 16  ;;  %v3020_v56 = vld [vmem:[#allocation2 + $0xe8] sm:$0xf]  ;;  %v3021_v27 = vld [vmem:[#allocation2 + $0xf0] sm:$0xf8]  ;;  %v2498_v21 = vpop.permute.xlu0 %2497 }
 0x15b   : > { %v3881_v29 = vld [vmem:[#allocation3 + $0x30] sm:$0xff]  ;;  %1986 = vst.msk [vmem:[#allocation3 + $0x78] sm:$0xff] %vm1067_vm10, %v1954_v52  ;;  %v3204_v37 = vor.u32 %v3203_v10, %v3200_v46  ;;  %v3217_v49 = vrot.slane %v3215_v16, 3  ;;  %v3223_v7 = vshrl.u32 %v3018_v39, 16  ;;  %v3226_v55 = vshll.u32 %v3018_v39, 16 }
 0x15c   : > { %6304 = vmatprep.mubr.msk.bf16.mxu0 %vm2559_vm13, %v3881_v29  ;;  %2162 = vst.msk [vmem:[#allocation3 + $0x78] sm:$0xff] %vm1245_vm11, %v7550_v14  ;;  %v3196_v51 = vsel %vm451_vm3, %v3187_v63, %v3195_v13  ;;  %v3212_v20 = vor.u32 %v3211_v36, %v3208_v43  ;;  %v3220_v2 = vrot.slane %v3218_v15, 4  ;;  %v3232_v31 = vshrl.u32 %v3019_v38, 16  ;;  %v3022_v48 = vld [vmem:[#allocation2 + $0xf8] sm:$0xf] }
 0x15d   : > { %3324 = vst.msk [vmem:[#allocation3 + $0x48] sm:$0xff] %vm1067_vm10, %v3196_v51  ;;  %v3225_v22 = vrot.slane %v3223_v7, 3  ;;  %v3228_v18 = vrot.slane %v3226_v55, 4  ;;  %v3235_v44 = vshll.u32 %v3019_v38, 16  ;;  %v3240_v40 = vshrl.u32 %v3020_v56, 16 }
 0x15e   : > { %3500 = vst.msk [vmem:[#allocation3 + $0x48] sm:$0xff] %vm1245_vm11, %v3462_v58  ;;  %v3213_v57 = vsel %vm451_vm3, %v3204_v37, %v3212_v20  ;;  %v3221_v14 = vor.u32 %v3220_v2, %v3217_v49  ;;  %v3234_v59 = vrot.slane %v3232_v31, 3  ;;  %v3243_v41 = vshll.u32 %v3020_v56, 16  ;;  %v3023_v8 = vld [vmem:[#allocation2 + $0x100] sm:$0xf8]  ;;  %v3460_v35 = vpop.permute.xlu0 %3459 }
 0x15f   : > { %2530 = vst.msk [vmem:[#allocation3 + $0x78] sm:$0xff] %vm1615_vm12, %v2498_v21  ;;  %v3229_v53 = vor.u32 %v3228_v18, %v3225_v22  ;;  %v3237_v60 = vrot.slane %v3235_v44, 4  ;;  %v3242_v50 = vrot.slane %v3240_v40, 3  ;;  %v3249_v3 = vshrl.u32 %v3021_v27, 16  ;;  %v3024_v19 = vld [vmem:[#allocation2 + $0x108] sm:$0xf] }
 0x160   : > { %3325 = vst.msk [vmem:[#allocation3 + $0x50] sm:$0xff] %vm1067_vm10, %v3213_v57  ;;  %v3882_v42 = vld [vmem:[#allocation3 + $0x38] sm:$0xff]  ;;  %v3245_v61 = vrot.slane %v3243_v41, 4  ;;  %v3252_v32 = vshll.u32 %v3021_v27, 16  ;;  %v3257_v11 = vshrl.u32 %v3022_v48, 16  ;;  %v3260_v33 = vshll.u32 %v3022_v48, 16 }
 0x161   : > { %6305 = vmatmul.mubr.msk.bf16.gmra.mrb[12].mxu0 %vm2559_vm13, %v3882_v42  ;;  %v3230_v26 = vsel %vm451_vm3, %v3221_v14, %v3229_v53  ;;  %v3238_v62 = vor.u32 %v3237_v60, %v3234_v59  ;;  %v3251_v30 = vrot.slane %v3249_v3, 3  ;;  %v3266_v63 = vshrl.u32 %v3023_v8, 16  ;;  %v447_v25 = vld [vmem:[#allocation2 + $0x110] sm:$0x8]  ;;  %3499 = vst.msk [vmem:[#allocation3 + $0x40] sm:$0xff] %vm1245_vm11, %v3460_v35 }
 0x162   : > { %3326 = vst.msk [vmem:[#allocation3 + $0x58] sm:$0xff] %vm1067_vm10, %v3230_v26  ;;  %v3246_v6 = vor.u32 %v3245_v61, %v3242_v50  ;;  %v3254_v12 = vrot.slane %v3252_v32, 4  ;;  %v3259_v9 = vrot.slane %v3257_v11, 3  ;;  %v3262_v34 = vrot.slane %v3260_v33, 4  ;;  %v3026_v52 = vld [vmem:[#allocation2 + $0x118] sm:$0xf]  ;;  %v3828_v15 = vpop.permute.xlu0 %3827 }
 0x163   : > { %v3268_v17 = vrot.slane %v3266_v63, 3  ;;  %v3269_v4 = vshll.u32 %v3023_v8, 16  ;;  %v3274_v39 = vshrl.u32 %v3024_v19, 16  ;;  %v3277_v46 = vshll.u32 %v3024_v19, 16  ;;  %3867 = vst.msk [vmem:[#allocation3 + $0x40] sm:$0xff] %vm1615_vm12, %v3828_v15 }
 0x164   : > { %v3247_v10 = vsel %vm451_vm3, %v3238_v62, %v3246_v6  ;;  %v3255_v43 = vor.u32 %v3254_v12, %v3251_v30  ;;  %v3263_v16 = vor.u32 %v3262_v34, %v3259_v9  ;;  %v448_v38 = vsel %vm6832_vm9, 0, %v447_v25 }
 0x165   : > { %3327 = vst.msk [vmem:[#allocation3 + $0x60] sm:$0xff] %vm1067_vm10, %v3247_v10  ;;  %v3271_v13 = vrot.slane %v3269_v4, 4  ;;  %v3276_v29 = vrot.slane %v3274_v39, 3  ;;  %v3279_v36 = vrot.slane %v3277_v46, 4  ;;  %449 = vst [vmem:[#allocation2 + $0x110] sm:$0x8] %v448_v38  ;;  %v3830_v51 = vpop.permute.xlu1 %3829 }
 0x166   : > { %v2546_v56 = vld [vmem:[#allocation3 + $0x78] sm:$0xff]  ;;  %v3264_v37 = vsel %vm451_vm3, %v3255_v43, %v3263_v16  ;;  %v3291_v7 = vshrl.u32 %v3026_v52, 16  ;;  %v3294_v55 = vshll.u32 %v3026_v52, 16  ;;  %3868 = vst.msk [vmem:[#allocation3 + $0x48] sm:$0xff] %vm1615_vm12, %v3830_v51  ;;  %v3464_v20 = vpop.permute.xlu0 %3463  ;;  %v7655_v10 = vld [vmem:[%s8146_s4] ss:$0 sm:$0xff] }
 0x167   : > { %6249 = vmatmul.mubr.msk.bf16.gmra.mrb[28].mxu1 %vm2559_vm13, %v2546_v56  ;;  %3328 = vst.msk [vmem:[#allocation3 + $0x68] sm:$0xff] %vm1067_vm10, %v3264_v37  ;;  %v3272_v49 = vor.u32 %v3271_v13, %v3268_v17  ;;  %v3280_v1 = vor.u32 %v3279_v36, %v3276_v29  ;;  %v7660_v38 = vld [vmem:[%s8146_s4 + $0x1] ss:$0 sm:$0xff]  ;;  %vm5769_vm0 = vcmask 1042434   ;;  %vm5771_vm1 = vcmask 1043459  }
 0x168   : > { %6272 = vmatprep.mubr.msk.bf16.mxu1 %vm2559_vm13, %v7336_v24  ;;  %3501 = vst.msk [vmem:[#allocation3 + $0x50] sm:$0xff] %vm1245_vm11, %v3464_v20  ;;  %v3293_v2 = vrot.slane %v3291_v7, 3  ;;  %v3296_v31 = vrot.slane %v3294_v55, 4  ;;  %v4289_v7 = vlaneseq  ;;  %vm5773_vm2 = vcmask 1044484  }
 0x169   : > { %v3281_v58 = vsel %vm451_vm3, %v3272_v49, %v3280_v1  ;;  %v3466_v22 = vpop.permute.xlu1 %3465  ;;  %v6492_v49 = vmov 1966171168   ;;  %vm5777_vm4 = vcmask 1046534   ;;  %vm5779_vm5 = vcmask 1047559  }
 0x16a   : > { %3329 = vst.msk [vmem:[#allocation3 + $0x70] sm:$0xff] %vm1067_vm10, %v3281_v58  ;;  %v3883_v40 = vld [vmem:[#allocation3 + $0x40] sm:$0xff]  ;;  %v3297_v21 = vor.u32 %v3296_v31, %v3293_v2  ;;  %v4287_v1 = vunpack.c.l.s4 %v6492_v49 }
 0x16b   : > { %3502 = vst.msk [vmem:[#allocation3 + $0x58] sm:$0xff] %vm1245_vm11, %v3466_v22  ;;  %6308 = vmatprep.mubr.msk.bf16.mxu0 %vm2559_vm13, %v3883_v40  ;;  %v4290_v22 = vshrl.u32 %v4289_v7, 7 }
 0x16c   : > { %v3025_v27 = vld [vmem:[#allocation2 + $0x110] sm:$0xf8] }
 0x16d   : > { %v3283_v18 = vshrl.u32 %v3025_v27, 16  ;;  %v3286_v44 = vshll.u32 %v3025_v27, 16  ;;  %v3884_v57 = vld [vmem:[#allocation3 + $0x48] sm:$0xff]  ;;  %v4288_v27 = vunpack.c.0.s8 %v4287_v1 }
 0x16e   : > { %v3832_v59 = vpop.permute.xlu0 %3831  ;;  %6309 = vmatmul.mubr.msk.bf16.gmra.mrb[16].mxu0 %vm2559_vm13, %v3884_v57 }
 0x16f   : > { %6273 = vmatmul.mubr.msk.bf16.vlgmr.msra.gmra.mrb[16].mxu1 %vm2559_vm13, %v7375_v5  ;;  %v3285_v24 = vrot.slane %v3283_v18, 3  ;;  %v3288_v48 = vrot.slane %v3286_v44, 4  ;;  %3869 = vst.msk [vmem:[#allocation3 + $0x50] sm:$0xff] %vm1615_vm12, %v3832_v59  ;;  %v7670_v57 = vsub.s32 %v4288_v27, %v4290_v22 }
 0x170   : > { %6276 = vmatprep.mubr.msk.bf16.mxu1 %vm2559_vm13, %v7418_v0  ;;  %v3834_v8 = vpop.permute.xlu1 %3833 }
 0x171   : > { %v3289_v14 = vor.u32 %v3288_v48, %v3285_v24  ;;  %3870 = vst.msk [vmem:[#allocation3 + $0x58] sm:$0xff] %vm1615_vm12, %v3834_v8 }
 0x172   : > { %v3468_v5 = vpop.permute.xlu0 %3467 }
 0x173   : > { %v3298_v41 = vsel %vm451_vm3, %v3289_v14, %v3297_v21  ;;  %3503 = vst.msk [vmem:[#allocation3 + $0x60] sm:$0xff] %vm1245_vm11, %v3468_v5  ;;  %vm5775_vm3 = vcmask 1045509  }
 0x174   : > { %3330 = vst.msk [vmem:[#allocation3 + $0x78] sm:$0xff] %vm1067_vm10, %v3298_v41  ;;  %v3470_v0 = vpop.permute.xlu1 %3469 }
 0x175   : > { %3504 = vst.msk [vmem:[#allocation3 + $0x68] sm:$0xff] %vm1245_vm11, %v3470_v0 }
 0x176   : > { %v3885_v53 = vld [vmem:[#allocation3 + $0x50] sm:$0xff] }
 0x177   : > { %6277 = vmatmul.mubr.msk.bf16.gmra.mrb[20].mxu1 %vm2559_vm13, %v7457_v54  ;;  %6312 = vmatprep.mubr.msk.bf16.mxu0 %vm2559_vm13, %v3885_v53 }
 0x178   : > { %6280 = vmatprep.mubr.msk.bf16.mxu1 %vm2559_vm13, %v7491_v23  ;;  %v3886_v60 = vld [vmem:[#allocation3 + $0x58] sm:$0xff] }
 0x179   : > { %6313 = vmatmul.mubr.msk.bf16.gmra.mrb[20].mxu0 %vm2559_vm13, %v3886_v60 }
 0x17c   : > { %v3836_v50 = vpop.permute.xlu0 %3835 }
 0x17d   : > { %3871 = vst.msk [vmem:[#allocation3 + $0x60] sm:$0xff] %vm1615_vm12, %v3836_v50 }
 0x17f   : > { %6281 = vmatmul.mubr.msk.bf16.gmra.mrb[24].mxu1 %vm2559_vm13, %v7523_v45  ;;  %v3838_v54 = vpop.permute.xlu1 %3837 }
 0x180   : > { %6284 = vmatprep.mubr.msk.bf16.mxu1 %vm2559_vm13, %v7535_v47  ;;  %3872 = vst.msk [vmem:[#allocation3 + $0x68] sm:$0xff] %vm1615_vm12, %v3838_v54  ;;  %v3472_v23 = vpop.permute.xlu0 %3471 }
 0x181   : > { %3505 = vst.msk [vmem:[#allocation3 + $0x70] sm:$0xff] %vm1245_vm11, %v3472_v23 }
 0x183   : > { %v3474_v3 = vpop.permute.xlu1 %3473 }
 0x184   : > { %3506 = vst.msk [vmem:[#allocation3 + $0x78] sm:$0xff] %vm1245_vm11, %v3474_v3  ;;  %v3887_v19 = vld [vmem:[#allocation3 + $0x60] sm:$0xff] }
 0x185   : > { %6316 = vmatprep.mubr.msk.bf16.mxu0 %vm2559_vm13, %v3887_v19 }
 0x187   : > { %6285 = vmatmul.mubr.msk.bf16.gmra.mrb[28].mxu1 %vm2559_vm13, %v7568_v28  ;;  %v3840_v45 = vpop.permute.xlu0 %3839  ;;  %v3888_v47 = vld [vmem:[#allocation3 + $0x68] sm:$0xff] }
 0x188   : > { %3873 = vst.msk [vmem:[#allocation3 + $0x70] sm:$0xff] %vm1615_vm12, %v3840_v45  ;;  %6317 = vmatmul.mubr.msk.bf16.gmra.mrb[24].mxu0 %vm2559_vm13, %v3888_v47 }
 0x18f   : > { %v3889_v42 = vld [vmem:[#allocation3 + $0x70] sm:$0xff] }
 0x190   : > { %6320 = vmatprep.mubr.msk.bf16.mxu0 %vm2559_vm13, %v3889_v42 }
 0x191   : > { %v3842_v61 = vpop.permute.xlu1 %3841 }
 0x192   : > { %3874 = vst.msk [vmem:[#allocation3 + $0x78] sm:$0xff] %vm1615_vm12, %v3842_v61 }
 0x199   : > { %v3890_v32 = vld [vmem:[#allocation3 + $0x78] sm:$0xff] }
 0x19a   : > { %6321 = vmatmul.mubr.msk.bf16.gmra.mrb[28].mxu0 %vm2559_vm13, %v3890_v32 }
 0x1a1   : > { %v6222_v28 = vpop.f32.mrb[0].mxu1 }
 0x1a2   : > { %v2646_v11 = vpop.f32.mrb[1].mxu1 }
 0x1a3   : > { %v6223_v33 = vpop.f32.mrb[2].mxu1 }
 0x1a4   : > { %v2649_v26 = vpop.f32.mrb[3].mxu1 }
 0x1af   : > { %v6226_v62 = vpop.f32.mrb[4].mxu1 }
 0x1b0   : > { %v2662_v30 = vpop.f32.mrb[5].mxu1 }
 0x1b1   : > { %v6227_v63 = vpop.f32.mrb[6].mxu1 }
 0x1b2   : > { %v7634_v25 = vpop.f32.mrb[7].mxu1 }
 0x1ca   : > { %v7636_v35 = vpop.f32.mrb[8].mxu1 }
 0x1cb   : > { %v7638_v6 = vpop.f32.mrb[9].mxu1 }
 0x1cc   : > { %v7640_v12 = vpop.f32.mrb[10].mxu1 }
 0x1cd   : > { %v7642_v9 = vpop.f32.mrb[11].mxu1 }
 0x1e5   : > { %v7644_v34 = vpop.f32.mrb[12].mxu1 }
 0x1e6   : > { %v7646_v17 = vpop.f32.mrb[13].mxu1 }
 0x1e7   : > { %v7648_v4 = vpop.f32.mrb[14].mxu1 }
 0x1e8   : > { %v7650_v39 = vpop.f32.mrb[15].mxu1 }
 0x204   : > { %v6294_v46 = vpop.f32.mrb[0].mxu0 }
 0x205   : > { %v6328_v43 = vadd.f32 %v6294_v46, %v6222_v28  ;;  %v3988_v16 = vpop.f32.mrb[1].mxu0 }
 0x206   : > { %v6329_v52 = vadd.f32 %v3988_v16, %v2646_v11  ;;  %v6295_v13 = vpop.f32.mrb[2].mxu0 }
 0x207   : > { %v4154_v29 = vmul.f32 %v6328_v43, %v7655_v10  ;;  %v6330_v36 = vadd.f32 %v6295_v13, %v6223_v33  ;;  %v3991_v15 = vpop.f32.mrb[3].mxu0 }
 0x208   : > { %v4152_v56 = vmul.f32 %v6329_v52, %v7655_v10  ;;  %v6331_v37 = vadd.f32 %v3991_v15, %v2649_v26 }
 0x209   : > { %v4191_v55 = vadd.f32 %v7660_v38, %v4154_v29  ;;  %v4155_v51 = vmul.f32 %v6330_v36, %v7655_v10 }
 0x20a   : > { %v4189_v58 = vadd.f32 %v7660_v38, %v4152_v56  ;;  %v4153_v20 = vmul.f32 %v6331_v37, %v7655_v10 }
 0x20b   : > { %v4192_v2 = vadd.f32 %v7660_v38, %v4155_v51  ;;  %v4223_v18 = vmax.f32 %v4191_v55, 0.0 }
 0x20c   : > { %v4190_v31 = vadd.f32 %v7660_v38, %v4153_v20  ;;  %v4221_v40 = vmax.f32 %v4189_v58, 0.0 }
 0x20d   : > { %v4224_v44 = vmax.f32 %v4192_v2, 0.0 }
 0x20e   : > { %v4222_v24 = vmax.f32 %v4190_v31, 0.0 }
 0x20f   : > { %v4254_v48 = vpack.c.bf16 %v4224_v44, %v4223_v18 }
 0x210   : > { %v4253_v21 = vpack.c.bf16 %v4222_v24, %v4221_v40 }
 0x212   : > { %v4269_v14 = vmax.bf16 %v4254_v48, %v4253_v21 }
 0x214   : > { %v4285_v59 = vcombine.high %v4269_v14, %v4269_v14  ;;  %v4292_v41 = vrot.slane %v4269_v14, %v7670_v57 }
 0x216   : > { %v4299_v53 = vrot.slane %v4285_v59, %v7670_v57  ;;  %v4300_v60 = vcombine.high %v4292_v41, %v4292_v41  ;;  %v4308_v50 = vrot.slane %v4292_v41, %v7670_v57 }
 0x217   : > { %v6298_v8 = vpop.f32.mrb[4].mxu0 }
 0x218   : > { %v6332_v5 = vadd.f32 %v6298_v8, %v6226_v62  ;;  %v4004_v0 = vpop.f32.mrb[5].mxu0  ;;  %v4301_v47 = vcombine.high %v4299_v53, %v4299_v53  ;;  %v4315_v42 = vrot.slane %v4299_v53, %v7670_v57  ;;  %v4322_v61 = vrot.slane %v4300_v60, %v7670_v57 }
 0x219   : > { %v6333_v54 = vadd.f32 %v4004_v0, %v2662_v30  ;;  %v6299_v23 = vpop.f32.mrb[6].mxu0  ;;  %v4330_v32 = vcombine.high %v4308_v50, %v4308_v50  ;;  %v4680_v28 = vsel %vm4677_vm14, %v4308_v50, 4286644096 }
 0x21a   : > { %v4158_v3 = vmul.f32 %v6332_v5, %v7655_v10  ;;  %v6334_v19 = vadd.f32 %v6299_v23, %v6227_v63  ;;  %v7676_v45 = vpop.f32.mrb[7].mxu0  ;;  %v4329_v62 = vrot.slane %v4301_v47, %v7670_v57  ;;  %v4331_v30 = vcombine.high %v4315_v42, %v4315_v42 }
 0x21b   : > { %v7685_v33 = vmul.f32 %v6333_v54, %v7655_v10  ;;  %v4332_v63 = vcombine.high %v4322_v61, %v4322_v61  ;;  %v4682_v46 = vunpack.i.l.bf16 %v4680_v28  ;;  %v4683_v43 = vunpack.i.h.bf16 %v4680_v28 }
 0x21c   : > { %v7682_v11 = vadd.f32 %v7660_v38, %v4158_v3  ;;  %v7688_v26 = vmul.f32 %v6334_v19, %v7655_v10  ;;  %v4693_v16 = vsel %vm4677_vm14, %v4322_v61, 4286644096  ;;  %v4706_v52 = vsel %vm4677_vm14, %v4330_v32, 4286644096 }
 0x21d   : > { %v4732_v13 = vsel %vm4677_vm14, %v4315_v42, 4286644096  ;;  %v4333_v29 = vcombine.high %v4329_v62, %v4329_v62  ;;  %v4695_v36 = vunpack.i.l.bf16 %v4693_v16  ;;  %v4696_v15 = vunpack.i.h.bf16 %v4693_v16 }
 0x21e   : > { %v4708_v56 = vunpack.i.l.bf16 %v4706_v52  ;;  %v4684_v37 = vmax.f32 %v4682_v46, %v4683_v43  ;;  %v4709_v49 = vunpack.i.h.bf16 %v4706_v52  ;;  %v4719_v1 = vsel %vm4677_vm14, %v4332_v63, 4286644096 }
 0x21f   : > { %v4734_v7 = vunpack.i.l.bf16 %v4732_v13  ;;  %v4697_v55 = vmax.f32 %v4695_v36, %v4696_v15  ;;  %v4721_v51 = vunpack.i.l.bf16 %v4719_v1  ;;  %v4722_v58 = vunpack.i.h.bf16 %v4719_v1 }
 0x220   : > { %v4735_v20 = vunpack.i.h.bf16 %v4732_v13  ;;  %v4685_v2 = vrot.slane %v4684_v37, 4  ;;  %v4710_v31 = vmax.f32 %v4708_v56, %v4709_v49  ;;  %v4745_v27 = vsel %vm4677_vm14, %v4329_v62, 4286644096 }
 0x221   : > { %v4758_v22 = vsel %vm4677_vm14, %v4331_v30, 4286644096  ;;  %v4698_v18 = vrot.slane %v4697_v55, 4  ;;  %v4723_v44 = vmax.f32 %v4721_v51, %v4722_v58  ;;  %v4747_v24 = vunpack.i.l.bf16 %v4745_v27 }
 0x222   : > { %v4736_v40 = vmax.f32 %v4734_v7, %v4735_v20  ;;  %v4686_v48 = vmax.f32 %v4684_v37, %v4685_v2  ;;  %v4711_v21 = vrot.slane %v4710_v31, 4  ;;  %v4748_v14 = vunpack.i.h.bf16 %v4745_v27 }
 0x223   : > { %v4760_v59 = vunpack.i.l.bf16 %v4758_v22  ;;  %v4699_v41 = vmax.f32 %v4697_v55, %v4698_v18  ;;  %v4724_v8 = vrot.slane %v4723_v44, 4  ;;  %v4761_v0 = vunpack.i.h.bf16 %v4758_v22 }
 0x224   : > { %v4737_v5 = vrot.slane %v4736_v40, 4  ;;  %v4687_v53 = vrot.slane %v4686_v48, 2  ;;  %v4712_v60 = vmax.f32 %v4710_v31, %v4711_v21  ;;  %v4749_v50 = vmax.f32 %v4747_v24, %v4748_v14 }
 0x225   : > { %v4771_v54 = vsel %vm4677_vm14, %v4333_v29, 4286644096  ;;  %v4700_v23 = vrot.slane %v4699_v41, 2  ;;  %v4725_v3 = vmax.f32 %v4723_v44, %v4724_v8  ;;  %v4762_v47 = vmax.f32 %v4760_v59, %v4761_v0 }
 0x226   : > { %v4738_v19 = vmax.f32 %v4736_v40, %v4737_v5  ;;  %v4688_v42 = vmax.f32 %v4686_v48, %v4687_v53  ;;  %v4713_v61 = vrot.slane %v4712_v60, 2  ;;  %v4750_v32 = vrot.slane %v4749_v50, 4 }
 0x227   : > { %v4773_v28 = vunpack.i.l.bf16 %v4771_v54  ;;  %v4701_v62 = vmax.f32 %v4699_v41, %v4700_v23  ;;  %v4726_v30 = vrot.slane %v4725_v3, 2  ;;  %v4763_v46 = vrot.slane %v4762_v47, 4 }
 0x228   : > { %v4739_v63 = vrot.slane %v4738_v19, 2  ;;  %v4689_v43 = vrot.slane %v4688_v42, 1  ;;  %v4714_v16 = vmax.f32 %v4712_v60, %v4713_v61  ;;  %v4751_v52 = vmax.f32 %v4749_v50, %v4750_v32 }
 0x229   : > { %v4774_v13 = vunpack.i.h.bf16 %v4771_v54  ;;  %v4702_v29 = vrot.slane %v4701_v62, 1  ;;  %v4727_v15 = vmax.f32 %v4725_v3, %v4726_v30  ;;  %v4764_v37 = vmax.f32 %v4762_v47, %v4763_v46 }
 0x22a   : > { %v7698_v36 = vpop.f32.mrb[8].mxu0  ;;  %v4740_v56 = vmax.f32 %v4738_v19, %v4739_v63  ;;  %v4690_v1 = vmax.f32 %v4688_v42, %v4689_v43  ;;  %v4715_v7 = vrot.slane %v4714_v16, 1  ;;  %v4752_v55 = vrot.slane %v4751_v52, 2 }
 0x22b   : > { %v7700_v49 = vpop.f32.mrb[9].mxu0  ;;  %v4775_v51 = vmax.f32 %v4773_v28, %v4774_v13  ;;  %v4703_v20 = vmax.f32 %v4701_v62, %v4702_v29  ;;  %v4728_v2 = vrot.slane %v4727_v15, 1  ;;  %v4765_v27 = vrot.slane %v4764_v37, 2 }
 0x22c   : > { %v7702_v58 = vpop.f32.mrb[10].mxu0  ;;  %v4741_v31 = vrot.slane %v4740_v56, 1  ;;  %v4691_v18 = vpack.i.bf16 %v4690_v1, %v4690_v1  ;;  %v4716_v44 = vmax.f32 %v4714_v16, %v4715_v7  ;;  %v4753_v40 = vmax.f32 %v4751_v52, %v4752_v55 }
 0x22d   : > { %v7704_v22 = vpop.f32.mrb[11].mxu0  ;;  %v4776_v24 = vrot.slane %v4775_v51, 4  ;;  %v4704_v48 = vpack.i.bf16 %v4703_v20, %v4703_v20  ;;  %v4729_v21 = vmax.f32 %v4727_v15, %v4728_v2  ;;  %v4766_v59 = vmax.f32 %v4764_v37, %v4765_v27 }
 0x22e   : > { %v4742_v14 = vmax.f32 %v4740_v56, %v4741_v31  ;;  %v4717_v41 = vpack.i.bf16 %v4716_v44, %v4716_v44  ;;  %v4754_v8 = vrot.slane %v4753_v40, 1  ;;  %v6091_v0 = vcombine.low %v4691_v18, %v4691_v18 }
 0x22f   : > { %v4777_v5 = vmax.f32 %v4775_v51, %v4776_v24  ;;  %v4730_v53 = vpack.i.bf16 %v4729_v21, %v4729_v21  ;;  %v4767_v50 = vrot.slane %v4766_v59, 1  ;;  %v6092_v54 = vcombine.low %v4704_v48, %v4704_v48 }
 0x230   : > { %v4743_v60 = vpack.i.bf16 %v4742_v14, %v4742_v14  ;;  %v4755_v23 = vmax.f32 %v4753_v40, %v4754_v8  ;;  %v6093_v19 = vcombine.low %v4717_v41, %v4717_v41  ;;  %v5703_v47 = vunpack.c.l.b16 %v6091_v0 }
 0x231   : > { %v4778_v3 = vrot.slane %v4777_v5, 2  ;;  %v4768_v42 = vmax.f32 %v4766_v59, %v4767_v50  ;;  %v6094_v61 = vcombine.low %v4730_v53, %v4730_v53  ;;  %v5704_v28 = vunpack.c.l.b16 %v6092_v54 }
 0x232   : > { %v6095_v32 = vcombine.low %v4743_v60, %v4743_v60  ;;  %v4756_v62 = vpack.i.bf16 %v4755_v23, %v4755_v23  ;;  %v5705_v63 = vunpack.c.l.b16 %v6093_v19  ;;  %v4227_v46 = vmax.f32 %v7682_v11, 0.0 }
 0x233   : > { %v4779_v30 = vmax.f32 %v4777_v5, %v4778_v3  ;;  %v4769_v16 = vpack.i.bf16 %v4768_v42, %v4768_v42  ;;  %v5706_v52 = vunpack.c.l.b16 %v6094_v61  ;;  %v5768_v29 = vsel %vm5767_vm15, %v5704_v28, %v5703_v47 }
 0x234   : > { %v6306_v43 = vpop.f32.mrb[12].mxu0  ;;  %v5707_v13 = vunpack.c.l.b16 %v6095_v32  ;;  %v6096_v37 = vcombine.low %v4756_v62, %v4756_v62  ;;  %v5770_v1 = vsel %vm5769_vm0, %v5705_v63, %v5768_v29  ;;  %v4193_v7 = vadd.f32 %v7660_v38, %v7685_v33 }
 0x235   : > { %v4036_v15 = vpop.f32.mrb[13].mxu0  ;;  %v4780_v56 = vrot.slane %v4779_v30, 1  ;;  %v6097_v51 = vcombine.low %v4769_v16, %v4769_v16  ;;  %v5772_v20 = vsel %vm5771_vm1, %v5706_v52, %v5770_v1  ;;  %v4196_v11 = vadd.f32 %v7660_v38, %v7688_v26 }
 0x236   : > { %v6307_v55 = vpop.f32.mrb[14].mxu0  ;;  %v6335_v2 = vadd.f32 %v7676_v45, %v7634_v25  ;;  %v5708_v18 = vunpack.c.l.b16 %v6096_v37  ;;  %v5774_v44 = vsel %vm5773_vm2, %v5707_v13, %v5772_v20  ;;  %v4225_v40 = vmax.f32 %v4193_v7, 0.0 }
 0x237   : > { %v4039_v31 = vpop.f32.mrb[15].mxu0  ;;  %v4781_v27 = vmax.f32 %v4779_v30, %v4780_v56  ;;  %v5709_v24 = vunpack.c.l.b16 %v6097_v51  ;;  %v4228_v48 = vmax.f32 %v4196_v11, 0.0  ;;  %v6336_v21 = vadd.f32 %v7698_v36, %v7636_v35 }
 0x238   : > { %v4157_v33 = vmul.f32 %v6335_v2, %v7655_v10  ;;  %v5776_v26 = vsel %vm5775_vm3, %v5708_v18, %v5774_v44  ;;  %v6337_v25 = vadd.f32 %v7700_v49, %v7638_v6  ;;  %v6338_v45 = vadd.f32 %v7702_v58, %v7640_v12 }
 0x239   : > { %v4782_v14 = vpack.i.bf16 %v4781_v27, %v4781_v27  ;;  %v5778_v59 = vsel %vm5777_vm4, %v5709_v24, %v5776_v26  ;;  %v4256_v41 = vpack.c.bf16 %v4228_v48, %v4227_v46  ;;  %v4162_v5 = vmul.f32 %v6336_v21, %v7655_v10 }
 0x23a   : > { %v4194_v8 = vadd.f32 %v7660_v38, %v4157_v33  ;;  %v4160_v53 = vmul.f32 %v6337_v25, %v7655_v10  ;;  %v4163_v35 = vmul.f32 %v6338_v45, %v7655_v10  ;;  %v6339_v36 = vadd.f32 %v7704_v22, %v7642_v9 }
 0x23b   : > { %v6098_v0 = vcombine.low %v4782_v14, %v4782_v14  ;;  %v4199_v49 = vadd.f32 %v7660_v38, %v4162_v5  ;;  %v6340_v12 = vadd.f32 %v6306_v43, %v7644_v34  ;;  %v6341_v58 = vadd.f32 %v4036_v15, %v7646_v17 }
 0x23c   : > { %v4226_v6 = vmax.f32 %v4194_v8, 0.0  ;;  %v4197_v50 = vadd.f32 %v7660_v38, %v4160_v53  ;;  %v4200_v54 = vadd.f32 %v7660_v38, %v4163_v35  ;;  %v4161_v23 = vmul.f32 %v6339_v36, %v7655_v10 }
 0x23d   : > { %v5710_v60 = vunpack.c.l.b16 %v6098_v0  ;;  %v4231_v19 = vmax.f32 %v4199_v49, 0.0  ;;  %v4166_v47 = vmul.f32 %v6340_v12, %v7655_v10  ;;  %v4164_v9 = vmul.f32 %v6341_v58, %v7655_v10 }
 0x23e   : > { %v4255_v3 = vpack.c.bf16 %v4226_v6, %v4225_v40  ;;  %v4229_v17 = vmax.f32 %v4197_v50, 0.0  ;;  %v4232_v22 = vmax.f32 %v4200_v54, 0.0  ;;  %v4198_v42 = vadd.f32 %v7660_v38, %v4161_v23 }
 0x23f   : > { %v5780_v34 = vsel %vm5779_vm5, %v5710_v60, %v5778_v59  ;;  %v7749_v28 = vadd.f32 %v7660_v38, %v4166_v47  ;;  %v7752_v62 = vadd.f32 %v7660_v38, %v4164_v9  ;;  %v6342_v46 = vadd.f32 %v6307_v55, %v7648_v4 }
 0x240   : > { %v5830_v61 = vpack.c.b16 %v5780_v34, %v5780_v34  ;;  %v4270_v32 = vmax.bf16 %v4256_v41, %v4255_v3  ;;  %v4258_v30 = vpack.c.bf16 %v4232_v22, %v4231_v19  ;;  %v4230_v63 = vmax.f32 %v4198_v42, 0.0 }
 0x241   : > { %v6343_v43 = vadd.f32 %v4039_v31, %v7650_v39  ;;  %v4167_v37 = vmul.f32 %v6342_v46, %v7655_v10  ;;  %v6310_v20 = vpop.f32.mrb[16].mxu0 }
 0x242   : > { %v6274_v16 = vpop.f32.mrb[16].mxu1  ;;  %5846 = vst [vmem:[%s7744_s23] sm:$0xf] %v5830_v61  ;;  %v4334_v52 = vcombine.high %v4270_v32, %v4270_v32  ;;  %v4341_v13 = vrot.slane %v4270_v32, %v7670_v57  ;;  %v4257_v15 = vpack.c.bf16 %v4230_v63, %v4229_v17  ;;  %v7780_v44 = vpop.f32.mrb[17].mxu0 }
 0x243   : > { %v7758_v29 = vpop.f32.mrb[17].mxu1  ;;  %v4165_v1 = vmul.f32 %v6343_v43, %v7655_v10  ;;  %v7773_v31 = vadd.f32 %v7660_v38, %v4167_v37  ;;  %v7778_v18 = vadd.f32 %v6310_v20, %v6274_v16  ;;  %v7784_v21 = vpop.f32.mrb[18].mxu0 }
 0x244   : > { %v7763_v7 = vpop.f32.mrb[18].mxu1  ;;  %v4348_v4 = vrot.slane %v4334_v52, %v7670_v57  ;;  %v4349_v55 = vcombine.high %v4341_v13, %v4341_v13  ;;  %v4357_v39 = vrot.slane %v4341_v13, %v7670_v57  ;;  %v7770_v2 = vmax.bf16 %v4258_v30, %v4257_v15  ;;  %v7794_v59 = vpop.f32.mrb[19].mxu0 }
 0x245   : > { %v7768_v11 = vpop.f32.mrb[19].mxu1  ;;  %v7776_v27 = vadd.f32 %v7660_v38, %v4165_v1 }
 0x246   : > { %v4350_v40 = vcombine.high %v4348_v4, %v4348_v4  ;;  %v4364_v24 = vrot.slane %v4348_v4, %v7670_v57  ;;  %v4371_v48 = vrot.slane %v4349_v55, %v7670_v57  ;;  %v4379_v33 = vcombine.high %v4357_v39, %v4357_v39 }
 0x247   : > { %v4784_v14 = vsel %vm4677_vm14, %v4357_v39, 4286644096  ;;  %v4383_v26 = vcombine.high %v7770_v2, %v7770_v2  ;;  %v7791_v25 = vrot.slane %v7770_v2, %v7670_v57 }
 0x248   : > { %v4378_v41 = vrot.slane %v4350_v40, %v7670_v57  ;;  %v4380_v8 = vcombine.high %v4364_v24, %v4364_v24  ;;  %v4381_v5 = vcombine.high %v4371_v48, %v4371_v48  ;;  %v4786_v0 = vunpack.i.l.bf16 %v4784_v14 }
 0x249   : > { %v4787_v53 = vunpack.i.h.bf16 %v4784_v14  ;;  %v4797_v35 = vsel %vm4677_vm14, %v4371_v48, 4286644096  ;;  %v4810_v36 = vsel %vm4677_vm14, %v4379_v33, 4286644096  ;;  %v4836_v6 = vsel %vm4677_vm14, %v4364_v24, 4286644096 }
 0x24a   : > { %v4382_v49 = vcombine.high %v4378_v41, %v4378_v41  ;;  %v4799_v12 = vunpack.i.l.bf16 %v4797_v35  ;;  %v4800_v58 = vunpack.i.h.bf16 %v4797_v35  ;;  %v4812_v60 = vunpack.i.l.bf16 %v4810_v36  ;;  %v7800_v50 = vpop.f32.mrb[20].mxu1 }
 0x24b   : > { %v4788_v54 = vmax.f32 %v4786_v0, %v4787_v53  ;;  %v4813_v23 = vunpack.i.h.bf16 %v4810_v36  ;;  %v4823_v3 = vsel %vm4677_vm14, %v4381_v5, 4286644096  ;;  %v4838_v19 = vunpack.i.l.bf16 %v4836_v6  ;;  %v7803_v47 = vpop.f32.mrb[21].mxu1 }
 0x24c   : > { %v4801_v9 = vmax.f32 %v4799_v12, %v4800_v58  ;;  %v4825_v34 = vunpack.i.l.bf16 %v4823_v3  ;;  %v4826_v17 = vunpack.i.h.bf16 %v4823_v3  ;;  %v4839_v22 = vunpack.i.h.bf16 %v4836_v6  ;;  %v7805_v42 = vpop.f32.mrb[22].mxu1  ;;  %v7811_v55 = vpop.f32.mrb[20].mxu0 }
 0x24d   : > { %v4789_v61 = vrot.slane %v4788_v54, 4  ;;  %v4814_v32 = vmax.f32 %v4812_v60, %v4813_v23  ;;  %v4849_v30 = vsel %vm4677_vm14, %v4378_v41, 4286644096  ;;  %v4862_v63 = vsel %vm4677_vm14, %v4380_v8, 4286644096  ;;  %v7809_v46 = vpop.f32.mrb[23].mxu1 }
 0x24e   : > { %v4802_v43 = vrot.slane %v4801_v9, 4  ;;  %v4827_v16 = vmax.f32 %v4825_v34, %v4826_v17  ;;  %v4840_v52 = vmax.f32 %v4838_v19, %v4839_v22  ;;  %v4851_v13 = vunpack.i.l.bf16 %v4849_v30  ;;  %v7813_v48 = vpop.f32.mrb[21].mxu0 }
 0x24f   : > { %v4790_v15 = vmax.f32 %v4788_v54, %v4789_v61  ;;  %v4815_v37 = vrot.slane %v4814_v32, 4  ;;  %v4852_v1 = vunpack.i.h.bf16 %v4849_v30  ;;  %v4864_v4 = vunpack.i.l.bf16 %v4862_v63  ;;  %v7816_v5 = vpop.f32.mrb[22].mxu0 }
 0x250   : > { %v4803_v39 = vmax.f32 %v4801_v9, %v4802_v43  ;;  %v4828_v20 = vrot.slane %v4827_v16, 4  ;;  %v4841_v40 = vrot.slane %v4840_v52, 4  ;;  %v4865_v24 = vunpack.i.h.bf16 %v4862_v63  ;;  %v7820_v12 = vpop.f32.mrb[23].mxu0 }
 0x251   : > { %v4791_v33 = vrot.slane %v4790_v15, 2  ;;  %v4816_v14 = vmax.f32 %v4814_v32, %v4815_v37  ;;  %v4853_v41 = vmax.f32 %v4851_v13, %v4852_v1  ;;  %v4875_v8 = vsel %vm4677_vm14, %v4382_v49, 4286644096 }
 0x252   : > { %v7818_v0 = vpop.f32.mrb[24].mxu1  ;;  %v4804_v53 = vrot.slane %v4803_v39, 2  ;;  %v4829_v35 = vmax.f32 %v4827_v16, %v4828_v20  ;;  %v4842_v36 = vmax.f32 %v4840_v52, %v4841_v40  ;;  %v4866_v6 = vmax.f32 %v4864_v4, %v4865_v24 }
 0x253   : > { %v7822_v58 = vpop.f32.mrb[25].mxu1  ;;  %v4792_v60 = vmax.f32 %v4790_v15, %v4791_v33  ;;  %v4817_v54 = vrot.slane %v4816_v14, 2  ;;  %v4854_v23 = vrot.slane %v4853_v41, 4  ;;  %v4877_v3 = vunpack.i.l.bf16 %v4875_v8 }
 0x254   : > { %v7824_v19 = vpop.f32.mrb[26].mxu1  ;;  %v4805_v9 = vmax.f32 %v4803_v39, %v4804_v53  ;;  %v4830_v49 = vrot.slane %v4829_v35, 2  ;;  %v4843_v34 = vrot.slane %v4842_v36, 2  ;;  %v4867_v17 = vrot.slane %v4866_v6, 4 }
 0x255   : > { %v7826_v22 = vpop.f32.mrb[27].mxu1  ;;  %v4793_v61 = vrot.slane %v4792_v60, 1  ;;  %v4818_v32 = vmax.f32 %v4816_v14, %v4817_v54  ;;  %v4855_v30 = vmax.f32 %v4853_v41, %v4854_v23  ;;  %v4878_v63 = vunpack.i.h.bf16 %v4875_v8 }
 0x256   : > { %v4806_v43 = vrot.slane %v4805_v9, 1  ;;  %v4831_v16 = vmax.f32 %v4829_v35, %v4830_v49  ;;  %v4844_v52 = vmax.f32 %v4842_v36, %v4843_v34  ;;  %v4868_v13 = vmax.f32 %v4866_v6, %v4867_v17 }
 0x257   : > { %v4794_v15 = vmax.f32 %v4792_v60, %v4793_v61  ;;  %v4819_v37 = vrot.slane %v4818_v32, 1  ;;  %v4856_v1 = vrot.slane %v4855_v30, 2  ;;  %v4879_v4 = vmax.f32 %v4877_v3, %v4878_v63 }
 0x258   : > { %v4807_v20 = vmax.f32 %v4805_v9, %v4806_v43  ;;  %v4832_v40 = vrot.slane %v4831_v16, 1  ;;  %v4845_v39 = vrot.slane %v4844_v52, 1  ;;  %v4869_v24 = vrot.slane %v4868_v13, 2 }
 0x259   : > { %v4795_v33 = vpack.i.bf16 %v4794_v15, %v4794_v15  ;;  %v4820_v53 = vmax.f32 %v4818_v32, %v4819_v37  ;;  %v4857_v51 = vmax.f32 %v4855_v30, %v4856_v1  ;;  %v4880_v45 = vrot.slane %v4879_v4, 4 }
 0x25a   : > { %v4808_v56 = vpack.i.bf16 %v4807_v20, %v4807_v20  ;;  %v4833_v14 = vmax.f32 %v4831_v16, %v4832_v40  ;;  %v4846_v41 = vmax.f32 %v4844_v52, %v4845_v39  ;;  %v4870_v8 = vmax.f32 %v4868_v13, %v4869_v24 }
 0x25b   : > { %v4821_v54 = vpack.i.bf16 %v4820_v53, %v4820_v53  ;;  %v4858_v35 = vrot.slane %v4857_v51, 1  ;;  %v4881_v36 = vmax.f32 %v4879_v4, %v4880_v45  ;;  %v6099_v6 = vcombine.low %v4795_v33, %v4795_v33  ;;  %v7828_v15 = vpop.f32.mrb[24].mxu0 }
 0x25c   : > { %v4834_v60 = vpack.i.bf16 %v4833_v14, %v4833_v14  ;;  %v4847_v23 = vpack.i.bf16 %v4846_v41, %v4846_v41  ;;  %v4871_v49 = vrot.slane %v4870_v8, 1  ;;  %v6100_v3 = vcombine.low %v4808_v56, %v4808_v56  ;;  %v7834_v37 = vpop.f32.mrb[25].mxu0 }
 0x25d   : > { %v4859_v9 = vmax.f32 %v4857_v51, %v4858_v35  ;;  %v4882_v34 = vrot.slane %v4881_v36, 2  ;;  %v6101_v17 = vcombine.low %v4821_v54, %v4821_v54  ;;  %v5711_v61 = vunpack.c.l.b16 %v6099_v6  ;;  %v7840_v33 = vpop.f32.mrb[26].mxu0 }
 0x25e   : > { %v4872_v63 = vmax.f32 %v4870_v8, %v4871_v49  ;;  %v6102_v32 = vcombine.low %v4834_v60, %v4834_v60  ;;  %v6103_v30 = vcombine.low %v4847_v23, %v4847_v23  ;;  %v5712_v43 = vunpack.c.l.b16 %v6100_v3 }
 0x25f   : > { %v4860_v16 = vpack.i.bf16 %v4859_v9, %v4859_v9  ;;  %v4883_v52 = vmax.f32 %v4881_v36, %v4882_v34  ;;  %v5713_v13 = vunpack.c.l.b16 %v6101_v17  ;;  %v4397_v45 = vrot.slane %v4383_v26, %v7670_v57 }
 0x260   : > { %v4873_v56 = vpack.i.bf16 %v4872_v63, %v4872_v63  ;;  %v5714_v51 = vunpack.c.l.b16 %v6102_v32  ;;  %v5715_v1 = vunpack.c.l.b16 %v6103_v30  ;;  %v5781_v4 = vsel %vm5767_vm15, %v5712_v43, %v5711_v61 }
 0x261   : > { %v4884_v20 = vrot.slane %v4883_v52, 1  ;;  %v6104_v40 = vcombine.low %v4860_v16, %v4860_v16  ;;  %v5782_v39 = vsel %vm5769_vm0, %v5713_v13, %v5781_v4  ;;  %v4398_v24 = vcombine.high %v7791_v25, %v7791_v25 }
 0x262   : > { %v6105_v53 = vcombine.low %v4873_v56, %v4873_v56  ;;  %v5783_v2 = vsel %vm5771_vm1, %v5714_v51, %v5782_v39  ;;  %v4399_v26 = vcombine.high %v4397_v45, %v4397_v45  ;;  %v4406_v14 = vrot.slane %v7791_v25, %v7670_v57 }
 0x263   : > { %v4885_v41 = vmax.f32 %v4883_v52, %v4884_v20  ;;  %v5716_v8 = vunpack.c.l.b16 %v6104_v40  ;;  %v5784_v54 = vsel %vm5773_vm2, %v5715_v1, %v5783_v2  ;;  %v4413_v35 = vrot.slane %v4397_v45, %v7670_v57  ;;  %v7854_v52 = vpop.f32.mrb[27].mxu0 }
 0x264   : > { %v5717_v36 = vunpack.c.l.b16 %v6105_v53  ;;  %v4420_v6 = vrot.slane %v4398_v24, %v7670_v57  ;;  %v4427_v60 = vrot.slane %v4399_v26, %v7670_v57  ;;  %v4428_v23 = vcombine.high %v4406_v14, %v4406_v14 }
 0x265   : > { %v4886_v49 = vpack.i.bf16 %v4885_v41, %v4885_v41  ;;  %v5785_v3 = vsel %vm5775_vm3, %v5716_v8, %v5784_v54  ;;  %v4429_v9 = vcombine.high %v4413_v35, %v4413_v35  ;;  %v4888_v34 = vsel %vm4677_vm14, %v4406_v14, 4286644096 }
 0x266   : > { %v5786_v25 = vsel %vm5777_vm4, %v5717_v36, %v5785_v3  ;;  %v4430_v17 = vcombine.high %v4420_v6, %v4420_v6  ;;  %v4431_v61 = vcombine.high %v4427_v60, %v4427_v60  ;;  %v4890_v63 = vunpack.i.l.bf16 %v4888_v34 }
 0x267   : > { %v6106_v32 = vcombine.low %v4886_v49, %v4886_v49  ;;  %v4891_v30 = vunpack.i.h.bf16 %v4888_v34  ;;  %v4901_v43 = vsel %vm4677_vm14, %v4420_v6, 4286644096  ;;  %v4914_v16 = vsel %vm4677_vm14, %v4428_v23, 4286644096 }
 0x268   : > { %v4903_v13 = vunpack.i.l.bf16 %v4901_v43  ;;  %v4904_v45 = vunpack.i.h.bf16 %v4901_v43  ;;  %v4916_v56 = vunpack.i.l.bf16 %v4914_v16  ;;  %v4917_v51 = vunpack.i.h.bf16 %v4914_v16 }
 0x269   : > { %v5718_v1 = vunpack.c.l.b16 %v6106_v32  ;;  %v4892_v4 = vmax.f32 %v4890_v63, %v4891_v30  ;;  %v4927_v20 = vsel %vm4677_vm14, %v4430_v17, 4286644096  ;;  %v4940_v40 = vsel %vm4677_vm14, %v4413_v35, 4286644096 }
 0x26a   : > { %v4905_v39 = vmax.f32 %v4903_v13, %v4904_v45  ;;  %v4918_v24 = vmax.f32 %v4916_v56, %v4917_v51  ;;  %v4929_v53 = vunpack.i.l.bf16 %v4927_v20  ;;  %v4930_v2 = vunpack.i.h.bf16 %v4927_v20 }
 0x26b   : > { %v5787_v26 = vsel %vm5779_vm5, %v5718_v1, %v5786_v25  ;;  %v4893_v14 = vrot.slane %v4892_v4, 4  ;;  %v4942_v41 = vunpack.i.l.bf16 %v4940_v40  ;;  %v4943_v8 = vunpack.i.h.bf16 %v4940_v40 }
 0x26c   : > { %v5831_v54 = vpack.c.b16 %v5787_v26, %v5787_v26  ;;  %v4906_v36 = vrot.slane %v4905_v39, 4  ;;  %v4919_v6 = vrot.slane %v4918_v24, 4  ;;  %v4931_v23 = vmax.f32 %v4929_v53, %v4930_v2 }
 0x26d   : > { %v4894_v49 = vmax.f32 %v4892_v4, %v4893_v14  ;;  %v4944_v3 = vmax.f32 %v4942_v41, %v4943_v8  ;;  %v4953_v34 = vsel %vm4677_vm14, %v4427_v60, 4286644096  ;;  %v4966_v35 = vsel %vm4677_vm14, %v4429_v9, 4286644096  ;;  %v7863_v8 = vpop.f32.mrb[28].mxu1 }
 0x26e   : > { %5847 = vst [vmem:[%s7744_s23 + $0x4] sm:$0xf] %v5831_v54  ;;  %v4907_v17 = vmax.f32 %v4905_v39, %v4906_v36  ;;  %v4920_v63 = vmax.f32 %v4918_v24, %v4919_v6  ;;  %v4932_v32 = vrot.slane %v4931_v23, 4  ;;  %v4955_v30 = vunpack.i.l.bf16 %v4953_v34 }
 0x26f   : > { %v4895_v43 = vrot.slane %v4894_v49, 2  ;;  %v4945_v25 = vrot.slane %v4944_v3, 4  ;;  %v4956_v16 = vunpack.i.h.bf16 %v4953_v34  ;;  %v4968_v13 = vunpack.i.l.bf16 %v4966_v35  ;;  %v7865_v34 = vpop.f32.mrb[29].mxu1 }
 0x270   : > { %v4908_v45 = vrot.slane %v4907_v17, 2  ;;  %v4921_v56 = vrot.slane %v4920_v63, 2  ;;  %v4933_v51 = vmax.f32 %v4931_v23, %v4932_v32  ;;  %v4969_v1 = vunpack.i.h.bf16 %v4966_v35 }
 0x271   : > { %v4896_v20 = vmax.f32 %v4894_v49, %v4895_v43  ;;  %v4946_v4 = vmax.f32 %v4944_v3, %v4945_v25  ;;  %v4957_v40 = vmax.f32 %v4955_v30, %v4956_v16  ;;  %v4979_v60 = vsel %vm4677_vm14, %v4431_v61, 4286644096  ;;  %v7869_v25 = vpop.f32.mrb[28].mxu0 }
 0x272   : > { %v4909_v53 = vmax.f32 %v4907_v17, %v4908_v45  ;;  %v4922_v9 = vmax.f32 %v4920_v63, %v4921_v56  ;;  %v4934_v2 = vrot.slane %v4933_v51, 2  ;;  %v4970_v39 = vmax.f32 %v4968_v13, %v4969_v1  ;;  %v7867_v17 = vpop.f32.mrb[30].mxu1  ;;  %v7873_v1 = vpop.f32.mrb[29].mxu0 }
 0x273   : > { %v4897_v24 = vrot.slane %v4896_v20, 1  ;;  %v4947_v26 = vrot.slane %v4946_v4, 2  ;;  %v4958_v14 = vrot.slane %v4957_v40, 4  ;;  %v4981_v41 = vunpack.i.l.bf16 %v4979_v60  ;;  %8152 = vst [vmem:[#allocation4_spill] sm:$0xff] %v7867_v17  ;;  %v7871_v16 = vpop.f32.mrb[31].mxu1 }
 0x274   : > { %v4910_v54 = vrot.slane %v4909_v53, 1  ;;  %v4923_v36 = vrot.slane %v4922_v9, 1  ;;  %v4935_v6 = vmax.f32 %v4933_v51, %v4934_v2  ;;  %v4971_v23 = vrot.slane %v4970_v39, 4  ;;  %8153 = vst [vmem:[#allocation5_spill] sm:$0xff] %v7871_v16  ;;  %v7875_v2 = vpop.f32.mrb[30].mxu0 }
 0x275   : > { %v4898_v49 = vmax.f32 %v4896_v20, %v4897_v24  ;;  %v4948_v3 = vmax.f32 %v4946_v4, %v4947_v26  ;;  %v4959_v35 = vmax.f32 %v4957_v40, %v4958_v14  ;;  %v4982_v61 = vunpack.i.h.bf16 %v4979_v60  ;;  %8154 = vst [vmem:[#allocation6_spill] sm:$0xff] %v7875_v2  ;;  %v7877_v26 = vpop.f32.mrb[31].mxu0 }
 0x276   : > { %v4911_v63 = vmax.f32 %v4909_v53, %v4910_v54  ;;  %v4924_v32 = vmax.f32 %v4922_v9, %v4923_v36  ;;  %v4936_v30 = vrot.slane %v4935_v6, 1  ;;  %v4972_v43 = vmax.f32 %v4970_v39, %v4971_v23 }
 0x277   : > { %v4899_v13 = vpack.i.bf16 %v4898_v49, %v4898_v49  ;;  %v4949_v45 = vrot.slane %v4948_v3, 1  ;;  %v4960_v56 = vrot.slane %v4959_v35, 2  ;;  %v4983_v51 = vmax.f32 %v4981_v41, %v4982_v61 }
 0x278   : > { %v4912_v20 = vpack.i.bf16 %v4911_v63, %v4911_v63  ;;  %v4925_v4 = vpack.i.bf16 %v4924_v32, %v4924_v32  ;;  %v4937_v40 = vmax.f32 %v4935_v6, %v4936_v30  ;;  %v4973_v60 = vrot.slane %v4972_v43, 2 }
 0x279   : > { %v4950_v53 = vmax.f32 %v4948_v3, %v4949_v45  ;;  %v4961_v9 = vmax.f32 %v4959_v35, %v4960_v56  ;;  %v4984_v24 = vrot.slane %v4983_v51, 4  ;;  %v6107_v39 = vcombine.low %v4899_v13, %v4899_v13 }
 0x27a   : > { %v4938_v14 = vpack.i.bf16 %v4937_v40, %v4937_v40  ;;  %v4974_v54 = vmax.f32 %v4972_v43, %v4973_v60  ;;  %v6108_v36 = vcombine.low %v4912_v20, %v4912_v20  ;;  %v6109_v23 = vcombine.low %v4925_v4, %v4925_v4 }
 0x27b   : > { %v4951_v49 = vpack.i.bf16 %v4950_v53, %v4950_v53  ;;  %v4962_v41 = vrot.slane %v4961_v9, 1  ;;  %v4985_v61 = vmax.f32 %v4983_v51, %v4984_v24  ;;  %v5719_v16 = vunpack.c.l.b16 %v6107_v39 }
 0x27c   : > { %v4975_v63 = vrot.slane %v4974_v54, 1  ;;  %v6110_v32 = vcombine.low %v4938_v14, %v4938_v14  ;;  %v5720_v6 = vunpack.c.l.b16 %v6108_v36  ;;  %v5721_v30 = vunpack.c.l.b16 %v6109_v23 }
 0x27d   : > { %v4963_v17 = vmax.f32 %v4961_v9, %v4962_v41  ;;  %v4986_v2 = vrot.slane %v4985_v61, 2  ;;  %v6111_v3 = vcombine.low %v4951_v49, %v4951_v49  ;;  %v8155_v35 = vmax.f32 %v7749_v28, 0.0 }
 0x27e   : > { %v8156_v13 = vmax.f32 %v7773_v31, 0.0  ;;  %v4976_v56 = vmax.f32 %v4974_v54, %v4975_v63  ;;  %v5722_v43 = vunpack.c.l.b16 %v6110_v32  ;;  %v5788_v20 = vsel %vm5767_vm15, %v5720_v6, %v5719_v16 }
 0x27f   : > { %v4234_v4 = vmax.f32 %v7776_v27, 0.0  ;;  %v4964_v51 = vpack.i.bf16 %v4963_v17, %v4963_v17  ;;  %v4987_v40 = vmax.f32 %v4985_v61, %v4986_v2  ;;  %v5723_v60 = vunpack.c.l.b16 %v6111_v3 }
 0x280   : > { %v4260_v45 = vpack.c.bf16 %v8156_v13, %v8155_v35  ;;  %v5789_v53 = vsel %vm5769_vm0, %v5721_v30, %v5788_v20  ;;  %v4977_v24 = vpack.i.bf16 %v4976_v56, %v4976_v56  ;;  %v8157_v39 = vmax.f32 %v7752_v62, 0.0 }
 0x281   : > { %v5790_v9 = vsel %vm5771_vm1, %v5722_v43, %v5789_v53  ;;  %v4170_v31 = vmul.f32 %v7778_v18, %v7655_v10  ;;  %v4988_v14 = vrot.slane %v4987_v40, 1  ;;  %v6112_v54 = vcombine.low %v4964_v51, %v4964_v51  ;;  %v7902_v10 = vld [vmem:[%s8146_s4] ss:$0 sm:$0xff] }
 0x282   : > { %v4259_v28 = vpack.c.bf16 %v4234_v4, %v8157_v39  ;;  %v5791_v16 = vsel %vm5773_vm2, %v5723_v60, %v5790_v9  ;;  %v6345_v27 = vadd.f32 %v7780_v44, %v7758_v29  ;;  %v6113_v17 = vcombine.low %v4977_v24, %v4977_v24 }
 0x283   : > { %v7895_v36 = vadd.f32 %v7660_v38, %v4170_v31  ;;  %v6346_v23 = vadd.f32 %v7784_v21, %v7763_v7  ;;  %v4989_v62 = vmax.f32 %v4987_v40, %v4988_v14  ;;  %v5724_v49 = vunpack.c.l.b16 %v6112_v54  ;;  %v7913_v21 = vld [vmem:[%s8146_s4 + $0x1] ss:$0 sm:$0xff] }
 0x284   : > { %v4272_v2 = vmax.bf16 %v4260_v45, %v4259_v28  ;;  %v4168_v18 = vmul.f32 %v7902_v10, %v6345_v27  ;;  %v6347_v29 = vadd.f32 %v7794_v59, %v7768_v11  ;;  %v5725_v44 = vunpack.c.l.b16 %v6113_v17 }
 0x285   : > { %v4239_v61 = vmax.f32 %v7895_v36, 0.0  ;;  %v4990_v63 = vpack.i.bf16 %v4989_v62, %v4989_v62  ;;  %v5792_v7 = vsel %vm5775_vm3, %v5724_v49, %v5791_v16  ;;  %v4171_v6 = vmul.f32 %v7902_v10, %v6346_v23 }
 0x286   : > { %v4432_v41 = vcombine.high %v4272_v2, %v4272_v2  ;;  %v4439_v38 = vrot.slane %v4272_v2, %v7670_v57  ;;  %v7916_v32 = vadd.f32 %v7913_v21, %v4168_v18  ;;  %v5793_v11 = vsel %vm5777_vm4, %v5725_v44, %v5792_v7 }
 0x287   : > { %v6114_v35 = vcombine.low %v4990_v63, %v4990_v63  ;;  %v7924_v45 = vadd.f32 %v7913_v21, %v4171_v6  ;;  %v4169_v56 = vmul.f32 %v7902_v10, %v6347_v29  ;;  %v6348_v36 = vadd.f32 %v7811_v55, %v7800_v50 }
 0x288   : > { %v4446_v59 = vrot.slane %v4432_v41, %v7670_v57  ;;  %v4447_v30 = vcombine.high %v4439_v38, %v4439_v38  ;;  %v4455_v3 = vrot.slane %v4439_v38, %v7670_v57  ;;  %v6351_v55 = vadd.f32 %v7820_v12, %v7809_v46 }
 0x289   : > { %v5726_v40 = vunpack.c.l.b16 %v6114_v35  ;;  %v7932_v24 = vadd.f32 %v7913_v21, %v4169_v56 }
 0x28a   : > { %v4448_v43 = vcombine.high %v4446_v59, %v4446_v59  ;;  %v4462_v20 = vrot.slane %v4446_v59, %v7670_v57  ;;  %v4469_v4 = vrot.slane %v4447_v30, %v7670_v57  ;;  %v4477_v51 = vcombine.high %v4455_v3, %v4455_v3 }
 0x28b   : > { %v4992_v60 = vsel %vm4677_vm14, %v4455_v3, 4286644096  ;;  %v5794_v14 = vsel %vm5779_vm5, %v5726_v40, %v5793_v11  ;;  %v4173_v46 = vmul.f32 %v7902_v10, %v6351_v55 }
 0x28c   : > { %v4476_v9 = vrot.slane %v4448_v43, %v7670_v57  ;;  %v4478_v39 = vcombine.high %v4462_v20, %v4462_v20  ;;  %v4479_v28 = vcombine.high %v4469_v4, %v4469_v4  ;;  %v4994_v31 = vunpack.i.l.bf16 %v4992_v60 }
 0x28d   : > { %v4995_v54 = vunpack.i.h.bf16 %v4992_v60  ;;  %v5005_v16 = vsel %vm4677_vm14, %v4469_v4, 4286644096  ;;  %v5018_v27 = vsel %vm4677_vm14, %v4477_v51, 4286644096  ;;  %v5832_v17 = vpack.c.b16 %v5794_v14, %v5794_v14 }
 0x28e   : > { %v4480_v2 = vcombine.high %v4476_v9, %v4476_v9  ;;  %v5007_v23 = vunpack.i.l.bf16 %v5005_v16  ;;  %v5008_v62 = vunpack.i.h.bf16 %v5005_v16  ;;  %v5020_v18 = vunpack.i.l.bf16 %v5018_v27 }
 0x28f   : > { %v4996_v49 = vmax.f32 %v4994_v31, %v4995_v54  ;;  %v5021_v29 = vunpack.i.h.bf16 %v5018_v27  ;;  %v5031_v44 = vsel %vm4677_vm14, %v4479_v28, 4286644096  ;;  %5848 = vst [vmem:[%s7744_s23 + $0x8] sm:$0xf] %v5832_v17  ;;  %v5044_v7 = vsel %vm4677_vm14, %v4462_v20, 4286644096 }
 0x290   : > { %v5009_v41 = vmax.f32 %v5007_v23, %v5008_v62  ;;  %v5033_v38 = vunpack.i.l.bf16 %v5031_v44  ;;  %v5034_v63 = vunpack.i.h.bf16 %v5031_v44  ;;  %v5046_v59 = vunpack.i.l.bf16 %v5044_v7 }
 0x291   : > { %v4997_v6 = vrot.slane %v4996_v49, 4  ;;  %v5022_v11 = vmax.f32 %v5020_v18, %v5021_v29  ;;  %v5047_v30 = vunpack.i.h.bf16 %v5044_v7  ;;  %v5057_v56 = vsel %vm4677_vm14, %v4476_v9, 4286644096 }
 0x292   : > { %v5010_v3 = vrot.slane %v5009_v41, 4  ;;  %v5035_v35 = vmax.f32 %v5033_v38, %v5034_v63  ;;  %v5070_v43 = vsel %vm4677_vm14, %v4478_v39, 4286644096  ;;  %v5059_v60 = vunpack.i.l.bf16 %v5057_v56 }
 0x293   : > { %v4998_v4 = vmax.f32 %v4996_v49, %v4997_v6  ;;  %v5023_v51 = vrot.slane %v5022_v11, 4  ;;  %v5048_v40 = vmax.f32 %v5046_v59, %v5047_v30  ;;  %v5060_v14 = vunpack.i.h.bf16 %v5057_v56 }
 0x294   : > { %v5011_v28 = vmax.f32 %v5009_v41, %v5010_v3  ;;  %v5036_v31 = vrot.slane %v5035_v35, 4  ;;  %v5072_v54 = vunpack.i.l.bf16 %v5070_v43  ;;  %v5073_v17 = vunpack.i.h.bf16 %v5070_v43 }
 0x295   : > { %v4999_v16 = vrot.slane %v4998_v4, 2  ;;  %v5024_v20 = vmax.f32 %v5022_v11, %v5023_v51  ;;  %v5049_v27 = vrot.slane %v5048_v40, 4  ;;  %v5061_v18 = vmax.f32 %v5059_v60, %v5060_v14 }
 0x296   : > { %v5012_v23 = vrot.slane %v5011_v28, 2  ;;  %v5037_v62 = vmax.f32 %v5035_v35, %v5036_v31  ;;  %v5083_v29 = vsel %vm4677_vm14, %v4480_v2, 4286644096  ;;  %v5074_v49 = vmax.f32 %v5072_v54, %v5073_v17 }
 0x297   : > { %v5000_v9 = vmax.f32 %v4998_v4, %v4999_v16  ;;  %v5025_v44 = vrot.slane %v5024_v20, 2  ;;  %v5050_v39 = vmax.f32 %v5048_v40, %v5049_v27  ;;  %v5062_v7 = vrot.slane %v5061_v18, 4 }
 0x298   : > { %v5013_v38 = vmax.f32 %v5011_v28, %v5012_v23  ;;  %v5038_v63 = vrot.slane %v5037_v62, 2  ;;  %v5085_v41 = vunpack.i.l.bf16 %v5083_v29  ;;  %v5075_v3 = vrot.slane %v5074_v49, 4 }
 0x299   : > { %v5001_v6 = vrot.slane %v5000_v9, 1  ;;  %v5026_v59 = vmax.f32 %v5024_v20, %v5025_v44  ;;  %v5051_v30 = vrot.slane %v5050_v39, 2  ;;  %v5063_v43 = vmax.f32 %v5061_v18, %v5062_v7 }
 0x29a   : > { %v5014_v11 = vrot.slane %v5013_v38, 1  ;;  %v5039_v56 = vmax.f32 %v5037_v62, %v5038_v63  ;;  %v5086_v51 = vunpack.i.h.bf16 %v5083_v29  ;;  %v5076_v2 = vmax.f32 %v5074_v49, %v5075_v3 }
 0x29b   : > { %v5002_v35 = vmax.f32 %v5000_v9, %v5001_v6  ;;  %v5027_v60 = vrot.slane %v5026_v59, 1  ;;  %v5052_v31 = vmax.f32 %v5050_v39, %v5051_v30  ;;  %v5064_v40 = vrot.slane %v5063_v43, 2 }
 0x29c   : > { %v5015_v4 = vmax.f32 %v5013_v38, %v5014_v11  ;;  %v5040_v14 = vrot.slane %v5039_v56, 1  ;;  %v5087_v54 = vmax.f32 %v5085_v41, %v5086_v51  ;;  %v5077_v17 = vrot.slane %v5076_v2, 2 }
 0x29d   : > { %v5003_v28 = vpack.i.bf16 %v5002_v35, %v5002_v35  ;;  %v5028_v16 = vmax.f32 %v5026_v59, %v5027_v60  ;;  %v5053_v27 = vrot.slane %v5052_v31, 1  ;;  %v5065_v44 = vmax.f32 %v5063_v43, %v5064_v40 }
 0x29e   : > { %v5016_v23 = vpack.i.bf16 %v5015_v4, %v5015_v4  ;;  %v5041_v20 = vmax.f32 %v5039_v56, %v5040_v14  ;;  %v5088_v13 = vrot.slane %v5087_v54, 4  ;;  %v5078_v18 = vmax.f32 %v5076_v2, %v5077_v17 }
 0x29f   : > { %v5029_v53 = vpack.i.bf16 %v5028_v16, %v5028_v16  ;;  %v5054_v62 = vmax.f32 %v5052_v31, %v5053_v27  ;;  %v6115_v29 = vcombine.low %v5003_v28, %v5003_v28  ;;  %v5066_v63 = vrot.slane %v5065_v44, 1 }
 0x2a0   : > { %v5042_v9 = vpack.i.bf16 %v5041_v20, %v5041_v20  ;;  %v5089_v39 = vmax.f32 %v5087_v54, %v5088_v13  ;;  %v6116_v49 = vcombine.low %v5016_v23, %v5016_v23  ;;  %v5079_v7 = vrot.slane %v5078_v18, 1 }
 0x2a1   : > { %v5055_v38 = vpack.i.bf16 %v5054_v62, %v5054_v62  ;;  %v6117_v6 = vcombine.low %v5029_v53, %v5029_v53  ;;  %v5727_v41 = vunpack.c.l.b16 %v6115_v29  ;;  %v5067_v30 = vmax.f32 %v5065_v44, %v5066_v63 }
 0x2a2   : > { %v5090_v59 = vrot.slane %v5089_v39, 2  ;;  %v6118_v3 = vcombine.low %v5042_v9, %v5042_v9  ;;  %v5728_v11 = vunpack.c.l.b16 %v6116_v49  ;;  %v5080_v51 = vmax.f32 %v5078_v18, %v5079_v7 }
 0x2a3   : > { %v6119_v56 = vcombine.low %v5055_v38, %v5055_v38  ;;  %v5729_v43 = vunpack.c.l.b16 %v6117_v6  ;;  %v8158_v35 = vmax.f32 %v7924_v45, 0.0  ;;  %v5068_v31 = vpack.i.bf16 %v5067_v30, %v5067_v30 }
 0x2a4   : > { %v5091_v2 = vmax.f32 %v5089_v39, %v5090_v59  ;;  %v5730_v13 = vunpack.c.l.b16 %v6118_v3  ;;  %v5795_v4 = vsel %vm5767_vm15, %v5728_v11, %v5727_v41  ;;  %v5081_v14 = vpack.i.bf16 %v5080_v51, %v5080_v51 }
 0x2a5   : > { %v4262_v60 = vpack.c.bf16 %v8158_v35, %v4239_v61  ;;  %v5731_v53 = vunpack.c.l.b16 %v6119_v56  ;;  %v5796_v40 = vsel %vm5769_vm0, %v5729_v43, %v5795_v4  ;;  %v4238_v54 = vmax.f32 %v7932_v24, 0.0 }
 0x2a6   : > { %v5092_v28 = vrot.slane %v5091_v2, 1  ;;  %v6120_v16 = vcombine.low %v5068_v31, %v5068_v31  ;;  %v5797_v27 = vsel %vm5771_vm1, %v5730_v13, %v5796_v40  ;;  %v6121_v45 = vcombine.low %v5081_v14, %v5081_v14 }
 0x2a7   : > { %v5798_v61 = vsel %vm5773_vm2, %v5731_v53, %v5797_v27  ;;  %v8159_v17 = vmax.f32 %v7916_v32, 0.0  ;;  %v6349_v20 = vadd.f32 %v7813_v48, %v7803_v47  ;;  %v4174_v24 = vmul.f32 %v7902_v10, %v6348_v36 }
 0x2a8   : > { %v5093_v44 = vmax.f32 %v5091_v2, %v5092_v28  ;;  %v5732_v62 = vunpack.c.l.b16 %v6120_v16  ;;  %v6350_v18 = vadd.f32 %v7816_v5, %v7805_v42  ;;  %v5733_v29 = vunpack.c.l.b16 %v6121_v45 }
 0x2a9   : > { %v4261_v23 = vpack.c.bf16 %v4238_v54, %v8159_v17  ;;  %v4172_v50 = vmul.f32 %v7902_v10, %v6349_v20  ;;  %v4211_v39 = vadd.f32 %v7913_v21, %v4174_v24  ;;  %v7979_v51 = vadd.f32 %v7913_v21, %v4173_v46 }
 0x2aa   : > { %v5094_v63 = vpack.i.bf16 %v5093_v44, %v5093_v44  ;;  %v5799_v32 = vsel %vm5775_vm3, %v5732_v62, %v5798_v61  ;;  %v4175_v47 = vmul.f32 %v7902_v10, %v6350_v18  ;;  %v7983_v56 = vadd.f32 %v7828_v15, %v7818_v0 }
 0x2ab   : > { %v4273_v9 = vmax.bf16 %v4262_v60, %v4261_v23  ;;  %v5800_v48 = vsel %vm5777_vm4, %v5733_v29, %v5799_v32  ;;  %v7971_v42 = vadd.f32 %v7913_v21, %v4172_v50  ;;  %v4243_v7 = vmax.f32 %v4211_v39, 0.0 }
 0x2ac   : > { %v6122_v5 = vcombine.low %v5094_v63, %v5094_v63  ;;  %v4212_v6 = vadd.f32 %v7913_v21, %v4175_v47  ;;  %v4242_v14 = vmax.f32 %v7979_v51, 0.0 }
 0x2ad   : > { %v4481_v49 = vcombine.high %v4273_v9, %v4273_v9  ;;  %v4488_v38 = vrot.slane %v4273_v9, %v7670_v57  ;;  %v4241_v59 = vmax.f32 %v7971_v42, 0.0  ;;  %v4178_v42 = vmul.f32 %v7902_v10, %v7983_v56 }
 0x2ae   : > { %v5734_v3 = vunpack.c.l.b16 %v6122_v5  ;;  %v4244_v11 = vmax.f32 %v4212_v6, 0.0 }
 0x2af   : > { %v4495_v12 = vrot.slane %v4481_v49, %v7670_v57  ;;  %v4496_v41 = vcombine.high %v4488_v38, %v4488_v38  ;;  %v4504_v30 = vrot.slane %v4488_v38, %v7670_v57  ;;  %v8019_v56 = vadd.f32 %v7913_v21, %v4178_v42 }
 0x2b0   : > { %v5801_v2 = vsel %vm5779_vm5, %v5734_v3, %v5800_v48  ;;  %v7989_v4 = vpack.c.bf16 %v4244_v11, %v4243_v7 }
 0x2b1   : > { %v4497_v43 = vcombine.high %v4495_v12, %v4495_v12  ;;  %v4511_v35 = vrot.slane %v4495_v12, %v7670_v57  ;;  %v4518_v60 = vrot.slane %v4496_v41, %v7670_v57  ;;  %v4526_v31 = vcombine.high %v4504_v30, %v4504_v30 }
 0x2b2   : > { %v5096_v13 = vsel %vm4677_vm14, %v4504_v30, 4286644096  ;;  %v5833_v53 = vpack.c.b16 %v5801_v2, %v5801_v2 }
 0x2b3   : > { %v4525_v40 = vrot.slane %v4497_v43, %v7670_v57  ;;  %v4527_v0 = vcombine.high %v4511_v35, %v4511_v35  ;;  %v4528_v15 = vcombine.high %v4518_v60, %v4518_v60  ;;  %v5098_v54 = vunpack.i.l.bf16 %v5096_v13 }
 0x2b4   : > { %v5099_v28 = vunpack.i.h.bf16 %v5096_v13  ;;  %v5109_v16 = vsel %vm4677_vm14, %v4518_v60, 4286644096  ;;  %v5122_v27 = vsel %vm4677_vm14, %v4526_v31, 4286644096  ;;  %5849 = vst [vmem:[%s7744_s23 + $0xc] sm:$0xf] %v5833_v53 }
 0x2b5   : > { %v4529_v36 = vcombine.high %v4525_v40, %v4525_v40  ;;  %v5111_v45 = vunpack.i.l.bf16 %v5109_v16  ;;  %v5112_v61 = vunpack.i.h.bf16 %v5109_v16  ;;  %v5124_v17 = vunpack.i.l.bf16 %v5122_v27 }
 0x2b6   : > { %v5100_v23 = vmax.f32 %v5098_v54, %v5099_v28  ;;  %v5125_v20 = vunpack.i.h.bf16 %v5122_v27  ;;  %v5135_v44 = vsel %vm4677_vm14, %v4528_v15, 4286644096  ;;  %v5148_v62 = vsel %vm4677_vm14, %v4511_v35, 4286644096 }
 0x2b7   : > { %v5113_v24 = vmax.f32 %v5111_v45, %v5112_v61  ;;  %v5137_v18 = vunpack.i.l.bf16 %v5135_v44  ;;  %v5138_v29 = vunpack.i.h.bf16 %v5135_v44  ;;  %v5150_v9 = vunpack.i.l.bf16 %v5148_v62 }
 0x2b8   : > { %v5101_v50 = vrot.slane %v5100_v23, 4  ;;  %v5126_v55 = vmax.f32 %v5124_v17, %v5125_v20  ;;  %v5151_v63 = vunpack.i.h.bf16 %v5148_v62  ;;  %v5161_v32 = vsel %vm4677_vm14, %v4525_v40, 4286644096 }
 0x2b9   : > { %v5114_v39 = vrot.slane %v5113_v24, 4  ;;  %v5139_v47 = vmax.f32 %v5137_v18, %v5138_v29  ;;  %v5163_v48 = vunpack.i.l.bf16 %v5161_v32  ;;  %v5164_v49 = vunpack.i.h.bf16 %v5161_v32 }
 0x2ba   : > { %v5102_v38 = vmax.f32 %v5100_v23, %v5101_v50  ;;  %v5127_v5 = vrot.slane %v5126_v55, 4  ;;  %v5152_v7 = vmax.f32 %v5150_v9, %v5151_v63  ;;  %v5174_v6 = vsel %vm4677_vm14, %v4527_v0, 4286644096 }
 0x2bb   : > { %v5115_v46 = vmax.f32 %v5113_v24, %v5114_v39  ;;  %v5140_v12 = vrot.slane %v5139_v47, 4  ;;  %v5165_v41 = vmax.f32 %v5163_v48, %v5164_v49  ;;  %v5176_v30 = vunpack.i.l.bf16 %v5174_v6 }
 0x2bc   : > { %v5103_v3 = vrot.slane %v5102_v38, 2  ;;  %v5128_v11 = vmax.f32 %v5126_v55, %v5127_v5  ;;  %v5153_v43 = vrot.slane %v5152_v7, 4  ;;  %v5177_v35 = vunpack.i.h.bf16 %v5174_v6 }
 0x2bd   : > { %v5116_v60 = vrot.slane %v5115_v46, 2  ;;  %v5141_v31 = vmax.f32 %v5139_v47, %v5140_v12  ;;  %v5166_v2 = vrot.slane %v5165_v41, 4  ;;  %v5187_v13 = vsel %vm4677_vm14, %v4529_v36, 4286644096 }
 0x2be   : > { %v5104_v53 = vmax.f32 %v5102_v38, %v5103_v3  ;;  %v5129_v40 = vrot.slane %v5128_v11, 2  ;;  %v5154_v15 = vmax.f32 %v5152_v7, %v5153_v43  ;;  %v5178_v54 = vmax.f32 %v5176_v30, %v5177_v35 }
 0x2bf   : > { %v5117_v28 = vmax.f32 %v5115_v46, %v5116_v60  ;;  %v5142_v16 = vrot.slane %v5141_v31, 2  ;;  %v5167_v0 = vmax.f32 %v5165_v41, %v5166_v2  ;;  %v5189_v27 = vunpack.i.l.bf16 %v5187_v13 }
 0x2c0   : > { %v5105_v45 = vrot.slane %v5104_v53, 1  ;;  %v5130_v61 = vmax.f32 %v5128_v11, %v5129_v40  ;;  %v5155_v17 = vrot.slane %v5154_v15, 2  ;;  %v5179_v23 = vrot.slane %v5178_v54, 4 }
 0x2c1   : > { %v5118_v20 = vrot.slane %v5117_v28, 1  ;;  %v5143_v44 = vmax.f32 %v5141_v31, %v5142_v16  ;;  %v5168_v62 = vrot.slane %v5167_v0, 2  ;;  %v5190_v24 = vunpack.i.h.bf16 %v5187_v13 }
 0x2c2   : > { %v5106_v18 = vmax.f32 %v5104_v53, %v5105_v45  ;;  %v5131_v29 = vrot.slane %v5130_v61, 1  ;;  %v5156_v9 = vmax.f32 %v5154_v15, %v5155_v17  ;;  %v5180_v36 = vmax.f32 %v5178_v54, %v5179_v23 }
 0x2c3   : > { %v5119_v50 = vmax.f32 %v5117_v28, %v5118_v20  ;;  %v5144_v55 = vrot.slane %v5143_v44, 1  ;;  %v5169_v63 = vmax.f32 %v5167_v0, %v5168_v62  ;;  %v5191_v32 = vmax.f32 %v5189_v27, %v5190_v24 }
 0x2c4   : > { %v5107_v39 = vpack.i.bf16 %v5106_v18, %v5106_v18  ;;  %v5132_v47 = vmax.f32 %v5130_v61, %v5131_v29  ;;  %v5157_v48 = vrot.slane %v5156_v9, 1  ;;  %v5181_v49 = vrot.slane %v5180_v36, 2 }
 0x2c5   : > { %v5120_v38 = vpack.i.bf16 %v5119_v50, %v5119_v50  ;;  %v5145_v5 = vmax.f32 %v5143_v44, %v5144_v55  ;;  %v5170_v7 = vrot.slane %v5169_v63, 1  ;;  %v5192_v6 = vrot.slane %v5191_v32, 4 }
 0x2c6   : > { %v5133_v46 = vpack.i.bf16 %v5132_v47, %v5132_v47  ;;  %v5158_v12 = vmax.f32 %v5156_v9, %v5157_v48  ;;  %v5182_v41 = vmax.f32 %v5180_v36, %v5181_v49  ;;  %v6123_v30 = vcombine.low %v5107_v39, %v5107_v39 }
 0x2c7   : > { %v5146_v3 = vpack.i.bf16 %v5145_v5, %v5145_v5  ;;  %v5171_v11 = vmax.f32 %v5169_v63, %v5170_v7  ;;  %v5193_v43 = vmax.f32 %v5191_v32, %v5192_v6  ;;  %v6124_v35 = vcombine.low %v5120_v38, %v5120_v38 }
 0x2c8   : > { %v5159_v60 = vpack.i.bf16 %v5158_v12, %v5158_v12  ;;  %v5183_v31 = vrot.slane %v5182_v41, 1  ;;  %v6125_v2 = vcombine.low %v5133_v46, %v5133_v46  ;;  %v5735_v13 = vunpack.c.l.b16 %v6123_v30 }
 0x2c9   : > { %v5172_v53 = vpack.i.bf16 %v5171_v11, %v5171_v11  ;;  %v5194_v40 = vrot.slane %v5193_v43, 2  ;;  %v6126_v15 = vcombine.low %v5146_v3, %v5146_v3  ;;  %v5736_v54 = vunpack.c.l.b16 %v6124_v35 }
 0x2ca   : > { %v5184_v28 = vmax.f32 %v5182_v41, %v5183_v31  ;;  %v6127_v16 = vcombine.low %v5159_v60, %v5159_v60  ;;  %v5737_v0 = vunpack.c.l.b16 %v6125_v2  ;;  %v4263_v27 = vpack.c.bf16 %v4242_v14, %v4241_v59 }
 0x2cb   : > { %v5195_v45 = vmax.f32 %v5193_v43, %v5194_v40  ;;  %v6128_v61 = vcombine.low %v5172_v53, %v5172_v53  ;;  %v5738_v17 = vunpack.c.l.b16 %v6126_v15  ;;  %v5802_v23 = vsel %vm5767_vm15, %v5736_v54, %v5735_v13 }
 0x2cc   : > { %v5185_v20 = vpack.i.bf16 %v5184_v28, %v5184_v28  ;;  %v5739_v44 = vunpack.c.l.b16 %v6127_v16  ;;  %v5803_v62 = vsel %vm5769_vm0, %v5737_v0, %v5802_v23  ;;  %v4274_v24 = vmax.bf16 %v7989_v4, %v4263_v27 }
 0x2cd   : > { %v5196_v18 = vrot.slane %v5195_v45, 1  ;;  %v5740_v29 = vunpack.c.l.b16 %v6128_v61  ;;  %v5804_v9 = vsel %vm5771_vm1, %v5738_v17, %v5803_v62  ;;  %v6353_v55 = vadd.f32 %v7834_v37, %v7822_v58 }
 0x2ce   : > { %v6129_v51 = vcombine.low %v5185_v20, %v5185_v20  ;;  %v5805_v59 = vsel %vm5773_vm2, %v5739_v44, %v5804_v9  ;;  %v4530_v14 = vcombine.high %v4274_v24, %v4274_v24  ;;  %v4537_v36 = vrot.slane %v4274_v24, %v7670_v57 }
 0x2cf   : > { %v5197_v50 = vmax.f32 %v5195_v45, %v5196_v18  ;;  %v5806_v63 = vsel %vm5775_vm3, %v5740_v29, %v5805_v59  ;;  %v8023_v49 = vadd.f32 %v7840_v33, %v7824_v19  ;;  %v8028_v37 = vmul.f32 %v7902_v10, %v6353_v55 }
 0x2d0   : > { %v4544_v4 = vrot.slane %v4530_v14, %v7670_v57  ;;  %v4545_v32 = vcombine.high %v4537_v36, %v4537_v36  ;;  %v4553_v39 = vrot.slane %v4537_v36, %v7670_v57  ;;  %v5741_v48 = vunpack.c.l.b16 %v6129_v51 }
 0x2d1   : > { %v5198_v47 = vpack.i.bf16 %v5197_v50, %v5197_v50 }
 0x2d2   : > { %v4546_v38 = vcombine.high %v4544_v4, %v4544_v4  ;;  %v4560_v5 = vrot.slane %v4544_v4, %v7670_v57  ;;  %v4567_v58 = vrot.slane %v4545_v32, %v7670_v57  ;;  %v5807_v6 = vsel %vm5777_vm4, %v5741_v48, %v5806_v63 }
 0x2d3   : > { %v6130_v7 = vcombine.low %v5198_v47, %v5198_v47  ;;  %v4575_v46 = vcombine.high %v4553_v39, %v4553_v39  ;;  %v5200_v12 = vsel %vm4677_vm14, %v4553_v39, 4286644096 }
 0x2d4   : > { %v4574_v41 = vrot.slane %v4546_v38, %v7670_v57  ;;  %v4576_v30 = vcombine.high %v4560_v5, %v4560_v5  ;;  %v4577_v3 = vcombine.high %v4567_v58, %v4567_v58  ;;  %v5202_v19 = vunpack.i.l.bf16 %v5200_v12 }
 0x2d5   : > { %v5742_v33 = vunpack.c.l.b16 %v6130_v7  ;;  %v5203_v11 = vunpack.i.h.bf16 %v5200_v12  ;;  %v5213_v43 = vsel %vm4677_vm14, %v4567_v58, 4286644096  ;;  %v5226_v35 = vsel %vm4677_vm14, %v4575_v46, 4286644096 }
 0x2d6   : > { %v4578_v60 = vcombine.high %v4574_v41, %v4574_v41  ;;  %v5215_v31 = vunpack.i.l.bf16 %v5213_v43  ;;  %v5216_v2 = vunpack.i.h.bf16 %v5213_v43  ;;  %v5228_v13 = vunpack.i.l.bf16 %v5226_v35 }
 0x2d7   : > { %v5808_v53 = vsel %vm5779_vm5, %v5742_v33, %v5807_v6  ;;  %v5204_v40 = vmax.f32 %v5202_v19, %v5203_v11  ;;  %v5229_v15 = vunpack.i.h.bf16 %v5226_v35  ;;  %v5239_v54 = vsel %vm4677_vm14, %v4577_v3, 4286644096 }
 0x2d8   : > { %v5834_v28 = vpack.c.b16 %v5808_v53, %v5808_v53  ;;  %v5217_v16 = vmax.f32 %v5215_v31, %v5216_v2  ;;  %v5241_v0 = vunpack.i.l.bf16 %v5239_v54  ;;  %v5242_v27 = vunpack.i.h.bf16 %v5239_v54 }
 0x2d9   : > { %v5205_v45 = vrot.slane %v5204_v40, 4  ;;  %v5230_v61 = vmax.f32 %v5228_v13, %v5229_v15  ;;  %v5252_v17 = vsel %vm4677_vm14, %v4560_v5, 4286644096  ;;  %v5265_v23 = vsel %vm4677_vm14, %v4574_v41, 4286644096 }
 0x2da   : > { %5850 = vst [vmem:[%s7744_s23 + $0x10] sm:$0xf] %v5834_v28  ;;  %v5218_v20 = vrot.slane %v5217_v16, 4  ;;  %v5243_v44 = vmax.f32 %v5241_v0, %v5242_v27  ;;  %v5254_v62 = vunpack.i.l.bf16 %v5252_v17  ;;  %v5255_v24 = vunpack.i.h.bf16 %v5252_v17 }
 0x2db   : > { %v5206_v18 = vmax.f32 %v5204_v40, %v5205_v45  ;;  %v5231_v29 = vrot.slane %v5230_v61, 4  ;;  %v5267_v9 = vunpack.i.l.bf16 %v5265_v23  ;;  %v5268_v42 = vunpack.i.h.bf16 %v5265_v23 }
 0x2dc   : > { %v5219_v51 = vmax.f32 %v5217_v16, %v5218_v20  ;;  %v5244_v59 = vrot.slane %v5243_v44, 4  ;;  %v5256_v14 = vmax.f32 %v5254_v62, %v5255_v24  ;;  %v5278_v36 = vsel %vm4677_vm14, %v4576_v30, 4286644096 }
 0x2dd   : > { %v5207_v50 = vrot.slane %v5206_v18, 2  ;;  %v5232_v55 = vmax.f32 %v5230_v61, %v5231_v29  ;;  %v5269_v63 = vmax.f32 %v5267_v9, %v5268_v42  ;;  %v5280_v4 = vunpack.i.l.bf16 %v5278_v36 }
 0x2de   : > { %v5220_v32 = vrot.slane %v5219_v51, 2  ;;  %v5245_v39 = vmax.f32 %v5243_v44, %v5244_v59  ;;  %v5257_v47 = vrot.slane %v5256_v14, 4  ;;  %v5281_v48 = vunpack.i.h.bf16 %v5278_v36 }
 0x2df   : > { %v5208_v38 = vmax.f32 %v5206_v18, %v5207_v50  ;;  %v5233_v5 = vrot.slane %v5232_v55, 2  ;;  %v5270_v58 = vrot.slane %v5269_v63, 4  ;;  %v5291_v7 = vsel %vm4677_vm14, %v4578_v60, 4286644096 }
 0x2e0   : > { %v5221_v6 = vmax.f32 %v5219_v51, %v5220_v32  ;;  %v5246_v46 = vrot.slane %v5245_v39, 2  ;;  %v5258_v12 = vmax.f32 %v5256_v14, %v5257_v47  ;;  %v5282_v41 = vmax.f32 %v5280_v4, %v5281_v48 }
 0x2e1   : > { %v5209_v3 = vrot.slane %v5208_v38, 1  ;;  %v5234_v19 = vmax.f32 %v5232_v55, %v5233_v5  ;;  %v5271_v30 = vmax.f32 %v5269_v63, %v5270_v58  ;;  %v5293_v33 = vunpack.i.l.bf16 %v5291_v7 }
 0x2e2   : > { %v5222_v11 = vrot.slane %v5221_v6, 1  ;;  %v5247_v43 = vmax.f32 %v5245_v39, %v5246_v46  ;;  %v5259_v35 = vrot.slane %v5258_v12, 2  ;;  %v5283_v31 = vrot.slane %v5282_v41, 4 }
 0x2e3   : > { %v5210_v2 = vmax.f32 %v5208_v38, %v5209_v3  ;;  %v5235_v13 = vrot.slane %v5234_v19, 1  ;;  %v5272_v53 = vrot.slane %v5271_v30, 2  ;;  %v5294_v40 = vunpack.i.h.bf16 %v5291_v7 }
 0x2e4   : > { %v5223_v15 = vmax.f32 %v5221_v6, %v5222_v11  ;;  %v5248_v54 = vrot.slane %v5247_v43, 1  ;;  %v5260_v28 = vmax.f32 %v5258_v12, %v5259_v35  ;;  %v5284_v60 = vmax.f32 %v5282_v41, %v5283_v31 }
 0x2e5   : > { %v5211_v16 = vpack.i.bf16 %v5210_v2, %v5210_v2  ;;  %v5236_v0 = vmax.f32 %v5234_v19, %v5235_v13  ;;  %v5273_v27 = vmax.f32 %v5271_v30, %v5272_v53  ;;  %v5295_v45 = vmax.f32 %v5293_v33, %v5294_v40 }
 0x2e6   : > { %v5224_v61 = vpack.i.bf16 %v5223_v15, %v5223_v15  ;;  %v5249_v17 = vmax.f32 %v5247_v43, %v5248_v54  ;;  %v5261_v23 = vrot.slane %v5260_v28, 1  ;;  %v5285_v20 = vrot.slane %v5284_v60, 2 }
 0x2e7   : > { %v5237_v44 = vpack.i.bf16 %v5236_v0, %v5236_v0  ;;  %v5274_v62 = vrot.slane %v5273_v27, 1  ;;  %v5296_v24 = vrot.slane %v5295_v45, 4  ;;  %v6131_v18 = vcombine.low %v5211_v16, %v5211_v16 }
 0x2e8   : > { %v5250_v29 = vpack.i.bf16 %v5249_v17, %v5249_v17  ;;  %v5262_v9 = vmax.f32 %v5260_v28, %v5261_v23  ;;  %v5286_v42 = vmax.f32 %v5284_v60, %v5285_v20  ;;  %v6132_v51 = vcombine.low %v5224_v61, %v5224_v61  ;;  %v8160_v60 = vld [vmem:[#allocation4_spill] sm:$0xff] }
 0x2e9   : > { %v5275_v59 = vmax.f32 %v5273_v27, %v5274_v62  ;;  %v5297_v14 = vmax.f32 %v5295_v45, %v5296_v24  ;;  %v6133_v36 = vcombine.low %v5237_v44, %v5237_v44  ;;  %v5743_v50 = vunpack.c.l.b16 %v6131_v18  ;;  %v8162_v45 = vld [vmem:[#allocation5_spill] sm:$0xff] }
 0x2ea   : > { %v5263_v55 = vpack.i.bf16 %v5262_v9, %v5262_v9  ;;  %v5287_v63 = vrot.slane %v5286_v42, 1  ;;  %v6134_v4 = vcombine.low %v5250_v29, %v5250_v29  ;;  %v5744_v32 = vunpack.c.l.b16 %v6132_v51 }
 0x2eb   : > { %v5276_v39 = vpack.i.bf16 %v5275_v59, %v5275_v59  ;;  %v5298_v47 = vrot.slane %v5297_v14, 2  ;;  %v5745_v48 = vunpack.c.l.b16 %v6133_v36  ;;  %v4213_v38 = vadd.f32 %v7913_v21, %v8028_v37 }
 0x2ec   : > { %v5288_v5 = vmax.f32 %v5286_v42, %v5287_v63  ;;  %v6135_v58 = vcombine.low %v5263_v55, %v5263_v55  ;;  %v5746_v7 = vunpack.c.l.b16 %v6134_v4  ;;  %v5809_v6 = vsel %vm5767_vm15, %v5744_v32, %v5743_v50 }
 0x2ed   : > { %v5299_v46 = vmax.f32 %v5297_v14, %v5298_v47  ;;  %v6136_v12 = vcombine.low %v5276_v39, %v5276_v39  ;;  %v5810_v41 = vsel %vm5769_vm0, %v5745_v48, %v5809_v6  ;;  %v4179_v3 = vmul.f32 %v7902_v10, %v8023_v49 }
 0x2ee   : > { %v5289_v19 = vpack.i.bf16 %v5288_v5, %v5288_v5  ;;  %v5747_v30 = vunpack.c.l.b16 %v6135_v58  ;;  %v5811_v33 = vsel %vm5771_vm1, %v5746_v7, %v5810_v41  ;;  %v6355_v11 = vadd.f32 %v7854_v52, %v7826_v22 }
 0x2ef   : > { %v5300_v37 = vrot.slane %v5299_v46, 1  ;;  %v4247_v43 = vmax.f32 %v8019_v56, 0.0  ;;  %v4216_v35 = vadd.f32 %v7913_v21, %v4179_v3  ;;  %v6356_v31 = vadd.f32 %v7869_v25, %v7863_v8  ;;  %v8161_v8 = vld [vmem:[#allocation6_spill] sm:$0xff] }
 0x2f0   : > { %v6137_v2 = vcombine.low %v5289_v19, %v5289_v19  ;;  %v5812_v13 = vsel %vm5773_vm2, %v5747_v30, %v5811_v33  ;;  %v4177_v49 = vmul.f32 %v7902_v10, %v6355_v11  ;;  %v6357_v53 = vadd.f32 %v7873_v1, %v7865_v34 }
 0x2f1   : > { %v5301_v40 = vmax.f32 %v5299_v46, %v5300_v37  ;;  %v5748_v15 = vunpack.c.l.b16 %v6136_v12  ;;  %v4248_v54 = vmax.f32 %v4216_v35, 0.0  ;;  %v4182_v22 = vmul.f32 %v7902_v10, %v6356_v31 }
 0x2f2   : > { %v4245_v52 = vmax.f32 %v4213_v38, 0.0  ;;  %v4214_v56 = vadd.f32 %v7913_v21, %v4177_v49  ;;  %v4180_v28 = vmul.f32 %v7902_v10, %v6357_v53  ;;  %v6358_v25 = vadd.f32 %v8161_v8, %v8160_v60 }
 0x2f3   : > { %v5302_v16 = vpack.i.bf16 %v5301_v40, %v5301_v40  ;;  %v5813_v0 = vsel %vm5775_vm3, %v5748_v15, %v5812_v13  ;;  %v4266_v27 = vpack.c.bf16 %v4248_v54, %v4247_v43  ;;  %v6359_v34 = vadd.f32 %v7877_v26, %v8162_v45 }
 0x2f4   : > { %v5749_v1 = vunpack.c.l.b16 %v6137_v2  ;;  %v4246_v61 = vmax.f32 %v4214_v56, 0.0  ;;  %v4219_v17 = vadd.f32 %v7913_v21, %v4182_v22  ;;  %v4183_v23 = vmul.f32 %v7902_v10, %v6358_v25 }
 0x2f5   : > { %v6138_v20 = vcombine.low %v5302_v16, %v5302_v16  ;;  %v4217_v44 = vadd.f32 %v7913_v21, %v4180_v28  ;;  %v4181_v62 = vmul.f32 %v7902_v10, %v6359_v34 }
 0x2f6   : > { %v5814_v24 = vsel %vm5777_vm4, %v5749_v1, %v5813_v0  ;;  %v4265_v18 = vpack.c.bf16 %v4246_v61, %v4245_v52  ;;  %v4220_v29 = vadd.f32 %v7913_v21, %v4183_v23  ;;  %v4251_v51 = vmax.f32 %v4219_v17, 0.0 }
 0x2f7   : > { %v5750_v9 = vunpack.c.l.b16 %v6138_v20  ;;  %v4218_v26 = vadd.f32 %v7913_v21, %v4181_v62  ;;  %v4249_v36 = vmax.f32 %v4217_v44, 0.0 }
 0x2f8   : > { %v4275_v42 = vmax.bf16 %v4266_v27, %v4265_v18  ;;  %v4252_v59 = vmax.f32 %v4220_v29, 0.0 }
 0x2f9   : > { %v5815_v14 = vsel %vm5779_vm5, %v5750_v9, %v5814_v24  ;;  %v4250_v50 = vmax.f32 %v4218_v26, 0.0 }
 0x2fa   : > { %v5835_v55 = vpack.c.b16 %v5815_v14, %v5815_v14  ;;  %v4579_v63 = vcombine.high %v4275_v42, %v4275_v42  ;;  %v4586_v10 = vrot.slane %v4275_v42, %v7670_v57  ;;  %v4268_v4 = vpack.c.bf16 %v4252_v59, %v4251_v51 }
 0x2fb   : > { %v4267_v32 = vpack.c.bf16 %v4250_v50, %v4249_v36 }
 0x2fc   : > { %5851 = vst [vmem:[%s7744_s23 + $0x14] sm:$0xf] %v5835_v55  ;;  %v4593_v39 = vrot.slane %v4579_v63, %v7670_v57  ;;  %v4594_v47 = vcombine.high %v4586_v10, %v4586_v10  ;;  %v4602_v48 = vrot.slane %v4586_v10, %v7670_v57 }
 0x2fd   : > { %v8079_v21 = vmax.bf16 %v4268_v4, %v4267_v32 }
 0x2fe   : > { %v4595_v38 = vcombine.high %v4593_v39, %v4593_v39  ;;  %v4609_v5 = vrot.slane %v4593_v39, %v7670_v57  ;;  %v4616_v58 = vrot.slane %v4594_v47, %v7670_v57  ;;  %v4624_v7 = vcombine.high %v4602_v48, %v4602_v48 }
 0x2ff   : > { %v5304_v6 = vsel %vm4677_vm14, %v4602_v48, 4286644096  ;;  %v4628_v46 = vcombine.high %v8079_v21, %v8079_v21  ;;  %v8088_v12 = vrot.slane %v8079_v21, %v7670_v57 }
 0x300   : > { %v4623_v41 = vrot.slane %v4595_v38, %v7670_v57  ;;  %v4625_v3 = vcombine.high %v4609_v5, %v4609_v5  ;;  %v4626_v19 = vcombine.high %v4616_v58, %v4616_v58  ;;  %v5306_v30 = vunpack.i.l.bf16 %v5304_v6 }
 0x301   : > { %v5307_v33 = vunpack.i.h.bf16 %v5304_v6  ;;  %v5317_v11 = vsel %vm4677_vm14, %v4616_v58, 4286644096  ;;  %v5330_v37 = vsel %vm4677_vm14, %v4624_v7, 4286644096  ;;  %v5356_v43 = vsel %vm4677_vm14, %v4609_v5, 4286644096 }
 0x302   : > { %v4627_v35 = vcombine.high %v4623_v41, %v4623_v41  ;;  %v5319_v31 = vunpack.i.l.bf16 %v5317_v11  ;;  %v5320_v2 = vunpack.i.h.bf16 %v5317_v11  ;;  %v5332_v13 = vunpack.i.l.bf16 %v5330_v37 }
 0x303   : > { %v5308_v49 = vmax.f32 %v5306_v30, %v5307_v33  ;;  %v5333_v53 = vunpack.i.h.bf16 %v5330_v37  ;;  %v5343_v40 = vsel %vm4677_vm14, %v4626_v19, 4286644096  ;;  %v5358_v15 = vunpack.i.l.bf16 %v5356_v43 }
 0x304   : > { %v5321_v54 = vmax.f32 %v5319_v31, %v5320_v2  ;;  %v5345_v22 = vunpack.i.l.bf16 %v5343_v40  ;;  %v5346_v52 = vunpack.i.h.bf16 %v5343_v40  ;;  %v5359_v56 = vunpack.i.h.bf16 %v5356_v43 }
 0x305   : > { %v5309_v28 = vrot.slane %v5308_v49, 4  ;;  %v5334_v60 = vmax.f32 %v5332_v13, %v5333_v53  ;;  %v5369_v8 = vsel %vm4677_vm14, %v4623_v41, 4286644096  ;;  %v5382_v25 = vsel %vm4677_vm14, %v4625_v3, 4286644096 }
 0x306   : > { %v5322_v16 = vrot.slane %v5321_v54, 4  ;;  %v5347_v0 = vmax.f32 %v5345_v22, %v5346_v52  ;;  %v5360_v27 = vmax.f32 %v5358_v15, %v5359_v56  ;;  %v5371_v45 = vunpack.i.l.bf16 %v5369_v8 }
 0x307   : > { %v5310_v34 = vmax.f32 %v5308_v49, %v5309_v28  ;;  %v5335_v1 = vrot.slane %v5334_v60, 4  ;;  %v5372_v61 = vunpack.i.h.bf16 %v5369_v8  ;;  %v5384_v17 = vunpack.i.l.bf16 %v5382_v25 }
 0x308   : > { %v5323_v23 = vmax.f32 %v5321_v54, %v5322_v16  ;;  %v5348_v20 = vrot.slane %v5347_v0, 4  ;;  %v5361_v44 = vrot.slane %v5360_v27, 4  ;;  %v5385_v62 = vunpack.i.h.bf16 %v5382_v25 }
 0x309   : > { %v5311_v24 = vrot.slane %v5310_v34, 2  ;;  %v5336_v18 = vmax.f32 %v5334_v60, %v5335_v1  ;;  %v5373_v29 = vmax.f32 %v5371_v45, %v5372_v61  ;;  %v5395_v9 = vsel %vm4677_vm14, %v4627_v35, 4286644096 }
 0x30a   : > { %v5324_v26 = vrot.slane %v5323_v23, 2  ;;  %v5349_v42 = vmax.f32 %v5347_v0, %v5348_v20  ;;  %v5362_v51 = vmax.f32 %v5360_v27, %v5361_v44  ;;  %v5386_v59 = vmax.f32 %v5384_v17, %v5385_v62 }
 0x30b   : > { %v5312_v14 = vmax.f32 %v5310_v34, %v5311_v24  ;;  %v5337_v36 = vrot.slane %v5336_v18, 2  ;;  %v5374_v50 = vrot.slane %v5373_v29, 4  ;;  %v5397_v55 = vunpack.i.l.bf16 %v5395_v9 }
 0x30c   : > { %v5325_v63 = vmax.f32 %v5323_v23, %v5324_v26  ;;  %v5350_v10 = vrot.slane %v5349_v42, 2  ;;  %v5363_v4 = vrot.slane %v5362_v51, 2  ;;  %v5387_v32 = vrot.slane %v5386_v59, 4 }
 0x30d   : > { %v5313_v39 = vrot.slane %v5312_v14, 1  ;;  %v5338_v47 = vmax.f32 %v5336_v18, %v5337_v36  ;;  %v5375_v48 = vmax.f32 %v5373_v29, %v5374_v50  ;;  %v5398_v38 = vunpack.i.h.bf16 %v5395_v9 }
 0x30e   : > { %v5326_v5 = vrot.slane %v5325_v63, 1  ;;  %v5351_v58 = vmax.f32 %v5349_v42, %v5350_v10  ;;  %v5364_v7 = vmax.f32 %v5362_v51, %v5363_v4  ;;  %v5388_v6 = vmax.f32 %v5386_v59, %v5387_v32 }
 0x30f   : > { %v5314_v41 = vmax.f32 %v5312_v14, %v5313_v39  ;;  %v5339_v3 = vrot.slane %v5338_v47, 1  ;;  %v5376_v19 = vrot.slane %v5375_v48, 2  ;;  %v5399_v30 = vmax.f32 %v5397_v55, %v5398_v38 }
 0x310   : > { %v5327_v33 = vmax.f32 %v5325_v63, %v5326_v5  ;;  %v5352_v11 = vrot.slane %v5351_v58, 1  ;;  %v5365_v37 = vrot.slane %v5364_v7, 1  ;;  %v5389_v43 = vrot.slane %v5388_v6, 2 }
 0x311   : > { %v5315_v35 = vpack.i.bf16 %v5314_v41, %v5314_v41  ;;  %v5340_v31 = vmax.f32 %v5338_v47, %v5339_v3  ;;  %v5377_v2 = vmax.f32 %v5375_v48, %v5376_v19  ;;  %v5400_v13 = vrot.slane %v5399_v30, 4 }
 0x312   : > { %v5328_v49 = vpack.i.bf16 %v5327_v33, %v5327_v33  ;;  %v5353_v53 = vmax.f32 %v5351_v58, %v5352_v11  ;;  %v5366_v40 = vmax.f32 %v5364_v7, %v5365_v37  ;;  %v5390_v15 = vmax.f32 %v5388_v6, %v5389_v43 }
 0x313   : > { %v5341_v54 = vpack.i.bf16 %v5340_v31, %v5340_v31  ;;  %v5378_v22 = vrot.slane %v5377_v2, 1  ;;  %v5401_v52 = vmax.f32 %v5399_v30, %v5400_v13  ;;  %v6139_v56 = vcombine.low %v5315_v35, %v5315_v35 }
 0x314   : > { %v5354_v28 = vpack.i.bf16 %v5353_v53, %v5353_v53  ;;  %v5367_v60 = vpack.i.bf16 %v5366_v40, %v5366_v40  ;;  %v5391_v8 = vrot.slane %v5390_v15, 1  ;;  %v6140_v25 = vcombine.low %v5328_v49, %v5328_v49 }
 0x315   : > { %v5379_v16 = vmax.f32 %v5377_v2, %v5378_v22  ;;  %v5402_v0 = vrot.slane %v5401_v52, 2  ;;  %v6141_v27 = vcombine.low %v5341_v54, %v5341_v54  ;;  %v5751_v45 = vunpack.c.l.b16 %v6139_v56 }
 0x316   : > { %v5392_v34 = vmax.f32 %v5390_v15, %v5391_v8  ;;  %v6142_v1 = vcombine.low %v5354_v28, %v5354_v28  ;;  %v6143_v61 = vcombine.low %v5367_v60, %v5367_v60  ;;  %v5752_v17 = vunpack.c.l.b16 %v6140_v25 }
 0x317   : > { %v5380_v23 = vpack.i.bf16 %v5379_v16, %v5379_v16  ;;  %v5403_v20 = vmax.f32 %v5401_v52, %v5402_v0  ;;  %v5753_v44 = vunpack.c.l.b16 %v6141_v27  ;;  %v4642_v62 = vrot.slane %v4628_v46, %v7670_v57 }
 0x318   : > { %v5393_v24 = vpack.i.bf16 %v5392_v34, %v5392_v34  ;;  %v5754_v18 = vunpack.c.l.b16 %v6142_v1  ;;  %v5755_v29 = vunpack.c.l.b16 %v6143_v61  ;;  %v5816_v9 = vsel %vm5767_vm15, %v5752_v17, %v5751_v45 }
 0x319   : > { %v5404_v26 = vrot.slane %v5403_v20, 1  ;;  %v6144_v42 = vcombine.low %v5380_v23, %v5380_v23  ;;  %v5817_v51 = vsel %vm5769_vm0, %v5753_v44, %v5816_v9  ;;  %v4643_v59 = vcombine.high %v8088_v12, %v8088_v12 }
 0x31a   : > { %v6145_v14 = vcombine.low %v5393_v24, %v5393_v24  ;;  %v5818_v36 = vsel %vm5771_vm1, %v5754_v18, %v5817_v51  ;;  %v4644_v50 = vcombine.high %v4642_v62, %v4642_v62  ;;  %v4651_v21 = vrot.slane %v8088_v12, %v7670_v57 }
 0x31b   : > { %v5405_v46 = vmax.f32 %v5403_v20, %v5404_v26  ;;  %v5756_v55 = vunpack.c.l.b16 %v6144_v42  ;;  %v5819_v63 = vsel %vm5773_vm2, %v5755_v29, %v5818_v36  ;;  %v4658_v10 = vrot.slane %v4642_v62, %v7670_v57 }
 0x31c   : > { %v5757_v4 = vunpack.c.l.b16 %v6145_v14  ;;  %v4665_v32 = vrot.slane %v4643_v59, %v7670_v57  ;;  %v4672_v39 = vrot.slane %v4644_v50, %v7670_v57  ;;  %v4673_v47 = vcombine.high %v4651_v21, %v4651_v21 }
 0x31d   : > { %v5406_v48 = vpack.i.bf16 %v5405_v46, %v5405_v46  ;;  %v5820_v38 = vsel %vm5775_vm3, %v5756_v55, %v5819_v63  ;;  %v4674_v5 = vcombine.high %v4658_v10, %v4658_v10  ;;  %v5408_v58 = vsel %vm4677_vm14, %v4651_v21, 4286644096 }
 0x31e   : > { %v5821_v12 = vsel %vm5777_vm4, %v5757_v4, %v5820_v38  ;;  %v4675_v7 = vcombine.high %v4665_v32, %v4665_v32  ;;  %v4676_v6 = vcombine.high %v4672_v39, %v4672_v39  ;;  %v5410_v41 = vunpack.i.l.bf16 %v5408_v58 }
 0x31f   : > { %v6146_v3 = vcombine.low %v5406_v48, %v5406_v48  ;;  %v5411_v19 = vunpack.i.h.bf16 %v5408_v58  ;;  %v5421_v30 = vsel %vm4677_vm14, %v4665_v32, 4286644096  ;;  %v5434_v33 = vsel %vm4677_vm14, %v4673_v47, 4286644096 }
 0x320   : > { %v5423_v11 = vunpack.i.l.bf16 %v5421_v30  ;;  %v5424_v57 = vunpack.i.h.bf16 %v5421_v30  ;;  %v5436_v37 = vunpack.i.l.bf16 %v5434_v33  ;;  %v5437_v43 = vunpack.i.h.bf16 %v5434_v33 }
 0x321   : > { %v5758_v35 = vunpack.c.l.b16 %v6146_v3  ;;  %v5412_v31 = vmax.f32 %v5410_v41, %v5411_v19  ;;  %v5447_v2 = vsel %vm4677_vm14, %v4675_v7, 4286644096  ;;  %v5460_v13 = vsel %vm4677_vm14, %v4658_v10, 4286644096 }
 0x322   : > { %v5425_v49 = vmax.f32 %v5423_v11, %v5424_v57  ;;  %v5438_v53 = vmax.f32 %v5436_v37, %v5437_v43  ;;  %v5449_v40 = vunpack.i.l.bf16 %v5447_v2  ;;  %v5450_v15 = vunpack.i.h.bf16 %v5447_v2 }
 0x323   : > { %v5822_v54 = vsel %vm5779_vm5, %v5758_v35, %v5821_v12  ;;  %v5413_v22 = vrot.slane %v5412_v31, 4  ;;  %v5462_v52 = vunpack.i.l.bf16 %v5460_v13  ;;  %v5463_v56 = vunpack.i.h.bf16 %v5460_v13 }
 0x324   : > { %v5836_v28 = vpack.c.b16 %v5822_v54, %v5822_v54  ;;  %v5426_v60 = vrot.slane %v5425_v49, 4  ;;  %v5439_v8 = vrot.slane %v5438_v53, 4  ;;  %v5451_v25 = vmax.f32 %v5449_v40, %v5450_v15 }
 0x325   : > { %v5414_v16 = vmax.f32 %v5412_v31, %v5413_v22  ;;  %v5464_v0 = vmax.f32 %v5462_v52, %v5463_v56  ;;  %v5473_v27 = vsel %vm4677_vm14, %v4672_v39, 4286644096  ;;  %v5486_v45 = vsel %vm4677_vm14, %v4674_v5, 4286644096 }
 0x326   : > { %5852 = vst [vmem:[%s7744_s23 + $0x18] sm:$0xf] %v5836_v28  ;;  %v5427_v34 = vmax.f32 %v5425_v49, %v5426_v60  ;;  %v5440_v1 = vmax.f32 %v5438_v53, %v5439_v8  ;;  %v5452_v61 = vrot.slane %v5451_v25, 4  ;;  %v5475_v17 = vunpack.i.l.bf16 %v5473_v27 }
 0x327   : > { %v5415_v23 = vrot.slane %v5414_v16, 2  ;;  %v5465_v20 = vrot.slane %v5464_v0, 4  ;;  %v5476_v44 = vunpack.i.h.bf16 %v5473_v27  ;;  %v5488_v62 = vunpack.i.l.bf16 %v5486_v45 }
 0x328   : > { %v5428_v24 = vrot.slane %v5427_v34, 2  ;;  %v5441_v18 = vrot.slane %v5440_v1, 2  ;;  %v5453_v29 = vmax.f32 %v5451_v25, %v5452_v61  ;;  %v5489_v9 = vunpack.i.h.bf16 %v5486_v45 }
 0x329   : > { %v5416_v26 = vmax.f32 %v5414_v16, %v5415_v23  ;;  %v5466_v42 = vmax.f32 %v5464_v0, %v5465_v20  ;;  %v5477_v51 = vmax.f32 %v5475_v17, %v5476_v44  ;;  %v5499_v59 = vsel %vm4677_vm14, %v4676_v6, 4286644096 }
 0x32a   : > { %v5429_v14 = vmax.f32 %v5427_v34, %v5428_v24  ;;  %v5442_v36 = vmax.f32 %v5440_v1, %v5441_v18  ;;  %v5454_v50 = vrot.slane %v5453_v29, 2  ;;  %v5490_v21 = vmax.f32 %v5488_v62, %v5489_v9 }
 0x32b   : > { %v5417_v46 = vrot.slane %v5416_v26, 1  ;;  %v5467_v55 = vrot.slane %v5466_v42, 2  ;;  %v5478_v63 = vrot.slane %v5477_v51, 4  ;;  %v5501_v10 = vunpack.i.l.bf16 %v5499_v59 }
 0x32c   : > { %v5430_v4 = vrot.slane %v5429_v14, 1  ;;  %v5443_v32 = vrot.slane %v5442_v36, 1  ;;  %v5455_v39 = vmax.f32 %v5453_v29, %v5454_v50  ;;  %v5491_v47 = vrot.slane %v5490_v21, 4 }
 0x32d   : > { %v5418_v48 = vmax.f32 %v5416_v26, %v5417_v46  ;;  %v5468_v38 = vmax.f32 %v5466_v42, %v5467_v55  ;;  %v5479_v5 = vmax.f32 %v5477_v51, %v5478_v63  ;;  %v5502_v58 = vunpack.i.h.bf16 %v5499_v59 }
 0x32e   : > { %v5431_v12 = vmax.f32 %v5429_v14, %v5430_v4  ;;  %v5444_v7 = vmax.f32 %v5442_v36, %v5443_v32  ;;  %v5456_v41 = vrot.slane %v5455_v39, 1  ;;  %v5492_v6 = vmax.f32 %v5490_v21, %v5491_v47 }
 0x32f   : > { %v5419_v3 = vpack.i.bf16 %v5418_v48, %v5418_v48  ;;  %v5469_v19 = vrot.slane %v5468_v38, 1  ;;  %v5480_v30 = vrot.slane %v5479_v5, 2  ;;  %v5503_v33 = vmax.f32 %v5501_v10, %v5502_v58 }
 0x330   : > { %v5432_v11 = vpack.i.bf16 %v5431_v12, %v5431_v12  ;;  %v5445_v57 = vpack.i.bf16 %v5444_v7, %v5444_v7  ;;  %v5457_v37 = vmax.f32 %v5455_v39, %v5456_v41  ;;  %v5493_v43 = vrot.slane %v5492_v6, 2 }
 0x331   : > { %v5470_v35 = vmax.f32 %v5468_v38, %v5469_v19  ;;  %v5481_v31 = vmax.f32 %v5479_v5, %v5480_v30  ;;  %v5504_v2 = vrot.slane %v5503_v33, 4  ;;  %v6147_v13 = vcombine.low %v5419_v3, %v5419_v3 }
 0x332   : > { %v5458_v49 = vpack.i.bf16 %v5457_v37, %v5457_v37  ;;  %v5494_v53 = vmax.f32 %v5492_v6, %v5493_v43  ;;  %v6148_v40 = vcombine.low %v5432_v11, %v5432_v11  ;;  %v6149_v15 = vcombine.low %v5445_v57, %v5445_v57 }
 0x333   : > { %v5471_v54 = vpack.i.bf16 %v5470_v35, %v5470_v35  ;;  %v5482_v22 = vrot.slane %v5481_v31, 1  ;;  %v5505_v52 = vmax.f32 %v5503_v33, %v5504_v2  ;;  %v5759_v56 = vunpack.c.l.b16 %v6147_v13 }
 0x334   : > { %v5495_v28 = vrot.slane %v5494_v53, 1  ;;  %v6150_v60 = vcombine.low %v5458_v49, %v5458_v49  ;;  %v5760_v8 = vunpack.c.l.b16 %v6148_v40  ;;  %v5761_v25 = vunpack.c.l.b16 %v6149_v15 }
 0x335   : > { %v5483_v16 = vmax.f32 %v5481_v31, %v5482_v22  ;;  %v5506_v0 = vrot.slane %v5505_v52, 2  ;;  %v6151_v27 = vcombine.low %v5471_v54, %v5471_v54 }
 0x336   : > { %v5496_v45 = vmax.f32 %v5494_v53, %v5495_v28  ;;  %v5762_v34 = vunpack.c.l.b16 %v6150_v60  ;;  %v5823_v1 = vsel %vm5767_vm15, %v5760_v8, %v5759_v56 }
 0x337   : > { %v5484_v61 = vpack.i.bf16 %v5483_v16, %v5483_v16  ;;  %v5507_v17 = vmax.f32 %v5505_v52, %v5506_v0  ;;  %v5824_v23 = vsel %vm5769_vm0, %v5761_v25, %v5823_v1  ;;  %v5763_v44 = vunpack.c.l.b16 %v6151_v27 }
 0x338   : > { %v5497_v20 = vpack.i.bf16 %v5496_v45, %v5496_v45  ;;  %v5825_v62 = vsel %vm5771_vm1, %v5762_v34, %v5824_v23 }
 0x339   : > { %v5508_v24 = vrot.slane %v5507_v17, 1  ;;  %v6152_v18 = vcombine.low %v5484_v61, %v5484_v61  ;;  %v5826_v9 = vsel %vm5773_vm2, %v5763_v44, %v5825_v62 }
 0x33a   : > { %v6153_v29 = vcombine.low %v5497_v20, %v5497_v20 }
 0x33b   : > { %v5509_v26 = vmax.f32 %v5507_v17, %v5508_v24  ;;  %v5764_v42 = vunpack.c.l.b16 %v6152_v18 }
 0x33c   : > { %v5765_v14 = vunpack.c.l.b16 %v6153_v29 }
 0x33d   : > { %v5510_v51 = vpack.i.bf16 %v5509_v26, %v5509_v26  ;;  %v5827_v59 = vsel %vm5775_vm3, %v5764_v42, %v5826_v9 }
 0x33e   : > { %v5828_v50 = vsel %vm5777_vm4, %v5765_v14, %v5827_v59 }
 0x33f   : > { %v6154_v36 = vcombine.low %v5510_v51, %v5510_v51 }
 0x341   : > { %v5766_v21 = vunpack.c.l.b16 %v6154_v36 }
 0x343   : > { %v5829_v46 = vsel %vm5779_vm5, %v5766_v21, %v5828_v50 }
 0x344   : > { %v5837_v55 = vpack.c.b16 %v5829_v46, %v5829_v46 }
 0x346   : > { %5853 = vst [vmem:[%s7744_s23 + $0x1c] sm:$0xf] %v5837_v55 }
 0x347 PF: > { %s15_s20 = sadd.s32 1, %s6487_s20   ;;  %s8163_s18 = smov %s6483_s19 }
 0x348   : > { %p12_p5 = scmp.ge.s32.totalorder %s15_s20, 4   ;;  %s8164_s19 = smov %s8166_s1 }
 0x34a   :  { %14 = sbr.rel (!%p12_p5) target bundleno = 2 (0x2), region = 96 }

</bundles_post_ra>
